<compile_context>
chip_gen: v7x
topology: tpu7x:2x2x1
jax: 0.10.0
libtpu: 0.0.40
codegen_flags: <defaults>
</compile_context>

<pallas_src>
import functools

import jax
import jax.numpy as jnp
from jax.experimental import pallas as pl
from jax.experimental.pallas import tpu as pltpu


_SQRT_HALF = 0.7071067811865476


# ----------------------------- in-kernel helpers ---------------------------- #

def _erf_f32(x):
    # Abramowitz & Stegun 7.1.26 rational approximation (|err| <= ~1.5e-7 in exact arith).
    # The divide is replaced by an approximate EUP reciprocal (moves work off the VALU).
    a1, a2, a3, a4, a5 = 0.254829592, -0.284496736, 1.421413741, -1.453152027, 1.061405429
    p = 0.3275911
    ax = jnp.abs(x)
    t = pl.reciprocal(1.0 + p * ax, approx=True)
    poly = ((((a5 * t + a4) * t + a3) * t + a2) * t + a1) * t
    y = 1.0 - poly * jnp.exp(-ax * ax)
    return jnp.where(x >= 0.0, y, -y)


def _gelu_exact(x):
    # matches torch.nn.GELU() default (erf-based, non-approximate)
    return 0.5 * x * (1.0 + _erf_f32(x * _SQRT_HALF))


def _ln(x, g, b, eps):
    mean = jnp.mean(x, axis=-1, keepdims=True)
    xc = x - mean
    var = jnp.mean(xc * xc, axis=-1, keepdims=True)
    return xc * jax.lax.rsqrt(var + eps) * g + b


# ----------------------------- Pallas kernels ------------------------------- #

def _head_kernel(x_ref, r_ref,
                 gx_ref, bx_ref, gr_ref, br_ref,
                 wd_ref, bd_ref, wcx_ref, wcr_ref, bc_ref, go_ref, bo_ref,
                 cat_ref, catn_ref, cls_ref, *, eps):
    # x_ref, r_ref: (tm, c); wd_ref: (c, d2) bf16; wcx/wcr_ref: (d2, ncp) bf16.
    f32 = jnp.float32
    cdt = wd_ref.dtype                      # MXU operand dtype (bf16)
    tm = x_ref.shape[0]
    c = x_ref.shape[1]
    d2 = wd_ref.shape[1]

    xl = _ln(x_ref[...].astype(f32), gx_ref[...].astype(f32), bx_ref[...].astype(f32), eps)
    rl = _ln(r_ref[...].astype(f32), gr_ref[...].astype(f32), br_ref[...].astype(f32), eps)

    # One down-projection matmul over a row-stacked (2*tm, c) operand (sublane concat is
    # cheap); halves the number of MXU pushes for the lane-thin N = dim//2 projection.
    stacked = jnp.concatenate([xl, rl], axis=0).astype(cdt)            # (2*tm, c)
    hidden = jnp.dot(stacked, wd_ref[...], preferred_element_type=f32)
    hidden = _gelu_exact(hidden + bd_ref[...].astype(f32))             # (2*tm, d2) f32
    xd = hidden[:tm]
    rd = hidden[tm:]

    # cls = [xd | rd] @ Wc  without materialising the lane concat; Wc is 128-lane padded.
    cls = (jnp.dot(xd.astype(cdt), wcx_ref[...], preferred_element_type=f32)
           + jnp.dot(rd.astype(cdt), wcr_ref[...], preferred_element_type=f32)
           + bc_ref[...].astype(f32))
    cls_ref[...] = cls.astype(cls_ref.dtype)

    # out_norm statistics assembled from the two halves.
    inv_c = 1.0 / c
    mean = (jnp.sum(xd, axis=-1, keepdims=True)
            + jnp.sum(rd, axis=-1, keepdims=True)) * inv_c
    xc = xd - mean
    rc = rd - mean
    var = (jnp.sum(xc * xc, axis=-1, keepdims=True)
           + jnp.sum(rc * rc, axis=-1, keepdims=True)) * inv_c
    rstd = jax.lax.rsqrt(var + eps)
    go = go_ref[...].astype(f32)
    bo = bo_ref[...].astype(f32)

    if d2 % 128 == 0:
        # Lane-aligned halves (production widths): write each half straight into its
        # lane slice — no concat, no retiling copy.
        cat_ref[:, :d2] = xd.astype(cat_ref.dtype)
        cat_ref[:, d2:] = rd.astype(cat_ref.dtype)
        catn_ref[:, :d2] = (xc * rstd * go[:, :d2] + bo[:, :d2]).astype(catn_ref.dtype)
        catn_ref[:, d2:] = (rc * rstd * go[:, d2:] + bo[:, d2:]).astype(catn_ref.dtype)
    else:
        # Sub-128-lane halves (small test widths): one lane concat + full-width store
        # lowers more robustly than offset sub-tile stores.
        cat = jnp.concatenate([xd, rd], axis=-1)                       # (tm, c) f32
        cat_ref[...] = cat.astype(cat_ref.dtype)
        catn_ref[...] = ((cat - mean) * rstd * go + bo).astype(catn_ref.dtype)


def _conv_taps_kernel(t_ref, w_ref, b_ref, o_ref, acc_ref, *, apply_gelu):
    # t_ref: (tm, tk) im2col taps (taps collapsed into K); w_ref: (tk, Cout); K-tiled grid.
    k = pl.program_id(1)

    @pl.when(k == 0)
    def _():
        acc_ref[...] = jnp.zeros_like(acc_ref)

    acc_ref[...] += jnp.dot(t_ref[...], w_ref[...], preferred_element_type=jnp.float32)

    @pl.when(k == pl.num_programs(1) - 1)
    def _():
        acc = acc_ref[...] + b_ref[...].astype(jnp.float32)
        if apply_gelu:
            acc = _gelu_exact(acc)
        o_ref[...] = acc.astype(o_ref.dtype)


# ------------------------------ tiling helpers ------------------------------- #

def _pick_tile(m, target, *, mult=8, min_steps=1):
    """Largest multiple-of-`mult` divisor of m that is <= target, preferring at least
    `min_steps` grid steps (so v7x megacore gets >= 2 parallel steps)."""
    cap = min(target, m if min_steps <= 1 else max(mult, m // min_steps))
    t = cap - cap % mult
    while t >= mult:
        if m % t == 0:
            return t
        t -= mult
    # Fallback: full dim (guarded by the explicit vmem_limit set by callers).
    return m


def _pick_k_tile(k, target):
    """Largest multiple-of-128 divisor of k <= target; fall back to the full K."""
    t = min(target, k)
    t -= t % 128
    while t >= 128:
        if k % t == 0:
            return t
        t -= 128
    return k


def _vmem_limit(nbytes):
    # Explicit scoped-VMEM request (v5e default is only 16 MiB); cap at v7x physical 64 MiB.
    return int(min(64 * 1024 * 1024, max(32 * 1024 * 1024, 2 * nbytes)))


# ------------------------------ wrappers ------------------------------------ #

def fused_head(x, res, prep, *, eps=1e-5, tile_rows=512):
    """LN(x), LN(res) -> shared down Linear -> GELU -> {cat, out_norm(cat), cls(cat)} fused."""
    b, n, c = x.shape
    d2 = prep['down_w'].shape[1]
    ncp = prep['cls_w_x'].shape[1]                 # lane-padded class count (multiple of 128)
    M = b * n
    tm = _pick_tile(M, tile_rows, min_steps=2)
    grid = (M // tm,)
    cat_dtype = prep['down_w'].dtype               # bf16: halves HBM bytes for the conv re-read

    row = lambda shape: pl.BlockSpec(shape, lambda i: (i, 0))
    const = lambda shape: pl.BlockSpec(shape, lambda i: (0, 0))

    itm = x.dtype.itemsize
    wit = prep['down_w'].dtype.itemsize
    in_bytes = 2 * tm * c * itm
    out_bytes = tm * c * jnp.dtype(cat_dtype).itemsize + tm * c * itm + tm * ncp * itm
    param_bytes = (c * d2 + 2 * d2 * ncp) * wit + (d2 + ncp + 6 * c) * 4
    vmem = _vmem_limit(2 * (in_bytes + out_bytes) + param_bytes)

    flops = 2 * (2 * M) * c * d2 + 2 * M * c * ncp + 20 * M * c
    bytes_acc = in_bytes * (M // tm) + out_bytes * (M // tm) + param_bytes

    cat, catn, cls = pl.pallas_call(
        functools.partial(_head_kernel, eps=eps),
        out_shape=(jax.ShapeDtypeStruct((M, c), cat_dtype),    # raw cat (conv input, bf16)
                   jax.ShapeDtypeStruct((M, c), x.dtype),      # out_norm(cat)
                   jax.ShapeDtypeStruct((M, ncp), x.dtype)),   # cls(cat), lane-padded
        grid=grid,
        in_specs=[row((tm, c)), row((tm, c)),
                  const((1, c)), const((1, c)), const((1, c)), const((1, c)),
                  const((c, d2)), const((1, d2)),
                  const((d2, ncp)), const((d2, ncp)), const((1, ncp)),
                  const((1, c)), const((1, c))],
        out_specs=(row((tm, c)), row((tm, c)), row((tm, ncp))),
        compiler_params=pltpu.CompilerParams(
            dimension_semantics=("parallel",),
            vmem_limit_bytes=vmem),
        cost_estimate=pl.CostEstimate(flops=int(flops),
                                      transcendentals=int(4 * M * d2),
                                      bytes_accessed=int(bytes_acc)),
    )(x.reshape(M, c), res.reshape(M, c),
      prep['x_norm_g'], prep['x_norm_b'], prep['res_norm_g'], prep['res_norm_b'],
      prep['down_w'], prep['down_b'],
      prep['cls_w_x'], prep['cls_w_r'], prep['cls_b'],
      prep['out_norm_g'], prep['out_norm_b'])
    return cat, catn, cls


def conv3x3_s2_gelu(x_nhwc, w_flat, bias, *, out_dtype=None, tile_rows=512, tile_k=2304):
    """3x3 conv, stride=2, padding=1 as a K-collapsed im2col matmul + fused exact GELU.
    w_flat: (9*Cin, Cout) pre-transposed weights (see prepare_params)."""
    B, H, W, Cin = x_nhwc.shape
    K, Cout = w_flat.shape
    Ho = (H + 2 - 3) // 2 + 1
    Wo = (W + 2 - 3) // 2 + 1
    out_dtype = out_dtype if out_dtype is not None else x_nhwc.dtype

    # glue: zero pad + stride-2 tap extraction (stays in the compute dtype, e.g. bf16).
    # TODO(synk): at production sizes move the tap extraction in-kernel via halo/Element
    # BlockSpecs to remove the 2.25x HBM blow-up (matters most on bandwidth-poor v5e).
    xp = jnp.pad(x_nhwc, ((0, 0), (1, 1), (1, 1), (0, 0)))
    taps = [xp[:, ky:ky + 2 * (Ho - 1) + 1:2, kx:kx + 2 * (Wo - 1) + 1:2, :]
            for ky in range(3) for kx in range(3)]
    taps = jnp.concatenate(taps, axis=-1).reshape(B * Ho * Wo, K)      # (M, 9*Cin)

    M = B * Ho * Wo
    tm = _pick_tile(M, tile_rows, min_steps=2)
    tk = _pick_k_tile(K, tile_k)
    grid = (M // tm, K // tk)

    tit = taps.dtype.itemsize
    wit = w_flat.dtype.itemsize
    oit = jnp.dtype(out_dtype).itemsize
    vmem = _vmem_limit(2 * (tm * tk * tit + tk * Cout * wit + tm * Cout * oit)
                       + tm * Cout * 4 + Cout * 4)

    out = pl.pallas_call(
        functools.partial(_conv_taps_kernel, apply_gelu=True),
        out_shape=jax.ShapeDtypeStruct((M, Cout), out_dtype),
        grid=grid,
        in_specs=[pl.BlockSpec((tm, tk), lambda i, k: (i, k)),
                  pl.BlockSpec((tk, Cout), lambda i, k: (k, 0)),
                  pl.BlockSpec((1, Cout), lambda i, k: (0, 0))],
        out_specs=pl.BlockSpec((tm, Cout), lambda i, k: (i, 0)),
        scratch_shapes=[pltpu.VMEM((tm, Cout), jnp.float32)],
        compiler_params=pltpu.CompilerParams(
            dimension_semantics=("parallel", "arbitrary"),
            vmem_limit_bytes=vmem),
        cost_estimate=pl.CostEstimate(
            flops=int(2 * M * K * Cout),
            transcendentals=int(2 * M * Cout),
            bytes_accessed=int(M * K * tit + K * Cout * wit + M * Cout * oit)),
    )(taps, w_flat, bias)
    return out.reshape(B, Ho, Wo, Cout)


# ------------------------------ params --------------------------------------- #

def prepare_params(params, *, compute_dtype=jnp.bfloat16, lane_pad=128):
    """One-time parameter preprocessing (hoisted out of the forward):
    transpose + cast matmul weights to the MXU dtype, pad the cls path to a lane-dense
    width, reshape LN params / biases to (1, dim) rows."""
    dim = params['x_norm_g'].shape[0]
    d2 = params['down_w'].shape[0]
    nc = params['cls_w'].shape[0]
    ncp = ((nc + lane_pad - 1) // lane_pad) * lane_pad

    wc_t = params['cls_w'].T.astype(compute_dtype)                       # (dim, nc)
    wc_pad = jnp.zeros((dim, ncp), compute_dtype).at[:, :nc].set(wc_t)   # (dim, ncp)
    bc_pad = jnp.zeros((1, ncp), jnp.float32).at[0, :nc].set(params['cls_b'])

    return {
        'x_norm_g': params['x_norm_g'].reshape(1, dim),
        'x_norm_b': params['x_norm_b'].reshape(1, dim),
        'res_norm_g': params['res_norm_g'].reshape(1, dim),
        'res_norm_b': params['res_norm_b'].reshape(1, dim),
        'out_norm_g': params['out_norm_g'].reshape(1, dim),
        'out_norm_b': params['out_norm_b'].reshape(1, dim),
        'down_w': params['down_w'].T.astype(compute_dtype),              # (dim, d2)
        'down_b': params['down_b'].reshape(1, d2),
        'cls_w_x': wc_pad[:d2],                                          # (d2, ncp)
        'cls_w_r': wc_pad[d2:],                                          # (d2, ncp)
        'cls_b': bc_pad,                                                 # (1, ncp)
        'conv_w': jnp.transpose(params['res_w'], (2, 3, 1, 0))
                     .reshape(9 * dim, 2 * dim).astype(compute_dtype),   # (9*Cin, Cout)
        'conv_b': params['res_b'].reshape(1, 2 * dim),
    }


def init_params(key, dim, num_classes):
    ks = jax.random.split(key, 12)

    def lin(kw, kb, cout, cin):
        bound = 1.0 / (cin ** 0.5)
        return (jax.random.uniform(kw, (cout, cin), jnp.float32, -bound, bound),
                jax.random.uniform(kb, (cout,), jnp.float32, -bound, bound))

    def conv(kw, kb, cout, cin):
        bound = 1.0 / ((cin * 9) ** 0.5)
        return (jax.random.uniform(kw, (cout, cin, 3, 3), jnp.float32, -bound, bound),
                jax.random.uniform(kb, (cout,), jnp.float32, -bound, bound))

    p = {}
    p['down_w'], p['down_b'] = lin(ks[0], ks[1], dim // 2, dim)
    p['cls_w'], p['cls_b'] = lin(ks[2], ks[3], num_classes, dim)
    p['res_w'], p['res_b'] = conv(ks[4], ks[5], dim * 2, dim)
    for i, name in enumerate(('x_norm', 'res_norm', 'out_norm')):
        p[f'{name}_g'] = 1.0 + 0.1 * jax.random.normal(ks[6 + 2 * i], (dim,), jnp.float32)
        p[f'{name}_b'] = 0.1 * jax.random.normal(ks[7 + 2 * i], (dim,), jnp.float32)
    return p


# ------------------------------ NewSmall forward ----------------------------- #

def new_small_forward(prep, x, res, *, num_classes):
    assert x.shape == res.shape
    b, n, c = x.shape
    h = w = int(n ** 0.5)

    cat, catn, cls_pad = fused_head(x, res, prep)

    catted = catn.reshape(b, n, c)                                       # out_norm(catted)
    cls = cls_pad[:, :num_classes]                                       # drop lane padding
    cur_cls = jnp.transpose(cls.reshape(b, h, w, num_classes), (0, 3, 1, 2))

    conv_out = conv3x3_s2_gelu(cat.reshape(b, h, w, c),
                               prep['conv_w'], prep['conv_b'], out_dtype=x.dtype)
    ho, wo = conv_out.shape[1], conv_out.shape[2]
    res_out = conv_out.reshape(b, ho * wo, 2 * c)                        # (b, n/4, 2c)

    return catted, res_out, cur_cls, None


# ------------------------------ reference (pure JAX, f32) --------------------- #

def reference_forward(params, x, res):
    hi = jax.lax.Precision.HIGHEST

    def ln(z, g, b, eps=1e-5):
        m = jnp.mean(z, axis=-1, keepdims=True)
        v = jnp.mean((z - m) ** 2, axis=-1, keepdims=True)
        return (z - m) / jnp.sqrt(v + eps) * g + b

    bsz, n, c = x.shape
    h = w = int(n ** 0.5)
    xl = ln(x, params['x_norm_g'], params['x_norm_b']).reshape(bsz, h, w, c)
    rl = ln(res, params['res_norm_g'], params['res_norm_b']).reshape(bsz, h, w, c)
    wd_t = params['down_w'].T
    xd = jax.nn.gelu(jnp.einsum('bhwc,cd->bhwd', xl, wd_t, precision=hi) + params['down_b'],
                     approximate=False)
    rd = jax.nn.gelu(jnp.einsum('bhwc,cd->bhwd', rl, wd_t, precision=hi) + params['down_b'],
                     approximate=False)
    catted = jnp.concatenate([xd, rd], axis=-1)
    cur_cls = jnp.einsum('bhwc,cn->bhwn', catted, params['cls_w'].T, precision=hi) + params['cls_b']
    cat_nchw = jnp.transpose(catted, (0, 3, 1, 2))
    conv = jax.lax.conv_general_dilated(cat_nchw, params['res_w'], (2, 2), ((1, 1), (1, 1)),
                                        dimension_numbers=('NCHW', 'OIHW', 'NCHW'),
                                        precision=hi)
    conv = jax.nn.gelu(conv + params['res_b'][None, :, None, None], approximate=False)
    catted_seq = jnp.transpose(cat_nchw.reshape(bsz, c, -1), (0, 2, 1))
    res_seq = jnp.transpose(conv.reshape(bsz, conv.shape[1], -1), (0, 2, 1))
    cur_cls_out = jnp.transpose(cur_cls, (0, 3, 1, 2))
    catted_out = ln(catted_seq, params['out_norm_g'], params['out_norm_b'])
    return catted_out, res_seq, cur_cls_out, None


# ------------------------------ main ------------------------------------------ #

if __name__ == "__main__":
    key = jax.random.PRNGKey(0)
    k_x, k_res, k_p = jax.random.split(key, 3)

    b, dim, h, num_classes = 2, 64, 16, 10        # x, res -> (b, n, c) = (2, 256, 64)
    n = h * h
    x = jax.random.normal(k_x, (b, n, dim), jnp.float32)
    res = jax.random.normal(k_res, (b, n, dim), jnp.float32)
    params = init_params(k_p, dim, num_classes)

    # One-time weight preprocessing (transposes / bf16 casts / cls lane padding).
    prep = jax.block_until_ready(prepare_params(params))

    fwd = jax.jit(functools.partial(new_small_forward, num_classes=num_classes))
    outs = jax.block_until_ready(fwd(prep, x, res))

    refs = reference_forward(params, x, res)
    names = ("catted", "res", "cur_cls")
    for name, o, r in zip(names, outs[:3], refs[:3]):
        assert o.shape == r.shape, (name, o.shape, r.shape)
        err = float(jnp.max(jnp.abs(o - r)))
        # bf16 MXU operands (f32 accumulation / LN statistics) -> bf16-level tolerance.
        assert jnp.allclose(o, r, atol=3e-2, rtol=3e-2), (name, err)
    assert outs[3] is None

    print("KERNEL_OK")
</pallas_src>

<mosaic_0001>
module attributes {stable_mosaic.version = 11 : i64} {
  func.func @_head_kernel(%arg0: i32, %arg1: memref<256x64xf32, #tpu.memory_space<vmem>>, %arg2: memref<256x64xf32, #tpu.memory_space<vmem>>, %arg3: memref<1x64xf32, #tpu.memory_space<vmem>>, %arg4: memref<1x64xf32, #tpu.memory_space<vmem>>, %arg5: memref<1x64xf32, #tpu.memory_space<vmem>>, %arg6: memref<1x64xf32, #tpu.memory_space<vmem>>, %arg7: memref<64x32xbf16, #tpu.memory_space<vmem>>, %arg8: memref<1x32xf32, #tpu.memory_space<vmem>>, %arg9: memref<32x128xbf16, #tpu.memory_space<vmem>>, %arg10: memref<32x128xbf16, #tpu.memory_space<vmem>>, %arg11: memref<1x128xf32, #tpu.memory_space<vmem>>, %arg12: memref<1x64xf32, #tpu.memory_space<vmem>>, %arg13: memref<1x64xf32, #tpu.memory_space<vmem>>, %arg14: memref<256x64xbf16, #tpu.memory_space<vmem>>, %arg15: memref<256x64xf32, #tpu.memory_space<vmem>>, %arg16: memref<256x128xf32, #tpu.memory_space<vmem>>) attributes {dimension_semantics = [#tpu.dimension_semantics<parallel>], iteration_bounds = array<i64: 2>, scalar_prefetch = 0 : i64, scratch_operands = 0 : i64, tpu.core_type = #tpu.core_type<tc>, window_params = [{transform_indices = @transform_0, window_bounds = array<i64: 256, 64>}, {transform_indices = @transform_1, window_bounds = array<i64: 256, 64>}, {pipeline_mode = #tpu.pipeline_mode<synchronous>, transform_indices = @transform_2, window_bounds = array<i64: 1, 64>}, {pipeline_mode = #tpu.pipeline_mode<synchronous>, transform_indices = @transform_3, window_bounds = array<i64: 1, 64>}, {pipeline_mode = #tpu.pipeline_mode<synchronous>, transform_indices = @transform_4, window_bounds = array<i64: 1, 64>}, {pipeline_mode = #tpu.pipeline_mode<synchronous>, transform_indices = @transform_5, window_bounds = array<i64: 1, 64>}, {pipeline_mode = #tpu.pipeline_mode<synchronous>, transform_indices = @transform_6, window_bounds = array<i64: 64, 32>}, {pipeline_mode = #tpu.pipeline_mode<synchronous>, transform_indices = @transform_7, window_bounds = array<i64: 1, 32>}, {pipeline_mode = #tpu.pipeline_mode<synchronous>, transform_indices = @transform_8, window_bounds = array<i64: 32, 128>}, {pipeline_mode = #tpu.pipeline_mode<synchronous>, transform_indices = @transform_9, window_bounds = array<i64: 32, 128>}, {pipeline_mode = #tpu.pipeline_mode<synchronous>, transform_indices = @transform_10, window_bounds = array<i64: 1, 128>}, {pipeline_mode = #tpu.pipeline_mode<synchronous>, transform_indices = @transform_11, window_bounds = array<i64: 1, 64>}, {pipeline_mode = #tpu.pipeline_mode<synchronous>, transform_indices = @transform_12, window_bounds = array<i64: 1, 64>}, {transform_indices = @transform_13, window_bounds = array<i64: 256, 64>}, {transform_indices = @transform_14, window_bounds = array<i64: 256, 64>}, {transform_indices = @transform_15, window_bounds = array<i64: 256, 128>}]} {
    %c0 = arith.constant 0 : index
    %c0_0 = arith.constant 0 : index
    %0 = vector.load %arg1[%c0, %c0_0] : memref<256x64xf32, #tpu.memory_space<vmem>>, vector<256x64xf32>
    %c0_1 = arith.constant 0 : index
    %c0_2 = arith.constant 0 : index
    %1 = vector.load %arg3[%c0_1, %c0_2] : memref<1x64xf32, #tpu.memory_space<vmem>>, vector<1x64xf32>
    %c0_3 = arith.constant 0 : index
    %c0_4 = arith.constant 0 : index
    %2 = vector.load %arg4[%c0_3, %c0_4] : memref<1x64xf32, #tpu.memory_space<vmem>>, vector<1x64xf32>
    %cst = arith.constant dense<0.000000e+00> : vector<256xf32>
    %3 = vector.multi_reduction <add>, %0, %cst [1] : vector<256x64xf32> to vector<256xf32>
    %4 = vector.shape_cast %3 : vector<256xf32> to vector<256x1xf32>
    %cst_5 = arith.constant 6.400000e+01 : f32
    %5 = vector.broadcast %cst_5 : f32 to vector<256x1xf32>
    %6 = arith.divf %4, %5 : vector<256x1xf32>
    %7 = vector.broadcast %6 : vector<256x1xf32> to vector<256x64xf32>
    %8 = arith.subf %0, %7 : vector<256x64xf32>
    %9 = arith.mulf %8, %8 : vector<256x64xf32>
    %cst_6 = arith.constant dense<0.000000e+00> : vector<256xf32>
    %10 = vector.multi_reduction <add>, %9, %cst_6 [1] : vector<256x64xf32> to vector<256xf32>
    %11 = vector.shape_cast %10 : vector<256xf32> to vector<256x1xf32>
    %cst_7 = arith.constant 6.400000e+01 : f32
    %12 = vector.broadcast %cst_7 : f32 to vector<256x1xf32>
    %13 = arith.divf %11, %12 : vector<256x1xf32>
    %cst_8 = arith.constant 9.99999974E-6 : f32
    %14 = vector.broadcast %cst_8 : f32 to vector<256x1xf32>
    %15 = arith.addf %13, %14 : vector<256x1xf32>
    %16 = math.rsqrt %15 : vector<256x1xf32>
    %17 = vector.broadcast %16 : vector<256x1xf32> to vector<256x64xf32>
    %18 = arith.mulf %8, %17 : vector<256x64xf32>
    %19 = vector.broadcast %1 : vector<1x64xf32> to vector<256x64xf32>
    %20 = arith.mulf %18, %19 : vector<256x64xf32>
    %21 = vector.broadcast %2 : vector<1x64xf32> to vector<256x64xf32>
    %22 = arith.addf %20, %21 : vector<256x64xf32>
    %c0_9 = arith.constant 0 : index
    %c0_10 = arith.constant 0 : index
    %23 = vector.load %arg2[%c0_9, %c0_10] : memref<256x64xf32, #tpu.memory_space<vmem>>, vector<256x64xf32>
    %c0_11 = arith.constant 0 : index
    %c0_12 = arith.constant 0 : index
    %24 = vector.load %arg5[%c0_11, %c0_12] : memref<1x64xf32, #tpu.memory_space<vmem>>, vector<1x64xf32>
    %c0_13 = arith.constant 0 : index
    %c0_14 = arith.constant 0 : index
    %25 = vector.load %arg6[%c0_13, %c0_14] : memref<1x64xf32, #tpu.memory_space<vmem>>, vector<1x64xf32>
    %cst_15 = arith.constant dense<0.000000e+00> : vector<256xf32>
    %26 = vector.multi_reduction <add>, %23, %cst_15 [1] : vector<256x64xf32> to vector<256xf32>
    %27 = vector.shape_cast %26 : vector<256xf32> to vector<256x1xf32>
    %cst_16 = arith.constant 6.400000e+01 : f32
    %28 = vector.broadcast %cst_16 : f32 to vector<256x1xf32>
    %29 = arith.divf %27, %28 : vector<256x1xf32>
    %30 = vector.broadcast %29 : vector<256x1xf32> to vector<256x64xf32>
    %31 = arith.subf %23, %30 : vector<256x64xf32>
    %32 = arith.mulf %31, %31 : vector<256x64xf32>
    %cst_17 = arith.constant dense<0.000000e+00> : vector<256xf32>
    %33 = vector.multi_reduction <add>, %32, %cst_17 [1] : vector<256x64xf32> to vector<256xf32>
    %34 = vector.shape_cast %33 : vector<256xf32> to vector<256x1xf32>
    %cst_18 = arith.constant 6.400000e+01 : f32
    %35 = vector.broadcast %cst_18 : f32 to vector<256x1xf32>
    %36 = arith.divf %34, %35 : vector<256x1xf32>
    %cst_19 = arith.constant 9.99999974E-6 : f32
    %37 = vector.broadcast %cst_19 : f32 to vector<256x1xf32>
    %38 = arith.addf %36, %37 : vector<256x1xf32>
    %39 = math.rsqrt %38 : vector<256x1xf32>
    %40 = vector.broadcast %39 : vector<256x1xf32> to vector<256x64xf32>
    %41 = arith.mulf %31, %40 : vector<256x64xf32>
    %42 = vector.broadcast %24 : vector<1x64xf32> to vector<256x64xf32>
    %43 = arith.mulf %41, %42 : vector<256x64xf32>
    %44 = vector.broadcast %25 : vector<1x64xf32> to vector<256x64xf32>
    %45 = arith.addf %43, %44 : vector<256x64xf32>
    %46 = tpu.concatenate %22, %45 in 0 : vector<256x64xf32>, vector<256x64xf32> -> vector<512x64xf32>
    %47 = arith.truncf %46 : vector<512x64xf32> to vector<512x64xbf16>
    %c0_20 = arith.constant 0 : index
    %c0_21 = arith.constant 0 : index
    %48 = vector.load %arg7[%c0_20, %c0_21] : memref<64x32xbf16, #tpu.memory_space<vmem>>, vector<64x32xbf16>
    %cst_22 = arith.constant dense<0.000000e+00> : vector<512x32xf32>
    %49 = tpu.matmul %47, %48, %cst_22 {dimension_numbers = #tpu.dot_dimension_numbers<[1], [0], [0], [1], [0, 0, 1, 1], [], []>} : vector<512x64xbf16>, vector<64x32xbf16>, vector<512x32xf32> -> vector<512x32xf32>
    %c0_23 = arith.constant 0 : index
    %c0_24 = arith.constant 0 : index
    %50 = vector.load %arg8[%c0_23, %c0_24] : memref<1x32xf32, #tpu.memory_space<vmem>>, vector<1x32xf32>
    %51 = vector.broadcast %50 : vector<1x32xf32> to vector<512x32xf32>
    %52 = arith.addf %49, %51 : vector<512x32xf32>
    %cst_25 = arith.constant 5.000000e-01 : f32
    %53 = vector.broadcast %cst_25 : f32 to vector<512x32xf32>
    %54 = arith.mulf %53, %52 : vector<512x32xf32>
    %cst_26 = arith.constant 0.707106769 : f32
    %55 = vector.broadcast %cst_26 : f32 to vector<512x32xf32>
    %56 = arith.mulf %52, %55 : vector<512x32xf32>
    %57 = math.absf %56 : vector<512x32xf32>
    %cst_27 = arith.constant 0.327591091 : f32
    %58 = vector.broadcast %cst_27 : f32 to vector<512x32xf32>
    %59 = arith.mulf %58, %57 : vector<512x32xf32>
    %cst_28 = arith.constant 1.000000e+00 : f32
    %60 = vector.broadcast %cst_28 : f32 to vector<512x32xf32>
    %61 = arith.addf %60, %59 : vector<512x32xf32>
    %62 = tpu.reciprocal %61 {approx = true} : vector<512x32xf32> -> vector<512x32xf32>
    %cst_29 = arith.constant 1.06140542 : f32
    %63 = vector.broadcast %cst_29 : f32 to vector<512x32xf32>
    %64 = arith.mulf %63, %62 : vector<512x32xf32>
    %cst_30 = arith.constant -1.45315206 : f32
    %65 = vector.broadcast %cst_30 : f32 to vector<512x32xf32>
    %66 = arith.addf %64, %65 : vector<512x32xf32>
    %67 = arith.mulf %66, %62 : vector<512x32xf32>
    %cst_31 = arith.constant 1.42141378 : f32
    %68 = vector.broadcast %cst_31 : f32 to vector<512x32xf32>
    %69 = arith.addf %67, %68 : vector<512x32xf32>
    %70 = arith.mulf %69, %62 : vector<512x32xf32>
    %cst_32 = arith.constant -0.284496725 : f32
    %71 = vector.broadcast %cst_32 : f32 to vector<512x32xf32>
    %72 = arith.addf %70, %71 : vector<512x32xf32>
    %73 = arith.mulf %72, %62 : vector<512x32xf32>
    %cst_33 = arith.constant 0.254829586 : f32
    %74 = vector.broadcast %cst_33 : f32 to vector<512x32xf32>
    %75 = arith.addf %73, %74 : vector<512x32xf32>
    %76 = arith.mulf %75, %62 : vector<512x32xf32>
    %cst_34 = arith.constant 0.000000e+00 : f32
    %77 = vector.broadcast %cst_34 : f32 to vector<512x32xf32>
    %78 = arith.subf %77, %57 : vector<512x32xf32>
    %79 = arith.mulf %78, %57 : vector<512x32xf32>
    %80 = math.exp %79 : vector<512x32xf32>
    %81 = arith.mulf %76, %80 : vector<512x32xf32>
    %cst_35 = arith.constant 1.000000e+00 : f32
    %82 = vector.broadcast %cst_35 : f32 to vector<512x32xf32>
    %83 = arith.subf %82, %81 : vector<512x32xf32>
    %cst_36 = arith.constant 0.000000e+00 : f32
    %84 = vector.broadcast %cst_36 : f32 to vector<512x32xf32>
    %85 = arith.cmpf oge, %56, %84 : vector<512x32xf32>
    %cst_37 = arith.constant 0.000000e+00 : f32
    %86 = vector.broadcast %cst_37 : f32 to vector<512x32xf32>
    %87 = arith.subf %86, %83 : vector<512x32xf32>
    %88 = arith.select %85, %83, %87 : vector<512x32xi1>, vector<512x32xf32>
    %cst_38 = arith.constant 1.000000e+00 : f32
    %89 = vector.broadcast %cst_38 : f32 to vector<512x32xf32>
    %90 = arith.addf %89, %88 : vector<512x32xf32>
    %91 = arith.mulf %54, %90 : vector<512x32xf32>
    %92 = vector.extract_strided_slice %91 {offsets = [0, 0], sizes = [256, 32], strides = [1, 1]} : vector<512x32xf32> to vector<256x32xf32>
    %93 = vector.extract_strided_slice %91 {offsets = [256, 0], sizes = [256, 32], strides = [1, 1]} : vector<512x32xf32> to vector<256x32xf32>
    %94 = arith.truncf %92 : vector<256x32xf32> to vector<256x32xbf16>
    %c0_39 = arith.constant 0 : index
    %c0_40 = arith.constant 0 : index
    %95 = vector.load %arg9[%c0_39, %c0_40] : memref<32x128xbf16, #tpu.memory_space<vmem>>, vector<32x128xbf16>
    %cst_41 = arith.constant dense<0.000000e+00> : vector<256x128xf32>
    %96 = tpu.matmul %94, %95, %cst_41 {dimension_numbers = #tpu.dot_dimension_numbers<[1], [0], [0], [1], [0, 0, 1, 1], [], []>} : vector<256x32xbf16>, vector<32x128xbf16>, vector<256x128xf32> -> vector<256x128xf32>
    %97 = arith.truncf %93 : vector<256x32xf32> to vector<256x32xbf16>
    %c0_42 = arith.constant 0 : index
    %c0_43 = arith.constant 0 : index
    %98 = vector.load %arg10[%c0_42, %c0_43] : memref<32x128xbf16, #tpu.memory_space<vmem>>, vector<32x128xbf16>
    %cst_44 = arith.constant dense<0.000000e+00> : vector<256x128xf32>
    %99 = tpu.matmul %97, %98, %cst_44 {dimension_numbers = #tpu.dot_dimension_numbers<[1], [0], [0], [1], [0, 0, 1, 1], [], []>} : vector<256x32xbf16>, vector<32x128xbf16>, vector<256x128xf32> -> vector<256x128xf32>
    %100 = arith.addf %96, %99 : vector<256x128xf32>
    %c0_45 = arith.constant 0 : index
    %c0_46 = arith.constant 0 : index
    %101 = vector.load %arg11[%c0_45, %c0_46] : memref<1x128xf32, #tpu.memory_space<vmem>>, vector<1x128xf32>
    %102 = vector.broadcast %101 : vector<1x128xf32> to vector<256x128xf32>
    %103 = arith.addf %100, %102 : vector<256x128xf32>
    %c0_47 = arith.constant 0 : index
    %c0_48 = arith.constant 0 : index
    %104 = vector.load %arg16[%c0_47, %c0_48] : memref<256x128xf32, #tpu.memory_space<vmem>>, vector<256x128xf32>
    tpu.vector_store %arg16[%c0_47, %c0_48], %103 {strides = array<i32>} : memref<256x128xf32, #tpu.memory_space<vmem>>, vector<256x128xf32>,
    %cst_49 = arith.constant dense<0.000000e+00> : vector<256xf32>
    %105 = vector.multi_reduction <add>, %92, %cst_49 [1] : vector<256x32xf32> to vector<256xf32>
    %106 = vector.shape_cast %105 : vector<256xf32> to vector<256x1xf32>
    %cst_50 = arith.constant dense<0.000000e+00> : vector<256xf32>
    %107 = vector.multi_reduction <add>, %93, %cst_50 [1] : vector<256x32xf32> to vector<256xf32>
    %108 = vector.shape_cast %107 : vector<256xf32> to vector<256x1xf32>
    %109 = arith.addf %106, %108 : vector<256x1xf32>
    %cst_51 = arith.constant 1.562500e-02 : f32
    %110 = vector.broadcast %cst_51 : f32 to vector<256x1xf32>
    %111 = arith.mulf %109, %110 : vector<256x1xf32>
    %112 = vector.broadcast %111 : vector<256x1xf32> to vector<256x32xf32>
    %113 = arith.subf %92, %112 : vector<256x32xf32>
    %114 = vector.broadcast %111 : vector<256x1xf32> to vector<256x32xf32>
    %115 = arith.subf %93, %114 : vector<256x32xf32>
    %116 = arith.mulf %113, %113 : vector<256x32xf32>
    %cst_52 = arith.constant dense<0.000000e+00> : vector<256xf32>
    %117 = vector.multi_reduction <add>, %116, %cst_52 [1] : vector<256x32xf32> to vector<256xf32>
    %118 = vector.shape_cast %117 : vector<256xf32> to vector<256x1xf32>
    %119 = arith.mulf %115, %115 : vector<256x32xf32>
    %cst_53 = arith.constant dense<0.000000e+00> : vector<256xf32>
    %120 = vector.multi_reduction <add>, %119, %cst_53 [1] : vector<256x32xf32> to vector<256xf32>
    %121 = vector.shape_cast %120 : vector<256xf32> to vector<256x1xf32>
    %122 = arith.addf %118, %121 : vector<256x1xf32>
    %cst_54 = arith.constant 1.562500e-02 : f32
    %123 = vector.broadcast %cst_54 : f32 to vector<256x1xf32>
    %124 = arith.mulf %122, %123 : vector<256x1xf32>
    %cst_55 = arith.constant 9.99999974E-6 : f32
    %125 = vector.broadcast %cst_55 : f32 to vector<256x1xf32>
    %126 = arith.addf %124, %125 : vector<256x1xf32>
    %127 = math.rsqrt %126 : vector<256x1xf32>
    %c0_56 = arith.constant 0 : index
    %c0_57 = arith.constant 0 : index
    %128 = vector.load %arg12[%c0_56, %c0_57] : memref<1x64xf32, #tpu.memory_space<vmem>>, vector<1x64xf32>
    %c0_58 = arith.constant 0 : index
    %c0_59 = arith.constant 0 : index
    %129 = vector.load %arg13[%c0_58, %c0_59] : memref<1x64xf32, #tpu.memory_space<vmem>>, vector<1x64xf32>
    %130 = tpu.concatenate %92, %93 in 1 : vector<256x32xf32>, vector<256x32xf32> -> vector<256x64xf32>
    %131 = arith.truncf %130 : vector<256x64xf32> to vector<256x64xbf16>
    %c0_60 = arith.constant 0 : index
    %c0_61 = arith.constant 0 : index
    %132 = vector.load %arg14[%c0_60, %c0_61] : memref<256x64xbf16, #tpu.memory_space<vmem>>, vector<256x64xbf16>
    tpu.vector_store %arg14[%c0_60, %c0_61], %131 {strides = array<i32>} : memref<256x64xbf16, #tpu.memory_space<vmem>>, vector<256x64xbf16>,
    %133 = vector.broadcast %111 : vector<256x1xf32> to vector<256x64xf32>
    %134 = arith.subf %130, %133 : vector<256x64xf32>
    %135 = vector.broadcast %127 : vector<256x1xf32> to vector<256x64xf32>
    %136 = arith.mulf %134, %135 : vector<256x64xf32>
    %137 = vector.broadcast %128 : vector<1x64xf32> to vector<256x64xf32>
    %138 = arith.mulf %136, %137 : vector<256x64xf32>
    %139 = vector.broadcast %129 : vector<1x64xf32> to vector<256x64xf32>
    %140 = arith.addf %138, %139 : vector<256x64xf32>
    %c0_62 = arith.constant 0 : index
    %c0_63 = arith.constant 0 : index
    %141 = vector.load %arg15[%c0_62, %c0_63] : memref<256x64xf32, #tpu.memory_space<vmem>>, vector<256x64xf32>
    tpu.vector_store %arg15[%c0_62, %c0_63], %140 {strides = array<i32>} : memref<256x64xf32, #tpu.memory_space<vmem>>, vector<256x64xf32>,
    return
  }
  func.func @transform_0(%arg0: i32) -> (i32, i32) {
    %c0_i32 = arith.constant 0 : i32
    %c0_i32_0 = arith.constant 0 : i32
    return %arg0, %c0_i32 : i32, i32
  }
  func.func @transform_1(%arg0: i32) -> (i32, i32) {
    %c0_i32 = arith.constant 0 : i32
    %c0_i32_0 = arith.constant 0 : i32
    return %arg0, %c0_i32 : i32, i32
  }
  func.func @transform_2(%arg0: i32) -> (i32, i32) {
    %c0_i32 = arith.constant 0 : i32
    %c0_i32_0 = arith.constant 0 : i32
    %c0_i32_1 = arith.constant 0 : i32
    return %c0_i32, %c0_i32_0 : i32, i32
  }
  func.func @transform_3(%arg0: i32) -> (i32, i32) {
    %c0_i32 = arith.constant 0 : i32
    %c0_i32_0 = arith.constant 0 : i32
    %c0_i32_1 = arith.constant 0 : i32
    return %c0_i32, %c0_i32_0 : i32, i32
  }
  func.func @transform_4(%arg0: i32) -> (i32, i32) {
    %c0_i32 = arith.constant 0 : i32
    %c0_i32_0 = arith.constant 0 : i32
    %c0_i32_1 = arith.constant 0 : i32
    return %c0_i32, %c0_i32_0 : i32, i32
  }
  func.func @transform_5(%arg0: i32) -> (i32, i32) {
    %c0_i32 = arith.constant 0 : i32
    %c0_i32_0 = arith.constant 0 : i32
    %c0_i32_1 = arith.constant 0 : i32
    return %c0_i32, %c0_i32_0 : i32, i32
  }
  func.func @transform_6(%arg0: i32) -> (i32, i32) {
    %c0_i32 = arith.constant 0 : i32
    %c0_i32_0 = arith.constant 0 : i32
    %c0_i32_1 = arith.constant 0 : i32
    return %c0_i32, %c0_i32_0 : i32, i32
  }
  func.func @transform_7(%arg0: i32) -> (i32, i32) {
    %c0_i32 = arith.constant 0 : i32
    %c0_i32_0 = arith.constant 0 : i32
    %c0_i32_1 = arith.constant 0 : i32
    return %c0_i32, %c0_i32_0 : i32, i32
  }
  func.func @transform_8(%arg0: i32) -> (i32, i32) {
    %c0_i32 = arith.constant 0 : i32
    %c0_i32_0 = arith.constant 0 : i32
    %c0_i32_1 = arith.constant 0 : i32
    return %c0_i32, %c0_i32_0 : i32, i32
  }
  func.func @transform_9(%arg0: i32) -> (i32, i32) {
    %c0_i32 = arith.constant 0 : i32
    %c0_i32_0 = arith.constant 0 : i32
    %c0_i32_1 = arith.constant 0 : i32
    return %c0_i32, %c0_i32_0 : i32, i32
  }
  func.func @transform_10(%arg0: i32) -> (i32, i32) {
    %c0_i32 = arith.constant 0 : i32
    %c0_i32_0 = arith.constant 0 : i32
    %c0_i32_1 = arith.constant 0 : i32
    return %c0_i32, %c0_i32_0 : i32, i32
  }
  func.func @transform_11(%arg0: i32) -> (i32, i32) {
    %c0_i32 = arith.constant 0 : i32
    %c0_i32_0 = arith.constant 0 : i32
    %c0_i32_1 = arith.constant 0 : i32
    return %c0_i32, %c0_i32_0 : i32, i32
  }
  func.func @transform_12(%arg0: i32) -> (i32, i32) {
    %c0_i32 = arith.constant 0 : i32
    %c0_i32_0 = arith.constant 0 : i32
    %c0_i32_1 = arith.constant 0 : i32
    return %c0_i32, %c0_i32_0 : i32, i32
  }
  func.func @transform_13(%arg0: i32) -> (i32, i32) {
    %c0_i32 = arith.constant 0 : i32
    %c0_i32_0 = arith.constant 0 : i32
    return %arg0, %c0_i32 : i32, i32
  }
  func.func @transform_14(%arg0: i32) -> (i32, i32) {
    %c0_i32 = arith.constant 0 : i32
    %c0_i32_0 = arith.constant 0 : i32
    return %arg0, %c0_i32 : i32, i32
  }
  func.func @transform_15(%arg0: i32) -> (i32, i32) {
    %c0_i32 = arith.constant 0 : i32
    %c0_i32_0 = arith.constant 0 : i32
    return %arg0, %c0_i32 : i32, i32
  }
}

module attributes {stable_mosaic.version = 11 : i64} {
  func.func @_conv_taps_kernel(%arg0: i32, %arg1: i32, %arg2: memref<64x576xbf16, #tpu.memory_space<vmem>>, %arg3: memref<576x128xbf16, #tpu.memory_space<vmem>>, %arg4: memref<1x128xf32, #tpu.memory_space<vmem>>, %arg5: memref<64x128xf32, #tpu.memory_space<vmem>>, %arg6: memref<64x128xf32, #tpu.memory_space<vmem>>) attributes {dimension_semantics = [#tpu.dimension_semantics<parallel>, #tpu.dimension_semantics<arbitrary>], iteration_bounds = array<i64: 2, 1>, scalar_prefetch = 0 : i64, scratch_operands = 1 : i64, tpu.core_type = #tpu.core_type<tc>, window_params = [{transform_indices = @transform_0, window_bounds = array<i64: 64, 576>}, {transform_indices = @transform_1, window_bounds = array<i64: 576, 128>}, {pipeline_mode = #tpu.pipeline_mode<synchronous>, transform_indices = @transform_2, window_bounds = array<i64: 1, 128>}, {transform_indices = @transform_3, window_bounds = array<i64: 64, 128>}]} {
    %c0_i32 = arith.constant 0 : i32
    %0 = arith.cmpi eq, %arg1, %c0_i32 : i32
    %1 = arith.extui %0 : i1 to i32
    %c0_i32_0 = arith.constant 0 : i32
    %2 = arith.cmpi ne, %1, %c0_i32_0 : i32
    scf.if %2 {
      %cst_10 = arith.constant 0.000000e+00 : f32
      %12 = vector.broadcast %cst_10 : f32 to vector<64x128xf32>
      %c0_11 = arith.constant 0 : index
      %c0_12 = arith.constant 0 : index
      %13 = vector.load %arg6[%c0_11, %c0_12] : memref<64x128xf32, #tpu.memory_space<vmem>>, vector<64x128xf32>
      tpu.vector_store %arg6[%c0_11, %c0_12], %12 {strides = array<i32>} : memref<64x128xf32, #tpu.memory_space<vmem>>, vector<64x128xf32>,
    } else {
    }
    %c0 = arith.constant 0 : index
    %c0_1 = arith.constant 0 : index
    %3 = vector.load %arg6[%c0, %c0_1] : memref<64x128xf32, #tpu.memory_space<vmem>>, vector<64x128xf32>
    %c0_2 = arith.constant 0 : index
    %c0_3 = arith.constant 0 : index
    %4 = vector.load %arg2[%c0_2, %c0_3] : memref<64x576xbf16, #tpu.memory_space<vmem>>, vector<64x576xbf16>
    %c0_4 = arith.constant 0 : index
    %c0_5 = arith.constant 0 : index
    %5 = vector.load %arg3[%c0_4, %c0_5] : memref<576x128xbf16, #tpu.memory_space<vmem>>, vector<576x128xbf16>
    %cst = arith.constant dense<0.000000e+00> : vector<64x128xf32>
    %6 = tpu.matmul %4, %5, %cst {dimension_numbers = #tpu.dot_dimension_numbers<[1], [0], [0], [1], [0, 0, 1, 1], [], []>} : vector<64x576xbf16>, vector<576x128xbf16>, vector<64x128xf32> -> vector<64x128xf32>
    %7 = arith.addf %3, %6 : vector<64x128xf32>
    %c0_6 = arith.constant 0 : index
    %c0_7 = arith.constant 0 : index
    %8 = vector.load %arg6[%c0_6, %c0_7] : memref<64x128xf32, #tpu.memory_space<vmem>>, vector<64x128xf32>
    tpu.vector_store %arg6[%c0_6, %c0_7], %7 {strides = array<i32>} : memref<64x128xf32, #tpu.memory_space<vmem>>, vector<64x128xf32>,
    %c0_i32_8 = arith.constant 0 : i32
    %9 = arith.cmpi eq, %arg1, %c0_i32_8 : i32
    %10 = arith.extui %9 : i1 to i32
    %c0_i32_9 = arith.constant 0 : i32
    %11 = arith.cmpi ne, %10, %c0_i32_9 : i32
    scf.if %11 {
      %c0_10 = arith.constant 0 : index
      %c0_11 = arith.constant 0 : index
      %12 = vector.load %arg6[%c0_10, %c0_11] : memref<64x128xf32, #tpu.memory_space<vmem>>, vector<64x128xf32>
      %c0_12 = arith.constant 0 : index
      %c0_13 = arith.constant 0 : index
      %13 = vector.load %arg4[%c0_12, %c0_13] : memref<1x128xf32, #tpu.memory_space<vmem>>, vector<1x128xf32>
      %14 = vector.broadcast %13 : vector<1x128xf32> to vector<64x128xf32>
      %15 = arith.addf %12, %14 : vector<64x128xf32>
      %cst_14 = arith.constant 5.000000e-01 : f32
      %16 = vector.broadcast %cst_14 : f32 to vector<64x128xf32>
      %17 = arith.mulf %16, %15 : vector<64x128xf32>
      %cst_15 = arith.constant 0.707106769 : f32
      %18 = vector.broadcast %cst_15 : f32 to vector<64x128xf32>
      %19 = arith.mulf %15, %18 : vector<64x128xf32>
      %20 = math.absf %19 : vector<64x128xf32>
      %cst_16 = arith.constant 0.327591091 : f32
      %21 = vector.broadcast %cst_16 : f32 to vector<64x128xf32>
      %22 = arith.mulf %21, %20 : vector<64x128xf32>
      %cst_17 = arith.constant 1.000000e+00 : f32
      %23 = vector.broadcast %cst_17 : f32 to vector<64x128xf32>
      %24 = arith.addf %23, %22 : vector<64x128xf32>
      %25 = tpu.reciprocal %24 {approx = true} : vector<64x128xf32> -> vector<64x128xf32>
      %cst_18 = arith.constant 1.06140542 : f32
      %26 = vector.broadcast %cst_18 : f32 to vector<64x128xf32>
      %27 = arith.mulf %26, %25 : vector<64x128xf32>
      %cst_19 = arith.constant -1.45315206 : f32
      %28 = vector.broadcast %cst_19 : f32 to vector<64x128xf32>
      %29 = arith.addf %27, %28 : vector<64x128xf32>
      %30 = arith.mulf %29, %25 : vector<64x128xf32>
      %cst_20 = arith.constant 1.42141378 : f32
      %31 = vector.broadcast %cst_20 : f32 to vector<64x128xf32>
      %32 = arith.addf %30, %31 : vector<64x128xf32>
      %33 = arith.mulf %32, %25 : vector<64x128xf32>
      %cst_21 = arith.constant -0.284496725 : f32
      %34 = vector.broadcast %cst_21 : f32 to vector<64x128xf32>
      %35 = arith.addf %33, %34 : vector<64x128xf32>
      %36 = arith.mulf %35, %25 : vector<64x128xf32>
      %cst_22 = arith.constant 0.254829586 : f32
      %37 = vector.broadcast %cst_22 : f32 to vector<64x128xf32>
      %38 = arith.addf %36, %37 : vector<64x128xf32>
      %39 = arith.mulf %38, %25 : vector<64x128xf32>
      %cst_23 = arith.constant 0.000000e+00 : f32
      %40 = vector.broadcast %cst_23 : f32 to vector<64x128xf32>
      %41 = arith.subf %40, %20 : vector<64x128xf32>
      %42 = arith.mulf %41, %20 : vector<64x128xf32>
      %43 = math.exp %42 : vector<64x128xf32>
      %44 = arith.mulf %39, %43 : vector<64x128xf32>
      %cst_24 = arith.constant 1.000000e+00 : f32
      %45 = vector.broadcast %cst_24 : f32 to vector<64x128xf32>
      %46 = arith.subf %45, %44 : vector<64x128xf32>
      %cst_25 = arith.constant 0.000000e+00 : f32
      %47 = vector.broadcast %cst_25 : f32 to vector<64x128xf32>
      %48 = arith.cmpf oge, %19, %47 : vector<64x128xf32>
      %cst_26 = arith.constant 0.000000e+00 : f32
      %49 = vector.broadcast %cst_26 : f32 to vector<64x128xf32>
      %50 = arith.subf %49, %46 : vector<64x128xf32>
      %51 = arith.select %48, %46, %50 : vector<64x128xi1>, vector<64x128xf32>
      %cst_27 = arith.constant 1.000000e+00 : f32
      %52 = vector.broadcast %cst_27 : f32 to vector<64x128xf32>
      %53 = arith.addf %52, %51 : vector<64x128xf32>
      %54 = arith.mulf %17, %53 : vector<64x128xf32>
      %c0_28 = arith.constant 0 : index
      %c0_29 = arith.constant 0 : index
      %55 = vector.load %arg5[%c0_28, %c0_29] : memref<64x128xf32, #tpu.memory_space<vmem>>, vector<64x128xf32>
      tpu.vector_store %arg5[%c0_28, %c0_29], %54 {strides = array<i32>} : memref<64x128xf32, #tpu.memory_space<vmem>>, vector<64x128xf32>,
    } else {
    }
    return
  }
  func.func @transform_0(%arg0: i32, %arg1: i32) -> (i32, i32) {
    %c0_i32 = arith.constant 0 : i32
    return %arg0, %arg1 : i32, i32
  }
  func.func @transform_1(%arg0: i32, %arg1: i32) -> (i32, i32) {
    %c0_i32 = arith.constant 0 : i32
    %c0_i32_0 = arith.constant 0 : i32
    return %arg1, %c0_i32 : i32, i32
  }
  func.func @transform_2(%arg0: i32, %arg1: i32) -> (i32, i32) {
    %c0_i32 = arith.constant 0 : i32
    %c0_i32_0 = arith.constant 0 : i32
    %c0_i32_1 = arith.constant 0 : i32
    return %c0_i32, %c0_i32_0 : i32, i32
  }
  func.func @transform_3(%arg0: i32, %arg1: i32) -> (i32, i32) {
    %c0_i32 = arith.constant 0 : i32
    %c0_i32_0 = arith.constant 0 : i32
    return %arg0, %c0_i32 : i32, i32
  }
}

</mosaic_0001>

<bundles_post_ra>
// kernel: new_small_forward.3
= control target key start
LH: loop header
LB: loop body
LE: loop exit
PB: predicated region body
PF: predicated region fallthrough
CT: control target
= control target key end

     0   :  { %8 = vsyncpa [#allocation4], 0  ;;  %s2065_s0 = inlined_call_operand.vmem [shape: bf16[128,576], index: 0, kind: input, shape index: {}]   ;;  %s2066_s1 = inlined_call_operand.vmem [shape: bf16[576,128], index: 1, kind: input, shape index: {}]   ;;  %s2067_s2 = inlined_call_operand.vmem [shape: f32[1,128], index: 2, kind: input, shape index: {}]   ;;  %s2068_s3 = inlined_call_operand.hbm [shape: f32[128,128], index: 3, kind: output, shape index: {}]  }
   0x1   :  { %10 = vsyncpa [#allocation4 + $0x1], 0  ;;  %s1674_s12 = smov 0   ;;  %s1676_s13 = smov 0  }
   0x2   :  { %s1678_s14 = smov 0   ;;  %s1680_s15 = smov 0  }
   0x3   :  { %s1682_s16 = smov 0   ;;  %s1684_s17 = smov 0  }
   0x4 LB: > { %s1229_s18 = sadd.s32 4294967295, %s1649_s17   ;;  %s1230_s19 = sadd.s32 4294967294, %s1649_s17   ;;  %s1649_s17 = sphi %s1684_s17, %s16_s17   ;;  %s1645_s16 = sphi %s1682_s16, %s2075_s16   ;;  %s1641_s15 = sphi %s1680_s15, %s2074_s15   ;;  %s1637_s14 = sphi %s1678_s14, %s2073_s14   ;;  %s1633_s13 = sphi %s1676_s13, %s2072_s13   ;;  %s1629_s12 = sphi %s1674_s12, %s2071_s12  }
   0x5   : > { %s28_s20 = sadd.s32 1, %s1645_s16  ;;  %s110_s21 = sadd.s32 1, %s1637_s14 }
   0x6   : > { %p30_p0 = scmp.ge.s32.totalorder %s28_s20, 2  ;;  %p120_p1 = scmp.ne.s32.totalorder %s1637_s14, %s1633_s13 }
   0x7   : > { %p121_p2 = scmp.eq.s32.totalorder %s1229_s18, 1  ;;  %p126_p3 = scmp.ne.s32.totalorder %s1633_s13, %s1629_s12 }
   0x8   : > { %s2077_s20 = smov (%p30_p0, %s28_s20), 0  ;;  %p127_p5 = scmp.eq.s32.totalorder %s1230_s19, 1 }
   0x9   : > { %p1714_p4 = por %p121_p2, %p120_p1  ;;  %s107_s23 = ssub.s32 %s1645_s16, %s2077_s20 }
   0xa   : > { %p1234_p6 = scmp.ge.s32.totalorder %s1649_s17, 1  ;;  %p108_p7 = scmp.eq.s32.totalorder %s107_s23, 0 }
   0xb   : > { %p1721_p8 = por %p127_p5, %p126_p3  ;;  %p172_p9 = scmp.lt.s32.totalorder %s1649_s17, 3 }
   0xc   : > { %s1727_s25 = scalar_select %p108_p7, %s1637_s14, %s110_s21  }
   0xd   : > { %p173_p10 = pnand %p1234_p6, %p172_p9 }
   0xe   : > { %v1475_v0 = vld [vmem:[%s2066_s1 + $0x40] sm:$0xff] (!%p173_p10)   ;;  %v1479_v4 = vld [vmem:[%s2066_s1 + $0x48] sm:$0xff] (!%p173_p10)   ;;  %v1483_v8 = vld [vmem:[%s2066_s1 + $0x50] sm:$0xff] (!%p173_p10)   ;;  %s1236_s18 = sshll.u32 (!%p173_p10), %s1641_s15, 3  ;;  %vm658_vm0 = vcmask (!%p173_p10), 523264   ;;  %s1304_s21 = sshll.u32 (!%p173_p10), %s1641_s15, 10 }
   0xf   : > { %176 = sbr.rel (%p173_p10) target bundleno = 377 (0x179), region = 32  ;;  %v1476_v1 = vld [vmem:[%s2066_s1 + $0xc0] sm:$0xff] (!%p173_p10)   ;;  %1305 = vmatprep.subr.bf16.mxu0 (!%p173_p10), %v1475_v0  ;;  %v1480_v5 = vld [vmem:[%s2066_s1 + $0xc8] sm:$0xff] (!%p173_p10)   ;;  %v1484_v9 = vld [vmem:[%s2066_s1 + $0xd0] sm:$0xff] (!%p173_p10)   ;;  %p208_p11 = scmp.lt.s32.totalorder (!%p173_p10), %s1236_s18, 15 }
  0x10   : > { %v1477_v2 = vld [vmem:[%s2066_s1] sm:$0xff] (!%p173_p10)   ;;  %1345 = vmatprep.subr.bf16.mxu1 (!%p173_p10), %v1476_v1  ;;  %v1481_v6 = vld [vmem:[%s2066_s1 + $0x8] sm:$0xff] (!%p173_p10)   ;;  %v1485_v10 = vld [vmem:[%s2066_s1 + $0x10] sm:$0xff] (!%p173_p10)   ;;  %s2012_s28 = scalar_lea.hbm (!%p173_p10), %s2068_s3, %s1304_s21  ;;  %s1651_s30 = smov (!%p173_p10), [#allocation3]  }
  0x11   : > { %v1478_v3 = vld [vmem:[%s2066_s1 + $0x80] sm:$0xff] (!%p173_p10)   ;;  %1306 = vmatpush3.bf16.msra.mxu0 (!%p173_p10), %v1477_v2  ;;  %v1482_v7 = vld [vmem:[%s2066_s1 + $0x88] sm:$0xff] (!%p173_p10)   ;;  %v1486_v11 = vld [vmem:[%s2066_s1 + $0x90] sm:$0xff] (!%p173_p10)   ;;  %s1575_s4 = sshll.u32 (!%p173_p10), %s1651_s30, 4  ;;  %s1576_s4 = int_to_ptr.vmem [resolvable:$false] %s1575_s4 }
  0x12   : > { %1346 = vmatpush3.bf16.msra.mxu1 (!%p173_p10), %v1478_v3  ;;  %1307 = vmatprep.subr.bf16.mxu0 (!%p173_p10), %v1479_v4  ;;  %v1487_v12 = vld [vmem:[%s2066_s1 + $0x58] sm:$0xff] (!%p173_p10)   ;;  %v1491_v16 = vld [vmem:[%s2066_s1 + $0x60] sm:$0xff] (!%p173_p10)   ;;  %v1495_v20 = vld [vmem:[%s2066_s1 + $0x68] sm:$0xff] (!%p173_p10)   ;;  %s1577_s5 = scalar_lea.vmem (!%p173_p10), %s1576_s4, 2048 }
  0x13   : > { %1347 = vmatprep.subr.bf16.mxu1 (!%p173_p10), %v1480_v5  ;;  %v1488_v13 = vld [vmem:[%s2066_s1 + $0xd8] sm:$0xff] (!%p173_p10)   ;;  %v1492_v17 = vld [vmem:[%s2066_s1 + $0xe0] sm:$0xff] (!%p173_p10)   ;;  %v1496_v21 = vld [vmem:[%s2066_s1 + $0xe8] sm:$0xff] (!%p173_p10)  }
  0x14   : > { %v1489_v14 = vld [vmem:[%s2066_s1 + $0x18] sm:$0xff] (!%p173_p10)   ;;  %v1493_v18 = vld [vmem:[%s2066_s1 + $0x20] sm:$0xff] (!%p173_p10)   ;;  %v1497_v22 = vld [vmem:[%s2066_s1 + $0x28] sm:$0xff] (!%p173_p10)  }
  0x15   : > { %1308 = vmatpush3.bf16.msra.mxu0 (!%p173_p10), %v1481_v6  ;;  %v1490_v15 = vld [vmem:[%s2066_s1 + $0x98] sm:$0xff] (!%p173_p10)   ;;  %v1494_v19 = vld [vmem:[%s2066_s1 + $0xa0] sm:$0xff] (!%p173_p10)   ;;  %v1498_v23 = vld [vmem:[%s2066_s1 + $0xa8] sm:$0xff] (!%p173_p10)  }
  0x16   : > { %1348 = vmatpush3.bf16.msra.mxu1 %v1482_v7  ;;  %1309 = vmatprep.subr.bf16.mxu0 %v1483_v8  ;;  %s2079_s18 = smov (!%p208_p11, %s1236_s18), 15  ;;  %v1499_v24 = vld [vmem:[%s2066_s1 + $0x70] sm:$0xff]   ;;  %v1503_v28 = vld [vmem:[%s2066_s1 + $0x78] sm:$0xff]   ;;  %v1513_v36 = vld [vmem:[%s2066_s1 + $0x100] sm:$0xff]  }
  0x17   : > { %1349 = vmatprep.subr.bf16.mxu1 %v1484_v9  ;;  %v1500_v25 = vld [vmem:[%s2066_s1 + $0xf0] sm:$0xff]   ;;  %s1417_s29 = smul.u32 20, %s2079_s18  ;;  %v1504_v29 = vld [vmem:[%s2066_s1 + $0xf8] sm:$0xff]   ;;  %v1520_v39 = vld [vmem:[%s2066_s1 + $0x108] sm:$0xff]   ;;  %s203_s18 = sand.u32 1, %s1633_s13  }
  0x18   : > { %v1501_v26 = vld [vmem:[%s2066_s1 + $0x30] sm:$0xff]   ;;  %v1505_v30 = vld [vmem:[%s2066_s1 + $0x38] sm:$0xff]   ;;  %s1235_s11 = sshll.u32 %s203_s18, 6 }
  0x19   : > { %1310 = vmatpush3.bf16.msra.mxu0 %v1485_v10  ;;  %v1502_v27 = vld [vmem:[%s2066_s1 + $0xb0] sm:$0xff]   ;;  %s1823_s19 = scalar_lea.vmem %s2065_s0, %s1417_s29  ;;  %v1506_v31 = vld [vmem:[%s2066_s1 + $0xb8] sm:$0xff]   ;;  %s2019_s29 = scalar_lea.sflag [#allocation4], %s203_s18 }
  0x1a   : > { %1350 = vmatpush3.bf16.msra.mxu1 %v1486_v11  ;;  %1311 = vmatprep.subr.bf16.mxu0 %v1487_v12  ;;  %v1507_v32 = vld [vmem:[%s1823_s19] ss:$20 sps:$4 sm:$0xff]   ;;  %v1509_v33 = vld [vmem:[%s1823_s19 + $0x4] ss:$20 sps:$4 sm:$0xff]   ;;  %v1510_v34 = vld [vmem:[%s1823_s19 + $0x8] ss:$20 sps:$4 sm:$0xff]  }
  0x1b   : > { %1351 = vmatprep.subr.bf16.mxu1 %v1488_v13  ;;  %v1512_v35 = vld [vmem:[%s1823_s19 + $0xc] ss:$20 sps:$4 sm:$0xff]   ;;  %703 = vmatprep.mubr.bf16.mxu0 %v1509_v33  ;;  %v1516_v38 = vld [vmem:[%s1823_s19 + $0x34] ss:$20 sps:$4 sm:$0xff]   ;;  %v1519_v41 = vld [vmem:[%s1823_s19 + $0x30] ss:$20 sps:$4 sm:$0xff]  }
  0x1c   : > { %768 = vmatprep.mubr.bf16.mxu1 %v1512_v35  ;;  %v1514_v37 = vld [vmem:[%s1823_s19 + $0x2c] ss:$20 sps:$4 sm:$0xff]   ;;  %v1518_v40 = vld [vmem:[%s1823_s19 + $0x28] ss:$20 sps:$4 sm:$0xff]   ;;  %v1527_v44 = vld [vmem:[%s2066_s1 + $0x110] sm:$0xff]  }
  0x1d   : > { %1312 = vmatpush3.bf16.msra.mxu0 %v1489_v14  ;;  %v1521_v42 = vld [vmem:[%s1823_s19 + $0x54] ss:$20 sps:$4 sm:$0xff]   ;;  %v1523_v43 = vld [vmem:[%s1823_s19 + $0x5c] ss:$20 sps:$4 sm:$0xff]   ;;  %v1526_v47 = vld [vmem:[%s1823_s19 + $0x58] ss:$20 sps:$4 sm:$0xff]  }
  0x1e   : > { %1352 = vmatpush3.bf16.msra.mxu1 %v1490_v15  ;;  %1313 = vmatprep.subr.bf16.mxu0 %v1491_v16  ;;  %v1534_v45 = vld [vmem:[%s2066_s1 + $0x118] sm:$0xff]   ;;  %v1525_v46 = vld [vmem:[%s1823_s19 + $0x50] ss:$20 sps:$4 sm:$0xff]   ;;  %v1533_v51 = vld [vmem:[%s1823_s19 + $0x80] ss:$20 sps:$4 sm:$0xff]  }
  0x1f   : > { %1353 = vmatprep.subr.bf16.mxu1 %v1492_v17  ;;  %v1528_v48 = vld [vmem:[%s1823_s19 + $0x7c] ss:$20 sps:$4 sm:$0xff]   ;;  %v1530_v49 = vld [vmem:[%s1823_s19 + $0x84] ss:$20 sps:$4 sm:$0xff]   ;;  %v1536_v53 = vld [vmem:[%s1823_s19 + $0x60] ss:$20 sps:$4 sm:$0xff]  }
  0x20   : > { %v1532_v50 = vld [vmem:[%s1823_s19 + $0x78] ss:$20 sps:$4 sm:$0xff]   ;;  %v1535_v52 = vld [vmem:[%s1823_s19 + $0x10] ss:$20 sps:$4 sm:$0xff]   ;;  %v1538_v55 = vld [vmem:[%s1823_s19 + $0x88] ss:$20 sps:$4 sm:$0xff]  }
  0x21   : > { %1314 = vmatpush3.bf16.msra.mxu0 %v1493_v18  ;;  %v1537_v54 = vld [vmem:[%s1823_s19 + $0x38] ss:$20 sps:$4 sm:$0xff]   ;;  %s1981_s19 = scalar_lea.vmem [#allocation3], %s1235_s11 }
  0x22   : > { %1354 = vmatpush3.bf16.msra.mxu1 %v1494_v19  ;;  %1315 = vmatprep.subr.bf16.mxu0 %v1495_v20  ;;  %s1138_s23 = sshll.u32 %s1981_s19, 4  ;;  %s2014_s23 = int_to_ptr.vmem [resolvable:$true] %s1138_s23 }
  0x23   : > { %1355 = vmatprep.subr.bf16.mxu1 %v1496_v21  ;;  %s1571_s15 = scalar_lea.vmem %s2014_s23, 1024  ;;  %p1578_p1 = scmp.lt.s32.totalorder %s2014_s23, %s1576_s4 }
  0x24   : > { %p1572_p12 = scmp.ne.s32.totalorder %s2014_s23, %s1571_s15  ;;  %p1579_p2 = scmp.lt.s32.totalorder %s1577_s5, %s1571_s15 }
  0x25   : > { %1316 = vmatpush3.bf16.msra.mxu0 %v1497_v22 }
  0x26   : > { %1356 = vmatpush3.bf16.msra.mxu1 %v1498_v23  ;;  %1317 = vmatprep.subr.bf16.mxu0 %v1499_v24  ;;  %p1573_p13 = pnand %p1572_p12, %p1714_p4  ;;  %p1580_p3 = por %p1579_p2, %p1578_p1 }
  0x27   : > { %1357 = vmatprep.subr.bf16.mxu1 %v1500_v25 }
  0x28   : > { %p1574_p0 = pneg %p1573_p13 }
  0x29   : > { %1318 = vmatpush3.bf16.msra.mxu0 %v1501_v26 }
  0x2a   : > { %1358 = vmatpush3.bf16.msra.mxu1 %v1502_v27  ;;  %1319 = vmatprep.subr.bf16.mxu0 %v1503_v28  ;;  %p1581_p5 = pnand %p1580_p3, %p1574_p0 }
  0x2b   : > { %1359 = vmatprep.subr.bf16.mxu1 %v1504_v29 }
  0x2d   : > { %1320 = vmatpush3.bf16.msra.mxu0 %v1505_v30 }
  0x2e   : > { %1360 = vmatpush3.bf16.msra.mxu1 %v1506_v31  ;;  %1393 = vmatprep.subr.bf16.mxu0 %v1513_v36 }
  0x2f   : > { %1409 = vmatprep.subr.bf16.mxu1 %v1513_v36 }
  0x30   : > { %704 = vmatmul.mubr.bf16.vlgmr.msra.gmra.mrb[0].mxu0 %v1507_v32 }
  0x31   : > { %769 = vmatmul.mubr.bf16.vlgmr.msra.gmra.mrb[0].mxu1 %v1510_v34  ;;  %1394 = vmatpush3.bf16.msra.mxu0 %v1513_v36 }
  0x32   : > { %1413 = vmatpush3.bf16.msra.mxu1 %v1513_v36  ;;  %711 = vmatprep.mubr.bf16.mxu0 %v1514_v37 }
  0x33   : > { %776 = vmatprep.mubr.bf16.mxu1 %v1516_v38  ;;  %1395 = vmatprep.subr.bf16.mxu0 %v1520_v39 }
  0x34   : > { %1410 = vmatprep.subr.bf16.mxu1 %v1520_v39 }
  0x35   : > { %1396 = vmatpush3.bf16.msra.mxu0 %v1520_v39 }
  0x36   : > { %1414 = vmatpush3.bf16.msra.mxu1 %v1520_v39  ;;  %1397 = vmatprep.subr.bf16.mxu0 %v1527_v44 }
  0x37   : > { %1411 = vmatprep.subr.bf16.mxu1 %v1527_v44 }
  0x38   : > { %712 = vmatmul.mubr.bf16.gmra.mrb[4].mxu0 %v1518_v40 }
  0x39   : > { %777 = vmatmul.mubr.bf16.gmra.mrb[4].mxu1 %v1519_v41  ;;  %719 = vmatprep.mubr.bf16.mxu0 %v1521_v42 }
  0x3a   : > { %784 = vmatprep.mubr.bf16.mxu1 %v1523_v43  ;;  %1398 = vmatpush3.bf16.msra.mxu0 %v1527_v44 }
  0x3b   : > { %1415 = vmatpush3.bf16.msra.mxu1 %v1527_v44  ;;  %1399 = vmatprep.subr.bf16.mxu0 %v1534_v45 }
  0x3c   : > { %1412 = vmatprep.subr.bf16.mxu1 %v1534_v45 }
  0x3e   : > { %1400 = vmatpush3.bf16.msra.mxu0 %v1534_v45 }
  0x3f   : > { %1416 = vmatpush3.bf16.msra.mxu1 %v1534_v45 }
  0x40   : > { %720 = vmatmul.mubr.bf16.gmra.mrb[8].mxu0 %v1525_v46 }
  0x41   : > { %785 = vmatmul.mubr.bf16.gmra.mrb[8].mxu1 %v1526_v47  ;;  %727 = vmatprep.mubr.bf16.mxu0 %v1528_v48 }
  0x42   : > { %792 = vmatprep.mubr.bf16.mxu1 %v1530_v49  ;;  %v1298_v49 = vld [vmem:[%s2067_s2] ss:$0 sm:$0xff] }
  0x48   : > { %728 = vmatmul.mubr.bf16.gmra.mrb[12].mxu0 %v1532_v50 }
  0x49   : > { %793 = vmatmul.mubr.bf16.gmra.mrb[12].mxu1 %v1533_v51  ;;  %1401 = vmatprep.mubr.msk.bf16.mxu0 %vm658_vm0, %v1535_v52 }
  0x4a   : > { %1405 = vmatprep.mubr.msk.bf16.mxu1 %vm658_vm0, %v1536_v53 }
  0x50   : > { %1402 = vmatmul.mubr.msk.bf16.vlgmr.msra.gmra.mrb[16].mxu0 %vm658_vm0, %v1537_v54 }
  0x51   : > { %1406 = vmatmul.mubr.msk.bf16.vlgmr.msra.gmra.mrb[16].mxu1 %vm658_vm0, %v1538_v55 }
 0x103   : > { %v1321_v56 = vpop.f32.mrb[0].mxu0 }
 0x104   : > { %v1361_v57 = vpop.f32.mrb[0].mxu1  ;;  %v1322_v58 = vpop.f32.mrb[1].mxu0 }
 0x105   : > { %v1323_v59 = vadd.f32 %v1322_v58, %v1321_v56  ;;  %v1362_v60 = vpop.f32.mrb[1].mxu1  ;;  %v1324_v61 = vpop.f32.mrb[2].mxu0 }
 0x106   : > { %v1363_v62 = vadd.f32 %v1362_v60, %v1361_v57  ;;  %v1364_v63 = vpop.f32.mrb[2].mxu1  ;;  %v1325_v0 = vpop.f32.mrb[3].mxu0 }
 0x107   : > { %v1326_v1 = vadd.f32 %v1325_v0, %v1324_v61  ;;  %v1365_v2 = vpop.f32.mrb[3].mxu1 }
 0x108   : > { %v1366_v3 = vadd.f32 %v1365_v2, %v1364_v63  ;;  %v771_v4 = vadd.f32 %v1363_v62, %v1323_v59 }
 0x10a   : > { %v774_v5 = vadd.f32 %v1366_v3, %v1326_v1 }
 0x10b   : > { %v1327_v6 = vpop.f32.mrb[4].mxu0 }
 0x10c   : > { %v1367_v7 = vpop.f32.mrb[4].mxu1  ;;  %v1328_v8 = vpop.f32.mrb[5].mxu0 }
 0x10d   : > { %v1329_v9 = vadd.f32 %v1328_v8, %v1327_v6  ;;  %v1368_v10 = vpop.f32.mrb[5].mxu1  ;;  %v1330_v11 = vpop.f32.mrb[6].mxu0 }
 0x10e   : > { %v1369_v12 = vadd.f32 %v1368_v10, %v1367_v7  ;;  %v1370_v13 = vpop.f32.mrb[6].mxu1  ;;  %v1331_v14 = vpop.f32.mrb[7].mxu0 }
 0x10f   : > { %v1332_v15 = vadd.f32 %v1331_v14, %v1330_v11  ;;  %v1371_v16 = vpop.f32.mrb[7].mxu1 }
 0x110   : > { %v1372_v17 = vadd.f32 %v1371_v16, %v1370_v13  ;;  %v779_v18 = vadd.f32 %v1369_v12, %v1329_v9 }
 0x112   : > { %v782_v19 = vadd.f32 %v1372_v17, %v1332_v15 }
 0x113   : > { %v1333_v20 = vpop.f32.mrb[8].mxu0 }
 0x114   : > { %v1373_v21 = vpop.f32.mrb[8].mxu1  ;;  %v1334_v22 = vpop.f32.mrb[9].mxu0 }
 0x115   : > { %v1335_v23 = vadd.f32 %v1334_v22, %v1333_v20  ;;  %v1374_v24 = vpop.f32.mrb[9].mxu1  ;;  %v1336_v25 = vpop.f32.mrb[10].mxu0 }
 0x116   : > { %v1375_v26 = vadd.f32 %v1374_v24, %v1373_v21  ;;  %v1376_v27 = vpop.f32.mrb[10].mxu1  ;;  %v1337_v28 = vpop.f32.mrb[11].mxu0 }
 0x117   : > { %v1338_v29 = vadd.f32 %v1337_v28, %v1336_v25  ;;  %v1377_v30 = vpop.f32.mrb[11].mxu1 }
 0x118   : > { %v1378_v31 = vadd.f32 %v1377_v30, %v1376_v27  ;;  %v787_v32 = vadd.f32 %v1375_v26, %v1335_v23 }
 0x11a   : > { %v790_v33 = vadd.f32 %v1378_v31, %v1338_v29 }
 0x11b   : > { %v1339_v34 = vpop.f32.mrb[12].mxu0 }
 0x11c   : > { %v1379_v35 = vpop.f32.mrb[12].mxu1  ;;  %v1340_v36 = vpop.f32.mrb[13].mxu0 }
 0x11d   : > { %v1341_v37 = vadd.f32 %v1340_v36, %v1339_v34  ;;  %v1380_v38 = vpop.f32.mrb[13].mxu1  ;;  %v1342_v39 = vpop.f32.mrb[14].mxu0 }
 0x11e   : > { %v1381_v40 = vadd.f32 %v1380_v38, %v1379_v35  ;;  %v1382_v41 = vpop.f32.mrb[14].mxu1  ;;  %v1343_v42 = vpop.f32.mrb[15].mxu0 }
 0x11f   : > { %v1344_v43 = vadd.f32 %v1343_v42, %v1342_v39  ;;  %v1383_v44 = vpop.f32.mrb[15].mxu1 }
 0x120   : > { %v1384_v45 = vadd.f32 %v1383_v44, %v1382_v41  ;;  %v795_v46 = vadd.f32 %v1381_v40, %v1341_v37 }
 0x122   : > { %v798_v47 = vadd.f32 %v1384_v45, %v1344_v43 }
 0x123   : > { %v1403_v48 = vpop.f32.mrb[16].mxu0 }
 0x124   : > { %v844_v50 = vadd.f32 %v1403_v48, %v779_v18  ;;  %v1407_v51 = vpop.f32.mrb[16].mxu1  ;;  %v835_v52 = vpop.f32.mrb[17].mxu0 }
 0x125   : > { %v860_v53 = vadd.f32 %v1407_v51, %v795_v46  ;;  %v836_v54 = vadd.f32 %v835_v52, %v771_v4  ;;  %v851_v55 = vpop.f32.mrb[17].mxu1  ;;  %v1404_v56 = vpop.f32.mrb[18].mxu0 }
 0x126   : > { %v902_v57 = vadd.f32 %v1298_v49, %v844_v50  ;;  %v852_v58 = vadd.f32 %v851_v55, %v787_v32  ;;  %v847_v59 = vadd.f32 %v1404_v56, %v782_v19  ;;  %v1408_v60 = vpop.f32.mrb[18].mxu1  ;;  %v838_v61 = vpop.f32.mrb[19].mxu0 }
 0x127   : > { %v906_v62 = vadd.f32 %v1298_v49, %v860_v53  ;;  %v1866_v63 = vadd.f32 %v1298_v49, %v836_v54  ;;  %v863_v0 = vadd.f32 %v1408_v60, %v798_v47  ;;  %v839_v1 = vadd.f32 %v838_v61, %v774_v5  ;;  %v854_v2 = vpop.f32.mrb[19].mxu1 }
 0x128   : > { %v1868_v3 = vmul.f32 0.70710677, %v902_v57  ;;  %v1870_v6 = vadd.f32 %v1298_v49, %v852_v58  ;;  %v1884_v17 = vadd.f32 %v1298_v49, %v847_v59  ;;  %v855_v26 = vadd.f32 %v854_v2, %v790_v33 }
 0x129   : > { %v1872_v7 = vmul.f32 0.70710677, %v906_v62  ;;  %v1875_v4 = vmul.f32 0.70710677, %v1866_v63  ;;  %v1889_v23 = vadd.f32 %v1298_v49, %v863_v0  ;;  %v1891_v25 = vadd.f32 %v1298_v49, %v839_v1 }
 0x12a   : > { %v926_v8 = vand.u32 2147483647, %v1868_v3  ;;  %v1879_v9 = vmul.f32 0.70710677, %v1870_v6  ;;  %v1887_v22 = vmul.f32 0.70710677, %v1884_v17  ;;  %v1900_v35 = vadd.f32 %v1298_v49, %v855_v26 }
 0x12b   : > { %v930_v10 = vand.u32 2147483647, %v1872_v7  ;;  %v924_v11 = vand.u32 2147483647, %v1875_v4  ;;  %v1895_v30 = vmul.f32 0.70710677, %v1889_v23 }
 0x12c   : > { %v934_v5 = vmul.f32 0.3275911, %v926_v8  ;;  %v928_v12 = vand.u32 2147483647, %v1879_v9  ;;  %v1030_v20 = vsub.f32 0.0, %v926_v8  ;;  %v1904_v38 = vmul.f32 0.5, %v902_v57 }
 0x12d   : > { %v938_v13 = vmul.f32 0.3275911, %v930_v10  ;;  %v932_v14 = vmul.f32 0.3275911, %v924_v11  ;;  %v1034_v24 = vsub.f32 0.0, %v930_v10  ;;  %v1028_v29 = vsub.f32 0.0, %v924_v11 }
 0x12e   : > { %v942_v15 = vadd.f32 1.0, %v934_v5  ;;  %v936_v16 = vmul.f32 0.3275911, %v928_v12  ;;  %v927_v27 = vand.u32 2147483647, %v1887_v22  ;;  %v1038_v28 = vmul.f32 %v1030_v20, %v926_v8 }
 0x12f   : > { %v946_v18 = vadd.f32 1.0, %v938_v13  ;;  %v940_v19 = vadd.f32 1.0, %v932_v14  ;;  %v1898_v31 = vmul.f32 0.70710677, %v1891_v25  ;;  %v1032_v32 = vsub.f32 0.0, %v928_v12 }
 0x130   : > { %1539 = vrcp.f32 %v942_v15  ;;  %v944_v21 = vadd.f32 1.0, %v936_v16  ;;  %v935_v34 = vmul.f32 0.3275911, %v927_v27  ;;  %v1042_v36 = vmul.f32 %v1034_v24, %v930_v10 }
 0x131   : > { %1541 = vrcp.f32 %v946_v18  ;;  %v931_v37 = vand.u32 2147483647, %v1895_v30  ;;  %v925_v33 = vand.u32 2147483647, %v1898_v31  ;;  %v1036_v40 = vmul.f32 %v1028_v29, %v924_v11 }
 0x132   : > { %1543 = vrcp.f32 %v940_v19  ;;  %v943_v39 = vadd.f32 1.0, %v935_v34  ;;  %v1031_v41 = vsub.f32 0.0, %v927_v27  ;;  %v1048_v45 = vmul.f32 1.442695, %v1038_v28 }
 0x133   : > { %1545 = vrcp.f32 %v944_v21  ;;  %v939_v42 = vmul.f32 0.3275911, %v931_v37  ;;  %v933_v43 = vmul.f32 0.3275911, %v925_v33  ;;  %v1040_v46 = vmul.f32 %v1032_v32, %v928_v12 }
 0x134   : > { %1547 = vrcp.f32 %v943_v39  ;;  %v1909_v47 = vmul.f32 0.70710677, %v1900_v35  ;;  %v1056_v50 = vmul.f32 1.442695, %v1042_v36  ;;  %v1914_v53 = vmul.f32 0.5, %v906_v62 }
 0x135   : > { %v947_v51 = vadd.f32 1.0, %v939_v42  ;;  %v941_v52 = vadd.f32 1.0, %v933_v43  ;;  %v1035_v55 = vsub.f32 0.0, %v931_v37  ;;  %v1044_v58 = vmul.f32 1.442695, %v1036_v40 }
 0x136   : > { %v929_v56 = vand.u32 2147483647, %v1909_v47  ;;  %v1039_v59 = vmul.f32 %v1031_v41, %v927_v27  ;;  %v1029_v0 = vsub.f32 0.0, %v925_v33  ;;  %v1052_v8 = vmul.f32 1.442695, %v1040_v46 }
 0x137   : > { %1549 = vrcp.f32 %v947_v51  ;;  %v1043_v5 = vmul.f32 %v1035_v55, %v931_v37  ;;  %v1934_v40 = vmul.f32 0.5, %v1866_v63  ;;  %vm1078_vm1 = vcmp.ge.f32.partialorder %v1868_v3, 0.0 }
 0x138   : > { %1551 = vrcp.f32 %v941_v52  ;;  %v937_v1 = vmul.f32 0.3275911, %v929_v56  ;;  %v1033_v13 = vsub.f32 0.0, %v929_v56  ;;  %v1050_v19 = vmul.f32 1.442695, %v1039_v59 }
 0x139   : > { %1553 = vpow2.f32 %v1048_v45  ;;  %v1037_v20 = vmul.f32 %v1029_v0, %v925_v33  ;;  %v1058_v29 = vmul.f32 1.442695, %v1043_v5  ;;  %vm1082_vm2 = vcmp.ge.f32.partialorder %v1872_v7, 0.0 }
 0x13a   : > { %v1906_v44 = vpop.eup %1539  ;;  %v945_v12 = vadd.f32 1.0, %v937_v1  ;;  %1555 = vpow2.f32 %v1056_v50  ;;  %v1041_v32 = vmul.f32 %v1033_v13, %v929_v56  ;;  %vm1076_vm3 = vcmp.ge.f32.partialorder %v1875_v4, 0.0 }
 0x13b   : > { %v1911_v48 = vpop.eup %1541  ;;  %v958_v49 = vmul.f32 1.0614054, %v1906_v44  ;;  %v1046_v41 = vmul.f32 1.442695, %v1037_v20  ;;  %vm1080_vm4 = vcmp.ge.f32.partialorder %v1879_v9, 0.0  ;;  %vm1079_vm5 = vcmp.ge.f32.partialorder %v1887_v22, 0.0 }
 0x13c   : > { %v962_v54 = vmul.f32 1.0614054, %v1911_v48  ;;  %v1918_v60 = vpop.eup %1543  ;;  %1557 = vrcp.f32 %v945_v12  ;;  %vm1083_vm6 = vcmp.ge.f32.partialorder %v1895_v30, 0.0  ;;  %vm1077_vm7 = vcmp.ge.f32.partialorder %v1898_v31, 0.0 }
 0x13d   : > { %v966_v57 = vadd.f32 -1.4531521, %v958_v49  ;;  %v956_v62 = vmul.f32 1.0614054, %v1918_v60  ;;  %v1922_v10 = vpop.eup %1545  ;;  %1559 = vpow2.f32 %v1044_v58  ;;  %vm1081_vm8 = vcmp.ge.f32.partialorder %v1909_v47, 0.0 }
 0x13e   : > { %v970_v61 = vadd.f32 -1.4531521, %v962_v54  ;;  %v960_v16 = vmul.f32 1.0614054, %v1922_v10  ;;  %v1928_v27 = vpop.eup %1547  ;;  %1561 = vpow2.f32 %v1052_v8  ;;  %v1054_v54 = vmul.f32 1.442695, %v1041_v32 }
 0x13f   : > { %v974_v2 = vmul.f32 %v1906_v44, %v966_v57  ;;  %v964_v15 = vadd.f32 -1.4531521, %v956_v62  ;;  %v959_v33 = vmul.f32 1.0614054, %v1928_v27  ;;  %1563 = vpow2.f32 %v1050_v19 }
 0x140   : > { %v978_v11 = vmul.f32 %v1911_v48, %v970_v61  ;;  %v968_v26 = vadd.f32 -1.4531521, %v960_v16  ;;  %1565 = vpow2.f32 %v1058_v29 }
 0x141   : > { %v982_v14 = vadd.f32 1.4214138, %v974_v2  ;;  %v972_v24 = vmul.f32 %v1918_v60, %v964_v15  ;;  %v1936_v42 = vpop.eup %1549  ;;  %v967_v49 = vadd.f32 -1.4531521, %v959_v33  ;;  %1567 = vpow2.f32 %v1046_v41 }
 0x142   : > { %v986_v18 = vadd.f32 1.4214138, %v978_v11  ;;  %v976_v37 = vmul.f32 %v1922_v10, %v968_v26  ;;  %v1940_v50 = vpop.eup %1551  ;;  %v963_v52 = vmul.f32 1.0614054, %v1936_v42  ;;  %1569 = vpow2.f32 %v1054_v54 }
 0x143   : > { %v990_v21 = vmul.f32 %v1906_v44, %v982_v14  ;;  %v980_v36 = vadd.f32 1.4214138, %v972_v24  ;;  %v1554_v63 = vpop.eup %1553  ;;  %v975_v58 = vmul.f32 %v1928_v27, %v967_v49  ;;  %v957_v0 = vmul.f32 1.0614054, %v1940_v50 }
 0x144   : > { %v994_v28 = vmul.f32 %v1911_v48, %v986_v18  ;;  %v984_v46 = vadd.f32 1.4214138, %v976_v37  ;;  %v971_v61 = vadd.f32 -1.4531521, %v963_v52  ;;  %v1556_v1 = vpop.eup %1555 }
 0x145   : > { %v998_v34 = vadd.f32 -0.28449672, %v990_v21  ;;  %v988_v45 = vmul.f32 %v1918_v60, %v980_v36  ;;  %v983_v11 = vadd.f32 1.4214138, %v975_v58  ;;  %v965_v14 = vadd.f32 -1.4531521, %v957_v0 }
 0x146   : > { %v1002_v39 = vadd.f32 -0.28449672, %v994_v28  ;;  %v992_v57 = vmul.f32 %v1922_v10, %v984_v46  ;;  %v1951_v5 = vpop.eup %1557  ;;  %v979_v13 = vmul.f32 %v1936_v42, %v971_v61 }
 0x147   : > { %v1006_v43 = vmul.f32 %v1906_v44, %v998_v34  ;;  %v996_v56 = vadd.f32 -0.28449672, %v988_v45  ;;  %v1560_v15 = vpop.eup %1559  ;;  %v991_v19 = vmul.f32 %v1928_v27, %v983_v11  ;;  %v973_v26 = vmul.f32 %v1940_v50, %v965_v14 }
 0x148   : > { %v1010_v51 = vmul.f32 %v1911_v48, %v1002_v39  ;;  %v1000_v8 = vadd.f32 -0.28449672, %v992_v57  ;;  %v1562_v20 = vpop.eup %1561  ;;  %v987_v24 = vadd.f32 1.4214138, %v979_v13 }
 0x149   : > { %v1014_v55 = vadd.f32 0.2548296, %v1006_v43  ;;  %v1004_v62 = vmul.f32 %v1918_v60, %v996_v56  ;;  %v999_v34 = vadd.f32 -0.28449672, %v991_v19  ;;  %v1564_v36 = vpop.eup %1563  ;;  %v981_v39 = vadd.f32 1.4214138, %v973_v26 }
 0x14a   : > { %v1018_v59 = vadd.f32 0.2548296, %v1010_v51  ;;  %v995_v33 = vmul.f32 %v1936_v42, %v987_v24  ;;  %v1566_v51 = vpop.eup %1565 }
 0x14b   : > { %v1022_v2 = vmul.f32 %v1906_v44, %v1014_v55  ;;  %v1012_v18 = vadd.f32 0.2548296, %v1004_v62  ;;  %v1008_v44 = vmul.f32 %v1922_v10, %v1000_v8  ;;  %v1007_v49 = vmul.f32 %v1928_v27, %v999_v34 }
 0x14c   : > { %v1026_v12 = vmul.f32 %v1911_v48, %v1018_v59  ;;  %v961_v48 = vmul.f32 1.0614054, %v1951_v5  ;;  %v1003_v52 = vadd.f32 -0.28449672, %v995_v33  ;;  %v989_v54 = vmul.f32 %v1940_v50, %v981_v39  ;;  %v1568_v59 = vpop.eup %1567 }
 0x14d   : > { %v1062_v16 = vmul.f32 %v1554_v63, %v1022_v2  ;;  %v1020_v29 = vmul.f32 %v1918_v60, %v1012_v18  ;;  %v1016_v32 = vadd.f32 0.2548296, %v1008_v44  ;;  %v1015_v58 = vadd.f32 0.2548296, %v1007_v49 }
 0x14e   : > { %v1066_v21 = vmul.f32 %v1556_v1, %v1026_v12  ;;  %v969_v41 = vadd.f32 -1.4531521, %v961_v48  ;;  %v1011_v0 = vmul.f32 %v1936_v42, %v1003_v52  ;;  %v997_v1 = vadd.f32 -0.28449672, %v989_v54  ;;  %v1570_v12 = vpop.eup %1569 }
 0x14f   : > { %v1070_v28 = vsub.f32 1.0, %v1062_v16  ;;  %v1060_v45 = vmul.f32 %v1560_v15, %v1020_v29  ;;  %v1024_v46 = vmul.f32 %v1922_v10, %v1016_v32  ;;  %v1023_v11 = vmul.f32 %v1928_v27, %v1015_v58 }
 0x150   : > { %v1074_v37 = vsub.f32 1.0, %v1066_v21  ;;  %v977_v63 = vmul.f32 %v1951_v5, %v969_v41  ;;  %v1019_v13 = vadd.f32 0.2548296, %v1011_v0  ;;  %v1005_v14 = vmul.f32 %v1940_v50, %v997_v1 }
 0x151   : > { %v1086_v43 = vsub.f32 0.0, %v1070_v28  ;;  %v1068_v56 = vsub.f32 1.0, %v1060_v45  ;;  %v1064_v57 = vmul.f32 %v1562_v20, %v1024_v46  ;;  %v1063_v44 = vmul.f32 %v1564_v36, %v1023_v11 }
 0x152   : > { %v1090_v60 = vsub.f32 0.0, %v1074_v37  ;;  %v985_v15 = vadd.f32 1.4214138, %v977_v63  ;;  %v1013_v19 = vadd.f32 0.2548296, %v1005_v14  ;;  %v915_v45 = vmul.f32 0.5, %v1889_v23 }
 0x153   : > { %v1094_v55 = vsel %vm1078_vm1, %v1070_v28, %v1086_v43  ;;  %v1084_v62 = vsub.f32 0.0, %v1068_v56  ;;  %v1072_v8 = vsub.f32 1.0, %v1064_v57  ;;  %v1071_v21 = vsub.f32 1.0, %v1063_v44 }
 0x154   : > { %v1102_v61 = vadd.f32 1.0, %v1094_v55  ;;  %v1098_v10 = vsel %vm1082_vm2, %v1074_v37, %v1090_v60  ;;  %v993_v20 = vmul.f32 %v1951_v5, %v985_v15  ;;  %v1021_v28 = vmul.f32 %v1940_v50, %v1013_v19 }
 0x155   : > { %v1106_v2 = vadd.f32 1.0, %v1098_v10  ;;  %v1092_v7 = vsel %vm1076_vm3, %v1068_v56, %v1084_v62  ;;  %v1088_v18 = vsub.f32 0.0, %v1072_v8  ;;  %v1087_v29 = vsub.f32 0.0, %v1071_v21 }
 0x156   : > { %v1110_v3 = vmul.f32 %v1102_v61, %v1904_v38  ;;  %v1100_v27 = vadd.f32 1.0, %v1092_v7  ;;  %v1027_v38 = vmul.f32 %v1936_v42, %v1019_v13  ;;  %v1001_v32 = vadd.f32 -0.28449672, %v993_v20 }
 0x157   : > { %v1114_v16 = vmul.f32 %v1106_v2, %v1914_v53  ;;  %v912_v53 = vmul.f32 0.5, %v1870_v6  ;;  %v1096_v4 = vsel %vm1080_vm4, %v1072_v8, %v1088_v18  ;;  %v1061_v36 = vmul.f32 %v1568_v59, %v1021_v28 }
 0x158   : > { %1118 = vst [vmem:[%s1981_s19 + $0x10] sm:$0xff] %v1110_v3  ;;  %v1108_v24 = vmul.f32 %v1100_v27, %v1934_v40  ;;  %v1104_v26 = vadd.f32 1.0, %v1096_v4  ;;  %v1067_v48 = vmul.f32 %v1566_v51, %v1027_v38  ;;  %v1095_v6 = vsel %vm1079_vm5, %v1071_v21, %v1087_v29 }
 0x159   : > { %1122 = vst [vmem:[%s1981_s19 + $0x30] sm:$0xff] %v1114_v16  ;;  %v1009_v9 = vmul.f32 %v1951_v5, %v1001_v32  ;;  %v911_v37 = vmul.f32 0.5, %v1884_v17  ;;  %v1103_v40 = vadd.f32 1.0, %v1095_v6  ;;  %v1069_v39 = vsub.f32 1.0, %v1061_v36 }
 0x15a   : > { %1116 = vst [vmem:[%s1981_s19] sm:$0xff] %v1108_v24  ;;  %v1112_v42 = vmul.f32 %v1104_v26, %v912_v53  ;;  %v1075_v34 = vsub.f32 1.0, %v1067_v48  ;;  %v909_v60 = vmul.f32 0.5, %v1891_v25 }
 0x15b   : > { %v1017_v50 = vadd.f32 0.2548296, %v1009_v9  ;;  %v1111_v41 = vmul.f32 %v1103_v40, %v911_v37  ;;  %v1085_v22 = vsub.f32 0.0, %v1069_v39 }
 0x15c   : > { %1120 = vst [vmem:[%s1981_s19 + $0x20] sm:$0xff] %v1112_v42  ;;  %v1091_v33 = vsub.f32 0.0, %v1075_v34 }
 0x15d   : > { %v1025_v17 = vmul.f32 %v1951_v5, %v1017_v50  ;;  %1119 = vst [vmem:[%s1981_s19 + $0x18] sm:$0xff] %v1111_v41  ;;  %v1093_v49 = vsel %vm1077_vm7, %v1069_v39, %v1085_v22  ;;  %v913_v5 = vmul.f32 0.5, %v1900_v35 }
 0x15e   : > { %v1099_v43 = vsel %vm1083_vm6, %v1075_v34, %v1091_v33  ;;  %v1101_v30 = vadd.f32 1.0, %v1093_v49 }
 0x15f   : > { %v1107_v46 = vadd.f32 1.0, %v1099_v43  ;;  %v1065_v52 = vmul.f32 %v1570_v12, %v1025_v17 }
 0x160   : > { %v1109_v54 = vmul.f32 %v1101_v30, %v909_v60 }
 0x161   : > { %v1115_v51 = vmul.f32 %v1107_v46, %v915_v45  ;;  %v1073_v63 = vsub.f32 1.0, %v1065_v52 }
 0x162   : > { %1117 = vst [vmem:[%s1981_s19 + $0x8] sm:$0xff] %v1109_v54 }
 0x163   : > { %1123 = vst [vmem:[%s1981_s19 + $0x38] sm:$0xff] %v1115_v51  ;;  %v1089_v23 = vsub.f32 0.0, %v1073_v63 }
 0x165   : > { %v1097_v31 = vsel %vm1081_vm8, %v1073_v63, %v1089_v23 }
 0x166   : > { %v1105_v55 = vadd.f32 1.0, %v1097_v31 }
 0x168   : > { %v1113_v25 = vmul.f32 %v1105_v55, %v913_v5 }
 0x16a   : > { %1121 = vst [vmem:[%s1981_s19 + $0x28] sm:$0xff] %v1113_v25 }
 0x16b   : > { %1584 = shalt.err (!%p1581_p5)
}
 0x16c   : > { %s1585_s6 = scalar_lea.hbm %s2012_s28, 1024  ;;  %s1589_s9 = scalar_lea.hbm %s2068_s3, 2048 }
 0x16d   : > { %p1586_p6 = scmp.ne.s32.totalorder %s2012_s28, %s1585_s6  ;;  %p1590_p10 = scmp.lt.u32.totalorder %s2012_s28, %s2068_s3 }
 0x16e   : > { %p1591_p11 = scmp.lt.u32.totalorder %s1589_s9, %s1585_s6  ;;  %p1593_p13 = scmp.lt.u32.totalorder %s1585_s6, %s2012_s28 }
 0x16f   : > { %p1587_p7 = pnand %p1586_p6, %p1714_p4 }
 0x170   : > { %p1592_p12 = por %p1591_p11, %p1590_p10 }
 0x171   : > { %p1588_p9 = pneg %p1587_p7 }
 0x172   : > { %p1594_p0 = por %p1593_p13, %p1592_p12 }
 0x174   : > { %p1595_p1 = pnand %p1594_p0, %p1588_p9 }
 0x176   : > { %1598 = shalt.err (!%p1595_p1)
}
 0x177   : > { %s1652_s11 = smov 128   ;;  %s1653_s19 = smov 8  }
 0x178   : > { %1418 = dma.vmem_to_hbm [thread:$0]  (%p1714_p4), %s2014_s23, 1024, %s2012_s28, %s2019_s29, %s1652_s11, %s1652_s11, %s1653_s19  }
 0x179 PF: > { %p1424_p2 = scmp.ge.s32.totalorder %s1649_s17, 2  ;;  %s1153_s21 = sand.u32 1, %s1629_s12  }
 0x17a   : > { %s1154_s26 = scalar_lea.sflag [#allocation4], %s1153_s21 }
 0x17b   : > { %p1421_p3 = pnand %p1424_p2, %p1721_p8 }
 0x17d   : > { %1624 = dma.done.wait (!%p1421_p3), %s1154_s26, 1024  }
 0x17e   : > { %1626 = vsyncadd (!%p1421_p3), %s1154_s26, 4294966272  ;;  %s16_s17 = sadd.s32 1, %s1649_s17   ;;  %s2071_s12 = smov %s1633_s13 }
 0x17f   : > { %p13_p5 = scmp.ge.s32.totalorder %s16_s17, 4   ;;  %s2072_s13 = smov %s1637_s14 }
 0x180   : > { %s2073_s14 = smov %s1727_s25  ;;  %s2074_s15 = smov %s1645_s16 }
 0x181   : > { %s2075_s16 = smov %s2077_s20  ;;  %15 = sbr.rel (!%p13_p5) target bundleno = 4 (0x4), region = 78 }
 0x188   :  { %1159 = vsyncpa [#allocation4], 1 }
 0x189   :  { %1161 = vsyncpa [#allocation4 + $0x1], 1 }

// kernel: new_small_forward.2
= control target key start
LH: loop header
LB: loop body
LE: loop exit
PB: predicated region body
PF: predicated region fallthrough
CT: control target
= control target key end

     0   :  { %s6577_s18 = smov 0   ;;  %s10864_s0 = inlined_call_operand.vmem [shape: f32[512,64], index: 0, kind: input, shape index: {}]   ;;  %s10865_s1 = inlined_call_operand.vmem [shape: f32[512,64], index: 1, kind: input, shape index: {}]   ;;  %s10866_s2 = inlined_call_operand.vmem [shape: f32[1,64], index: 2, kind: input, shape index: {}]   ;;  %s10867_s3 = inlined_call_operand.vmem [shape: f32[1,64], index: 3, kind: input, shape index: {}]   ;;  %s10868_s4 = inlined_call_operand.vmem [shape: f32[1,64], index: 4, kind: input, shape index: {}]   ;;  %s10869_s5 = inlined_call_operand.vmem [shape: f32[1,64], index: 5, kind: input, shape index: {}]   ;;  %s10870_s6 = inlined_call_operand.vmem [shape: bf16[64,32], index: 6, kind: input, shape index: {}]   ;;  %s10871_s7 = inlined_call_operand.vmem [shape: f32[1,32], index: 7, kind: input, shape index: {}]   ;;  %s10872_s8 = inlined_call_operand.vmem [shape: bf16[32,128], index: 8, kind: input, shape index: {}]   ;;  %s10873_s9 = inlined_call_operand.vmem [shape: bf16[32,128], index: 9, kind: input, shape index: {}]   ;;  %s10874_s10 = inlined_call_operand.vmem [shape: f32[1,128], index: 10, kind: input, shape index: {}]   ;;  %s10875_s11 = inlined_call_operand.vmem [shape: f32[1,64], index: 11, kind: input, shape index: {}]   ;;  %s10876_s12 = inlined_call_operand.vmem [shape: f32[1,64], index: 12, kind: input, shape index: {}]   ;;  %s10877_s13 = inlined_call_operand.vmem [shape: bf16[512,64], index: 13, kind: output, shape index: {0}]   ;;  %s10878_s14 = inlined_call_operand.vmem [shape: f32[512,64], index: 14, kind: output, shape index: {1}]   ;;  %s10879_s15 = inlined_call_operand.vmem [shape: f32[512,128], index: 15, kind: output, shape index: {2}]  }
   0x1 LB: > { %s5611_s19 = sadd.s32 4294967295, %s6494_s18   ;;  %p5615_p0 = scmp.ge.s32.totalorder %s6494_s18, 1  ;;  %s6494_s18 = sphi %s6577_s18, %s26_s18  }
   0x2   : > { %p454_p1 = scmp.lt.s32.totalorder %s6494_s18, 3 }
   0x4   : > { %p455_p2 = pnand %p5615_p0, %p454_p1 }
   0x6   : > { %458 = sbr.rel (%p455_p2) target bundleno = 2061 (0x80d), region = 72 }
   0xd   : > { %s5616_s20 = sshll.u32 %s5611_s19, 5  ;;  %vm582_vm0 = vcmask 523264   ;;  %vm3774_vm13 = vcmask 261120  }
   0xe   : > { %p518_p3 = scmp.lt.s32.totalorder %s5616_s20, 63 }
  0x10   : > { %s11555_s20 = smov (!%p518_p3, %s5616_s20), 63 }
  0x11   : > { %s6588_s21 = sshll.u32 %s11555_s20, 3  ;;  %s5621_s25 = sshll.u32 %s11555_s20, 2 }
  0x12   : > { %s6594_s24 = scalar_lea.vmem %s10864_s0, %s6588_s21  ;;  %s6756_s27 = scalar_lea.vmem %s10865_s1, %s6588_s21 }
  0x13   : > { %v6597_v0 = vld [vmem:[%s6594_s24] sm:$0xff]  ;;  %v6600_v1 = vld [vmem:[%s6594_s24 + $0x10] sm:$0xff]  ;;  %v6603_v2 = vld [vmem:[%s6594_s24 + $0x8] sm:$0xff]  ;;  %s9836_s28 = scalar_lea.vmem %s10877_s13, %s5621_s25  ;;  %s9980_s17 = scalar_lea.vmem %s10879_s15, %s6588_s21 }
  0x14   : > { %v583_v3 = vsel %vm582_vm0, %v6597_v0, 0.0  ;;  %v589_v4 = vsel %vm582_vm0, %v6600_v1, 0.0  ;;  %v6610_v5 = vld [vmem:[%s6594_s24 + $0x18] sm:$0xff]  ;;  %v586_v6 = vsel %vm582_vm0, %v6603_v2, 0.0  ;;  %v6617_v8 = vld [vmem:[%s6594_s24 + $0x20] sm:$0xff]  ;;  %v6620_v9 = vld [vmem:[%s6594_s24 + $0x28] sm:$0xff]  ;;  %s10620_s20 = scalar_lea.vmem %s10878_s14, %s6588_s21 }
  0x15   : > { %584 = vadd.xlane.f32.xlu0 %v583_v3  ;;  %590 = vadd.xlane.f32.xlu1 %v589_v4  ;;  %v592_v7 = vsel %vm582_vm0, %v6610_v5, 0.0  ;;  %v595_v10 = vsel %vm582_vm0, %v6617_v8, 0.0  ;;  %v598_v11 = vsel %vm582_vm0, %v6620_v9, 0.0  ;;  %v6627_v12 = vld [vmem:[%s6594_s24 + $0x30] sm:$0xff]  ;;  %v6630_v13 = vld [vmem:[%s6594_s24 + $0x38] sm:$0xff]  ;;  %v6637_v16 = vld [vmem:[%s6594_s24 + $0x40] sm:$0xff] }
  0x16   : > { %v601_v14 = vsel %vm582_vm0, %v6627_v12, 0.0  ;;  %v604_v15 = vsel %vm582_vm0, %v6630_v13, 0.0  ;;  %v6640_v17 = vld [vmem:[%s6594_s24 + $0x48] sm:$0xff]  ;;  %v607_v18 = vsel %vm582_vm0, %v6637_v16, 0.0  ;;  %v6647_v20 = vld [vmem:[%s6594_s24 + $0x50] sm:$0xff]  ;;  %v6650_v21 = vld [vmem:[%s6594_s24 + $0x58] sm:$0xff] }
  0x17   : > { %v610_v19 = vsel %vm582_vm0, %v6640_v17, 0.0  ;;  %v613_v22 = vsel %vm582_vm0, %v6647_v20, 0.0  ;;  %v616_v23 = vsel %vm582_vm0, %v6650_v21, 0.0  ;;  %v6657_v24 = vld [vmem:[%s6594_s24 + $0x60] sm:$0xff]  ;;  %v6660_v25 = vld [vmem:[%s6594_s24 + $0x68] sm:$0xff]  ;;  %v6667_v28 = vld [vmem:[%s6594_s24 + $0x70] sm:$0xff] }
  0x18   : > { %v619_v26 = vsel %vm582_vm0, %v6657_v24, 0.0  ;;  %v622_v27 = vsel %vm582_vm0, %v6660_v25, 0.0  ;;  %v6670_v29 = vld [vmem:[%s6594_s24 + $0x78] sm:$0xff]  ;;  %v625_v30 = vsel %vm582_vm0, %v6667_v28, 0.0  ;;  %v6677_v32 = vld [vmem:[%s6594_s24 + $0x80] sm:$0xff]  ;;  %v6680_v33 = vld [vmem:[%s6594_s24 + $0x88] sm:$0xff] }
  0x19   : > { %587 = vadd.xlane.f32.xlu0 %v586_v6  ;;  %593 = vadd.xlane.f32.xlu1 %v592_v7  ;;  %v628_v31 = vsel %vm582_vm0, %v6670_v29, 0.0  ;;  %v631_v34 = vsel %vm582_vm0, %v6677_v32, 0.0  ;;  %v634_v35 = vsel %vm582_vm0, %v6680_v33, 0.0  ;;  %v6687_v36 = vld [vmem:[%s6594_s24 + $0x90] sm:$0xff]  ;;  %v6690_v37 = vld [vmem:[%s6594_s24 + $0x98] sm:$0xff]  ;;  %v6697_v40 = vld [vmem:[%s6594_s24 + $0xa0] sm:$0xff] }
  0x1a   : > { %v637_v38 = vsel %vm582_vm0, %v6687_v36, 0.0  ;;  %v640_v39 = vsel %vm582_vm0, %v6690_v37, 0.0  ;;  %v6700_v41 = vld [vmem:[%s6594_s24 + $0xa8] sm:$0xff]  ;;  %v643_v42 = vsel %vm582_vm0, %v6697_v40, 0.0  ;;  %v6707_v44 = vld [vmem:[%s6594_s24 + $0xb0] sm:$0xff]  ;;  %v6710_v45 = vld [vmem:[%s6594_s24 + $0xb8] sm:$0xff] }
  0x1b   : > { %v646_v43 = vsel %vm582_vm0, %v6700_v41, 0.0  ;;  %v649_v46 = vsel %vm582_vm0, %v6707_v44, 0.0  ;;  %v652_v47 = vsel %vm582_vm0, %v6710_v45, 0.0  ;;  %v6717_v48 = vld [vmem:[%s6594_s24 + $0xc0] sm:$0xff]  ;;  %v6720_v49 = vld [vmem:[%s6594_s24 + $0xc8] sm:$0xff]  ;;  %v6727_v52 = vld [vmem:[%s6594_s24 + $0xd0] sm:$0xff] }
  0x1c   : > { %v655_v50 = vsel %vm582_vm0, %v6717_v48, 0.0  ;;  %v658_v51 = vsel %vm582_vm0, %v6720_v49, 0.0  ;;  %v6730_v53 = vld [vmem:[%s6594_s24 + $0xd8] sm:$0xff]  ;;  %v661_v54 = vsel %vm582_vm0, %v6727_v52, 0.0  ;;  %v6737_v56 = vld [vmem:[%s6594_s24 + $0xe0] sm:$0xff]  ;;  %v6740_v57 = vld [vmem:[%s6594_s24 + $0xe8] sm:$0xff] }
  0x1d   : > { %596 = vadd.xlane.f32.xlu0 %v595_v10  ;;  %599 = vadd.xlane.f32.xlu1 %v598_v11  ;;  %v664_v55 = vsel %vm582_vm0, %v6730_v53, 0.0  ;;  %v667_v58 = vsel %vm582_vm0, %v6737_v56, 0.0  ;;  %v670_v59 = vsel %vm582_vm0, %v6740_v57, 0.0  ;;  %v6747_v60 = vld [vmem:[%s6594_s24 + $0xf0] sm:$0xff]  ;;  %v6750_v61 = vld [vmem:[%s6594_s24 + $0xf8] sm:$0xff]  ;;  %v6763_v3 = vld [vmem:[%s6756_s27] sm:$0xff] }
  0x1e   : > { %v673_v62 = vsel %vm582_vm0, %v6747_v60, 0.0  ;;  %v676_v63 = vsel %vm582_vm0, %v6750_v61, 0.0  ;;  %v6766_v4 = vld [vmem:[%s6756_s27 + $0x8] sm:$0xff]  ;;  %v1110_v6 = vsel %vm582_vm0, %v6763_v3, 0.0  ;;  %v6773_v10 = vld [vmem:[%s6756_s27 + $0x10] sm:$0xff]  ;;  %v6776_v11 = vld [vmem:[%s6756_s27 + $0x18] sm:$0xff] }
  0x1f   : > { %v1113_v7 = vsel %vm582_vm0, %v6766_v4, 0.0  ;;  %s6496_s24 = smov 32  }
  0x21   : > { %602 = vadd.xlane.f32.xlu0 %v601_v14  ;;  %605 = vadd.xlane.f32.xlu1 %v604_v15  ;;  %v1116_v14 = vsel %vm582_vm0, %v6773_v10, 0.0  ;;  %v1119_v15 = vsel %vm582_vm0, %v6776_v11, 0.0 }
  0x25   : > { %608 = vadd.xlane.f32.xlu0 %v607_v18  ;;  %611 = vadd.xlane.f32.xlu1 %v610_v19  ;;  %v6783_v18 = vld [vmem:[%s6756_s27 + $0x20] sm:$0xff]  ;;  %v6786_v19 = vld [vmem:[%s6756_s27 + $0x28] sm:$0xff] }
  0x29   : > { %614 = vadd.xlane.f32.xlu0 %v613_v22  ;;  %617 = vadd.xlane.f32.xlu1 %v616_v23  ;;  %v1122_v22 = vsel %vm582_vm0, %v6783_v18, 0.0  ;;  %v1125_v23 = vsel %vm582_vm0, %v6786_v19, 0.0 }
  0x2d   : > { %620 = vadd.xlane.f32.xlu0 %v619_v26  ;;  %623 = vadd.xlane.f32.xlu1 %v622_v27  ;;  %v6793_v26 = vld [vmem:[%s6756_s27 + $0x30] sm:$0xff]  ;;  %v6796_v27 = vld [vmem:[%s6756_s27 + $0x38] sm:$0xff] }
  0x31   : > { %626 = vadd.xlane.f32.xlu0 %v625_v30  ;;  %629 = vadd.xlane.f32.xlu1 %v628_v31  ;;  %v1128_v30 = vsel %vm582_vm0, %v6793_v26, 0.0  ;;  %v1131_v31 = vsel %vm582_vm0, %v6796_v27, 0.0 }
  0x35   : > { %632 = vadd.xlane.f32.xlu0 %v631_v34  ;;  %635 = vadd.xlane.f32.xlu1 %v634_v35  ;;  %v6803_v34 = vld [vmem:[%s6756_s27 + $0x40] sm:$0xff]  ;;  %v6806_v35 = vld [vmem:[%s6756_s27 + $0x48] sm:$0xff] }
  0x39   : > { %638 = vadd.xlane.f32.xlu0 %v637_v38  ;;  %641 = vadd.xlane.f32.xlu1 %v640_v39  ;;  %v1134_v38 = vsel %vm582_vm0, %v6803_v34, 0.0  ;;  %v1137_v39 = vsel %vm582_vm0, %v6806_v35, 0.0 }
  0x3d   : > { %644 = vadd.xlane.f32.xlu0 %v643_v42  ;;  %647 = vadd.xlane.f32.xlu1 %v646_v43  ;;  %v6813_v42 = vld [vmem:[%s6756_s27 + $0x50] sm:$0xff]  ;;  %v6816_v43 = vld [vmem:[%s6756_s27 + $0x58] sm:$0xff] }
  0x41   : > { %650 = vadd.xlane.f32.xlu0 %v649_v46  ;;  %653 = vadd.xlane.f32.xlu1 %v652_v47  ;;  %v1140_v46 = vsel %vm582_vm0, %v6813_v42, 0.0  ;;  %v1143_v47 = vsel %vm582_vm0, %v6816_v43, 0.0 }
  0x45   : > { %656 = vadd.xlane.f32.xlu0 %v655_v50  ;;  %659 = vadd.xlane.f32.xlu1 %v658_v51  ;;  %v6823_v50 = vld [vmem:[%s6756_s27 + $0x60] sm:$0xff]  ;;  %v6826_v51 = vld [vmem:[%s6756_s27 + $0x68] sm:$0xff] }
  0x49   : > { %662 = vadd.xlane.f32.xlu0 %v661_v54  ;;  %665 = vadd.xlane.f32.xlu1 %v664_v55  ;;  %v1146_v54 = vsel %vm582_vm0, %v6823_v50, 0.0  ;;  %v1149_v55 = vsel %vm582_vm0, %v6826_v51, 0.0 }
  0x4d   : > { %668 = vadd.xlane.f32.xlu0 %v667_v58  ;;  %671 = vadd.xlane.f32.xlu1 %v670_v59  ;;  %v6833_v58 = vld [vmem:[%s6756_s27 + $0x70] sm:$0xff]  ;;  %v6836_v59 = vld [vmem:[%s6756_s27 + $0x78] sm:$0xff] }
  0x51   : > { %674 = vadd.xlane.f32.xlu0 %v673_v62  ;;  %677 = vadd.xlane.f32.xlu1 %v676_v63  ;;  %v1152_v62 = vsel %vm582_vm0, %v6833_v58, 0.0  ;;  %v1155_v63 = vsel %vm582_vm0, %v6836_v59, 0.0 }
  0x55   : > { %1111 = vadd.xlane.f32.xlu0 %v1110_v6  ;;  %1114 = vadd.xlane.f32.xlu1 %v1113_v7  ;;  %v6843_v6 = vld [vmem:[%s6756_s27 + $0x80] sm:$0xff]  ;;  %v6846_v7 = vld [vmem:[%s6756_s27 + $0x88] sm:$0xff] }
  0x59   : > { %1117 = vadd.xlane.f32.xlu0 %v1116_v14  ;;  %1120 = vadd.xlane.f32.xlu1 %v1119_v15  ;;  %v1158_v14 = vsel %vm582_vm0, %v6843_v6, 0.0  ;;  %v1161_v15 = vsel %vm582_vm0, %v6846_v7, 0.0 }
  0x5d   : > { %1123 = vadd.xlane.f32.xlu0 %v1122_v22  ;;  %1126 = vadd.xlane.f32.xlu1 %v1125_v23  ;;  %v6853_v22 = vld [vmem:[%s6756_s27 + $0x90] sm:$0xff]  ;;  %v6856_v23 = vld [vmem:[%s6756_s27 + $0x98] sm:$0xff] }
  0x5e   : > { %11077 = vst [vmem:[#allocation2_spill] sm:$0xff] %v6853_v22  ;;  %11078 = vst [vmem:[#allocation3_spill] sm:$0xff] %v6856_v23 }
  0x61   : > { %1129 = vadd.xlane.f32.xlu0 %v1128_v30  ;;  %1132 = vadd.xlane.f32.xlu1 %v1131_v31  ;;  %v1164_v30 = vsel %vm582_vm0, %v6853_v22, 0.0  ;;  %v1167_v31 = vsel %vm582_vm0, %v6856_v23, 0.0 }
  0x65   : > { %1135 = vadd.xlane.f32.xlu0 %v1134_v38  ;;  %1138 = vadd.xlane.f32.xlu1 %v1137_v39  ;;  %v6863_v38 = vld [vmem:[%s6756_s27 + $0xa0] sm:$0xff]  ;;  %v6866_v39 = vld [vmem:[%s6756_s27 + $0xa8] sm:$0xff] }
  0x66   : > { %11079 = vst [vmem:[#allocation4_spill] sm:$0xff] %v6863_v38  ;;  %11080 = vst [vmem:[#allocation5_spill] sm:$0xff] %v6866_v39 }
  0x69   : > { %1141 = vadd.xlane.f32.xlu0 %v1140_v46  ;;  %1144 = vadd.xlane.f32.xlu1 %v1143_v47  ;;  %v1170_v46 = vsel %vm582_vm0, %v6863_v38, 0.0  ;;  %v1173_v47 = vsel %vm582_vm0, %v6866_v39, 0.0 }
  0x6d   : > { %1147 = vadd.xlane.f32.xlu0 %v1146_v54  ;;  %1150 = vadd.xlane.f32.xlu1 %v1149_v55  ;;  %v6873_v54 = vld [vmem:[%s6756_s27 + $0xb0] sm:$0xff]  ;;  %v6876_v55 = vld [vmem:[%s6756_s27 + $0xb8] sm:$0xff] }
  0x6e   : > { %11081 = vst [vmem:[#allocation6_spill] sm:$0xff] %v6873_v54  ;;  %11082 = vst [vmem:[#allocation7_spill] sm:$0xff] %v6876_v55 }
  0x71   : > { %1153 = vadd.xlane.f32.xlu0 %v1152_v62  ;;  %1156 = vadd.xlane.f32.xlu1 %v1155_v63  ;;  %v1176_v62 = vsel %vm582_vm0, %v6873_v54, 0.0  ;;  %v1179_v63 = vsel %vm582_vm0, %v6876_v55, 0.0 }
  0x75   : > { %1159 = vadd.xlane.f32.xlu0 %v1158_v14  ;;  %1162 = vadd.xlane.f32.xlu1 %v1161_v15  ;;  %v6883_v14 = vld [vmem:[%s6756_s27 + $0xc0] sm:$0xff]  ;;  %v6886_v15 = vld [vmem:[%s6756_s27 + $0xc8] sm:$0xff] }
  0x76   : > { %11083 = vst [vmem:[#allocation8_spill] sm:$0xff] %v6883_v14  ;;  %11084 = vst [vmem:[#allocation9_spill] sm:$0xff] %v6886_v15 }
  0x79   : > { %1165 = vadd.xlane.f32.xlu0 %v1164_v30  ;;  %1168 = vadd.xlane.f32.xlu1 %v1167_v31  ;;  %v1182_v30 = vsel %vm582_vm0, %v6883_v14, 0.0  ;;  %v1185_v31 = vsel %vm582_vm0, %v6886_v15, 0.0 }
  0x7d   : > { %1171 = vadd.xlane.f32.xlu0 %v1170_v46  ;;  %1174 = vadd.xlane.f32.xlu1 %v1173_v47  ;;  %v6893_v46 = vld [vmem:[%s6756_s27 + $0xd0] sm:$0xff]  ;;  %v6896_v47 = vld [vmem:[%s6756_s27 + $0xd8] sm:$0xff] }
  0x7e   : > { %11085 = vst [vmem:[#allocation10_spill] sm:$0xff] %v6893_v46  ;;  %v1188_v55 = vsel %vm582_vm0, %v6893_v46, 0.0  ;;  %v1191_v54 = vsel %vm582_vm0, %v6896_v47, 0.0 }
  0x81   : > { %1177 = vadd.xlane.f32.xlu0 %v1176_v62  ;;  %1180 = vadd.xlane.f32.xlu1 %v1179_v63 }
  0x85   : > { %1183 = vadd.xlane.f32.xlu0 %v1182_v30  ;;  %1186 = vadd.xlane.f32.xlu1 %v1185_v31 }
  0x89   : > { %1189 = vadd.xlane.f32.xlu0 %v1188_v55  ;;  %1192 = vadd.xlane.f32.xlu1 %v1191_v54 }
  0xa2   : > { %v585_v62 = vpop.xlane.xlu0 %584  ;;  %v591_v63 = vpop.xlane.xlu1 %590 }
  0xa3   : > { %v680_v14 = vmul.f32 0.015625, %v585_v62  ;;  %v682_v39 = vmul.f32 0.015625, %v591_v63 }
  0xa5   : > { %v6903_v15 = vsub.f32 %v6597_v0, %v680_v14  ;;  %v6906_v38 = vsub.f32 %v6600_v1, %v682_v39 }
  0xa6   : > { %v588_v30 = vpop.xlane.xlu0 %587  ;;  %v594_v31 = vpop.xlane.xlu1 %593 }
  0xa7   : > { %11086 = vst [vmem:[#allocation11_spill] sm:$0xff] %v6906_v38  ;;  %v681_v23 = vmul.f32 0.015625, %v588_v30  ;;  %v683_v22 = vmul.f32 0.015625, %v594_v31  ;;  %v744_v46 = vmul.f32 %v6903_v15, %v6903_v15  ;;  %v746_v54 = vmul.f32 %v6906_v38, %v6906_v38 }
  0xa9   : > { %v6913_v55 = vsub.f32 %v6603_v2, %v681_v23  ;;  %v6916_v62 = vsub.f32 %v6610_v5, %v683_v22  ;;  %v776_v0 = vsel %vm582_vm0, %v744_v46, 0.0  ;;  %v782_v14 = vsel %vm582_vm0, %v746_v54, 0.0 }
  0xaa   : > { %777 = vadd.xlane.f32.xlu0 %v776_v0  ;;  %v597_v1 = vpop.xlane.xlu0 %596  ;;  %v600_v39 = vpop.xlane.xlu1 %599 }
  0xab   : > { %v684_v63 = vmul.f32 0.015625, %v597_v1  ;;  %v685_v30 = vmul.f32 0.015625, %v600_v39  ;;  %v745_v31 = vmul.f32 %v6913_v55, %v6913_v55  ;;  %v747_v38 = vmul.f32 %v6916_v62, %v6916_v62 }
  0xad   : > { %v6925_v2 = vsub.f32 %v6617_v8, %v684_v63  ;;  %v6928_v5 = vsub.f32 %v6620_v9, %v685_v30  ;;  %v779_v22 = vsel %vm582_vm0, %v745_v31, 0.0  ;;  %v785_v54 = vsel %vm582_vm0, %v747_v38, 0.0 }
  0xae   : > { %783 = vadd.xlane.f32.xlu0 %v782_v14  ;;  %780 = vadd.xlane.f32.xlu1 %v779_v22  ;;  %v603_v23 = vpop.xlane.xlu0 %602  ;;  %v606_v46 = vpop.xlane.xlu1 %605 }
  0xaf   : > { %v686_v0 = vmul.f32 0.015625, %v603_v23  ;;  %v687_v1 = vmul.f32 0.015625, %v606_v46  ;;  %v748_v39 = vmul.f32 %v6925_v2, %v6925_v2  ;;  %v749_v8 = vmul.f32 %v6928_v5, %v6928_v5 }
  0xb1   : > { %v6937_v63 = vsub.f32 %v6627_v12, %v686_v0  ;;  %v6940_v9 = vsub.f32 %v6630_v13, %v687_v1  ;;  %v788_v14 = vsel %vm582_vm0, %v748_v39, 0.0  ;;  %v791_v31 = vsel %vm582_vm0, %v749_v8, 0.0 }
  0xb2   : > { %786 = vadd.xlane.f32.xlu1 %v785_v54  ;;  %789 = vadd.xlane.f32.xlu0 %v788_v14  ;;  %v609_v30 = vpop.xlane.xlu0 %608  ;;  %v612_v38 = vpop.xlane.xlu1 %611 }
  0xb3   : > { %v688_v22 = vmul.f32 0.015625, %v609_v30  ;;  %v689_v23 = vmul.f32 0.015625, %v612_v38  ;;  %v750_v46 = vmul.f32 %v6937_v63, %v6937_v63  ;;  %v751_v12 = vmul.f32 %v6940_v9, %v6940_v9 }
  0xb5   : > { %v6949_v0 = vsub.f32 %v6637_v16, %v688_v22  ;;  %v6952_v13 = vsub.f32 %v6640_v17, %v689_v23  ;;  %v794_v54 = vsel %vm582_vm0, %v750_v46, 0.0  ;;  %v797_v8 = vsel %vm582_vm0, %v751_v12, 0.0 }
  0xb6   : > { %792 = vadd.xlane.f32.xlu1 %v791_v31  ;;  %795 = vadd.xlane.f32.xlu0 %v794_v54  ;;  %v615_v1 = vpop.xlane.xlu0 %614  ;;  %v618_v39 = vpop.xlane.xlu1 %617 }
  0xb7   : > { %v690_v14 = vmul.f32 0.015625, %v615_v1  ;;  %v691_v30 = vmul.f32 0.015625, %v618_v39  ;;  %v752_v38 = vmul.f32 %v6949_v0, %v6949_v0  ;;  %v753_v16 = vmul.f32 %v6952_v13, %v6952_v13 }
  0xb9   : > { %v6961_v22 = vsub.f32 %v6647_v20, %v690_v14  ;;  %v6964_v17 = vsub.f32 %v6650_v21, %v691_v30  ;;  %v800_v31 = vsel %vm582_vm0, %v752_v38, 0.0  ;;  %v803_v12 = vsel %vm582_vm0, %v753_v16, 0.0 }
  0xba   : > { %798 = vadd.xlane.f32.xlu1 %v797_v8  ;;  %801 = vadd.xlane.f32.xlu0 %v800_v31  ;;  %v621_v23 = vpop.xlane.xlu0 %620  ;;  %v624_v46 = vpop.xlane.xlu1 %623 }
  0xbb   : > { %v692_v54 = vmul.f32 0.015625, %v621_v23  ;;  %v693_v1 = vmul.f32 0.015625, %v624_v46  ;;  %v754_v39 = vmul.f32 %v6961_v22, %v6961_v22  ;;  %v755_v20 = vmul.f32 %v6964_v17, %v6964_v17 }
  0xbd   : > { %v6973_v14 = vsub.f32 %v6657_v24, %v692_v54  ;;  %v6976_v21 = vsub.f32 %v6660_v25, %v693_v1  ;;  %v806_v8 = vsel %vm582_vm0, %v754_v39, 0.0  ;;  %v809_v16 = vsel %vm582_vm0, %v755_v20, 0.0 }
  0xbe   : > { %804 = vadd.xlane.f32.xlu1 %v803_v12  ;;  %807 = vadd.xlane.f32.xlu0 %v806_v8  ;;  %v627_v30 = vpop.xlane.xlu0 %626  ;;  %v630_v38 = vpop.xlane.xlu1 %629 }
  0xbf   : > { %v694_v31 = vmul.f32 0.015625, %v627_v30  ;;  %v695_v23 = vmul.f32 0.015625, %v630_v38  ;;  %v756_v46 = vmul.f32 %v6973_v14, %v6973_v14  ;;  %v757_v24 = vmul.f32 %v6976_v21, %v6976_v21 }
  0xc1   : > { %v6985_v54 = vsub.f32 %v6667_v28, %v694_v31  ;;  %v6988_v25 = vsub.f32 %v6670_v29, %v695_v23  ;;  %v812_v12 = vsel %vm582_vm0, %v756_v46, 0.0  ;;  %v815_v20 = vsel %vm582_vm0, %v757_v24, 0.0 }
  0xc2   : > { %810 = vadd.xlane.f32.xlu1 %v809_v16  ;;  %813 = vadd.xlane.f32.xlu0 %v812_v12  ;;  %v633_v1 = vpop.xlane.xlu0 %632  ;;  %v636_v39 = vpop.xlane.xlu1 %635  ;;  %v6029_v12 = vld [vmem:[%s10870_s6] sm:$0xff]  }
  0xc3   : > { %v696_v8 = vmul.f32 0.015625, %v633_v1  ;;  %v697_v30 = vmul.f32 0.015625, %v636_v39  ;;  %v758_v38 = vmul.f32 %v6985_v54, %v6985_v54  ;;  %v759_v28 = vmul.f32 %v6988_v25, %v6988_v25  ;;  %5844 = vmatprep.subr.bf16.mxu0 %v6029_v12 }
  0xc4   : > { %5845 = vmatpush3.bf16.msra.mxu0 %v6029_v12 }
  0xc5   : > { %v6997_v31 = vsub.f32 %v6677_v32, %v696_v8  ;;  %v7000_v29 = vsub.f32 %v6680_v33, %v697_v30  ;;  %v818_v16 = vsel %vm582_vm0, %v758_v38, 0.0  ;;  %v821_v24 = vsel %vm582_vm0, %v759_v28, 0.0 }
  0xc6   : > { %816 = vadd.xlane.f32.xlu1 %v815_v20  ;;  %819 = vadd.xlane.f32.xlu0 %v818_v16  ;;  %v639_v23 = vpop.xlane.xlu0 %638  ;;  %v642_v46 = vpop.xlane.xlu1 %641 }
  0xc7   : > { %11087 = vst [vmem:[#allocation12_spill] sm:$0xff] %v7000_v29  ;;  %v698_v1 = vmul.f32 0.015625, %v639_v23  ;;  %v699_v39 = vmul.f32 0.015625, %v642_v46  ;;  %v760_v32 = vmul.f32 %v6997_v31, %v6997_v31  ;;  %v761_v33 = vmul.f32 %v7000_v29, %v7000_v29  ;;  %v6030_v23 = vld [vmem:[%s10870_s6 + $0x8] sm:$0xff]  }
  0xc8   : > { %5846 = vmatprep.subr.bf16.mxu0 %v6030_v23 }
  0xc9   : > { %v7012_v20 = vsub.f32 %v6687_v36, %v698_v1  ;;  %v7015_v8 = vsub.f32 %v6690_v37, %v699_v39  ;;  %v824_v30 = vsel %vm582_vm0, %v760_v32, 0.0  ;;  %v827_v16 = vsel %vm582_vm0, %v761_v33, 0.0  ;;  %5847 = vmatpush3.bf16.msra.mxu0 %v6030_v23 }
  0xca   : > { %822 = vadd.xlane.f32.xlu1 %v821_v24  ;;  %825 = vadd.xlane.f32.xlu0 %v824_v30  ;;  %v645_v38 = vpop.xlane.xlu0 %644  ;;  %v648_v28 = vpop.xlane.xlu1 %647  ;;  %v6031_v30 = vld [vmem:[%s10870_s6 + $0x10] sm:$0xff]  }
  0xcb   : > { %v700_v46 = vmul.f32 0.015625, %v645_v38  ;;  %v701_v29 = vmul.f32 0.015625, %v648_v28  ;;  %v762_v36 = vmul.f32 %v7012_v20, %v7012_v20  ;;  %v763_v37 = vmul.f32 %v7015_v8, %v7015_v8  ;;  %5848 = vmatprep.subr.bf16.mxu0 %v6031_v30 }
  0xcd   : > { %v7027_v24 = vsub.f32 %v6697_v40, %v700_v46  ;;  %v7030_v12 = vsub.f32 %v6700_v41, %v701_v29  ;;  %v830_v1 = vsel %vm582_vm0, %v762_v36, 0.0  ;;  %v833_v33 = vsel %vm582_vm0, %v763_v37, 0.0  ;;  %5849 = vmatpush3.bf16.msra.mxu0 %v6031_v30  ;;  %v6032_v37 = vld [vmem:[%s10870_s6 + $0x18] sm:$0xff]  }
  0xce   : > { %828 = vadd.xlane.f32.xlu1 %v827_v16  ;;  %831 = vadd.xlane.f32.xlu0 %v830_v1  ;;  %v651_v39 = vpop.xlane.xlu0 %650  ;;  %v654_v32 = vpop.xlane.xlu1 %653 }
  0xcf   : > { %11088 = vst [vmem:[#allocation13_spill] sm:$0xff] %v7027_v24  ;;  %11089 = vst [vmem:[#allocation14_spill] sm:$0xff] %v7030_v12  ;;  %v702_v38 = vmul.f32 0.015625, %v651_v39  ;;  %v703_v28 = vmul.f32 0.015625, %v654_v32  ;;  %v764_v40 = vmul.f32 %v7027_v24, %v7027_v24  ;;  %v765_v41 = vmul.f32 %v7030_v12, %v7030_v12  ;;  %v7057_v32 = vld [vmem:[%s6756_s27 + $0xe0] sm:$0xff]  ;;  %5850 = vmatprep.subr.bf16.mxu0 %v6032_v37 }
  0xd1   : > { %v7042_v29 = vsub.f32 %v6707_v44, %v702_v38  ;;  %v7045_v16 = vsub.f32 %v6710_v45, %v703_v28  ;;  %v836_v23 = vsel %vm582_vm0, %v764_v40, 0.0  ;;  %v839_v1 = vsel %vm582_vm0, %v765_v41, 0.0  ;;  %5851 = vmatpush3.bf16.msra.mxu0 %v6032_v37 }
  0xd2   : > { %834 = vadd.xlane.f32.xlu1 %v833_v33  ;;  %837 = vadd.xlane.f32.xlu0 %v836_v23  ;;  %v657_v46 = vpop.xlane.xlu0 %656  ;;  %v660_v36 = vpop.xlane.xlu1 %659  ;;  %v1194_v41 = vsel %vm582_vm0, %v7057_v32, 0.0 }
  0xd3   : > { %11090 = vst [vmem:[#allocation15_spill] sm:$0xff] %v7042_v29  ;;  %11091 = vst [vmem:[#allocation16_spill] sm:$0xff] %v7045_v16  ;;  %v766_v44 = vmul.f32 %v7042_v29, %v7042_v29  ;;  %v767_v45 = vmul.f32 %v7045_v16, %v7045_v16  ;;  %v704_v39 = vmul.f32 0.015625, %v657_v46  ;;  %v705_v30 = vmul.f32 0.015625, %v660_v36  ;;  %v7067_v46 = vld [vmem:[%s6756_s27 + $0xe8] sm:$0xff]  ;;  %v7070_v29 = vld [vmem:[%s6756_s27 + $0xf0] sm:$0xff] }
  0xd4   : > { %v1197_v37 = vsel %vm582_vm0, %v7067_v46, 0.0 }
  0xd5   : > { %v842_v33 = vsel %vm582_vm0, %v766_v44, 0.0  ;;  %v845_v40 = vsel %vm582_vm0, %v767_v45, 0.0  ;;  %v7064_v23 = vsub.f32 %v6717_v48, %v704_v39  ;;  %v7073_v36 = vsub.f32 %v6720_v49, %v705_v30 }
  0xd6   : > { %840 = vadd.xlane.f32.xlu1 %v839_v1  ;;  %843 = vadd.xlane.f32.xlu0 %v842_v33  ;;  %v663_v38 = vpop.xlane.xlu0 %662  ;;  %v666_v28 = vpop.xlane.xlu1 %665  ;;  %v1200_v48 = vsel %vm582_vm0, %v7070_v29, 0.0  ;;  %v7083_v33 = vld [vmem:[%s6756_s27 + $0xf8] sm:$0xff] }
  0xd7   : > { %v706_v16 = vmul.f32 0.015625, %v663_v38  ;;  %11092 = vst [vmem:[#allocation17_spill] sm:$0xff] %v7073_v36  ;;  %v707_v1 = vmul.f32 0.015625, %v666_v28  ;;  %v768_v38 = vmul.f32 %v7064_v23, %v7064_v23  ;;  %v1203_v30 = vsel %vm582_vm0, %v7083_v33, 0.0 }
  0xd9   : > { %v7080_v39 = vsub.f32 %v6727_v52, %v706_v16  ;;  %v7088_v49 = vsub.f32 %v6730_v53, %v707_v1  ;;  %v848_v12 = vsel %vm582_vm0, %v768_v38, 0.0 }
  0xda   : > { %846 = vadd.xlane.f32.xlu1 %v845_v40  ;;  %1195 = vadd.xlane.f32.xlu0 %v1194_v41  ;;  %v669_v44 = vpop.xlane.xlu0 %668  ;;  %v672_v45 = vpop.xlane.xlu1 %671  ;;  %v769_v41 = vmul.f32 %v7073_v36, %v7073_v36 }
  0xdb   : > { %v708_v40 = vmul.f32 0.015625, %v669_v44  ;;  %v709_v28 = vmul.f32 0.015625, %v672_v45 }
  0xdc   : > { %v851_v1 = vsel %vm582_vm0, %v769_v41, 0.0 }
  0xdd   : > { %v7096_v24 = vsub.f32 %v6737_v56, %v708_v40  ;;  %v7101_v53 = vsub.f32 %v6740_v57, %v709_v28 }
  0xde   : > { %1198 = vadd.xlane.f32.xlu1 %v1197_v37  ;;  %1201 = vadd.xlane.f32.xlu0 %v1200_v48  ;;  %v675_v52 = vpop.xlane.xlu0 %674  ;;  %v678_v16 = vpop.xlane.xlu1 %677  ;;  %v770_v37 = vmul.f32 %v7080_v39, %v7080_v39  ;;  %v771_v48 = vmul.f32 %v7088_v49, %v7088_v49 }
  0xdf   : > { %v710_v44 = vmul.f32 0.015625, %v675_v52  ;;  %v711_v45 = vmul.f32 0.015625, %v678_v16  ;;  %v773_v52 = vmul.f32 %v7101_v53, %v7101_v53 }
  0xe0   : > { %v854_v56 = vsel %vm582_vm0, %v770_v37, 0.0  ;;  %v857_v28 = vsel %vm582_vm0, %v771_v48, 0.0 }
  0xe1   : > { %v7108_v40 = vsub.f32 %v6747_v60, %v710_v44  ;;  %v7113_v57 = vsub.f32 %v6750_v61, %v711_v45  ;;  %v863_v45 = vsel %vm582_vm0, %v773_v52, 0.0 }
  0xe2   : > { %1204 = vadd.xlane.f32.xlu1 %v1203_v30  ;;  %849 = vadd.xlane.f32.xlu0 %v848_v12  ;;  %v1112_v36 = vpop.xlane.xlu0 %1111  ;;  %v1115_v38 = vpop.xlane.xlu1 %1114  ;;  %v772_v30 = vmul.f32 %v7096_v24, %v7096_v24 }
  0xe3   : > { %v1206_v12 = vmul.f32 0.015625, %v1112_v36  ;;  %v1207_v41 = vmul.f32 0.015625, %v1115_v38  ;;  %v774_v36 = vmul.f32 %v7108_v40, %v7108_v40  ;;  %v775_v38 = vmul.f32 %v7113_v57, %v7113_v57 }
  0xe4   : > { %v860_v60 = vsel %vm582_vm0, %v772_v30, 0.0 }
  0xe5   : > { %v7120_v44 = vsub.f32 %v6763_v3, %v1206_v12  ;;  %v7125_v61 = vsub.f32 %v6766_v4, %v1207_v41  ;;  %v866_v3 = vsel %vm582_vm0, %v774_v36, 0.0  ;;  %v869_v41 = vsel %vm582_vm0, %v775_v38, 0.0 }
  0xe6   : > { %852 = vadd.xlane.f32.xlu1 %v851_v1  ;;  %855 = vadd.xlane.f32.xlu0 %v854_v56  ;;  %v1118_v16 = vpop.xlane.xlu0 %1117  ;;  %v1121_v37 = vpop.xlane.xlu1 %1120 }
  0xe7   : > { %v1208_v1 = vmul.f32 0.015625, %v1118_v16  ;;  %v1209_v48 = vmul.f32 0.015625, %v1121_v37  ;;  %v1271_v37 = vmul.f32 %v7125_v61, %v7125_v61 }
  0xe9   : > { %v7132_v12 = vsub.f32 %v6773_v10, %v1208_v1  ;;  %v7137_v4 = vsub.f32 %v6776_v11, %v1209_v48  ;;  %v1305_v48 = vsel %vm582_vm0, %v1271_v37, 0.0 }
  0xea   : > { %858 = vadd.xlane.f32.xlu1 %v857_v28  ;;  %861 = vadd.xlane.f32.xlu0 %v860_v60  ;;  %v1124_v56 = vpop.xlane.xlu0 %1123  ;;  %v1127_v30 = vpop.xlane.xlu1 %1126  ;;  %v1270_v28 = vmul.f32 %v7120_v44, %v7120_v44 }
  0xeb   : > { %v1210_v16 = vmul.f32 0.015625, %v1124_v56  ;;  %v1211_v52 = vmul.f32 0.015625, %v1127_v30  ;;  %v1273_v30 = vmul.f32 %v7137_v4, %v7137_v4 }
  0xec   : > { %v1302_v10 = vsel %vm582_vm0, %v1270_v28, 0.0 }
  0xed   : > { %v7144_v1 = vsub.f32 %v6783_v18, %v1210_v16  ;;  %v7149_v11 = vsub.f32 %v6786_v19, %v1211_v52  ;;  %v1311_v52 = vsel %vm582_vm0, %v1273_v30, 0.0 }
  0xee   : > { %864 = vadd.xlane.f32.xlu1 %v863_v45  ;;  %867 = vadd.xlane.f32.xlu0 %v866_v3  ;;  %v1130_v60 = vpop.xlane.xlu0 %1129  ;;  %v1133_v36 = vpop.xlane.xlu1 %1132  ;;  %v1272_v45 = vmul.f32 %v7132_v12, %v7132_v12 }
  0xef   : > { %v1212_v56 = vmul.f32 0.015625, %v1130_v60  ;;  %v1213_v38 = vmul.f32 0.015625, %v1133_v36  ;;  %v1275_v36 = vmul.f32 %v7149_v11, %v7149_v11 }
  0xf0   : > { %v1308_v18 = vsel %vm582_vm0, %v1272_v45, 0.0 }
  0xf1   : > { %v7156_v16 = vsub.f32 %v6793_v26, %v1212_v56  ;;  %v7161_v19 = vsub.f32 %v6796_v27, %v1213_v38  ;;  %v1317_v38 = vsel %vm582_vm0, %v1275_v36, 0.0 }
  0xf2   : > { %870 = vadd.xlane.f32.xlu1 %v869_v41  ;;  %1303 = vadd.xlane.f32.xlu0 %v1302_v10  ;;  %v1136_v3 = vpop.xlane.xlu0 %1135  ;;  %v1139_v28 = vpop.xlane.xlu1 %1138  ;;  %v1274_v41 = vmul.f32 %v7144_v1, %v7144_v1 }
  0xf3   : > { %v1214_v60 = vmul.f32 0.015625, %v1136_v3  ;;  %v1215_v37 = vmul.f32 0.015625, %v1139_v28  ;;  %v1277_v28 = vmul.f32 %v7161_v19, %v7161_v19 }
  0xf4   : > { %v1314_v26 = vsel %vm582_vm0, %v1274_v41, 0.0 }
  0xf5   : > { %v7168_v56 = vsub.f32 %v6803_v34, %v1214_v60  ;;  %v7173_v27 = vsub.f32 %v6806_v35, %v1215_v37  ;;  %v1323_v37 = vsel %vm582_vm0, %v1277_v28, 0.0 }
  0xf6   : > { %1306 = vadd.xlane.f32.xlu1 %v1305_v48  ;;  %1309 = vadd.xlane.f32.xlu0 %v1308_v18  ;;  %v1142_v10 = vpop.xlane.xlu0 %1141  ;;  %v1145_v45 = vpop.xlane.xlu1 %1144  ;;  %v1276_v48 = vmul.f32 %v7156_v16, %v7156_v16 }
  0xf7   : > { %v1216_v3 = vmul.f32 0.015625, %v1142_v10  ;;  %v1217_v30 = vmul.f32 0.015625, %v1145_v45  ;;  %v1279_v45 = vmul.f32 %v7173_v27, %v7173_v27 }
  0xf8   : > { %v1320_v34 = vsel %vm582_vm0, %v1276_v48, 0.0 }
  0xf9   : > { %v7180_v60 = vsub.f32 %v6813_v42, %v1216_v3  ;;  %v7185_v35 = vsub.f32 %v6816_v43, %v1217_v30  ;;  %v1329_v30 = vsel %vm582_vm0, %v1279_v45, 0.0 }
  0xfa   : > { %1312 = vadd.xlane.f32.xlu1 %v1311_v52  ;;  %1315 = vadd.xlane.f32.xlu0 %v1314_v26  ;;  %v1148_v18 = vpop.xlane.xlu0 %1147  ;;  %v1151_v41 = vpop.xlane.xlu1 %1150  ;;  %v1278_v52 = vmul.f32 %v7168_v56, %v7168_v56 }
  0xfb   : > { %v1218_v10 = vmul.f32 0.015625, %v1148_v18  ;;  %v1219_v36 = vmul.f32 0.015625, %v1151_v41  ;;  %v1281_v41 = vmul.f32 %v7185_v35, %v7185_v35 }
  0xfc   : > { %v1326_v42 = vsel %vm582_vm0, %v1278_v52, 0.0 }
  0xfd   : > { %v7192_v3 = vsub.f32 %v6823_v50, %v1218_v10  ;;  %v7197_v43 = vsub.f32 %v6826_v51, %v1219_v36  ;;  %v1335_v36 = vsel %vm582_vm0, %v1281_v41, 0.0 }
  0xfe   : > { %1318 = vadd.xlane.f32.xlu1 %v1317_v38  ;;  %1321 = vadd.xlane.f32.xlu0 %v1320_v34  ;;  %v1154_v26 = vpop.xlane.xlu0 %1153  ;;  %v1157_v48 = vpop.xlane.xlu1 %1156  ;;  %v1280_v38 = vmul.f32 %v7180_v60, %v7180_v60 }
  0xff   : > { %v1220_v18 = vmul.f32 0.015625, %v1154_v26  ;;  %11093 = vst [vmem:[#allocation18_spill] sm:$0xff] %v7197_v43  ;;  %v1221_v28 = vmul.f32 0.015625, %v1157_v48  ;;  %v1283_v48 = vmul.f32 %v7197_v43, %v7197_v43 }
 0x100   : > { %v1332_v50 = vsel %vm582_vm0, %v1280_v38, 0.0 }
 0x101   : > { %v7204_v10 = vsub.f32 %v6833_v58, %v1220_v18  ;;  %v7209_v51 = vsub.f32 %v6836_v59, %v1221_v28  ;;  %v1341_v28 = vsel %vm582_vm0, %v1283_v48, 0.0 }
 0x102   : > { %1324 = vadd.xlane.f32.xlu1 %v1323_v37  ;;  %1327 = vadd.xlane.f32.xlu0 %v1326_v42  ;;  %v1160_v34 = vpop.xlane.xlu0 %1159  ;;  %v1163_v52 = vpop.xlane.xlu1 %1162  ;;  %v1282_v37 = vmul.f32 %v7192_v3, %v7192_v3 }
 0x103   : > { %11094 = vst [vmem:[#allocation19_spill] sm:$0xff] %v7204_v10  ;;  %v1222_v26 = vmul.f32 0.015625, %v1160_v34  ;;  %11095 = vst [vmem:[#allocation20_spill] sm:$0xff] %v7209_v51  ;;  %v1223_v45 = vmul.f32 0.015625, %v1163_v52  ;;  %v1285_v52 = vmul.f32 %v7209_v51, %v7209_v51 }
 0x104   : > { %v1338_v58 = vsel %vm582_vm0, %v1282_v37, 0.0 }
 0x105   : > { %v7216_v18 = vsub.f32 %v6843_v6, %v1222_v26  ;;  %v7221_v59 = vsub.f32 %v6846_v7, %v1223_v45  ;;  %v11098_v26 = vld [vmem:[#allocation2_spill] sm:$0xff]  ;;  %v11100_v7 = vld [vmem:[#allocation3_spill] sm:$0xff]  ;;  %v1347_v48 = vsel %vm582_vm0, %v1285_v52, 0.0 }
 0x106   : > { %1330 = vadd.xlane.f32.xlu1 %v1329_v30  ;;  %1333 = vadd.xlane.f32.xlu0 %v1332_v50  ;;  %v1166_v42 = vpop.xlane.xlu0 %1165  ;;  %v1169_v38 = vpop.xlane.xlu1 %1168  ;;  %v1284_v30 = vmul.f32 %v7204_v10, %v7204_v10 }
 0x107   : > { %11096 = vst [vmem:[#allocation21_spill] sm:$0xff] %v7216_v18  ;;  %v1224_v34 = vmul.f32 0.015625, %v1166_v42  ;;  %11097 = vst [vmem:[#allocation22_spill] sm:$0xff] %v7221_v59  ;;  %v1225_v41 = vmul.f32 0.015625, %v1169_v38 }
 0x108   : > { %v1344_v6 = vsel %vm582_vm0, %v1284_v30, 0.0 }
 0x109   : > { %v7228_v43 = vsub.f32 %v11098_v26, %v1224_v34  ;;  %v7233_v45 = vsub.f32 %v11100_v7, %v1225_v41  ;;  %v11102_v26 = vld [vmem:[#allocation4_spill] sm:$0xff]  ;;  %v11104_v41 = vld [vmem:[#allocation5_spill] sm:$0xff] }
 0x10a   : > { %1336 = vadd.xlane.f32.xlu1 %v1335_v36  ;;  %1339 = vadd.xlane.f32.xlu0 %v1338_v58  ;;  %v1172_v50 = vpop.xlane.xlu0 %1171  ;;  %v1175_v37 = vpop.xlane.xlu1 %1174  ;;  %v1286_v36 = vmul.f32 %v7216_v18, %v7216_v18  ;;  %v1287_v58 = vmul.f32 %v7221_v59, %v7221_v59 }
 0x10b   : > { %11099 = vst [vmem:[#allocation2_spill] sm:$0xff] %v7228_v43  ;;  %v1226_v42 = vmul.f32 0.015625, %v1172_v50  ;;  %11101 = vst [vmem:[#allocation3_spill] sm:$0xff] %v7233_v45  ;;  %v1227_v38 = vmul.f32 0.015625, %v1175_v37  ;;  %v1289_v7 = vmul.f32 %v7233_v45, %v7233_v45 }
 0x10c   : > { %v1350_v34 = vsel %vm582_vm0, %v1286_v36, 0.0  ;;  %v1353_v52 = vsel %vm582_vm0, %v1287_v58, 0.0 }
 0x10d   : > { %v7240_v10 = vsub.f32 %v11102_v26, %v1226_v42  ;;  %v11106_v26 = vld [vmem:[#allocation6_spill] sm:$0xff]  ;;  %v1359_v58 = vsel %vm582_vm0, %v1289_v7, 0.0 }
 0x10e   : > { %1342 = vadd.xlane.f32.xlu1 %v1341_v28  ;;  %1345 = vadd.xlane.f32.xlu0 %v1344_v6  ;;  %v1178_v51 = vpop.xlane.xlu0 %1177  ;;  %v1181_v30 = vpop.xlane.xlu1 %1180  ;;  %v1288_v28 = vmul.f32 %v7228_v43, %v7228_v43  ;;  %v7245_v6 = vsub.f32 %v11104_v41, %v1227_v38  ;;  %v11108_v38 = vld [vmem:[#allocation7_spill] sm:$0xff] }
 0x10f   : > { %11103 = vst [vmem:[#allocation4_spill] sm:$0xff] %v7240_v10  ;;  %v1228_v50 = vmul.f32 0.015625, %v1178_v51  ;;  %v1229_v37 = vmul.f32 0.015625, %v1181_v30  ;;  %v1290_v51 = vmul.f32 %v7240_v10, %v7240_v10 }
 0x110   : > { %11105 = vst [vmem:[#allocation5_spill] sm:$0xff] %v7245_v6  ;;  %v1356_v42 = vsel %vm582_vm0, %v1288_v28, 0.0  ;;  %v1291_v41 = vmul.f32 %v7245_v6, %v7245_v6  ;;  %v11114_v6 = vld [vmem:[#allocation10_spill] sm:$0xff] }
 0x111   : > { %v7252_v18 = vsub.f32 %v11106_v26, %v1228_v50  ;;  %v1362_v28 = vsel %vm582_vm0, %v1290_v51, 0.0  ;;  %v11110_v50 = vld [vmem:[#allocation8_spill] sm:$0xff] }
 0x112   : > { %1348 = vadd.xlane.f32.xlu1 %v1347_v48  ;;  %1351 = vadd.xlane.f32.xlu0 %v1350_v34  ;;  %v1184_v59 = vpop.xlane.xlu0 %1183  ;;  %v1187_v36 = vpop.xlane.xlu1 %1186  ;;  %v7257_v34 = vsub.f32 %v11108_v38, %v1229_v37  ;;  %v11112_v37 = vld [vmem:[#allocation9_spill] sm:$0xff]  ;;  %v1365_v7 = vsel %vm582_vm0, %v1291_v41, 0.0 }
 0x113   : > { %11107 = vst [vmem:[#allocation6_spill] sm:$0xff] %v7252_v18  ;;  %v1230_v48 = vmul.f32 0.015625, %v1184_v59  ;;  %v1231_v30 = vmul.f32 0.015625, %v1187_v36  ;;  %v1292_v59 = vmul.f32 %v7252_v18, %v7252_v18 }
 0x114   : > { %11109 = vst [vmem:[#allocation7_spill] sm:$0xff] %v7257_v34  ;;  %v1293_v36 = vmul.f32 %v7257_v34, %v7257_v34 }
 0x115   : > { %v7264_v26 = vsub.f32 %v11110_v50, %v1230_v48  ;;  %v7269_v38 = vsub.f32 %v11112_v37, %v1231_v30  ;;  %v1368_v51 = vsel %vm582_vm0, %v1292_v59, 0.0 }
 0x116   : > { %1354 = vadd.xlane.f32.xlu1 %v1353_v52  ;;  %1357 = vadd.xlane.f32.xlu0 %v1356_v42  ;;  %v1190_v45 = vpop.xlane.xlu0 %1189  ;;  %v1193_v42 = vpop.xlane.xlu1 %1192 }
 0x117   : > { %11111 = vst [vmem:[#allocation8_spill] sm:$0xff] %v7264_v26  ;;  %v1232_v52 = vmul.f32 0.015625, %v1190_v45  ;;  %11113 = vst [vmem:[#allocation9_spill] sm:$0xff] %v7269_v38  ;;  %v1233_v50 = vmul.f32 0.015625, %v1193_v42  ;;  %v1294_v45 = vmul.f32 %v7264_v26, %v7264_v26 }
 0x119   : > { %v7276_v48 = vsub.f32 %v11114_v6, %v1232_v52  ;;  %v7282_v30 = vsub.f32 %v6896_v47, %v1233_v50  ;;  %v1374_v41 = vsel %vm582_vm0, %v1294_v45, 0.0 }
 0x11a   : > { %1360 = vadd.xlane.f32.xlu1 %v1359_v58  ;;  %1363 = vadd.xlane.f32.xlu0 %v1362_v28  ;;  %v1371_v58 = vsel %vm582_vm0, %v1293_v36, 0.0  ;;  %v1295_v28 = vmul.f32 %v7269_v38, %v7269_v38 }
 0x11b   : > { %11115 = vst [vmem:[#allocation10_spill] sm:$0xff] %v7276_v48  ;;  %11116 = vst [vmem:[#allocation23_spill] sm:$0xff] %v7282_v30  ;;  %v1296_v6 = vmul.f32 %v7276_v48, %v7276_v48  ;;  %v1297_v42 = vmul.f32 %v7282_v30, %v7282_v30 }
 0x11c   : > { %v1377_v59 = vsel %vm582_vm0, %v1295_v28, 0.0 }
 0x11d   : > { %v1380_v52 = vsel %vm582_vm0, %v1296_v6, 0.0  ;;  %v1383_v47 = vsel %vm582_vm0, %v1297_v42, 0.0 }
 0x11e   : > { %1366 = vadd.xlane.f32.xlu1 %v1365_v7  ;;  %1369 = vadd.xlane.f32.xlu0 %v1368_v51 }
 0x122   : > { %1372 = vadd.xlane.f32.xlu1 %v1371_v58  ;;  %1375 = vadd.xlane.f32.xlu0 %v1374_v41 }
 0x126   : > { %1378 = vadd.xlane.f32.xlu1 %v1377_v59  ;;  %1381 = vadd.xlane.f32.xlu0 %v1380_v52 }
 0x12a   : > { %1384 = vadd.xlane.f32.xlu1 %v1383_v47 }
 0x137   : > { %v778_v37 = vpop.xlane.xlu0 %777 }
 0x138   : > { %v872_v7 = vmul.f32 0.015625, %v778_v37 }
 0x13a   : > { %v904_v36 = vadd.f32 1e-05, %v872_v7 }
 0x13b   : > { %v781_v51 = vpop.xlane.xlu1 %780  ;;  %v784_v50 = vpop.xlane.xlu0 %783 }
 0x13c   : > { %6037 = vrsqrt.f32 %v904_v36  ;;  %v873_v45 = vmul.f32 0.015625, %v781_v51  ;;  %v874_v58 = vmul.f32 0.015625, %v784_v50 }
 0x13e   : > { %v905_v41 = vadd.f32 1e-05, %v873_v45  ;;  %v906_v28 = vadd.f32 1e-05, %v874_v58 }
 0x13f   : > { %v787_v48 = vpop.xlane.xlu1 %786  ;;  %v790_v6 = vpop.xlane.xlu0 %789 }
 0x140   : > { %6039 = vrsqrt.f32 %v905_v41  ;;  %v875_v38 = vmul.f32 0.015625, %v787_v48  ;;  %v876_v30 = vmul.f32 0.015625, %v790_v6 }
 0x141   : > { %6041 = vrsqrt.f32 %v906_v28 }
 0x142   : > { %v907_v59 = vadd.f32 1e-05, %v875_v38  ;;  %v908_v52 = vadd.f32 1e-05, %v876_v30  ;;  %v7298_v38 = vld [vmem:[%s10866_s2] ss:$0 sm:$0xff] }
 0x143   : > { %v793_v42 = vpop.xlane.xlu1 %792  ;;  %v796_v47 = vpop.xlane.xlu0 %795 }
 0x144   : > { %6043 = vrsqrt.f32 %v907_v59  ;;  %v877_v37 = vmul.f32 0.015625, %v793_v42  ;;  %v878_v7 = vmul.f32 0.015625, %v796_v47 }
 0x145   : > { %6045 = vrsqrt.f32 %v908_v52 }
 0x146   : > { %v6038_v26 = vpop.eup %6037  ;;  %v909_v36 = vadd.f32 1e-05, %v877_v37  ;;  %v910_v51 = vadd.f32 1e-05, %v878_v7  ;;  %v7305_v7 = vld [vmem:[%s10867_s3] ss:$0 sm:$0xff] }
 0x147   : > { %v799_v50 = vpop.xlane.xlu1 %798  ;;  %v802_v45 = vpop.xlane.xlu0 %801  ;;  %v968_v58 = vmul.f32 %v6038_v26, %v6903_v15 }
 0x148   : > { %6047 = vrsqrt.f32 %v909_v36  ;;  %v879_v41 = vmul.f32 0.015625, %v799_v50  ;;  %v880_v48 = vmul.f32 0.015625, %v802_v45  ;;  %v11117_v36 = vld [vmem:[#allocation11_spill] sm:$0xff] }
 0x149   : > { %6049 = vrsqrt.f32 %v910_v51  ;;  %v1006_v37 = vmul.f32 %v7298_v38, %v968_v58 }
 0x14a   : > { %v6040_v30 = vpop.eup %6039  ;;  %v911_v28 = vadd.f32 1e-05, %v879_v41  ;;  %v912_v6 = vadd.f32 1e-05, %v880_v48 }
 0x14b   : > { %v6042_v59 = vpop.eup %6041  ;;  %v805_v52 = vpop.xlane.xlu1 %804  ;;  %v969_v47 = vmul.f32 %v6040_v30, %v6913_v55  ;;  %v1044_v58 = vadd.f32 %v7305_v7, %v1006_v37 }
 0x14c   : > { %v808_v42 = vpop.xlane.xlu0 %807  ;;  %6051 = vrsqrt.f32 %v911_v28  ;;  %v881_v15 = vmul.f32 0.015625, %v805_v52  ;;  %v970_v51 = vmul.f32 %v6042_v59, %v11117_v36 }
 0x14d   : > { %v882_v26 = vmul.f32 0.015625, %v808_v42  ;;  %6053 = vrsqrt.f32 %v912_v6  ;;  %v1007_v50 = vmul.f32 %v7298_v38, %v969_v47 }
 0x14e   : > { %v6044_v45 = vpop.eup %6043  ;;  %v913_v41 = vadd.f32 1e-05, %v881_v15  ;;  %v1008_v42 = vmul.f32 %v7298_v38, %v970_v51 }
 0x14f   : > { %v914_v48 = vadd.f32 1e-05, %v882_v26  ;;  %v6046_v34 = vpop.eup %6045  ;;  %v811_v55 = vpop.xlane.xlu1 %810  ;;  %v1045_v28 = vadd.f32 %v7305_v7, %v1007_v50  ;;  %v971_v52 = vmul.f32 %v6044_v45, %v6916_v62 }
 0x150   : > { %v814_v30 = vpop.xlane.xlu0 %813  ;;  %6055 = vrsqrt.f32 %v913_v41  ;;  %v883_v18 = vmul.f32 0.015625, %v811_v55  ;;  %v972_v15 = vmul.f32 %v6046_v34, %v6925_v2  ;;  %v1046_v62 = vadd.f32 %v7305_v7, %v1008_v42 }
 0x151   : > { %v884_v59 = vmul.f32 0.015625, %v814_v30  ;;  %6057 = vrsqrt.f32 %v914_v48  ;;  %v1602_v6 = vpack.c.bf16 %v1045_v28, %v1044_v58  ;;  %v1009_v47 = vmul.f32 %v7298_v38, %v971_v52 }
 0x152   : > { %v6048_v26 = vpop.eup %6047  ;;  %v915_v36 = vadd.f32 1e-05, %v883_v18  ;;  %v1010_v41 = vmul.f32 %v7298_v38, %v972_v15 }
 0x153   : > { %v916_v10 = vadd.f32 1e-05, %v884_v59  ;;  %v6050_v43 = vpop.eup %6049  ;;  %v817_v37 = vpop.xlane.xlu1 %816  ;;  %5852 = vmatprep.mubr.msk.bf16.mxu0 %vm582_vm0, %v1602_v6  ;;  %v1047_v51 = vadd.f32 %v7305_v7, %v1009_v47  ;;  %v973_v45 = vmul.f32 %v6048_v26, %v6928_v5 }
 0x154   : > { %v820_v50 = vpop.xlane.xlu0 %819  ;;  %6059 = vrsqrt.f32 %v915_v36  ;;  %v885_v48 = vmul.f32 0.015625, %v817_v37  ;;  %v974_v2 = vmul.f32 %v6050_v43, %v6937_v63  ;;  %v1048_v5 = vadd.f32 %v7305_v7, %v1010_v41 }
 0x155   : > { %v886_v55 = vmul.f32 0.015625, %v820_v50  ;;  %6061 = vrsqrt.f32 %v916_v10  ;;  %v1603_v18 = vpack.c.bf16 %v1047_v51, %v1046_v62  ;;  %v1011_v34 = vmul.f32 %v7298_v38, %v973_v45 }
 0x156   : > { %v6052_v30 = vpop.eup %6051  ;;  %v917_v58 = vadd.f32 1e-05, %v885_v48  ;;  %v1012_v63 = vmul.f32 %v7298_v38, %v974_v2 }
 0x157   : > { %v918_v28 = vadd.f32 1e-05, %v886_v55  ;;  %v6054_v52 = vpop.eup %6053  ;;  %v823_v42 = vpop.xlane.xlu1 %822  ;;  %5853 = vmatmul.mubr.msk.bf16.vlgmr.msra.gmra.mrb[0].mxu0 %vm582_vm0, %v1603_v18  ;;  %v1049_v6 = vadd.f32 %v7305_v7, %v1011_v34  ;;  %v975_v47 = vmul.f32 %v6052_v30, %v6940_v9 }
 0x158   : > { %v826_v59 = vpop.xlane.xlu0 %825  ;;  %6063 = vrsqrt.f32 %v917_v58  ;;  %v887_v43 = vmul.f32 0.015625, %v823_v42  ;;  %v976_v36 = vmul.f32 %v6054_v52, %v6949_v0  ;;  %v1050_v9 = vadd.f32 %v7305_v7, %v1012_v63 }
 0x159   : > { %v888_v10 = vmul.f32 0.015625, %v826_v59  ;;  %6065 = vrsqrt.f32 %v918_v28  ;;  %v1604_v15 = vpack.c.bf16 %v1049_v6, %v1048_v5  ;;  %v1013_v26 = vmul.f32 %v7298_v38, %v975_v47 }
 0x15a   : > { %v6056_v37 = vpop.eup %6055  ;;  %v919_v50 = vadd.f32 1e-05, %v887_v43  ;;  %v1014_v2 = vmul.f32 %v7298_v38, %v976_v36 }
 0x15b   : > { %v920_v62 = vadd.f32 1e-05, %v888_v10  ;;  %v6058_v51 = vpop.eup %6057  ;;  %v829_v45 = vpop.xlane.xlu1 %828  ;;  %5856 = vmatprep.mubr.msk.bf16.mxu0 %vm582_vm0, %v1604_v15  ;;  %v1051_v48 = vadd.f32 %v7305_v7, %v1013_v26  ;;  %v977_v55 = vmul.f32 %v6056_v37, %v6952_v13 }
 0x15c   : > { %v832_v41 = vpop.xlane.xlu0 %831  ;;  %6067 = vrsqrt.f32 %v919_v50  ;;  %v889_v18 = vmul.f32 0.015625, %v829_v45  ;;  %v978_v0 = vmul.f32 %v6058_v51, %v6961_v22  ;;  %v1052_v13 = vadd.f32 %v7305_v7, %v1014_v2 }
 0x15d   : > { %v890_v34 = vmul.f32 0.015625, %v832_v41  ;;  %6069 = vrsqrt.f32 %v920_v62  ;;  %v1605_v30 = vpack.c.bf16 %v1051_v48, %v1050_v9  ;;  %v1015_v58 = vmul.f32 %v7298_v38, %v977_v55 }
 0x15e   : > { %v6060_v28 = vpop.eup %6059  ;;  %v921_v52 = vadd.f32 1e-05, %v889_v18  ;;  %v1016_v22 = vmul.f32 %v7298_v38, %v978_v0 }
 0x15f   : > { %v922_v42 = vadd.f32 1e-05, %v890_v34  ;;  %v6062_v59 = vpop.eup %6061  ;;  %v835_v5 = vpop.xlane.xlu1 %834  ;;  %5857 = vmatmul.mubr.msk.bf16.gmra.mrb[4].mxu0 %vm582_vm0, %v1605_v30  ;;  %v1053_v47 = vadd.f32 %v7305_v7, %v1015_v58  ;;  %v979_v63 = vmul.f32 %v6060_v28, %v6964_v17 }
 0x160   : > { %v838_v6 = vpop.xlane.xlu0 %837  ;;  %6071 = vrsqrt.f32 %v921_v52  ;;  %v891_v43 = vmul.f32 0.015625, %v835_v5  ;;  %v980_v36 = vmul.f32 %v6062_v59, %v6973_v14  ;;  %v1054_v17 = vadd.f32 %v7305_v7, %v1016_v22 }
 0x161   : > { %v892_v10 = vmul.f32 0.015625, %v838_v6  ;;  %6073 = vrsqrt.f32 %v922_v42  ;;  %v1606_v15 = vpack.c.bf16 %v1053_v47, %v1052_v13  ;;  %v1017_v26 = vmul.f32 %v7298_v38, %v979_v63 }
 0x162   : > { %v6064_v37 = vpop.eup %6063  ;;  %v923_v50 = vadd.f32 1e-05, %v891_v43  ;;  %v1018_v55 = vmul.f32 %v7298_v38, %v980_v36 }
 0x163   : > { %v924_v62 = vadd.f32 1e-05, %v892_v10  ;;  %v6066_v51 = vpop.eup %6065  ;;  %v841_v45 = vpop.xlane.xlu1 %840  ;;  %5860 = vmatprep.mubr.msk.bf16.mxu0 %vm582_vm0, %v1606_v15  ;;  %v1055_v9 = vadd.f32 %v7305_v7, %v1017_v26  ;;  %v981_v48 = vmul.f32 %v6064_v37, %v6976_v21 }
 0x164   : > { %v844_v41 = vpop.xlane.xlu0 %843  ;;  %6075 = vrsqrt.f32 %v923_v50  ;;  %v893_v2 = vmul.f32 0.015625, %v841_v45  ;;  %v982_v14 = vmul.f32 %v6066_v51, %v6985_v54  ;;  %v1056_v21 = vadd.f32 %v7305_v7, %v1018_v55  ;;  %v11118_v51 = vld [vmem:[#allocation12_spill] sm:$0xff] }
 0x165   : > { %v894_v18 = vmul.f32 0.015625, %v844_v41  ;;  %6077 = vrsqrt.f32 %v924_v62  ;;  %v1607_v34 = vpack.c.bf16 %v1055_v9, %v1054_v17  ;;  %v1019_v0 = vmul.f32 %v7298_v38, %v981_v48 }
 0x166   : > { %v6068_v30 = vpop.eup %6067  ;;  %v925_v58 = vadd.f32 1e-05, %v893_v2  ;;  %v1020_v54 = vmul.f32 %v7298_v38, %v982_v14 }
 0x167   : > { %v926_v28 = vadd.f32 1e-05, %v894_v18  ;;  %v6070_v52 = vpop.eup %6069  ;;  %v847_v42 = vpop.xlane.xlu1 %846  ;;  %5861 = vmatmul.mubr.msk.bf16.gmra.mrb[8].mxu0 %vm582_vm0, %v1607_v34  ;;  %v1057_v5 = vadd.f32 %v7305_v7, %v1019_v0  ;;  %v983_v6 = vmul.f32 %v6068_v30, %v6988_v25 }
 0x168   : > { %v1196_v59 = vpop.xlane.xlu0 %1195  ;;  %6079 = vrsqrt.f32 %v925_v58  ;;  %v895_v13 = vmul.f32 0.015625, %v847_v42  ;;  %v984_v43 = vmul.f32 %v6070_v52, %v6997_v31  ;;  %v1058_v50 = vadd.f32 %v7305_v7, %v1020_v54 }
 0x169   : > { %v1234_v47 = vmul.f32 0.015625, %v1196_v59  ;;  %6081 = vrsqrt.f32 %v926_v28  ;;  %v1608_v63 = vpack.c.bf16 %v1057_v5, %v1056_v21  ;;  %v1021_v22 = vmul.f32 %v7298_v38, %v983_v6 }
 0x16a   : > { %v6072_v10 = vpop.eup %6071  ;;  %v927_v15 = vadd.f32 1e-05, %v895_v13  ;;  %v1022_v41 = vmul.f32 %v7298_v38, %v984_v43  ;;  %v11119_v13 = vld [vmem:[#allocation13_spill] sm:$0xff] }
 0x16b   : > { %v7358_v26 = vsub.f32 %v7057_v32, %v1234_v47  ;;  %v6074_v36 = vpop.eup %6073  ;;  %v1199_v37 = vpop.xlane.xlu1 %1198  ;;  %5864 = vmatprep.mubr.msk.bf16.mxu0 %vm582_vm0, %v1608_v63  ;;  %v1059_v62 = vadd.f32 %v7305_v7, %v1021_v22  ;;  %v985_v45 = vmul.f32 %v6072_v10, %v11118_v51 }
 0x16c   : > { %v1202_v25 = vpop.xlane.xlu0 %1201  ;;  %6083 = vrsqrt.f32 %v927_v15  ;;  %v1235_v31 = vmul.f32 0.015625, %v1199_v37  ;;  %v986_v55 = vmul.f32 %v6074_v36, %v7012_v20  ;;  %v1060_v0 = vadd.f32 %v7305_v7, %v1022_v41 }
 0x16d   : > { %v1236_v17 = vmul.f32 0.015625, %v1202_v25  ;;  %v1298_v32 = vmul.f32 %v7358_v26, %v7358_v26  ;;  %v1609_v9 = vpack.c.bf16 %v1059_v62, %v1058_v50  ;;  %v1023_v48 = vmul.f32 %v7298_v38, %v985_v45  ;;  %v11120_v50 = vld [vmem:[#allocation14_spill] sm:$0xff] }
 0x16e   : > { %v6076_v2 = vpop.eup %6075  ;;  %v7370_v18 = vsub.f32 %v7067_v46, %v1235_v31  ;;  %v1024_v46 = vmul.f32 %v7298_v38, %v986_v55 }
 0x16f   : > { %v7373_v14 = vsub.f32 %v7070_v29, %v1236_v17  ;;  %v1386_v34 = vsel %vm582_vm0, %v1298_v32, 0.0  ;;  %v6078_v30 = vpop.eup %6077  ;;  %v1205_v58 = vpop.xlane.xlu1 %1204  ;;  %5865 = vmatmul.mubr.msk.bf16.gmra.mrb[12].mxu0 %vm582_vm0, %v1609_v9  ;;  %v1061_v52 = vadd.f32 %v7305_v7, %v1023_v48  ;;  %v987_v20 = vmul.f32 %v6076_v2, %v7015_v8  ;;  %v11121_v32 = vld [vmem:[#allocation15_spill] sm:$0xff] }
 0x170   : > { %1387 = vadd.xlane.f32.xlu0 %v1386_v34  ;;  %v850_v28 = vpop.xlane.xlu0 %849  ;;  %v1237_v42 = vmul.f32 0.015625, %v1205_v58  ;;  %v1299_v29 = vmul.f32 %v7370_v18, %v7370_v18  ;;  %v1062_v54 = vadd.f32 %v7305_v7, %v1024_v46  ;;  %v988_v47 = vmul.f32 %v6078_v30, %v11119_v13 }
 0x171   : > { %v896_v59 = vmul.f32 0.015625, %v850_v28  ;;  %v1300_v21 = vmul.f32 %v7373_v14, %v7373_v14  ;;  %v1610_v5 = vpack.c.bf16 %v1061_v52, %v1060_v0  ;;  %v1025_v6 = vmul.f32 %v7298_v38, %v987_v20  ;;  %v11122_v52 = vld [vmem:[#allocation16_spill] sm:$0xff] }
 0x172   : > { %v6080_v63 = vpop.eup %6079  ;;  %v7389_v8 = vsub.f32 %v7083_v33, %v1237_v42  ;;  %v1389_v43 = vsel %vm582_vm0, %v1299_v29, 0.0  ;;  %v1026_v51 = vmul.f32 %v7298_v38, %v988_v47 }
 0x173   : > { %v928_v22 = vadd.f32 1e-05, %v896_v59  ;;  %v1392_v10 = vsel %vm582_vm0, %v1300_v21, 0.0  ;;  %v6082_v15 = vpop.eup %6081  ;;  %1390 = vadd.xlane.f32.xlu1 %v1389_v43  ;;  %v853_v36 = vpop.xlane.xlu1 %852  ;;  %5868 = vmatprep.mubr.msk.bf16.mxu0 %vm582_vm0, %v1610_v5  ;;  %v1063_v25 = vadd.f32 %v7305_v7, %v1025_v6  ;;  %v989_v62 = vmul.f32 %v6080_v63, %v11120_v50 }
 0x174   : > { %v856_v37 = vpop.xlane.xlu0 %855  ;;  %v897_v33 = vmul.f32 0.015625, %v853_v36  ;;  %1393 = vadd.xlane.f32.xlu0 %v1392_v10  ;;  %v1301_v41 = vmul.f32 %v7389_v8, %v7389_v8  ;;  %v990_v9 = vmul.f32 %v6082_v15, %v11121_v32  ;;  %v1064_v0 = vadd.f32 %v7305_v7, %v1026_v51 }
 0x175   : > { %6085 = vrsqrt.f32 %v928_v22  ;;  %v898_v45 = vmul.f32 0.015625, %v856_v37  ;;  %v1611_v31 = vpack.c.bf16 %v1063_v25, %v1062_v54  ;;  %v1027_v17 = vmul.f32 %v7298_v38, %v989_v62 }
 0x176   : > { %v6084_v48 = vpop.eup %6083  ;;  %v929_v55 = vadd.f32 1e-05, %v897_v33  ;;  %v1395_v34 = vsel %vm582_vm0, %v1301_v41, 0.0  ;;  %v1028_v46 = vmul.f32 %v7298_v38, %v990_v9 }
 0x177   : > { %v930_v2 = vadd.f32 1e-05, %v898_v45  ;;  %1396 = vadd.xlane.f32.xlu1 %v1395_v34  ;;  %v859_v30 = vpop.xlane.xlu1 %858  ;;  %5869 = vmatmul.mubr.msk.bf16.gmra.mrb[16].mxu0 %vm582_vm0, %v1611_v31  ;;  %v1065_v28 = vadd.f32 %v7305_v7, %v1027_v17  ;;  %v991_v20 = vmul.f32 %v6084_v48, %v11122_v52  ;;  %v11123_v48 = vld [vmem:[#allocation17_spill] sm:$0xff] }
 0x178   : > { %v862_v58 = vpop.xlane.xlu0 %861  ;;  %6087 = vrsqrt.f32 %v929_v55  ;;  %v899_v42 = vmul.f32 0.015625, %v859_v30  ;;  %v1066_v47 = vadd.f32 %v7305_v7, %v1028_v46 }
 0x179   : > { %v900_v59 = vmul.f32 0.015625, %v862_v58  ;;  %6089 = vrsqrt.f32 %v930_v2  ;;  %v1612_v29 = vpack.c.bf16 %v1065_v28, %v1064_v0  ;;  %v1029_v21 = vmul.f32 %v7298_v38, %v991_v20 }
 0x17a   : > { %v931_v5 = vadd.f32 1e-05, %v899_v42 }
 0x17b   : > { %v932_v6 = vadd.f32 1e-05, %v900_v59  ;;  %v865_v54 = vpop.xlane.xlu1 %864  ;;  %5872 = vmatprep.mubr.msk.bf16.mxu0 %vm582_vm0, %v1612_v29  ;;  %v1067_v63 = vadd.f32 %v7305_v7, %v1029_v21 }
 0x17c   : > { %v868_v13 = vpop.xlane.xlu0 %867  ;;  %6091 = vrsqrt.f32 %v931_v5  ;;  %v901_v22 = vmul.f32 0.015625, %v865_v54 }
 0x17d   : > { %v902_v43 = vmul.f32 0.015625, %v868_v13  ;;  %6093 = vrsqrt.f32 %v932_v6  ;;  %v1613_v10 = vpack.c.bf16 %v1067_v63, %v1066_v47 }
 0x17e   : > { %v933_v36 = vadd.f32 1e-05, %v901_v22 }
 0x17f   : > { %v6086_v15 = vpop.eup %6085  ;;  %v934_v37 = vadd.f32 1e-05, %v902_v43  ;;  %v871_v25 = vpop.xlane.xlu1 %870  ;;  %5873 = vmatmul.mubr.msk.bf16.gmra.mrb[20].mxu0 %vm582_vm0, %v1613_v10 }
 0x180   : > { %v1304_v50 = vpop.xlane.xlu0 %1303  ;;  %v992_v62 = vmul.f32 %v6086_v15, %v7064_v23  ;;  %6095 = vrsqrt.f32 %v933_v36  ;;  %v903_v51 = vmul.f32 0.015625, %v871_v25 }
 0x181   : > { %v1398_v33 = vmul.f32 0.015625, %v1304_v50  ;;  %6097 = vrsqrt.f32 %v934_v37 }
 0x182   : > { %v6088_v45 = vpop.eup %6087  ;;  %v935_v41 = vadd.f32 1e-05, %v903_v51  ;;  %v1030_v2 = vmul.f32 %v7298_v38, %v992_v62 }
 0x183   : > { %v1430_v31 = vadd.f32 1e-05, %v1398_v33  ;;  %v6090_v17 = vpop.eup %6089  ;;  %v1307_v32 = vpop.xlane.xlu1 %1306  ;;  %v993_v55 = vmul.f32 %v6088_v45, %v11123_v48 }
 0x184   : > { %v1310_v9 = vpop.xlane.xlu0 %1309  ;;  %6099 = vrsqrt.f32 %v935_v41  ;;  %v1399_v34 = vmul.f32 0.015625, %v1307_v32  ;;  %v994_v30 = vmul.f32 %v6090_v17, %v7080_v39  ;;  %v1068_v59 = vadd.f32 %v7305_v7, %v1030_v2 }
 0x185   : > { %v1400_v0 = vmul.f32 0.015625, %v1310_v9  ;;  %6101 = vrsqrt.f32 %v1430_v31  ;;  %v1031_v23 = vmul.f32 %v7298_v38, %v993_v55 }
 0x186   : > { %v6092_v58 = vpop.eup %6091  ;;  %v1431_v28 = vadd.f32 1e-05, %v1399_v34  ;;  %v1032_v5 = vmul.f32 %v7298_v38, %v994_v30  ;;  %v7438_v30 = vld [vmem:[%s10868_s4] ss:$0 sm:$0xff] }
 0x187   : > { %v1432_v52 = vadd.f32 1e-05, %v1400_v0  ;;  %v6094_v20 = vpop.eup %6093  ;;  %v1313_v46 = vpop.xlane.xlu1 %1312  ;;  %v1069_v29 = vadd.f32 %v7305_v7, %v1031_v23  ;;  %v995_v21 = vmul.f32 %v6092_v58, %v7088_v49 }
 0x188   : > { %v1316_v42 = vpop.xlane.xlu0 %1315  ;;  %6103 = vrsqrt.f32 %v1431_v28  ;;  %v1401_v6 = vmul.f32 0.015625, %v1313_v46  ;;  %v996_v47 = vmul.f32 %v6094_v20, %v7096_v24  ;;  %v1070_v49 = vadd.f32 %v7305_v7, %v1032_v5 }
 0x189   : > { %v1402_v39 = vmul.f32 0.015625, %v1316_v42  ;;  %6105 = vrsqrt.f32 %v1432_v52  ;;  %v1614_v54 = vpack.c.bf16 %v1069_v29, %v1068_v59  ;;  %v1033_v13 = vmul.f32 %v7298_v38, %v995_v21 }
 0x18a   : > { %v6096_v63 = vpop.eup %6095  ;;  %v1433_v22 = vadd.f32 1e-05, %v1401_v6  ;;  %v1034_v50 = vmul.f32 %v7298_v38, %v996_v47 }
 0x18b   : > { %v1434_v43 = vadd.f32 1e-05, %v1402_v39  ;;  %v6098_v10 = vpop.eup %6097  ;;  %v1319_v15 = vpop.xlane.xlu1 %1318  ;;  %5876 = vmatprep.mubr.msk.bf16.mxu0 %vm582_vm0, %v1614_v54  ;;  %v1071_v37 = vadd.f32 %v7305_v7, %v1033_v13  ;;  %v997_v25 = vmul.f32 %v6096_v63, %v7101_v53 }
 0x18c   : > { %v1322_v36 = vpop.xlane.xlu0 %1321  ;;  %6107 = vrsqrt.f32 %v1433_v22  ;;  %v1403_v62 = vmul.f32 0.015625, %v1319_v15  ;;  %v998_v24 = vmul.f32 %v6098_v10, %v7108_v40  ;;  %v1072_v53 = vadd.f32 %v7305_v7, %v1034_v50 }
 0x18d   : > { %v1404_v51 = vmul.f32 0.015625, %v1322_v36  ;;  %6109 = vrsqrt.f32 %v1434_v43  ;;  %v1615_v33 = vpack.c.bf16 %v1071_v37, %v1070_v49  ;;  %v1035_v45 = vmul.f32 %v7298_v38, %v997_v25 }
 0x18e   : > { %v6100_v41 = vpop.eup %6099  ;;  %v1435_v31 = vadd.f32 1e-05, %v1403_v62  ;;  %v1036_v40 = vmul.f32 %v7298_v38, %v998_v24 }
 0x18f   : > { %v1436_v17 = vadd.f32 1e-05, %v1404_v51  ;;  %v6102_v32 = vpop.eup %6101  ;;  %v1325_v9 = vpop.xlane.xlu1 %1324  ;;  %5877 = vmatmul.mubr.msk.bf16.gmra.mrb[24].mxu0 %vm582_vm0, %v1615_v33  ;;  %v1073_v55 = vadd.f32 %v7305_v7, %v1035_v45  ;;  %v999_v2 = vmul.f32 %v6100_v41, %v7113_v57 }
 0x190   : > { %v1328_v48 = vpop.xlane.xlu0 %1327  ;;  %6111 = vrsqrt.f32 %v1435_v31  ;;  %v1405_v34 = vmul.f32 0.015625, %v1325_v9  ;;  %v1494_v28 = vmul.f32 %v6102_v32, %v7120_v44  ;;  %v1074_v29 = vadd.f32 %v7305_v7, %v1036_v40  ;;  %v7450_v44 = vld [vmem:[%s10869_s5] ss:$0 sm:$0xff] }
 0x191   : > { %v1406_v0 = vmul.f32 0.015625, %v1328_v48  ;;  %6113 = vrsqrt.f32 %v1436_v17  ;;  %v1616_v23 = vpack.c.bf16 %v1073_v55, %v1072_v53  ;;  %v1037_v58 = vmul.f32 %v7298_v38, %v999_v2 }
 0x192   : > { %v6104_v52 = vpop.eup %6103  ;;  %v1437_v20 = vadd.f32 1e-05, %v1405_v34  ;;  %v1532_v6 = vmul.f32 %v7438_v30, %v1494_v28 }
 0x193   : > { %v1438_v46 = vadd.f32 1e-05, %v1406_v0  ;;  %v6106_v57 = vpop.eup %6105  ;;  %v1331_v42 = vpop.xlane.xlu1 %1330  ;;  %5880 = vmatprep.mubr.msk.bf16.mxu0 %vm582_vm0, %v1616_v23  ;;  %v1075_v21 = vadd.f32 %v7305_v7, %v1037_v58  ;;  %v1495_v5 = vmul.f32 %v6104_v52, %v7125_v61 }
 0x194   : > { %v1334_v59 = vpop.xlane.xlu0 %1333  ;;  %6115 = vrsqrt.f32 %v1437_v20  ;;  %v1407_v38 = vmul.f32 0.015625, %v1331_v42  ;;  %v1496_v54 = vmul.f32 %v6106_v57, %v7132_v12  ;;  %v1570_v15 = vadd.f32 %v7450_v44, %v1532_v6 }
 0x195   : > { %v1408_v39 = vmul.f32 0.015625, %v1334_v59  ;;  %6117 = vrsqrt.f32 %v1438_v46  ;;  %v1617_v13 = vpack.c.bf16 %v1075_v21, %v1074_v29  ;;  %v1533_v47 = vmul.f32 %v7438_v30, %v1495_v5 }
 0x196   : > { %v6108_v63 = vpop.eup %6107  ;;  %v1439_v7 = vadd.f32 1e-05, %v1407_v38  ;;  %v1534_v12 = vmul.f32 %v7438_v30, %v1496_v54 }
 0x197   : > { %v1440_v22 = vadd.f32 1e-05, %v1408_v39  ;;  %v6110_v61 = vpop.eup %6109  ;;  %v1337_v43 = vpop.xlane.xlu1 %1336  ;;  %5881 = vmatmul.mubr.msk.bf16.gmra.mrb[28].mxu0 %vm582_vm0, %v1617_v13  ;;  %v1571_v36 = vadd.f32 %v7450_v44, %v1533_v47  ;;  %v1497_v49 = vmul.f32 %v6108_v63, %v7137_v4 }
 0x198   : > { %v1340_v10 = vpop.xlane.xlu0 %1339  ;;  %6119 = vrsqrt.f32 %v1439_v7  ;;  %v1409_v37 = vmul.f32 0.015625, %v1337_v43  ;;  %v1498_v51 = vmul.f32 %v6110_v61, %v7144_v1  ;;  %v1572_v4 = vadd.f32 %v7450_v44, %v1534_v12 }
 0x199   : > { %v1410_v25 = vmul.f32 0.015625, %v1340_v10  ;;  %6121 = vrsqrt.f32 %v1440_v22  ;;  %v1618_v50 = vpack.c.bf16 %v1571_v36, %v1570_v15  ;;  %v1535_v62 = vmul.f32 %v7438_v30, %v1497_v49 }
 0x19a   : > { %v6112_v24 = vpop.eup %6111  ;;  %v1441_v33 = vadd.f32 1e-05, %v1409_v37  ;;  %v1536_v48 = vmul.f32 %v7438_v30, %v1498_v51 }
 0x19b   : > { %v1442_v45 = vadd.f32 1e-05, %v1410_v25  ;;  %v6114_v41 = vpop.eup %6113  ;;  %v1343_v31 = vpop.xlane.xlu1 %1342  ;;  %5884 = vmatprep.mubr.msk.bf16.mxu0 %vm582_vm0, %v1618_v50  ;;  %v1573_v32 = vadd.f32 %v7450_v44, %v1535_v62  ;;  %v1499_v9 = vmul.f32 %v6112_v24, %v7149_v11 }
 0x19c   : > { %v1346_v17 = vpop.xlane.xlu0 %1345  ;;  %6123 = vrsqrt.f32 %v1441_v33  ;;  %v1411_v53 = vmul.f32 0.015625, %v1343_v31  ;;  %v1500_v1 = vmul.f32 %v6114_v41, %v7156_v16  ;;  %v1574_v11 = vadd.f32 %v7450_v44, %v1536_v48 }
 0x19d   : > { %v1412_v55 = vmul.f32 0.015625, %v1346_v17  ;;  %6125 = vrsqrt.f32 %v1442_v45  ;;  %v1619_v2 = vpack.c.bf16 %v1573_v32, %v1572_v4  ;;  %v1537_v40 = vmul.f32 %v7438_v30, %v1499_v9 }
 0x19e   : > { %v6116_v34 = vpop.eup %6115  ;;  %v1443_v0 = vadd.f32 1e-05, %v1411_v53  ;;  %v1538_v16 = vmul.f32 %v7438_v30, %v1500_v1 }
 0x19f   : > { %v1444_v23 = vadd.f32 1e-05, %v1412_v55  ;;  %v6118_v58 = vpop.eup %6117  ;;  %v1349_v28 = vpop.xlane.xlu1 %1348  ;;  %5885 = vmatmul.mubr.msk.bf16.gmra.mrb[32].mxu0 %vm582_vm0, %v1619_v2  ;;  %v1575_v20 = vadd.f32 %v7450_v44, %v1537_v40  ;;  %v1501_v46 = vmul.f32 %v6116_v34, %v7161_v19  ;;  %v11124_v55 = vld [vmem:[#allocation18_spill] sm:$0xff] }
 0x1a0   : > { %v1352_v52 = vpop.xlane.xlu0 %1351  ;;  %6127 = vrsqrt.f32 %v1443_v0  ;;  %v1413_v57 = vmul.f32 0.015625, %v1349_v28  ;;  %v1502_v21 = vmul.f32 %v6118_v58, %v7168_v56  ;;  %v1576_v19 = vadd.f32 %v7450_v44, %v1538_v16 }
 0x1a1   : > { %v1414_v42 = vmul.f32 0.015625, %v1352_v52  ;;  %6129 = vrsqrt.f32 %v1444_v23  ;;  %v1620_v59 = vpack.c.bf16 %v1575_v20, %v1574_v11  ;;  %v1539_v29 = vmul.f32 %v7438_v30, %v1501_v46 }
 0x1a2   : > { %v6120_v5 = vpop.eup %6119  ;;  %v1445_v6 = vadd.f32 1e-05, %v1413_v57  ;;  %v1540_v7 = vmul.f32 %v7438_v30, %v1502_v21 }
 0x1a3   : > { %v1446_v38 = vadd.f32 1e-05, %v1414_v42  ;;  %v6122_v39 = vpop.eup %6121  ;;  %v1355_v54 = vpop.xlane.xlu1 %1354  ;;  %5888 = vmatprep.mubr.msk.bf16.mxu0 %vm582_vm0, %v1620_v59  ;;  %v1577_v47 = vadd.f32 %v7450_v44, %v1539_v29  ;;  %v1503_v63 = vmul.f32 %v6120_v5, %v7173_v27  ;;  %v11126_v59 = vld [vmem:[#allocation20_spill] sm:$0xff] }
 0x1a4   : > { %v1358_v13 = vpop.xlane.xlu0 %1357  ;;  %6131 = vrsqrt.f32 %v1445_v6  ;;  %v1415_v22 = vmul.f32 0.015625, %v1355_v54  ;;  %v1504_v56 = vmul.f32 %v6122_v39, %v7180_v60  ;;  %v1578_v27 = vadd.f32 %v7450_v44, %v1540_v7  ;;  %v11127_v54 = vld [vmem:[#allocation21_spill] sm:$0xff] }
 0x1a5   : > { %v1416_v61 = vmul.f32 0.015625, %v1358_v13  ;;  %6133 = vrsqrt.f32 %v1446_v38  ;;  %v1621_v43 = vpack.c.bf16 %v1577_v47, %v1576_v19  ;;  %v1541_v10 = vmul.f32 %v7438_v30, %v1503_v63 }
 0x1a6   : > { %v6124_v15 = vpop.eup %6123  ;;  %v1447_v36 = vadd.f32 1e-05, %v1415_v22  ;;  %v1542_v60 = vmul.f32 %v7438_v30, %v1504_v56 }
 0x1a7   : > { %v1448_v49 = vadd.f32 1e-05, %v1416_v61  ;;  %v6126_v12 = vpop.eup %6125  ;;  %v1361_v37 = vpop.xlane.xlu1 %1360  ;;  %5889 = vmatmul.mubr.msk.bf16.gmra.mrb[36].mxu0 %vm582_vm0, %v1621_v43  ;;  %v1579_v50 = vadd.f32 %v7450_v44, %v1541_v10  ;;  %v1505_v62 = vmul.f32 %v6124_v15, %v7185_v35  ;;  %v11128_v10 = vld [vmem:[#allocation22_spill] sm:$0xff] }
 0x1a8   : > { %v1364_v25 = vpop.xlane.xlu0 %1363  ;;  %6135 = vrsqrt.f32 %v1447_v36  ;;  %v1417_v51 = vmul.f32 0.015625, %v1361_v37  ;;  %v1506_v41 = vmul.f32 %v6126_v12, %v7192_v3  ;;  %v1580_v35 = vadd.f32 %v7450_v44, %v1542_v60  ;;  %v11125_v3 = vld [vmem:[#allocation19_spill] sm:$0xff]  ;;  %v11129_v37 = vld [vmem:[#allocation2_spill] sm:$0xff] }
 0x1a9   : > { %v1418_v24 = vmul.f32 0.015625, %v1364_v25  ;;  %6137 = vrsqrt.f32 %v1448_v49  ;;  %v1622_v33 = vpack.c.bf16 %v1579_v50, %v1578_v27  ;;  %v1543_v45 = vmul.f32 %v7438_v30, %v1505_v62 }
 0x1aa   : > { %v6128_v31 = vpop.eup %6127  ;;  %v1449_v17 = vadd.f32 1e-05, %v1417_v51  ;;  %v1544_v2 = vmul.f32 %v7438_v30, %v1506_v41 }
 0x1ab   : > { %v1450_v4 = vadd.f32 1e-05, %v1418_v24  ;;  %v6130_v32 = vpop.eup %6129  ;;  %v1367_v9 = vpop.xlane.xlu1 %1366  ;;  %5892 = vmatprep.mubr.msk.bf16.mxu0 %vm582_vm0, %v1622_v33  ;;  %v1581_v53 = vadd.f32 %v7450_v44, %v1543_v45  ;;  %v1507_v1 = vmul.f32 %v6128_v31, %v11124_v55  ;;  %v11130_v31 = vld [vmem:[#allocation3_spill] sm:$0xff] }
 0x1ac   : > { %v1370_v48 = vpop.xlane.xlu0 %1369  ;;  %6139 = vrsqrt.f32 %v1449_v17  ;;  %v1419_v40 = vmul.f32 0.015625, %v1367_v9  ;;  %v1508_v0 = vmul.f32 %v6130_v32, %v11125_v3  ;;  %v1582_v57 = vadd.f32 %v7450_v44, %v1544_v2  ;;  %v11131_v9 = vld [vmem:[#allocation4_spill] sm:$0xff]  ;;  %v11132_v3 = vld [vmem:[#allocation5_spill] sm:$0xff] }
 0x1ad   : > { %v1420_v34 = vmul.f32 0.015625, %v1370_v48  ;;  %6141 = vrsqrt.f32 %v1450_v4  ;;  %v1623_v23 = vpack.c.bf16 %v1581_v53, %v1580_v35  ;;  %v1545_v58 = vmul.f32 %v7438_v30, %v1507_v1 }
 0x1ae   : > { %v6132_v28 = vpop.eup %6131  ;;  %v1451_v52 = vadd.f32 1e-05, %v1419_v40  ;;  %v1546_v21 = vmul.f32 %v7438_v30, %v1508_v0 }
 0x1af   : > { %v1452_v11 = vadd.f32 1e-05, %v1420_v34  ;;  %v6134_v20 = vpop.eup %6133  ;;  %v1373_v46 = vpop.xlane.xlu1 %1372  ;;  %5893 = vmatmul.mubr.msk.bf16.gmra.mrb[40].mxu0 %vm582_vm0, %v1623_v23  ;;  %v1583_v42 = vadd.f32 %v7450_v44, %v1545_v58  ;;  %v1509_v29 = vmul.f32 %v6132_v28, %v11126_v59  ;;  %v11133_v58 = vld [vmem:[#allocation6_spill] sm:$0xff] }
 0x1b0   : > { %v1376_v16 = vpop.xlane.xlu0 %1375  ;;  %6143 = vrsqrt.f32 %v1451_v52  ;;  %v1421_v5 = vmul.f32 0.015625, %v1373_v46  ;;  %v1510_v13 = vmul.f32 %v6134_v20, %v11127_v54  ;;  %v1584_v56 = vadd.f32 %v7450_v44, %v1546_v21  ;;  %v11135_v21 = vld [vmem:[#allocation8_spill] sm:$0xff] }
 0x1b1   : > { %v1422_v6 = vmul.f32 0.015625, %v1376_v16  ;;  %6145 = vrsqrt.f32 %v1452_v11  ;;  %v1624_v38 = vpack.c.bf16 %v1583_v42, %v1582_v57  ;;  %v1547_v39 = vmul.f32 %v7438_v30, %v1509_v29  ;;  %v11134_v42 = vld [vmem:[#allocation7_spill] sm:$0xff] }
 0x1b2   : > { %v6136_v19 = vpop.eup %6135  ;;  %v1453_v47 = vadd.f32 1e-05, %v1421_v5  ;;  %v1548_v36 = vmul.f32 %v7438_v30, %v1510_v13 }
 0x1b3   : > { %v1454_v63 = vadd.f32 1e-05, %v1422_v6  ;;  %v6138_v7 = vpop.eup %6137  ;;  %v1379_v22 = vpop.xlane.xlu1 %1378  ;;  %5896 = vmatprep.mubr.msk.bf16.mxu0 %vm582_vm0, %v1624_v38  ;;  %v1585_v43 = vadd.f32 %v7450_v44, %v1547_v39  ;;  %v1511_v15 = vmul.f32 %v6136_v19, %v11128_v10 }
 0x1b4   : > { %v1382_v61 = vpop.xlane.xlu0 %1381  ;;  %6147 = vrsqrt.f32 %v1453_v47  ;;  %v1423_v49 = vmul.f32 0.015625, %v1379_v22  ;;  %v1512_v25 = vmul.f32 %v6138_v7, %v11129_v37  ;;  %v1586_v45 = vadd.f32 %v7450_v44, %v1548_v36  ;;  %v11136_v47 = vld [vmem:[#allocation9_spill] sm:$0xff]  ;;  %v11137_v22 = vld [vmem:[#allocation10_spill] sm:$0xff] }
 0x1b5   : > { %v1424_v12 = vmul.f32 0.015625, %v1382_v61  ;;  %6149 = vrsqrt.f32 %v1454_v63  ;;  %v1625_v27 = vpack.c.bf16 %v1585_v43, %v1584_v56  ;;  %v1549_v50 = vmul.f32 %v7438_v30, %v1511_v15 }
 0x1b6   : > { %v6140_v62 = vpop.eup %6139  ;;  %v1455_v60 = vadd.f32 1e-05, %v1423_v49  ;;  %v1550_v4 = vmul.f32 %v7438_v30, %v1512_v25  ;;  %v11138_v49 = vld [vmem:[#allocation23_spill] sm:$0xff] }
 0x1b7   : > { %v1456_v51 = vadd.f32 1e-05, %v1424_v12  ;;  %v6142_v24 = vpop.eup %6141  ;;  %v1385_v33 = vpop.xlane.xlu1 %1384  ;;  %5897 = vmatmul.mubr.msk.bf16.gmra.mrb[44].mxu0 %vm582_vm0, %v1625_v27  ;;  %v1587_v41 = vadd.f32 %v7450_v44, %v1549_v50  ;;  %v1513_v17 = vmul.f32 %v6140_v62, %v11130_v31 }
 0x1b8   : > { %6151 = vrsqrt.f32 %v1455_v60  ;;  %v1425_v32 = vmul.f32 0.015625, %v1385_v33  ;;  %v1514_v48 = vmul.f32 %v6142_v24, %v11131_v9  ;;  %v1588_v40 = vadd.f32 %v7450_v44, %v1550_v4 }
 0x1b9   : > { %6153 = vrsqrt.f32 %v1456_v51  ;;  %v1626_v35 = vpack.c.bf16 %v1587_v41, %v1586_v45  ;;  %v1551_v53 = vmul.f32 %v7438_v30, %v1513_v17 }
 0x1ba   : > { %v6144_v55 = vpop.eup %6143  ;;  %v1457_v1 = vadd.f32 1e-05, %v1425_v32  ;;  %v1552_v23 = vmul.f32 %v7438_v30, %v1514_v48 }
 0x1bb   : > { %v6146_v2 = vpop.eup %6145  ;;  %5900 = vmatprep.mubr.msk.bf16.mxu0 %vm582_vm0, %v1626_v35  ;;  %v1589_v34 = vadd.f32 %v7450_v44, %v1551_v53  ;;  %v1515_v0 = vmul.f32 %v6144_v55, %v11132_v3 }
 0x1bc   : > { %6155 = vrsqrt.f32 %v1457_v1  ;;  %v1516_v28 = vmul.f32 %v6146_v2, %v11133_v58  ;;  %v1590_v16 = vadd.f32 %v7450_v44, %v1552_v23 }
 0x1bd   : > { %v1627_v52 = vpack.c.bf16 %v1589_v34, %v1588_v40  ;;  %v1553_v11 = vmul.f32 %v7438_v30, %v1515_v0 }
 0x1be   : > { %v6148_v20 = vpop.eup %6147  ;;  %v1554_v29 = vmul.f32 %v7438_v30, %v1516_v28 }
 0x1bf   : > { %v6150_v46 = vpop.eup %6149  ;;  %5901 = vmatmul.mubr.msk.bf16.gmra.mrb[48].mxu0 %vm582_vm0, %v1627_v52  ;;  %v1591_v57 = vadd.f32 %v7450_v44, %v1553_v11  ;;  %v1517_v59 = vmul.f32 %v6148_v20, %v11134_v42 }
 0x1c0   : > { %v1518_v5 = vmul.f32 %v6150_v46, %v11135_v21  ;;  %v1592_v13 = vadd.f32 %v7450_v44, %v1554_v29 }
 0x1c1   : > { %v1628_v6 = vpack.c.bf16 %v1591_v57, %v1590_v16  ;;  %v1555_v38 = vmul.f32 %v7438_v30, %v1517_v59  ;;  %v7565_v16 = vld [vmem:[%s10871_s7] ss:$0 sm:$0xff] }
 0x1c2   : > { %v6152_v39 = vpop.eup %6151  ;;  %v1556_v7 = vmul.f32 %v7438_v30, %v1518_v5 }
 0x1c3   : > { %v6154_v54 = vpop.eup %6153  ;;  %5904 = vmatprep.mubr.msk.bf16.mxu0 %vm582_vm0, %v1628_v6  ;;  %v1593_v19 = vadd.f32 %v7450_v44, %v1555_v38  ;;  %v1519_v63 = vmul.f32 %v6152_v39, %v11136_v47 }
 0x1c4   : > { %v1520_v61 = vmul.f32 %v6154_v54, %v11137_v22  ;;  %v1594_v15 = vadd.f32 %v7450_v44, %v1556_v7 }
 0x1c5   : > { %v1629_v56 = vpack.c.bf16 %v1593_v19, %v1592_v13  ;;  %v1557_v43 = vmul.f32 %v7438_v30, %v1519_v63 }
 0x1c6   : > { %v6156_v10 = vpop.eup %6155  ;;  %v1558_v37 = vmul.f32 %v7438_v30, %v1520_v61 }
 0x1c7   : > { %5905 = vmatmul.mubr.msk.bf16.gmra.mrb[52].mxu0 %vm582_vm0, %v1629_v56  ;;  %v1595_v36 = vadd.f32 %v7450_v44, %v1557_v43  ;;  %v1521_v12 = vmul.f32 %v6156_v10, %v11138_v49 }
 0x1c8   : > { %v1596_v50 = vadd.f32 %v7450_v44, %v1558_v37 }
 0x1c9   : > { %v1630_v25 = vpack.c.bf16 %v1595_v36, %v1594_v15  ;;  %v1559_v27 = vmul.f32 %v7438_v30, %v1521_v12 }
 0x1cb   : > { %5908 = vmatprep.mubr.msk.bf16.mxu0 %vm582_vm0, %v1630_v25  ;;  %v1597_v62 = vadd.f32 %v7450_v44, %v1559_v27 }
 0x1cd   : > { %v1631_v60 = vpack.c.bf16 %v1597_v62, %v1596_v50 }
 0x1cf   : > { %5909 = vmatmul.mubr.msk.bf16.gmra.mrb[56].mxu0 %vm582_vm0, %v1631_v60 }
 0x1fd   : > { %v1388_v51 = vpop.xlane.xlu0 %1387 }
 0x1fe   : > { %v1426_v24 = vmul.f32 0.015625, %v1388_v51 }
 0x200   : > { %v1458_v33 = vadd.f32 1e-05, %v1426_v24  ;;  %v1391_v45 = vpop.xlane.xlu1 %1390 }
 0x201   : > { %v1427_v41 = vmul.f32 0.015625, %v1391_v45  ;;  %v1394_v31 = vpop.xlane.xlu0 %1393 }
 0x202   : > { %6157 = vrsqrt.f32 %v1458_v33  ;;  %v1428_v17 = vmul.f32 0.015625, %v1394_v31 }
 0x203   : > { %v1459_v4 = vadd.f32 1e-05, %v1427_v41 }
 0x204   : > { %v1460_v32 = vadd.f32 1e-05, %v1428_v17  ;;  %v1397_v9 = vpop.xlane.xlu1 %1396 }
 0x205   : > { %6159 = vrsqrt.f32 %v1459_v4  ;;  %v1429_v48 = vmul.f32 0.015625, %v1397_v9 }
 0x206   : > { %6161 = vrsqrt.f32 %v1460_v32 }
 0x207   : > { %v1461_v35 = vadd.f32 1e-05, %v1429_v48 }
 0x209   : > { %6163 = vrsqrt.f32 %v1461_v35 }
 0x20c   : > { %v6158_v53 = vpop.eup %6157 }
 0x20d   : > { %v1522_v55 = vmul.f32 %v6158_v53, %v7358_v26 }
 0x20f   : > { %v6160_v1 = vpop.eup %6159  ;;  %v1560_v34 = vmul.f32 %v7438_v30, %v1522_v55 }
 0x210   : > { %v6162_v2 = vpop.eup %6161  ;;  %v1523_v40 = vmul.f32 %v6160_v1, %v7370_v18 }
 0x211   : > { %v1524_v3 = vmul.f32 %v6162_v2, %v7373_v14  ;;  %v1598_v58 = vadd.f32 %v7450_v44, %v1560_v34 }
 0x212   : > { %v1561_v0 = vmul.f32 %v7438_v30, %v1523_v40 }
 0x213   : > { %v6164_v23 = vpop.eup %6163  ;;  %v1562_v11 = vmul.f32 %v7438_v30, %v1524_v3 }
 0x214   : > { %v1599_v28 = vadd.f32 %v7450_v44, %v1561_v0  ;;  %v1525_v52 = vmul.f32 %v6164_v23, %v7389_v8 }
 0x215   : > { %v1600_v18 = vadd.f32 %v7450_v44, %v1562_v11 }
 0x216   : > { %v1632_v26 = vpack.c.bf16 %v1599_v28, %v1598_v58  ;;  %v1563_v20 = vmul.f32 %v7438_v30, %v1525_v52 }
 0x218   : > { %5912 = vmatprep.mubr.msk.bf16.mxu0 %vm582_vm0, %v1632_v26  ;;  %v1601_v14 = vadd.f32 %v7450_v44, %v1563_v20 }
 0x21a   : > { %v1633_v46 = vpack.c.bf16 %v1601_v14, %v1600_v18 }
 0x21c   : > { %5913 = vmatmul.mubr.msk.bf16.gmra.mrb[60].mxu0 %vm582_vm0, %v1633_v46 }
 0x22a   : > { %v5854_v8 = vpop.f32.mrb[0].mxu0 }
 0x22b   : > { %v7568_v57 = vadd.f32 %v5854_v8, %v7565_v16  ;;  %v1803_v42 = vpop.f32.mrb[1].mxu0 }
 0x22c   : > { %v7571_v30 = vadd.f32 %v7565_v16, %v1803_v42  ;;  %v5855_v59 = vpop.f32.mrb[2].mxu0 }
 0x22d   : > { %v7574_v29 = vmul.f32 0.70710677, %v7568_v57  ;;  %v7577_v44 = vadd.f32 %v5855_v59, %v7565_v16  ;;  %v1806_v21 = vpop.f32.mrb[3].mxu0 }
 0x22e   : > { %v7580_v5 = vmul.f32 0.70710677, %v7571_v30  ;;  %v7592_v54 = vadd.f32 %v7565_v16, %v1806_v21 }
 0x22f   : > { %v7583_v6 = vand.u32 2147483647, %v7574_v29  ;;  %v7586_v38 = vmul.f32 0.70710677, %v7577_v44  ;;  %vm3404_vm1 = vcmp.ge.f32.partialorder %v7574_v29, 0.0 }
 0x230   : > { %v7589_v39 = vand.u32 2147483647, %v7580_v5  ;;  %v7600_v7 = vmul.f32 0.70710677, %v7592_v54  ;;  %vm3402_vm2 = vcmp.ge.f32.partialorder %v7580_v5, 0.0 }
 0x231   : > { %v2252_v13 = vmul.f32 0.3275911, %v7583_v6  ;;  %v7596_v19 = vand.u32 2147483647, %v7586_v38  ;;  %vm3405_vm3 = vcmp.ge.f32.partialorder %v7586_v38, 0.0 }
 0x232   : > { %v5858_v47 = vpop.f32.mrb[4].mxu0  ;;  %v2250_v63 = vmul.f32 0.3275911, %v7589_v39  ;;  %v7610_v12 = vand.u32 2147483647, %v7600_v7  ;;  %vm3403_vm4 = vcmp.ge.f32.partialorder %v7600_v7, 0.0 }
 0x233   : > { %v1819_v22 = vpop.f32.mrb[5].mxu0  ;;  %v2316_v43 = vadd.f32 1.0, %v2252_v13  ;;  %v2253_v10 = vmul.f32 0.3275911, %v7596_v19  ;;  %v7604_v15 = vadd.f32 %v5858_v47, %v7565_v16 }
 0x234   : > { %v5859_v61 = vpop.f32.mrb[6].mxu0  ;;  %v7607_v36 = vadd.f32 %v7565_v16, %v1819_v22  ;;  %v2314_v49 = vadd.f32 1.0, %v2250_v63  ;;  %v2251_v24 = vmul.f32 0.3275911, %v7610_v12 }
 0x235   : > { %v1822_v56 = vpop.f32.mrb[7].mxu0  ;;  %v7613_v37 = vmul.f32 0.70710677, %v7604_v15  ;;  %v7616_v25 = vadd.f32 %v5859_v61, %v7565_v16  ;;  %6165 = vrcp.f32 %v2316_v43  ;;  %v2317_v62 = vadd.f32 1.0, %v2253_v10 }
 0x236   : > { %v7619_v27 = vmul.f32 0.70710677, %v7607_v36  ;;  %6167 = vrcp.f32 %v2314_v49  ;;  %v7628_v33 = vadd.f32 %v7565_v16, %v1822_v56  ;;  %v2315_v32 = vadd.f32 1.0, %v2251_v24 }
 0x237   : > { %v7622_v60 = vand.u32 2147483647, %v7613_v37  ;;  %v7637_v17 = vmul.f32 0.70710677, %v7616_v25  ;;  %6169 = vrcp.f32 %v2317_v62  ;;  %v3020_v56 = vsub.f32 0.0, %v7583_v6 }
 0x238   : > { %v7634_v31 = vand.u32 2147483647, %v7619_v27  ;;  %v7642_v9 = vmul.f32 0.70710677, %v7628_v33  ;;  %6171 = vrcp.f32 %v2315_v32  ;;  %v3018_v24 = vsub.f32 0.0, %v7589_v39 }
 0x239   : > { %v2256_v41 = vmul.f32 0.3275911, %v7622_v60  ;;  %v7646_v53 = vand.u32 2147483647, %v7637_v17  ;;  %vm3408_vm5 = vcmp.ge.f32.partialorder %v7613_v37, 0.0  ;;  %vm3406_vm6 = vcmp.ge.f32.partialorder %v7619_v27, 0.0 }
 0x23a   : > { %v5862_v50 = vpop.f32.mrb[8].mxu0  ;;  %v2254_v35 = vmul.f32 0.3275911, %v7634_v31  ;;  %v7651_v1 = vand.u32 2147483647, %v7642_v9  ;;  %vm3409_vm7 = vcmp.ge.f32.partialorder %v7637_v17, 0.0 }
 0x23b   : > { %v7624_v51 = vpop.f32.mrb[9].mxu0  ;;  %v2320_v48 = vadd.f32 1.0, %v2256_v41  ;;  %v2257_v3 = vmul.f32 0.3275911, %v7646_v53  ;;  %v7659_v0 = vadd.f32 %v5862_v50, %v7565_v16  ;;  %vm3407_vm8 = vcmp.ge.f32.partialorder %v7642_v9, 0.0 }
 0x23c   : > { %v7630_v45 = vpop.f32.mrb[10].mxu0  ;;  %v2318_v34 = vadd.f32 1.0, %v2254_v35  ;;  %v2255_v11 = vmul.f32 0.3275911, %v7651_v1 }
 0x23d   : > { %v7639_v4 = vpop.f32.mrb[11].mxu0  ;;  %6173 = vrcp.f32 %v2320_v48  ;;  %v7670_v26 = vmul.f32 0.70710677, %v7659_v0  ;;  %v2321_v14 = vadd.f32 1.0, %v2257_v3  ;;  %v3084_v3 = vmul.f32 %v3020_v56, %v7583_v6 }
 0x23e   : > { %6175 = vrcp.f32 %v2318_v34  ;;  %v2319_v59 = vadd.f32 1.0, %v2255_v11 }
 0x23f   : > { %v7655_v40 = vpop.eup %6165  ;;  %11139 = vst [vmem:[#allocation11_spill] sm:$0xff] %v7670_v26  ;;  %v7676_v46 = vand.u32 2147483647, %v7670_v26  ;;  %6177 = vrcp.f32 %v2321_v14  ;;  %v3019_v14 = vsub.f32 0.0, %v7610_v12 }
 0x240   : > { %v7663_v58 = vpop.eup %6167  ;;  %v2444_v52 = vmul.f32 1.0614054, %v7655_v40  ;;  %6179 = vrcp.f32 %v2319_v59  ;;  %v3082_v59 = vmul.f32 %v3018_v24, %v7589_v39  ;;  %v7722_v39 = vmul.f32 0.5, %v7571_v30 }
 0x241   : > { %v7672_v20 = vpop.eup %6169  ;;  %v2442_v18 = vmul.f32 1.0614054, %v7663_v58  ;;  %v2260_v22 = vmul.f32 0.3275911, %v7676_v46 }
 0x242   : > { %v7648_v55 = vpop.f32.mrb[12].mxu0  ;;  %v2508_v8 = vadd.f32 -1.4531521, %v2444_v52  ;;  %v2445_v42 = vmul.f32 1.0614054, %v7672_v20  ;;  %v7683_v63 = vpop.eup %6171  ;;  %v3021_v52 = vsub.f32 0.0, %v7596_v19 }
 0x243   : > { %v7653_v2 = vpop.f32.mrb[13].mxu0  ;;  %v2506_v13 = vadd.f32 -1.4531521, %v2442_v18  ;;  %v2443_v41 = vmul.f32 1.0614054, %v7683_v63  ;;  %v2324_v48 = vadd.f32 1.0, %v2260_v22 }
 0x244   : > { %v7661_v23 = vpop.f32.mrb[14].mxu0  ;;  %v2572_v10 = vmul.f32 %v7655_v40, %v2508_v8  ;;  %v2509_v49 = vadd.f32 -1.4531521, %v2445_v42 }
 0x245   : > { %v7665_v28 = vpop.f32.mrb[15].mxu0  ;;  %v2570_v62 = vmul.f32 %v7663_v58, %v2506_v13  ;;  %v2507_v13 = vadd.f32 -1.4531521, %v2443_v41  ;;  %6181 = vrcp.f32 %v2324_v48  ;;  %v3083_v41 = vmul.f32 %v3019_v14, %v7610_v12 }
 0x246   : > { %v2636_v11 = vadd.f32 1.4214138, %v2572_v10  ;;  %v2573_v18 = vmul.f32 %v7672_v20, %v2509_v49  ;;  %v7717_v10 = vmul.f32 0.5, %v7568_v57  ;;  %v3150_v49 = vmul.f32 1.442695, %v3084_v3 }
 0x247   : > { %v7686_v61 = vpop.eup %6173  ;;  %v2634_v42 = vadd.f32 1.4214138, %v2570_v62  ;;  %v3146_v48 = vmul.f32 1.442695, %v3082_v59  ;;  %v2571_v57 = vmul.f32 %v7683_v63, %v2507_v13  ;;  %v3024_v3 = vsub.f32 0.0, %v7622_v60 }
 0x248   : > { %v2448_v32 = vmul.f32 1.0614054, %v7686_v61  ;;  %v7700_v34 = vpop.eup %6175  ;;  %v2700_v62 = vmul.f32 %v7655_v40, %v2636_v11  ;;  %v2637_v24 = vadd.f32 1.4214138, %v2573_v18  ;;  %6183 = vpow2.f32 %v3150_v49 }
 0x249   : > { %v7714_v56 = vpop.eup %6177  ;;  %v7736_v12 = vmul.f32 0.5, %v7592_v54  ;;  %6185 = vpow2.f32 %v3146_v48 }
 0x24a   : > { %v7679_v21 = vpop.f32.mrb[16].mxu0  ;;  %v2449_v30 = vmul.f32 1.0614054, %v7714_v56  ;;  %v2764_v18 = vadd.f32 -0.28449672, %v2700_v62  ;;  %v2701_v14 = vmul.f32 %v7672_v20, %v2637_v24  ;;  %v7751_v62 = vmul.f32 0.5, %v7607_v36 }
 0x24b   : > { %v7681_v47 = vpop.f32.mrb[17].mxu0  ;;  %v3025_v24 = vsub.f32 0.0, %v7646_v53  ;;  %v7764_v36 = vmul.f32 0.5, %v7616_v25  ;;  %v7777_v25 = vadd.f32 %v7630_v45, %v7565_v16 }
 0x24c   : > { %v7689_v43 = vpop.f32.mrb[18].mxu0  ;;  %11147 = vst [vmem:[#allocation19_spill] sm:$0xff] %v7751_v62  ;;  %v2828_v48 = vmul.f32 %v7655_v40, %v2764_v18 }
 0x24d   : > { %11140 = vst [vmem:[#allocation12_spill] sm:$0xff] %v7689_v43  ;;  %v7692_v50 = vpop.f32.mrb[19].mxu0  ;;  %v2513_v43 = vadd.f32 -1.4531521, %v2449_v30 }
 0x24e   : > { %11141 = vst [vmem:[#allocation13_spill] sm:$0xff] %v7692_v50  ;;  %v2446_v50 = vmul.f32 1.0614054, %v7700_v34 }
 0x24f   : > { %v2577_v26 = vmul.f32 %v7714_v56, %v2513_v43  ;;  %v3023_v43 = vsub.f32 0.0, %v7651_v1 }
 0x252   : > { %v7698_v35 = vpop.f32.mrb[20].mxu0 }
 0x253   : > { %11142 = vst [vmem:[#allocation14_spill] sm:$0xff] %v7698_v35  ;;  %v7706_v8 = vpop.f32.mrb[21].mxu0  ;;  %v2512_v35 = vadd.f32 -1.4531521, %v2448_v32  ;;  %v2698_v32 = vmul.f32 %v7663_v58, %v2634_v42  ;;  %v3148_v42 = vmul.f32 1.442695, %v3083_v41 }
 0x254   : > { %11143 = vst [vmem:[#allocation15_spill] sm:$0xff] %v7706_v8  ;;  %v7709_v22 = vpop.f32.mrb[22].mxu0  ;;  %v3085_v8 = vmul.f32 %v3021_v52, %v7596_v19  ;;  %v2510_v52 = vadd.f32 -1.4531521, %v2446_v50  ;;  %v2635_v50 = vadd.f32 1.4214138, %v2571_v57 }
 0x255   : > { %11144 = vst [vmem:[#allocation16_spill] sm:$0xff] %v7709_v22  ;;  %v7712_v6 = vpop.f32.mrb[23].mxu0  ;;  %v7730_v22 = vpop.eup %6179  ;;  %v2576_v19 = vmul.f32 %v7686_v61, %v2512_v35  ;;  %v3022_v35 = vsub.f32 0.0, %v7634_v31  ;;  %v2762_v59 = vadd.f32 -0.28449672, %v2698_v32 }
 0x256   : > { %11145 = vst [vmem:[#allocation17_spill] sm:$0xff] %v7712_v6  ;;  %v7727_v6 = vmul.f32 0.5, %v7577_v44  ;;  %v3152_v11 = vmul.f32 1.442695, %v3085_v8  ;;  %v7740_v44 = vadd.f32 %v7565_v16, %v7624_v51  ;;  %v2447_v13 = vmul.f32 1.0614054, %v7730_v22  ;;  %v7757_v32 = vpop.eup %6181 }
 0x257   : > { %v2640_v49 = vadd.f32 1.4214138, %v2576_v19  ;;  %v3088_v8 = vmul.f32 %v3024_v3, %v7622_v60  ;;  %v2574_v54 = vmul.f32 %v7700_v34, %v2510_v52  ;;  %v7748_v51 = vmul.f32 0.5, %v7604_v15 }
 0x258   : > { %v7755_v41 = vmul.f32 0.70710677, %v7740_v44  ;;  %v2765_v57 = vadd.f32 -0.28449672, %v2701_v14  ;;  %6187 = vpow2.f32 %v3152_v11  ;;  %v3086_v60 = vmul.f32 %v3022_v35, %v7634_v31 }
 0x259   : > { %11146 = vst [vmem:[#allocation18_spill] sm:$0xff] %v7748_v51  ;;  %v2826_v19 = vmul.f32 %v7663_v58, %v2762_v59  ;;  %v2699_v15 = vmul.f32 %v7683_v63, %v2635_v50  ;;  %v2511_v3 = vadd.f32 -1.4531521, %v2447_v13  ;;  %v2704_v52 = vmul.f32 %v7686_v61, %v2640_v49  ;;  %v6184_v13 = vpop.eup %6183 }
 0x25a   : > { %11148 = vst [vmem:[#allocation20_spill] sm:$0xff] %v7755_v41  ;;  %v3158_v30 = vmul.f32 1.442695, %v3088_v8  ;;  %v2638_v62 = vadd.f32 1.4214138, %v2574_v54  ;;  %v3089_v11 = vmul.f32 %v3025_v24, %v7646_v53  ;;  %v2829_v59 = vmul.f32 %v7672_v20, %v2765_v57  ;;  %v6186_v57 = vpop.eup %6185 }
 0x25b   : > { %v2452_v31 = vmul.f32 1.0614054, %v7757_v32  ;;  %v7773_v18 = vand.u32 2147483647, %v7755_v41  ;;  %v2892_v35 = vadd.f32 0.2548296, %v2828_v48  ;;  %v2575_v54 = vmul.f32 %v7730_v22, %v2511_v3 }
 0x25c   : > { %v3154_v50 = vmul.f32 1.442695, %v3086_v60  ;;  %v2890_v49 = vadd.f32 0.2548296, %v2826_v19  ;;  %v2763_v53 = vadd.f32 -0.28449672, %v2699_v15  ;;  %6189 = vpow2.f32 %v3148_v42 }
 0x25d   : > { %v7784_v8 = vmul.f32 0.5, %v7628_v33  ;;  %v2768_v45 = vadd.f32 -0.28449672, %v2704_v52  ;;  %v2641_v48 = vadd.f32 1.4214138, %v2577_v26  ;;  %6191 = vpow2.f32 %v3158_v30 }
 0x25e   : > { %v2516_v60 = vadd.f32 -1.4531521, %v2452_v31  ;;  %v2258_v19 = vmul.f32 0.3275911, %v7773_v18  ;;  %v7794_v15 = vmul.f32 0.70710677, %v7777_v25  ;;  %v2956_v33 = vmul.f32 %v7655_v40, %v2892_v35 }
 0x25f   : > { %11151 = vst [vmem:[#allocation2_spill] sm:$0xff] %v7784_v8  ;;  %v2893_v3 = vadd.f32 0.2548296, %v2829_v59  ;;  %v3160_v41 = vmul.f32 1.442695, %v3089_v11  ;;  %v3087_v42 = vmul.f32 %v3023_v43, %v7651_v1  ;;  %v2954_v52 = vmul.f32 %v7663_v58, %v2890_v49 }
 0x260   : > { %v2827_v26 = vmul.f32 %v7683_v63, %v2763_v53  ;;  %v2832_v31 = vmul.f32 %v7686_v61, %v2768_v45  ;;  %v2705_v8 = vmul.f32 %v7714_v56, %v2641_v48  ;;  %v7807_v40 = vadd.f32 %v7565_v16, %v7639_v4 }
 0x261   : > { %6193 = vpow2.f32 %v3154_v50  ;;  %v2580_v1 = vmul.f32 %v7757_v32, %v2516_v60  ;;  %v2322_v58 = vadd.f32 1.0, %v2258_v19  ;;  %v7814_v35 = vadd.f32 %v7648_v55, %v7565_v16 }
 0x262   : > { %v7768_v51 = vpop.f32.mrb[24].mxu0  ;;  %v6188_v30 = vpop.eup %6187  ;;  %v7818_v43 = vmul.f32 %v6184_v13, %v2956_v33  ;;  %v3156_v49 = vmul.f32 1.442695, %v3087_v42  ;;  %v3028_v45 = vsub.f32 0.0, %v7676_v46  ;;  %v7827_v48 = vmul.f32 0.70710677, %v7807_v40 }
 0x263   : > { %11149 = vst [vmem:[#allocation21_spill] sm:$0xff] %v7768_v51  ;;  %v7779_v14 = vpop.f32.mrb[25].mxu0  ;;  %v7831_v60 = vmul.f32 %v6186_v57, %v2954_v52  ;;  %v2896_v13 = vadd.f32 0.2548296, %v2832_v31  ;;  %v2769_v19 = vadd.f32 -0.28449672, %v2705_v8  ;;  %6195 = vrcp.f32 %v2322_v58 }
 0x264   : > { %11150 = vst [vmem:[#allocation22_spill] sm:$0xff] %v7779_v14  ;;  %v7787_v24 = vpop.f32.mrb[26].mxu0  ;;  %v2702_v14 = vmul.f32 %v7700_v34, %v2638_v62  ;;  %v2639_v62 = vadd.f32 1.4214138, %v2575_v54  ;;  %v2891_v54 = vadd.f32 0.2548296, %v2827_v26  ;;  %v7839_v42 = vadd.f32 %v7565_v16, %v7653_v2 }
 0x265   : > { %11152 = vst [vmem:[#allocation3_spill] sm:$0xff] %v7787_v24  ;;  %v7790_v51 = vpop.f32.mrb[27].mxu0  ;;  %v2644_v33 = vadd.f32 1.4214138, %v2580_v1  ;;  %6197 = vpow2.f32 %v3160_v41  ;;  %v7846_v31 = vand.u32 2147483647, %v7827_v48  ;;  %v2960_v1 = vmul.f32 %v7686_v61, %v2896_v13 }
 0x266   : > { %11153 = vst [vmem:[#allocation4_spill] sm:$0xff] %v7790_v51  ;;  %v7801_v51 = vand.u32 2147483647, %v7794_v15  ;;  %v2766_v24 = vadd.f32 -0.28449672, %v2702_v14  ;;  %v2957_v14 = vmul.f32 %v7672_v20, %v2893_v3  ;;  %v2703_v50 = vmul.f32 %v7730_v22, %v2639_v62  ;;  %v6190_v26 = vpop.eup %6189 }
 0x267   : > { %v7835_v3 = vmul.f32 0.70710677, %v7814_v35  ;;  %v10915_v62 = vsub.f32 1.0, %v7818_v43  ;;  %v6192_v52 = vpop.eup %6191  ;;  %6199 = vpow2.f32 %v3156_v49  ;;  %v2833_v2 = vmul.f32 %v7714_v56, %v2769_v19 }
 0x268   : > { %v2261_v4 = vmul.f32 0.3275911, %v7801_v51  ;;  %v2830_v20 = vmul.f32 %v7700_v34, %v2766_v24  ;;  %v2955_v24 = vmul.f32 %v7683_v63, %v2891_v54  ;;  %v2767_v8 = vadd.f32 -0.28449672, %v2703_v50 }
 0x269   : > { %11158 = vst [vmem:[#allocation9_spill] sm:$0xff] %v7835_v3  ;;  %v2708_v41 = vmul.f32 %v7757_v32, %v2644_v33  ;;  %v7857_v63 = vmul.f32 0.70710677, %v7839_v42  ;;  %v3468_v61 = vsub.f32 0.0, %v10915_v62  ;;  %v7874_v13 = vmul.f32 %v6192_v52, %v2960_v1 }
 0x26a   : > { %v7809_v11 = vpop.f32.mrb[28].mxu0  ;;  %v2325_v57 = vadd.f32 1.0, %v2261_v4  ;;  %v2894_v58 = vadd.f32 0.2548296, %v2830_v20  ;;  %v3275_v54 = vmul.f32 %v6190_v26, %v2955_v24  ;;  %v2831_v50 = vmul.f32 %v7730_v22, %v2767_v8 }
 0x26b   : > { %11154 = vst [vmem:[#allocation5_spill] sm:$0xff] %v7809_v11  ;;  %v7816_v59 = vpop.f32.mrb[29].mxu0  ;;  %11159 = vst [vmem:[#allocation10_spill] sm:$0xff] %v7857_v63  ;;  %v6194_v4 = vpop.eup %6193  ;;  %v2897_v20 = vadd.f32 0.2548296, %v2833_v2  ;;  %vm3413_vm11 = vcmp.ge.f32.partialorder %v7794_v15, 0.0 }
 0x26c   : > { %11155 = vst [vmem:[#allocation6_spill] sm:$0xff] %v7816_v59  ;;  %v7822_v53 = vpop.f32.mrb[30].mxu0  ;;  %6201 = vrcp.f32 %v2325_v57  ;;  %v3339_v1 = vsub.f32 1.0, %v3275_v54  ;;  %vm3411_vm12 = vcmp.ge.f32.partialorder %v7827_v48, 0.0 }
 0x26d   : > { %11156 = vst [vmem:[#allocation7_spill] sm:$0xff] %v7822_v53  ;;  %v7829_v55 = vpop.f32.mrb[31].mxu0  ;;  %v7842_v53 = vmul.f32 %v6188_v30, %v2957_v14  ;;  %v3338_v30 = vsub.f32 1.0, %v7831_v60  ;;  %v7854_v14 = vand.u32 2147483647, %v7835_v3  ;;  %v7886_v52 = vpop.eup %6195  ;;  %v2961_v54 = vmul.f32 %v7714_v56, %v2897_v20 }
 0x26e   : > { %11157 = vst [vmem:[#allocation8_spill] sm:$0xff] %v7829_v55  ;;  %v3092_v55 = vmul.f32 %v3028_v45, %v7676_v46  ;;  %v7866_v46 = vadd.f32 %v7661_v23, %v7565_v16  ;;  %v2259_v45 = vmul.f32 0.3275911, %v7846_v31  ;;  %v7872_v60 = vand.u32 2147483647, %v7857_v63 }
 0x26f   : > { %v3341_v49 = vsub.f32 1.0, %v7842_v53  ;;  %v2958_v53 = vmul.f32 %v7700_v34, %v2894_v58  ;;  %v3466_v33 = vsub.f32 0.0, %v3338_v30  ;;  %v2772_v23 = vadd.f32 -0.28449672, %v2708_v41  ;;  %v6198_v2 = vpop.eup %6197 }
 0x270   : > { %v3166_v19 = vmul.f32 1.442695, %v3092_v55  ;;  %v2264_v57 = vmul.f32 0.3275911, %v7854_v14  ;;  %v2262_v24 = vmul.f32 0.3275911, %v7872_v60  ;;  %v7891_v58 = vadd.f32 %v7565_v16, %v7665_v28 }
 0x271   : > { %v3469_v26 = vsub.f32 0.0, %v3341_v49  ;;  %v7882_v8 = vmul.f32 0.70710677, %v7866_v46  ;;  %v2895_v34 = vadd.f32 0.2548296, %v2831_v50  ;;  %v2323_v55 = vadd.f32 1.0, %v2259_v45 }
 0x272   : > { %v7878_v62 = vpop.f32.mrb[32].mxu0  ;;  %v3344_v41 = vsub.f32 1.0, %v7874_v13  ;;  %6203 = vpow2.f32 %v3166_v19  ;;  %v2836_v50 = vmul.f32 %v7757_v32, %v2772_v23  ;;  %v2328_v45 = vadd.f32 1.0, %v2264_v57 }
 0x273   : > { %11160 = vst [vmem:[#allocation23_spill] sm:$0xff] %v7878_v62  ;;  %11161 = vst [vmem:[#allocation24_spill] sm:$0xff] %v7882_v8  ;;  %v7884_v59 = vpop.f32.mrb[33].mxu0  ;;  %v7894_v62 = vmul.f32 %v6194_v4, %v2958_v53  ;;  %v7897_v11 = vand.u32 2147483647, %v7882_v8  ;;  %v2326_v13 = vadd.f32 1.0, %v2262_v24  ;;  %v7909_v53 = vadd.f32 %v7679_v21, %v7565_v16 }
 0x274   : > { %11162 = vst [vmem:[#allocation25_spill] sm:$0xff] %v7884_v59  ;;  %v6200_v59 = vpop.eup %6199  ;;  %v7903_v28 = vmul.f32 0.70710677, %v7891_v58  ;;  %v2450_v63 = vmul.f32 1.0614054, %v7886_v52  ;;  %v11163_v19 = vsub.f32 1.0, %v7818_v43  ;;  %v3530_v20 = vsel %vm3402_vm2, %v3338_v30, %v3466_v33 }
 0x275   : > { %v2265_v4 = vmul.f32 0.3275911, %v7897_v11  ;;  %v2959_v23 = vmul.f32 %v7730_v22, %v2895_v34  ;;  %6205 = vrcp.f32 %v2323_v55  ;;  %v3533_v24 = vsel %vm3405_vm3, %v3341_v49, %v3469_v26 }
 0x276   : > { %v3532_v56 = vsel %vm3404_vm1, %v11163_v19, %v3468_v61  ;;  %v7918_v57 = vpop.eup %6201  ;;  %v3467_v8 = vsub.f32 0.0, %v3339_v1  ;;  %v7923_v21 = vand.u32 2147483647, %v7903_v28  ;;  %v3472_v43 = vsub.f32 0.0, %v3344_v41 }
 0x277   : > { %v2329_v3 = vadd.f32 1.0, %v2265_v4  ;;  %v3342_v29 = vsub.f32 1.0, %v7894_v62  ;;  %v3281_v61 = vmul.f32 %v6198_v2, %v2961_v54  ;;  %6207 = vrcp.f32 %v2328_v45 }
 0x278   : > { %v2900_v5 = vadd.f32 0.2548296, %v2836_v50  ;;  %v2514_v30 = vadd.f32 -1.4531521, %v2450_v63  ;;  %6209 = vrcp.f32 %v2326_v13  ;;  %v7927_v22 = vmul.f32 0.70710677, %v7909_v53 }
 0x279   : > { %v3279_v38 = vmul.f32 %v6200_v59, %v2959_v23  ;;  %v2453_v49 = vmul.f32 1.0614054, %v7918_v57  ;;  %6211 = vrcp.f32 %v2329_v3  ;;  %v3596_v33 = vadd.f32 1.0, %v3532_v56 }
 0x27a   : > { %v3531_v26 = vsel %vm3403_vm4, %v3339_v1, %v3467_v8  ;;  %v2263_v62 = vmul.f32 0.3275911, %v7923_v21  ;;  %v7936_v63 = vand.u32 2147483647, %v7927_v22  ;;  %v3594_v34 = vadd.f32 1.0, %v3530_v20  ;;  %v7944_v1 = vpop.f32.mrb[34].mxu0 }
 0x27b   : > { %v3597_v55 = vadd.f32 1.0, %v3533_v24  ;;  %v3345_v2 = vsub.f32 1.0, %v3281_v61  ;;  %v3026_v54 = vsub.f32 0.0, %v7773_v18  ;;  %v3536_v3 = vsel %vm3408_vm5, %v3344_v41, %v3472_v43  ;;  %11164 = vst [vmem:[#allocation26_spill] sm:$0xff] %v7944_v1  ;;  %v7949_v56 = vpop.f32.mrb[35].mxu0 }
 0x27c   : > { %v6204_v59 = vpop.eup %6203  ;;  %v3470_v50 = vsub.f32 0.0, %v3342_v29  ;;  %v2964_v7 = vmul.f32 %v7757_v32, %v2900_v5  ;;  %v2578_v8 = vmul.f32 %v7886_v52, %v2514_v30  ;;  %v3595_v45 = vadd.f32 1.0, %v3531_v26  ;;  %11165 = vst [vmem:[#allocation27_spill] sm:$0xff] %v7949_v56 }
 0x27d   : > { %v3343_v13 = vsub.f32 1.0, %v3279_v38  ;;  %v7947_v4 = vmul.f32 0.5, %v7659_v0  ;;  %v2517_v19 = vadd.f32 -1.4531521, %v2453_v49  ;;  %v7952_v37 = vmul.f32 %v3596_v33, %v7717_v10 }
 0x27e   : > { %v7955_v41 = vmul.f32 0.5, %v7740_v44  ;;  %v2327_v20 = vadd.f32 1.0, %v2263_v62  ;;  %v2268_v32 = vmul.f32 0.3275911, %v7936_v63  ;;  %v7961_v24 = vmul.f32 %v3594_v34, %v7722_v39 }
 0x27f   : > { %11166 = vst [vmem:[#allocation28_spill] sm:$0xff] %v7952_v37  ;;  %v7958_v23 = vpop.eup %6205  ;;  %v3600_v43 = vadd.f32 1.0, %v3536_v3  ;;  %v3473_v0 = vsub.f32 0.0, %v3345_v2  ;;  %v3090_v61 = vmul.f32 %v3026_v54, %v7773_v18  ;;  %v7965_v5 = vmul.f32 %v3597_v55, %v7727_v6  ;;  %v11172_v3 = vld [vmem:[#allocation11_spill] sm:$0xff] }
 0x280   : > { %11167 = vst [vmem:[#allocation29_spill] sm:$0xff] %v7961_v24  ;;  %v3534_v10 = vsel %vm3406_vm6, %v3342_v29, %v3470_v50  ;;  %v3284_v44 = vmul.f32 %v6204_v59, %v2964_v7  ;;  %v2642_v30 = vadd.f32 1.4214138, %v2578_v8  ;;  %v7972_v49 = vmul.f32 %v3595_v45, %v7736_v12  ;;  %v11170_v12 = vld [vmem:[#allocation18_spill] sm:$0xff] }
 0x281   : > { %11168 = vst [vmem:[#allocation30_spill] sm:$0xff] %v7965_v5  ;;  %v7969_v38 = vpop.eup %6207  ;;  %v3471_v33 = vsub.f32 0.0, %v3343_v13  ;;  %v2581_v39 = vmul.f32 %v7918_v57, %v2517_v19  ;;  %v7977_v26 = vadd.f32 %v7565_v16, %v7681_v47  ;;  %v7982_v6 = vmul.f32 0.5, %v7777_v25 }
 0x282   : > { %11169 = vst [vmem:[#allocation31_spill] sm:$0xff] %v7972_v49  ;;  %v7979_v18 = vpop.eup %6209  ;;  %v2451_v27 = vmul.f32 1.0614054, %v7958_v23  ;;  %6213 = vrcp.f32 %v2327_v20  ;;  %v2332_v29 = vadd.f32 1.0, %v2268_v32  ;;  %v7988_v34 = vmul.f32 %v3600_v43, %v11170_v12  ;;  %v11173_v43 = vld [vmem:[#allocation19_spill] sm:$0xff] }
 0x283   : > { %v7985_v62 = vpop.eup %6211  ;;  %v3598_v55 = vadd.f32 1.0, %v3534_v10  ;;  %v3537_v54 = vsel %vm3409_vm7, %v3345_v2, %v3473_v0  ;;  %v3162_v47 = vmul.f32 1.442695, %v3090_v61  ;;  %v3348_v59 = vsub.f32 1.0, %v3284_v44 }
 0x284   : > { %11171 = vst [vmem:[#allocation18_spill] sm:$0xff] %v7988_v34  ;;  %vm3412_vm9 = vcmp.ge.f32.partialorder %v11172_v3, 0.0  ;;  %v2706_v25 = vmul.f32 %v7886_v52, %v2642_v30  ;;  %v3029_v50 = vsub.f32 0.0, %v7801_v51  ;;  %v3027_v7 = vsub.f32 0.0, %v7846_v31 }
 0x285   : > { %v3535_v8 = vsel %vm3407_vm8, %v3343_v13, %v3471_v33  ;;  %v2645_v45 = vadd.f32 1.4214138, %v2581_v39  ;;  %v2456_v19 = vmul.f32 1.0614054, %v7969_v38  ;;  %v8000_v20 = vmul.f32 0.70710677, %v7977_v26 }
 0x286   : > { %v2515_v17 = vadd.f32 -1.4531521, %v2451_v27  ;;  %v2454_v2 = vmul.f32 1.0614054, %v7979_v18  ;;  %v2457_v32 = vmul.f32 1.0614054, %v7985_v62  ;;  %6215 = vrcp.f32 %v2332_v29 }
 0x287   : > { %v8005_v0 = vmul.f32 %v3598_v55, %v11173_v43  ;;  %v3601_v61 = vadd.f32 1.0, %v3537_v54  ;;  %v3032_v10 = vsub.f32 0.0, %v7854_v14  ;;  %v8009_v9 = vand.u32 2147483647, %v8000_v20 }
 0x288   : > { %v3599_v13 = vadd.f32 1.0, %v3535_v8  ;;  %v2770_v44 = vadd.f32 -0.28449672, %v2706_v25  ;;  %6217 = vpow2.f32 %v3162_v47  ;;  %v3093_v30 = vmul.f32 %v3029_v50, %v7801_v51 }
 0x289   : > { %11174 = vst [vmem:[#allocation11_spill] sm:$0xff] %v8005_v0  ;;  %v3476_v33 = vsub.f32 0.0, %v3348_v59  ;;  %v2709_v39 = vmul.f32 %v7918_v57, %v2645_v45  ;;  %v2520_v27 = vadd.f32 -1.4531521, %v2456_v19  ;;  %v2266_v29 = vmul.f32 0.3275911, %v8009_v9 }
 0x28a   : > { %v2579_v12 = vmul.f32 %v7958_v23, %v2515_v17  ;;  %v3091_v55 = vmul.f32 %v3027_v7, %v7846_v31  ;;  %v2518_v54 = vadd.f32 -1.4531521, %v2454_v2  ;;  %v2521_v43 = vadd.f32 -1.4531521, %v2457_v32  ;;  %v11176_v19 = vld [vmem:[#allocation2_spill] sm:$0xff] }
 0x28b   : > { %v8017_v56 = vmul.f32 %v3601_v61, %v7764_v36  ;;  %v8020_v25 = vmul.f32 0.5, %v7807_v40  ;;  %v8023_v51 = vmul.f32 0.5, %v7814_v35  ;;  %v3096_v47 = vmul.f32 %v3032_v10, %v7854_v14 }
 0x28c   : > { %v8026_v50 = vpop.eup %6213  ;;  %v2834_v8 = vmul.f32 %v7886_v52, %v2770_v44  ;;  %v3168_v45 = vmul.f32 1.442695, %v3093_v30  ;;  %v3030_v31 = vsub.f32 0.0, %v7872_v60  ;;  %v2330_v7 = vadd.f32 1.0, %v2266_v29  ;;  %v11178_v30 = vld [vmem:[#allocation12_spill] sm:$0xff] }
 0x28d   : > { %11175 = vst [vmem:[#allocation19_spill] sm:$0xff] %v8017_v56  ;;  %v8031_v17 = vmul.f32 %v3599_v13, %v11176_v19  ;;  %v3540_v36 = vsel %vm3412_vm9, %v3348_v59, %v3476_v33  ;;  %v2773_v40 = vadd.f32 -0.28449672, %v2709_v39  ;;  %v2584_v35 = vmul.f32 %v7969_v38, %v2520_v27  ;;  %v8046_v39 = vpop.f32.mrb[36].mxu0 }
 0x28e   : > { %v2643_v2 = vadd.f32 1.4214138, %v2579_v12  ;;  %v3164_v32 = vmul.f32 1.442695, %v3091_v55  ;;  %v2582_v14 = vmul.f32 %v7979_v18, %v2518_v54  ;;  %v2585_v61 = vmul.f32 %v7985_v62, %v2521_v43  ;;  %11179 = vst [vmem:[#allocation12_spill] sm:$0xff] %v8046_v39  ;;  %v8053_v43 = vpop.f32.mrb[37].mxu0 }
 0x28f   : > { %11177 = vst [vmem:[#allocation2_spill] sm:$0xff] %v8031_v17  ;;  %v3174_v10 = vmul.f32 1.442695, %v3096_v47  ;;  %v2455_v44 = vmul.f32 1.0614054, %v8026_v50  ;;  %6219 = vrcp.f32 %v2330_v7  ;;  %v8041_v13 = vadd.f32 %v11178_v30, %v7565_v16  ;;  %11180 = vst [vmem:[#allocation32_spill] sm:$0xff] %v8053_v43 }
 0x290   : > { %v8043_v29 = vpop.eup %6215  ;;  %v3604_v59 = vadd.f32 1.0, %v3540_v36  ;;  %v2898_v3 = vadd.f32 0.2548296, %v2834_v8  ;;  %6221 = vpow2.f32 %v3168_v45  ;;  %v3094_v33 = vmul.f32 %v3030_v31, %v7872_v60  ;;  %v11183_v30 = vld [vmem:[#allocation13_spill] sm:$0xff] }
 0x291   : > { %v2837_v27 = vmul.f32 %v7918_v57, %v2773_v40  ;;  %v2648_v12 = vadd.f32 1.4214138, %v2584_v35  ;;  %v8050_v55 = vmul.f32 0.5, %v7839_v42  ;;  %v3033_v54 = vsub.f32 0.0, %v7897_v11 }
 0x292   : > { %v6218_v47 = vpop.eup %6217  ;;  %v2707_v7 = vmul.f32 %v7958_v23, %v2643_v2  ;;  %6223 = vpow2.f32 %v3164_v32  ;;  %v2646_v8 = vadd.f32 1.4214138, %v2582_v14  ;;  %v2649_v45 = vadd.f32 1.4214138, %v2585_v61 }
 0x293   : > { %6225 = vpow2.f32 %v3174_v10  ;;  %v2519_v60 = vadd.f32 -1.4531521, %v2455_v44  ;;  %v2460_v31 = vmul.f32 1.0614054, %v8043_v29  ;;  %v8058_v19 = vmul.f32 0.70710677, %v8041_v13 }
 0x294   : > { %v8061_v42 = vmul.f32 %v3604_v59, %v7947_v4  ;;  %v2962_v36 = vmul.f32 %v7886_v52, %v2898_v3  ;;  %v3170_v40 = vmul.f32 1.442695, %v3094_v33  ;;  %v8065_v35 = vmul.f32 0.5, %v7866_v46 }
 0x295   : > { %11181 = vst [vmem:[#allocation33_spill] sm:$0xff] %v8058_v19  ;;  %v2901_v2 = vadd.f32 0.2548296, %v2837_v27  ;;  %v2712_v32 = vmul.f32 %v7969_v38, %v2648_v12  ;;  %v3097_v14 = vmul.f32 %v3033_v54, %v7897_v11  ;;  %v8070_v61 = vand.u32 2147483647, %v8058_v19  ;;  %v8081_v11 = vpop.f32.mrb[38].mxu0 }
 0x296   : > { %11182 = vst [vmem:[#allocation34_spill] sm:$0xff] %v8061_v42  ;;  %v2771_v10 = vadd.f32 -0.28449672, %v2707_v7  ;;  %v2710_v44 = vmul.f32 %v7979_v18, %v2646_v8  ;;  %v3031_v4 = vsub.f32 0.0, %v7923_v21  ;;  %v8076_v52 = vadd.f32 %v7565_v16, %v11183_v30  ;;  %11184 = vst [vmem:[#allocation13_spill] sm:$0xff] %v8081_v11  ;;  %v8101_v42 = vpop.f32.mrb[39].mxu0 }
 0x297   : > { %v2713_v46 = vmul.f32 %v7985_v62, %v2649_v45  ;;  %v2583_v59 = vmul.f32 %v8026_v50, %v2519_v60  ;;  %v2524_v3 = vadd.f32 -1.4531521, %v2460_v31  ;;  %v2269_v33 = vmul.f32 0.3275911, %v8070_v61  ;;  %11186 = vst [vmem:[#allocation36_spill] sm:$0xff] %v8101_v42 }
 0x298   : > { %v8083_v27 = vmul.f32 %v6218_v47, %v2962_v36  ;;  %6227 = vpow2.f32 %v3170_v40  ;;  %v8086_v12 = vmul.f32 0.5, %v7891_v58  ;;  %v8089_v54 = vmul.f32 0.70710677, %v8076_v52 }
 0x299   : > { %v8091_v7 = vpop.eup %6219  ;;  %v2965_v8 = vmul.f32 %v7918_v57, %v2901_v2  ;;  %v2776_v45 = vadd.f32 -0.28449672, %v2712_v32  ;;  %v3176_v60 = vmul.f32 1.442695, %v3097_v14  ;;  %v3036_v31 = vsub.f32 0.0, %v7936_v63  ;;  %v11187_v32 = vld [vmem:[#allocation20_spill] sm:$0xff] }
 0x29a   : > { %11185 = vst [vmem:[#allocation35_spill] sm:$0xff] %v8089_v54  ;;  %v6222_v30 = vpop.eup %6221  ;;  %v2835_v11 = vmul.f32 %v7958_v23, %v2771_v10  ;;  %v2774_v47 = vadd.f32 -0.28449672, %v2710_v44  ;;  %v3095_v36 = vmul.f32 %v3031_v4, %v7923_v21  ;;  %v8098_v58 = vand.u32 2147483647, %v8089_v54  ;;  %v11188_v10 = vld [vmem:[#allocation14_spill] sm:$0xff] }
 0x29b   : > { %v2777_v40 = vadd.f32 -0.28449672, %v2713_v46  ;;  %v2647_v43 = vadd.f32 1.4214138, %v2583_v59  ;;  %v2588_v39 = vmul.f32 %v8043_v29, %v2524_v3  ;;  %v2333_v1 = vadd.f32 1.0, %v2269_v33 }
 0x29c   : > { %v6224_v57 = vpop.eup %6223  ;;  %v3346_v2 = vsub.f32 1.0, %v8083_v27  ;;  %vm3410_vm10 = vcmp.ge.f32.partialorder %v11187_v32, 0.0  ;;  %v8106_v14 = vmul.f32 0.5, %v7909_v53  ;;  %v2458_v21 = vmul.f32 1.0614054, %v8091_v7 }
 0x29d   : > { %v8111_v44 = vadd.f32 %v11188_v10, %v7565_v16  ;;  %v6226_v4 = vpop.eup %6225  ;;  %v8113_v46 = vmul.f32 %v6222_v30, %v2965_v8  ;;  %v2840_v59 = vmul.f32 %v7969_v38, %v2776_v45  ;;  %v3100_v3 = vmul.f32 %v3036_v31, %v7936_v63  ;;  %v11190_v45 = vld [vmem:[#allocation15_spill] sm:$0xff] }
 0x29e   : > { %v2267_v33 = vmul.f32 0.3275911, %v8098_v58  ;;  %v2899_v27 = vadd.f32 0.2548296, %v2835_v11  ;;  %v2838_v42 = vmul.f32 %v7979_v18, %v2774_v47  ;;  %6229 = vpow2.f32 %v3176_v60 }
 0x29f   : > { %v3172_v53 = vmul.f32 1.442695, %v3095_v36  ;;  %v2841_v17 = vmul.f32 %v7985_v62, %v2777_v40  ;;  %v2711_v54 = vmul.f32 %v8026_v50, %v2647_v43  ;;  %v2652_v10 = vadd.f32 1.4214138, %v2588_v39  ;;  %v11191_v40 = vld [vmem:[#allocation16_spill] sm:$0xff] }
 0x2a0   : > { %6231 = vrcp.f32 %v2333_v1  ;;  %v2522_v0 = vadd.f32 -1.4531521, %v2458_v21  ;;  %v2331_v8 = vadd.f32 1.0, %v2267_v33  ;;  %v8122_v30 = vmul.f32 0.70710677, %v8111_v44 }
 0x2a1   : > { %v8126_v63 = vadd.f32 %v7565_v16, %v11190_v45  ;;  %v3474_v11 = vsub.f32 0.0, %v3346_v2  ;;  %v3349_v31 = vsub.f32 1.0, %v8113_v46  ;;  %v2904_v60 = vadd.f32 0.2548296, %v2840_v59  ;;  %v8142_v59 = vpop.f32.mrb[40].mxu0 }
 0x2a2   : > { %11189 = vst [vmem:[#allocation20_spill] sm:$0xff] %v8122_v30  ;;  %v3182_v47 = vmul.f32 1.442695, %v3100_v3  ;;  %v6228_v36 = vpop.eup %6227  ;;  %v2963_v39 = vmul.f32 %v7958_v23, %v2899_v27  ;;  %v2902_v1 = vadd.f32 0.2548296, %v2838_v42  ;;  %v8136_v21 = vadd.f32 %v11191_v40, %v7565_v16  ;;  %11193 = vst [vmem:[#allocation15_spill] sm:$0xff] %v8142_v59 }
 0x2a3   : > { %v8132_v43 = vand.u32 2147483647, %v8122_v30  ;;  %v2775_v33 = vadd.f32 -0.28449672, %v2711_v54  ;;  %6233 = vpow2.f32 %v3172_v53  ;;  %v2716_v45 = vmul.f32 %v8043_v29, %v2652_v10 }
 0x2a4   : > { %v8140_v46 = vmul.f32 0.70710677, %v8126_v63  ;;  %v2905_v3 = vadd.f32 0.2548296, %v2841_v17  ;;  %v2586_v23 = vmul.f32 %v8091_v7, %v2522_v0  ;;  %6235 = vrcp.f32 %v2331_v8  ;;  %v8158_v0 = vpop.f32.mrb[41].mxu0 }
 0x2a5   : > { %v2272_v42 = vmul.f32 0.3275911, %v8132_v43  ;;  %v3538_v27 = vsel %vm3410_vm10, %v3346_v2, %v3474_v11  ;;  %v2968_v16 = vmul.f32 %v7969_v38, %v2904_v60  ;;  %6237 = vpow2.f32 %v3182_v47  ;;  %11195 = vst [vmem:[#allocation37_spill] sm:$0xff] %v8158_v0 }
 0x2a6   : > { %11192 = vst [vmem:[#allocation14_spill] sm:$0xff] %v8140_v46  ;;  %v8150_v54 = vand.u32 2147483647, %v8140_v46  ;;  %v3477_v53 = vsub.f32 0.0, %v3349_v31  ;;  %v8152_v10 = vmul.f32 %v6224_v57, %v2963_v39  ;;  %v2966_v40 = vmul.f32 %v7979_v18, %v2902_v1 }
 0x2a7   : > { %v8156_v17 = vmul.f32 0.70710677, %v8136_v21  ;;  %v2839_v8 = vmul.f32 %v8026_v50, %v2775_v33  ;;  %v2780_v32 = vadd.f32 -0.28449672, %v2716_v45  ;;  %v3034_v2 = vsub.f32 0.0, %v8009_v9  ;;  %v11196_v45 = vld [vmem:[#allocation17_spill] sm:$0xff] }
 0x2a8   : > { %v2270_v38 = vmul.f32 0.3275911, %v8150_v54  ;;  %v6230_v11 = vpop.eup %6229  ;;  %v2969_v60 = vmul.f32 %v7985_v62, %v2905_v3  ;;  %v2650_v47 = vadd.f32 1.4214138, %v2586_v23  ;;  %v2336_v57 = vadd.f32 1.0, %v2272_v42 }
 0x2a9   : > { %11194 = vst [vmem:[#allocation16_spill] sm:$0xff] %v8156_v17  ;;  %v8165_v39 = vand.u32 2147483647, %v8156_v17  ;;  %v3602_v1 = vadd.f32 1.0, %v3538_v27  ;;  %v8169_v59 = vmul.f32 %v6226_v4, %v2968_v16  ;;  %v8174_v33 = vld [vmem:[%s10871_s7] ss:$0 sm:$0xff]  ;;  %v8182_v3 = vmul.f32 %v6228_v36, %v2966_v40 }
 0x2aa   : > { %v8167_v18 = vpop.eup %6231  ;;  %v2334_v0 = vadd.f32 1.0, %v2270_v38  ;;  %v8178_v46 = vadd.f32 %v8174_v33, %v11196_v45  ;;  %v3347_v62 = vsub.f32 1.0, %v8152_v10  ;;  %v8185_v23 = vmul.f32 0.5, %v7977_v26 }
 0x2ab   : > { %v2273_v4 = vmul.f32 0.3275911, %v8165_v39  ;;  %v3541_v42 = vsel %vm3413_vm11, %v3349_v31, %v3477_v53  ;;  %v2903_v27 = vadd.f32 0.2548296, %v2839_v8  ;;  %v2844_v16 = vmul.f32 %v8043_v29, %v2780_v32  ;;  %v11198_v53 = vld [vmem:[#allocation9_spill] sm:$0xff]  ;;  %v11199_v8 = vld [vmem:[#allocation10_spill] sm:$0xff] }
 0x2ac   : > { %11197 = vst [vmem:[#allocation17_spill] sm:$0xff] %v8185_v23  ;;  %v3098_v38 = vmul.f32 %v3034_v2, %v8009_v9  ;;  %v8192_v45 = vmul.f32 %v6230_v11, %v2969_v60  ;;  %v2714_v10 = vmul.f32 %v8091_v7, %v2650_v47  ;;  %v2461_v36 = vmul.f32 1.0614054, %v8167_v18 }
 0x2ad   : > { %6239 = vrcp.f32 %v2336_v57  ;;  %v6234_v40 = vpop.eup %6233  ;;  %v3352_v26 = vsub.f32 1.0, %v8169_v59  ;;  %v8198_v17 = vmul.f32 0.70710677, %v8178_v46  ;;  %v3475_v31 = vsub.f32 0.0, %v3347_v62  ;;  %v11200_v59 = vld [vmem:[#allocation24_spill] sm:$0xff] }
 0x2ae   : > { %6241 = vrcp.f32 %v2334_v0  ;;  %v8200_v15 = vpop.eup %6235  ;;  %vm3416_vm14 = vcmp.ge.f32.partialorder %v11198_v53, 0.0  ;;  %v3350_v9 = vsub.f32 1.0, %v8182_v3  ;;  %vm3414_vm15 = vcmp.ge.f32.partialorder %v11199_v8, 0.0 }
 0x2af   : > { %v2337_v32 = vadd.f32 1.0, %v2273_v4  ;;  %v4282_v2 = vsel %vm3774_vm13, %v7952_v37, 0.0  ;;  %v6238_v11 = vpop.eup %6237  ;;  %vm3417_vm1 = vcmp.ge.f32.partialorder %v11200_v59, 0.0  ;;  %v2967_v0 = vmul.f32 %v8026_v50, %v2903_v27  ;;  %v8220_v27 = vpop.f32.mrb[42].mxu0 }
 0x2b0   : > { %v2908_v60 = vadd.f32 0.2548296, %v2844_v16  ;;  %v3178_v47 = vmul.f32 1.442695, %v3098_v38  ;;  %v8210_v57 = vand.u32 2147483647, %v8198_v17  ;;  %4283 = vadd.xlane.f32.xlu0 %v4282_v2  ;;  %v8216_v37 = vmul.f32 %v3602_v1, %v7955_v41 }
 0x2b1   : > { %v3353_v30 = vsub.f32 1.0, %v8192_v45  ;;  %v2778_v3 = vadd.f32 -0.28449672, %v2714_v10  ;;  %v2525_v56 = vadd.f32 -1.4531521, %v2461_v36  ;;  %v4285_v4 = vsel %vm3774_vm13, %v7965_v5, 0.0 }
 0x2b2   : > { %11201 = vst [vmem:[#allocation9_spill] sm:$0xff] %v8216_v37  ;;  %v3605_v19 = vadd.f32 1.0, %v3541_v42  ;;  %v2459_v23 = vmul.f32 1.0614054, %v8200_v15  ;;  %v2271_v50 = vmul.f32 0.3275911, %v8210_v57  ;;  %4286 = vadd.xlane.f32.xlu1 %v4285_v4  ;;  %6243 = vrcp.f32 %v2337_v32 }
 0x2b3   : > { %11202 = vst [vmem:[#allocation10_spill] sm:$0xff] %v8220_v27  ;;  %v3480_v16 = vsub.f32 0.0, %v3352_v26  ;;  %v4276_v38 = vsel %vm3774_vm13, %v7961_v24, 0.0  ;;  %v11203_v45 = vld [vmem:[#allocation21_spill] sm:$0xff]  ;;  %v8228_v36 = vpop.f32.mrb[43].mxu0  ;;  %v3539_v41 = vsel %vm3411_vm12, %v3347_v62, %v3475_v31  ;;  %v3478_v1 = vsub.f32 0.0, %v3350_v9 }
 0x2b4   : > { %v8226_v10 = vadd.f32 %v8174_v33, %v11203_v45  ;;  %11204 = vst [vmem:[#allocation24_spill] sm:$0xff] %v8228_v36  ;;  %v3287_v42 = vmul.f32 %v6234_v40, %v2967_v0  ;;  %v2335_v2 = vadd.f32 1.0, %v2271_v50  ;;  %4277 = vadd.xlane.f32.xlu0 %v4276_v38  ;;  %v3481_v4 = vsub.f32 0.0, %v3353_v30  ;;  %v11207_v40 = vld [vmem:[#allocation22_spill] sm:$0xff] }
 0x2b5   : > { %v2972_v5 = vmul.f32 %v8043_v29, %v2908_v60  ;;  %v3037_v32 = vsub.f32 0.0, %v8070_v61  ;;  %v2842_v45 = vmul.f32 %v8091_v7, %v2778_v3  ;;  %6245 = vpow2.f32 %v3178_v47 }
 0x2b6   : > { %v8235_v24 = vmul.f32 0.70710677, %v8226_v10  ;;  %v2589_v36 = vmul.f32 %v8167_v18, %v2525_v56  ;;  %v2523_v27 = vadd.f32 -1.4531521, %v2459_v23  ;;  %v8242_v62 = vmul.f32 %v3605_v19, %v7982_v6 }
 0x2b7   : > { %v8239_v48 = vpop.eup %6239  ;;  %vm3415_vm2 = vcmp.ge.f32.partialorder %v7903_v28, 0.0  ;;  %6247 = vrcp.f32 %v2335_v2  ;;  %v8250_v31 = vadd.f32 %v8174_v33, %v11207_v40  ;;  %v3603_v60 = vadd.f32 1.0, %v3539_v41 }
 0x2b8   : > { %11205 = vst [vmem:[#allocation21_spill] sm:$0xff] %v8235_v24  ;;  %11206 = vst [vmem:[#allocation38_spill] sm:$0xff] %v8242_v62  ;;  %v8246_v29 = vand.u32 2147483647, %v8235_v24  ;;  %v8252_v0 = vpop.eup %6241  ;;  %v3544_v56 = vsel %vm3416_vm14, %v3352_v26, %v3480_v16  ;;  %v3542_v6 = vsel %vm3414_vm15, %v3350_v9, %v3478_v1  ;;  %v3351_v19 = vsub.f32 1.0, %v3287_v42 }
 0x2b9   : > { %v3545_v23 = vsel %vm3417_vm1, %v3353_v30, %v3481_v4  ;;  %v3292_v47 = vmul.f32 %v6238_v11, %v2972_v5  ;;  %v3101_v3 = vmul.f32 %v3037_v32, %v8070_v61  ;;  %v2906_v38 = vadd.f32 0.2548296, %v2842_v45 }
 0x2ba   : > { %v2276_v50 = vmul.f32 0.3275911, %v8246_v29  ;;  %v2653_v2 = vadd.f32 1.4214138, %v2589_v36  ;;  %v2587_v40 = vmul.f32 %v8200_v15, %v2523_v27  ;;  %v8264_v41 = vmul.f32 0.70710677, %v8250_v31 }
 0x2bb   : > { %v8267_v26 = vmul.f32 0.5, %v8041_v13  ;;  %v2464_v53 = vmul.f32 1.0614054, %v8239_v48  ;;  %v2462_v9 = vmul.f32 1.0614054, %v8252_v0  ;;  %v3608_v5 = vadd.f32 1.0, %v3544_v56 }
 0x2bc   : > { %11208 = vst [vmem:[#allocation22_spill] sm:$0xff] %v8264_v41  ;;  %v2340_v30 = vadd.f32 1.0, %v2276_v50  ;;  %v3479_v8 = vsub.f32 0.0, %v3351_v19  ;;  %vm3420_vm3 = vcmp.ge.f32.partialorder %v7927_v22, 0.0  ;;  %v3035_v61 = vsub.f32 0.0, %v8098_v58  ;;  %v8276_v59 = vpop.eup %6243 }
 0x2bd   : > { %v8274_v11 = vand.u32 2147483647, %v8264_v41  ;;  %v8279_v27 = vmul.f32 %v3603_v60, %v8020_v25  ;;  %v3606_v13 = vadd.f32 1.0, %v3542_v6  ;;  %v3609_v16 = vadd.f32 1.0, %v3545_v23 }
 0x2be   : > { %v3356_v36 = vsub.f32 1.0, %v3292_v47  ;;  %v2970_v1 = vmul.f32 %v8091_v7, %v2906_v38  ;;  %v2717_v42 = vmul.f32 %v8167_v18, %v2653_v2  ;;  %v3184_v4 = vmul.f32 1.442695, %v3101_v3 }
 0x2bf   : > { %11209 = vst [vmem:[#allocation39_spill] sm:$0xff] %v8279_v27  ;;  %v2651_v32 = vadd.f32 1.4214138, %v2587_v40  ;;  %v2528_v45 = vadd.f32 -1.4531521, %v2464_v53  ;;  %6249 = vrcp.f32 %v2340_v30  ;;  %v6246_v41 = vpop.eup %6245  ;;  %v8285_v24 = vmul.f32 %v3608_v5, %v8023_v51 }
 0x2c0   : > { %v2526_v56 = vadd.f32 -1.4531521, %v2462_v9  ;;  %v2274_v50 = vmul.f32 0.3275911, %v8274_v11  ;;  %v3543_v25 = vsel %vm3415_vm2, %v3351_v19, %v3479_v8  ;;  %v3099_v60 = vmul.f32 %v3035_v61, %v8098_v58 }
 0x2c1   : > { %11210 = vst [vmem:[#allocation40_spill] sm:$0xff] %v8285_v24  ;;  %v2465_v7 = vmul.f32 1.0614054, %v8276_v59  ;;  %v8291_v6 = vpop.eup %6247  ;;  %v8294_v23 = vmul.f32 %v3606_v13, %v8050_v55  ;;  %v8297_v47 = vmul.f32 %v3609_v16, %v8065_v35  ;;  %v3484_v3 = vsub.f32 0.0, %v3356_v36 }
 0x2c2   : > { %v8300_v38 = vmul.f32 0.5, %v8076_v52  ;;  %v3290_v51 = vmul.f32 %v6246_v41, %v2970_v1  ;;  %v2781_v2 = vadd.f32 -0.28449672, %v2717_v42  ;;  %v2715_v28 = vmul.f32 %v8200_v15, %v2651_v32  ;;  %v8315_v1 = vpop.f32.mrb[44].mxu0 }
 0x2c3   : > { %11211 = vst [vmem:[#allocation41_spill] sm:$0xff] %v8294_v23  ;;  %11212 = vst [vmem:[#allocation42_spill] sm:$0xff] %v8297_v47  ;;  %v2338_v19 = vadd.f32 1.0, %v2274_v50  ;;  %v3607_v58 = vadd.f32 1.0, %v3543_v25  ;;  %6251 = vpow2.f32 %v3184_v4  ;;  %v2592_v40 = vmul.f32 %v8239_v48, %v2528_v45  ;;  %v11214_v4 = vld [vmem:[#allocation3_spill] sm:$0xff]  ;;  %v8324_v45 = vpop.f32.mrb[45].mxu0 }
 0x2c4   : > { %v2590_v53 = vmul.f32 %v8252_v0, %v2526_v56  ;;  %v3180_v55 = vmul.f32 1.442695, %v3099_v60  ;;  %v2529_v9 = vadd.f32 -1.4531521, %v2465_v7  ;;  %v2463_v35 = vmul.f32 1.0614054, %v8291_v6 }
 0x2c5   : > { %6253 = vrcp.f32 %v2338_v19  ;;  %v3548_v52 = vsel %vm3420_vm3, %v3356_v36, %v3484_v3  ;;  %v3040_v41 = vsub.f32 0.0, %v8132_v43  ;;  %v3038_v30 = vsub.f32 0.0, %v8150_v54  ;;  %11213 = vst [vmem:[#allocation43_spill] sm:$0xff] %v8315_v1  ;;  %11215 = vst [vmem:[#allocation3_spill] sm:$0xff] %v8324_v45  ;;  %v11217_v60 = vld [vmem:[#allocation4_spill] sm:$0xff] }
 0x2c6   : > { %v4279_v5 = vsel %vm3774_vm13, %v7972_v49, 0.0  ;;  %v3354_v8 = vsub.f32 1.0, %v3290_v51  ;;  %vm3418_vm4 = vcmp.ge.f32.partialorder %v8000_v20, 0.0  ;;  %v2845_v61 = vmul.f32 %v8167_v18, %v2781_v2 }
 0x2c7   : > { %v2779_v13 = vadd.f32 -0.28449672, %v2715_v28  ;;  %v3041_v16 = vsub.f32 0.0, %v8165_v39  ;;  %4280 = vadd.xlane.f32.xlu1 %v4279_v5  ;;  %v8318_v22 = vmul.f32 0.5, %v8111_v44  ;;  %v2656_v36 = vadd.f32 1.4214138, %v2592_v40 }
 0x2c8   : > { %v2654_v42 = vadd.f32 1.4214138, %v2590_v53  ;;  %v8322_v32 = vadd.f32 %v8174_v33, %v11214_v4  ;;  %v8327_v56 = vmul.f32 %v3607_v58, %v8086_v12  ;;  %v2593_v50 = vmul.f32 %v8276_v59, %v2529_v9 }
 0x2c9   : > { %v2527_v25 = vadd.f32 -1.4531521, %v2463_v35  ;;  %v8332_v7 = vadd.f32 %v8174_v33, %v11217_v60  ;;  %v8334_v44 = vpop.eup %6249  ;;  %v3612_v3 = vadd.f32 1.0, %v3548_v52  ;;  %6255 = vpow2.f32 %v3180_v55 }
 0x2ca   : > { %11216 = vst [vmem:[#allocation44_spill] sm:$0xff] %v8327_v56  ;;  %v3104_v51 = vmul.f32 %v3040_v41, %v8132_v43  ;;  %v8338_v2 = vmul.f32 0.70710677, %v8322_v32  ;;  %v3482_v28 = vsub.f32 0.0, %v3354_v8  ;;  %v2909_v19 = vadd.f32 0.2548296, %v2845_v61 }
 0x2cb   : > { %v3102_v12 = vmul.f32 %v3038_v30, %v8150_v54  ;;  %v3105_v58 = vmul.f32 %v3041_v16, %v8165_v39  ;;  %v2843_v40 = vmul.f32 %v8200_v15, %v2779_v13  ;;  %v2720_v53 = vmul.f32 %v8239_v48, %v2656_v36 }
 0x2cc   : > { %v2718_v9 = vmul.f32 %v8252_v0, %v2654_v42  ;;  %v8346_v35 = vand.u32 2147483647, %v8338_v2  ;;  %v2657_v55 = vadd.f32 1.4214138, %v2593_v50  ;;  %v2591_v43 = vmul.f32 %v8291_v6, %v2527_v25 }
 0x2cd   : > { %v2468_v52 = vmul.f32 1.0614054, %v8334_v44  ;;  %v8351_v41 = vmul.f32 0.70710677, %v8332_v7  ;;  %v6252_v54 = vpop.eup %6251  ;;  %v3190_v30 = vmul.f32 1.442695, %v3104_v51  ;;  %v8363_v16 = vmul.f32 %v3612_v3, %v8106_v14 }
 0x2ce   : > { %v8354_v39 = vmul.f32 0.5, %v8126_v63  ;;  %v8357_v5 = vmul.f32 0.5, %v8136_v21  ;;  %v2277_v61 = vmul.f32 0.3275911, %v8346_v35  ;;  %v2973_v36 = vmul.f32 %v8167_v18, %v2909_v19 }
 0x2cf   : > { %v8360_v13 = vpop.eup %6253  ;;  %11218 = vst [vmem:[#allocation4_spill] sm:$0xff] %v8363_v16  ;;  %v3186_v42 = vmul.f32 1.442695, %v3102_v12  ;;  %v8367_v4 = vand.u32 2147483647, %v8351_v41  ;;  %v3546_v63 = vsel %vm3418_vm4, %v3354_v8, %v3482_v28  ;;  %v2721_v51 = vmul.f32 %v8276_v59, %v2657_v55 }
 0x2d0   : > { %v2907_v50 = vadd.f32 0.2548296, %v2843_v40  ;;  %v2784_v25 = vadd.f32 -0.28449672, %v2720_v53  ;;  %v3192_v21 = vmul.f32 1.442695, %v3105_v58  ;;  %6257 = vpow2.f32 %v3190_v30 }
 0x2d1   : > { %v2782_v60 = vadd.f32 -0.28449672, %v2718_v9  ;;  %v2655_v49 = vadd.f32 1.4214138, %v2591_v43  ;;  %v2532_v45 = vadd.f32 -1.4531521, %v2468_v52  ;;  %v8374_v12 = vmul.f32 %v6252_v54, %v2973_v36 }
 0x2d2   : > { %v2466_v14 = vmul.f32 1.0614054, %v8360_v13  ;;  %v2341_v3 = vadd.f32 1.0, %v2277_v61  ;;  %v2275_v18 = vmul.f32 0.3275911, %v8367_v4  ;;  %v3610_v19 = vadd.f32 1.0, %v3546_v63 }
 0x2d3   : > { %v8377_v20 = vmul.f32 0.5, %v8178_v46  ;;  %v3039_v8 = vsub.f32 0.0, %v8210_v57  ;;  %v6256_v28 = vpop.eup %6255  ;;  %v2971_v58 = vmul.f32 %v8200_v15, %v2907_v50  ;;  %v2848_v40 = vmul.f32 %v8239_v48, %v2784_v25  ;;  %v11219_v30 = vld [vmem:[#allocation17_spill] sm:$0xff]  ;;  %v8393_v63 = vpop.f32.mrb[46].mxu0  ;;  %v11223_v25 = vld [vmem:[#allocation19_spill] sm:$0xff] }
 0x2d4   : > { %6259 = vpow2.f32 %v3186_v42  ;;  %v2339_v53 = vadd.f32 1.0, %v2275_v18  ;;  %v2846_v9 = vmul.f32 %v8252_v0, %v2782_v60  ;;  %v2785_v55 = vadd.f32 -0.28449672, %v2721_v51  ;;  %v11221_v36 = vld [vmem:[#allocation33_spill] sm:$0xff]  ;;  %v8402_v60 = vpop.f32.mrb[47].mxu0  ;;  %v11226_v18 = vld [vmem:[#allocation6_spill] sm:$0xff] }
 0x2d5   : > { %6261 = vpow2.f32 %v3192_v21  ;;  %v2719_v43 = vmul.f32 %v8291_v6, %v2655_v49  ;;  %v2596_v52 = vmul.f32 %v8334_v44, %v2532_v45  ;;  %v2530_v54 = vadd.f32 -1.4531521, %v2466_v14  ;;  %11222 = vst [vmem:[#allocation33_spill] sm:$0xff] %v8393_v63  ;;  %11224 = vst [vmem:[#allocation45_spill] sm:$0xff] %v8402_v60  ;;  %v8439_v60 = vpop.f32.mrb[48].mxu0 }
 0x2d6   : > { %6263 = vrcp.f32 %v2341_v3  ;;  %v4294_v46 = vsel %vm3774_vm13, %v7988_v34, 0.0  ;;  %v8388_v61 = vmul.f32 %v3610_v19, %v11219_v30  ;;  %v3357_v15 = vsub.f32 1.0, %v8374_v12 }
 0x2d7   : > { %vm3421_vm5 = vcmp.ge.f32.partialorder %v11221_v36, 0.0  ;;  %v3103_v42 = vmul.f32 %v3039_v8, %v8210_v57  ;;  %6265 = vrcp.f32 %v2339_v53  ;;  %4295 = vadd.xlane.f32.xlu0 %v4294_v46  ;;  %v8395_v49 = vmul.f32 %v6256_v28, %v2971_v58  ;;  %v11225_v57 = vld [vmem:[#allocation5_spill] sm:$0xff]  ;;  %v11227_v28 = vld [vmem:[#allocation11_spill] sm:$0xff] }
 0x2d8   : > { %11220 = vst [vmem:[#allocation17_spill] sm:$0xff] %v8388_v61  ;;  %v2912_v45 = vadd.f32 0.2548296, %v2848_v40  ;;  %v8398_v50 = vmul.f32 0.5, %v8226_v10  ;;  %v4297_v21 = vsel %vm3774_vm13, %v11223_v25, 0.0  ;;  %v2849_v14 = vmul.f32 %v8276_v59, %v2785_v55  ;;  %v11230_v25 = vld [vmem:[#allocation7_spill] sm:$0xff] }
 0x2d9   : > { %v2910_v51 = vadd.f32 0.2548296, %v2846_v9  ;;  %4298 = vadd.xlane.f32.xlu1 %v4297_v21  ;;  %v8407_v3 = vadd.f32 %v8174_v33, %v11225_v57  ;;  %v8411_v19 = vadd.f32 %v8174_v33, %v11226_v18  ;;  %v2783_v12 = vadd.f32 -0.28449672, %v2719_v43  ;;  %v11228_v21 = vld [vmem:[#allocation35_spill] sm:$0xff]  ;;  %11231 = vst [vmem:[#allocation5_spill] sm:$0xff] %v8439_v60 }
 0x2da   : > { %v2660_v10 = vadd.f32 1.4214138, %v2596_v52  ;;  %v2594_v8 = vmul.f32 %v8360_v13, %v2530_v54  ;;  %v4288_v58 = vsel %vm3774_vm13, %v11227_v28, 0.0  ;;  %v3485_v40 = vsub.f32 0.0, %v3357_v15  ;;  %v6258_v46 = vpop.eup %6257  ;;  %v11229_v54 = vld [vmem:[#allocation2_spill] sm:$0xff] }
 0x2db   : > { %v3188_v53 = vmul.f32 1.442695, %v3103_v42  ;;  %v3044_v9 = vsub.f32 0.0, %v8246_v29  ;;  %4289 = vadd.xlane.f32.xlu0 %v4288_v58  ;;  %v8418_v55 = vmul.f32 0.70710677, %v8407_v3  ;;  %v3355_v30 = vsub.f32 1.0, %v8395_v49 }
 0x2dc   : > { %vm3419_vm6 = vcmp.ge.f32.partialorder %v11228_v21, 0.0  ;;  %v2976_v43 = vmul.f32 %v8239_v48, %v2912_v45  ;;  %v3042_v52 = vsub.f32 0.0, %v8274_v11  ;;  %v4291_v57 = vsel %vm3774_vm13, %v11229_v54, 0.0 }
 0x2dd   : > { %v2974_v42 = vmul.f32 %v8252_v0, %v2910_v51  ;;  %v8428_v18 = vand.u32 2147483647, %v8418_v55  ;;  %v8431_v58 = vmul.f32 0.70710677, %v8411_v19  ;;  %4292 = vadd.xlane.f32.xlu1 %v4291_v57  ;;  %v8435_v49 = vadd.f32 %v8174_v33, %v11230_v25 }
 0x2de   : > { %v6260_v34 = vpop.eup %6259  ;;  %v2913_v48 = vadd.f32 0.2548296, %v2849_v14  ;;  %v2847_v45 = vmul.f32 %v8291_v6, %v2783_v12  ;;  %v2724_v28 = vmul.f32 %v8334_v44, %v2660_v10  ;;  %v2658_v54 = vadd.f32 1.4214138, %v2594_v8  ;;  %v8453_v8 = vpop.f32.mrb[49].mxu0 }
 0x2df   : > { %v6262_v0 = vpop.eup %6261  ;;  %6267 = vpow2.f32 %v3188_v53  ;;  %v3108_v51 = vmul.f32 %v3044_v9, %v8246_v29  ;;  %v2280_v63 = vmul.f32 0.3275911, %v8428_v18  ;;  %v8444_v57 = vand.u32 2147483647, %v8431_v58  ;;  %11232 = vst [vmem:[#allocation6_spill] sm:$0xff] %v8453_v8 }
 0x2e0   : > { %v8446_v25 = vpop.eup %6263  ;;  %v3549_v14 = vsel %vm3421_vm5, %v3357_v15, %v3485_v40  ;;  %v3483_v12 = vsub.f32 0.0, %v3355_v30  ;;  %v8450_v1 = vmul.f32 %v6258_v46, %v2976_v43  ;;  %v3106_v10 = vmul.f32 %v3042_v52, %v8274_v11  ;;  %v8465_v43 = vpop.f32.mrb[50].mxu0 }
 0x2e1   : > { %v8455_v53 = vpop.eup %6265  ;;  %v8457_v29 = vmul.f32 %v6260_v34, %v2974_v42  ;;  %v2344_v9 = vadd.f32 1.0, %v2280_v63  ;;  %v2278_v60 = vmul.f32 0.3275911, %v8444_v57  ;;  %v8461_v61 = vmul.f32 0.70710677, %v8435_v49  ;;  %11234 = vst [vmem:[#allocation7_spill] sm:$0xff] %v8465_v43 }
 0x2e2   : > { %v2977_v36 = vmul.f32 %v8276_v59, %v2913_v48  ;;  %v2911_v15 = vadd.f32 0.2548296, %v2847_v45  ;;  %v2788_v40 = vadd.f32 -0.28449672, %v2724_v28  ;;  %v2722_v46 = vmul.f32 %v8360_v13, %v2658_v54  ;;  %v11235_v54 = vld [vmem:[#allocation20_spill] sm:$0xff] }
 0x2e3   : > { %11233 = vst [vmem:[#allocation35_spill] sm:$0xff] %v8461_v61  ;;  %v3198_v11 = vmul.f32 1.442695, %v3108_v51  ;;  %v2469_v52 = vmul.f32 1.0614054, %v8446_v25  ;;  %6269 = vrcp.f32 %v2344_v9  ;;  %v2342_v34 = vadd.f32 1.0, %v2278_v60 }
 0x2e4   : > { %v3613_v42 = vadd.f32 1.0, %v3549_v14  ;;  %v8469_v63 = vmul.f32 0.5, %v8250_v31  ;;  %v3194_v8 = vmul.f32 1.442695, %v3106_v10  ;;  %v2467_v16 = vmul.f32 1.0614054, %v8455_v53 }
 0x2e5   : > { %v3547_v59 = vsel %vm3419_vm6, %v3355_v30, %v3483_v12  ;;  %v3360_v28 = vsub.f32 1.0, %v8450_v1  ;;  %vm3424_vm7 = vcmp.ge.f32.partialorder %v11235_v54, 0.0  ;;  %v3358_v48 = vsub.f32 1.0, %v8457_v29  ;;  %v11236_v10 = vld [vmem:[#allocation14_spill] sm:$0xff]  ;;  %v11237_v1 = vld [vmem:[#allocation8_spill] sm:$0xff] }
 0x2e6   : > { %v8478_v45 = vand.u32 2147483647, %v8461_v61  ;;  %v3297_v60 = vmul.f32 %v6262_v0, %v2977_v36  ;;  %v2975_v51 = vmul.f32 %v8291_v6, %v2911_v15  ;;  %v2852_v31 = vmul.f32 %v8334_v44, %v2788_v40  ;;  %v11239_v29 = vld [vmem:[#allocation34_spill] sm:$0xff] }
 0x2e7   : > { %v2786_v14 = vadd.f32 -0.28449672, %v2722_v46  ;;  %vm3422_vm8 = vcmp.ge.f32.partialorder %v11236_v10, 0.0  ;;  %v2533_v9 = vadd.f32 -1.4531521, %v2469_v52  ;;  %6271 = vrcp.f32 %v2342_v34  ;;  %v11240_v46 = vld [vmem:[#allocation16_spill] sm:$0xff] }
 0x2e8   : > { %v2281_v30 = vmul.f32 0.3275911, %v8478_v45  ;;  %v8486_v21 = vadd.f32 %v8174_v33, %v11237_v1  ;;  %v8489_v12 = vmul.f32 %v3613_v42, %v8267_v26  ;;  %6273 = vpow2.f32 %v3198_v11 }
 0x2e9   : > { %v2531_v0 = vadd.f32 -1.4531521, %v2467_v16  ;;  %v4306_v6 = vsel %vm3774_vm13, %v11239_v29, 0.0  ;;  %v6268_v36 = vpop.eup %6267  ;;  %v3611_v15 = vadd.f32 1.0, %v3547_v59  ;;  %v3488_v40 = vsub.f32 0.0, %v3360_v28 }
 0x2ea   : > { %11238 = vst [vmem:[#allocation20_spill] sm:$0xff] %v8489_v12  ;;  %vm3425_vm9 = vcmp.ge.f32.partialorder %v11240_v46, 0.0  ;;  %6275 = vpow2.f32 %v3194_v8  ;;  %v2345_v52 = vadd.f32 1.0, %v2281_v30  ;;  %4307 = vadd.xlane.f32.xlu0 %v4306_v6  ;;  %v3486_v34 = vsub.f32 0.0, %v3358_v48  ;;  %v8521_v6 = vpop.f32.mrb[51].mxu0 }
 0x2eb   : > { %v3361_v43 = vsub.f32 1.0, %v3297_v60  ;;  %v3295_v1 = vmul.f32 %v6268_v36, %v2975_v51  ;;  %v8495_v61 = vmul.f32 0.70710677, %v8486_v21  ;;  %v2916_v26 = vadd.f32 0.2548296, %v2852_v31  ;;  %v11242_v60 = vld [vmem:[#allocation23_spill] sm:$0xff] }
 0x2ec   : > { %v2850_v16 = vmul.f32 %v8360_v13, %v2786_v14  ;;  %v2597_v11 = vmul.f32 %v8446_v25, %v2533_v9  ;;  %v4309_v42 = vsel %vm3774_vm13, %v8242_v62, 0.0  ;;  %v2595_v59 = vmul.f32 %v8455_v53, %v2531_v0  ;;  %11244 = vst [vmem:[#allocation16_spill] sm:$0xff] %v8521_v6 }
 0x2ed   : > { %11241 = vst [vmem:[#allocation14_spill] sm:$0xff] %v8495_v61  ;;  %6277 = vrcp.f32 %v2345_v52  ;;  %v8503_v8 = vand.u32 2147483647, %v8495_v61  ;;  %4310 = vadd.xlane.f32.xlu1 %v4309_v42  ;;  %v8507_v51 = vadd.f32 %v8174_v33, %v11242_v60  ;;  %v8509_v30 = vpop.eup %6269  ;;  %v8512_v31 = vmul.f32 %v3611_v15, %v8300_v38 }
 0x2ee   : > { %vm3423_vm10 = vcmp.ge.f32.partialorder %v8198_v17, 0.0  ;;  %v8516_v14 = vmul.f32 0.5, %v8322_v32  ;;  %v3045_v9 = vsub.f32 0.0, %v8346_v35  ;;  %v4300_v0 = vsel %vm3774_vm13, %v8216_v37, 0.0 }
 0x2ef   : > { %11243 = vst [vmem:[#allocation8_spill] sm:$0xff] %v8512_v31  ;;  %v3552_v36 = vsel %vm3424_vm7, %v3360_v28, %v3488_v40  ;;  %v3489_v52 = vsub.f32 0.0, %v3361_v43  ;;  %v3359_v42 = vsub.f32 1.0, %v3295_v1  ;;  %v2279_v38 = vmul.f32 0.3275911, %v8503_v8  ;;  %4301 = vadd.xlane.f32.xlu0 %v4300_v0 }
 0x2f0   : > { %v2980_v15 = vmul.f32 %v8334_v44, %v2916_v26  ;;  %v2914_v60 = vadd.f32 0.2548296, %v2850_v16  ;;  %v2661_v32 = vadd.f32 1.4214138, %v2597_v11  ;;  %v8528_v62 = vmul.f32 0.70710677, %v8507_v51 }
 0x2f1   : > { %v3550_v29 = vsel %vm3422_vm8, %v3358_v48, %v3486_v34  ;;  %v2659_v37 = vadd.f32 1.4214138, %v2595_v59  ;;  %v2472_v6 = vmul.f32 1.0614054, %v8509_v30  ;;  %v2343_v54 = vadd.f32 1.0, %v2279_v38  ;;  %v8533_v28 = vpop.eup %6271  ;;  %v11246_v26 = vld [vmem:[#allocation25_spill] sm:$0xff] }
 0x2f2   : > { %11245 = vst [vmem:[#allocation23_spill] sm:$0xff] %v8528_v62  ;;  %v3109_v40 = vmul.f32 %v3045_v9, %v8346_v35  ;;  %v3043_v1 = vsub.f32 0.0, %v8367_v4  ;;  %v8538_v44 = vand.u32 2147483647, %v8528_v62  ;;  %v8542_v16 = vadd.f32 %v8174_v33, %v11246_v26  ;;  %v6274_v11 = vpop.eup %6273 }
 0x2f3   : > { %v3616_v10 = vadd.f32 1.0, %v3552_v36  ;;  %v3553_v48 = vsel %vm3425_vm9, %v3361_v43, %v3489_v52  ;;  %v3487_v34 = vsub.f32 0.0, %v3359_v42  ;;  %6279 = vrcp.f32 %v2343_v54 }
 0x2f4   : > { %v6276_v59 = vpop.eup %6275  ;;  %v3300_v0 = vmul.f32 %v6274_v11, %v2980_v15  ;;  %v2978_v35 = vmul.f32 %v8360_v13, %v2914_v60  ;;  %v2725_v9 = vmul.f32 %v8446_v25, %v2661_v32  ;;  %v2284_v38 = vmul.f32 0.3275911, %v8538_v44 }
 0x2f5   : > { %v3614_v31 = vadd.f32 1.0, %v3550_v29  ;;  %v2723_v62 = vmul.f32 %v8455_v53, %v2659_v37  ;;  %v2536_v26 = vadd.f32 -1.4531521, %v2472_v6  ;;  %v2470_v61 = vmul.f32 1.0614054, %v8533_v28  ;;  %v11248_v37 = vld [vmem:[#allocation21_spill] sm:$0xff] }
 0x2f6   : > { %v3200_v36 = vmul.f32 1.442695, %v3109_v40  ;;  %v3107_v46 = vmul.f32 %v3043_v1, %v8367_v4  ;;  %v2348_v43 = vadd.f32 1.0, %v2284_v38  ;;  %v8553_v52 = vmul.f32 0.70710677, %v8542_v16 }
 0x2f7   : > { %v8555_v15 = vpop.eup %6277  ;;  %v8558_v13 = vmul.f32 %v3616_v10, %v8318_v22  ;;  %v3617_v60 = vadd.f32 1.0, %v3553_v48  ;;  %v3551_v29 = vsel %vm3423_vm10, %v3359_v42, %v3487_v34  ;;  %vm3428_vm11 = vcmp.ge.f32.partialorder %v11248_v37, 0.0  ;;  %v11251_v34 = vld [vmem:[#allocation22_spill] sm:$0xff]  ;;  %v8616_v37 = vpop.f32.mrb[52].mxu0 }
 0x2f8   : > { %v8564_v6 = vmul.f32 0.5, %v8332_v7  ;;  %v3364_v32 = vsub.f32 1.0, %v3300_v0  ;;  %v3298_v4 = vmul.f32 %v6276_v59, %v2978_v35  ;;  %v2789_v54 = vadd.f32 -0.28449672, %v2725_v9 }
 0x2f9   : > { %11247 = vst [vmem:[#allocation25_spill] sm:$0xff] %v8558_v13  ;;  %6281 = vrcp.f32 %v2348_v43  ;;  %v8567_v40 = vmul.f32 %v3614_v31, %v8354_v39  ;;  %v2787_v1 = vadd.f32 -0.28449672, %v2723_v62  ;;  %v2600_v22 = vmul.f32 %v8509_v30, %v2536_v26  ;;  %v11252_v62 = vld [vmem:[#allocation26_spill] sm:$0xff] }
 0x2fa   : > { %v2534_v11 = vadd.f32 -1.4531521, %v2470_v61  ;;  %6283 = vpow2.f32 %v3200_v36  ;;  %v3196_v10 = vmul.f32 1.442695, %v3107_v46  ;;  %v2473_v17 = vmul.f32 1.0614054, %v8555_v15 }
 0x2fb   : > { %11249 = vst [vmem:[#allocation21_spill] sm:$0xff] %v8567_v40  ;;  %v8572_v42 = vand.u32 2147483647, %v8553_v52  ;;  %v8575_v7 = vmul.f32 %v3617_v60, %v8357_v5  ;;  %v3615_v48 = vadd.f32 1.0, %v3551_v29  ;;  %vm3426_vm12 = vcmp.ge.f32.partialorder %v11251_v34, 0.0  ;;  %11254 = vst [vmem:[#allocation26_spill] sm:$0xff] %v8616_v37 }
 0x2fc   : > { %v4303_v39 = vsel %vm3774_vm13, %v8279_v27, 0.0  ;;  %v8582_v31 = vadd.f32 %v8174_v33, %v11252_v62  ;;  %v3492_v61 = vsub.f32 0.0, %v3364_v32  ;;  %v3362_v59 = vsub.f32 1.0, %v3298_v4 }
 0x2fd   : > { %11250 = vst [vmem:[#allocation46_spill] sm:$0xff] %v8575_v7  ;;  %v2853_v0 = vmul.f32 %v8446_v25, %v2789_v54  ;;  %v2282_v35 = vmul.f32 0.3275911, %v8572_v42  ;;  %4304 = vadd.xlane.f32.xlu1 %v4303_v39  ;;  %v8586_v9 = vpop.eup %6279  ;;  %v2851_v5 = vmul.f32 %v8455_v53, %v2787_v1  ;;  %v8590_v38 = vmul.f32 0.5, %v8407_v3 }
 0x2fe   : > { %v2664_v26 = vadd.f32 1.4214138, %v2600_v22  ;;  %v2598_v36 = vmul.f32 %v8533_v28, %v2534_v11  ;;  %6285 = vpow2.f32 %v3196_v10  ;;  %v3048_v46 = vsub.f32 0.0, %v8428_v18 }
 0x2ff   : > { %v2537_v43 = vadd.f32 -1.4531521, %v2473_v17  ;;  %v2346_v60 = vadd.f32 1.0, %v2282_v35  ;;  %v8595_v29 = vmul.f32 0.5, %v8411_v19  ;;  %v3046_v4 = vsub.f32 0.0, %v8444_v57 }
 0x300   : > { %v2471_v54 = vmul.f32 1.0614054, %v8586_v9  ;;  %v8600_v1 = vmul.f32 0.70710677, %v8582_v31  ;;  %v8603_v3 = vmul.f32 %v3615_v48, %v8377_v20  ;;  %v3556_v22 = vsel %vm3428_vm11, %v3364_v32, %v3492_v61 }
 0x301   : > { %v3490_v11 = vsub.f32 0.0, %v3362_v59  ;;  %v2917_v10 = vadd.f32 0.2548296, %v2853_v0  ;;  %v2915_v17 = vadd.f32 0.2548296, %v2851_v5  ;;  %v2728_v39 = vmul.f32 %v8509_v30, %v2664_v26  ;;  %v11255_v0 = vld [vmem:[#allocation27_spill] sm:$0xff] }
 0x302   : > { %11253 = vst [vmem:[#allocation22_spill] sm:$0xff] %v8603_v3  ;;  %v2662_v19 = vadd.f32 1.4214138, %v2598_v36  ;;  %v8609_v62 = vand.u32 2147483647, %v8600_v1  ;;  %v3112_v27 = vmul.f32 %v3048_v46, %v8428_v18  ;;  %v2601_v40 = vmul.f32 %v8555_v15, %v2537_v43  ;;  %v8624_v26 = vpop.f32.mrb[53].mxu0 }
 0x303   : > { %v8611_v35 = vpop.eup %6281  ;;  %v3049_v20 = vsub.f32 0.0, %v8478_v45  ;;  %6287 = vrcp.f32 %v2346_v60  ;;  %v3110_v32 = vmul.f32 %v3046_v4, %v8444_v57  ;;  %v2535_v48 = vadd.f32 -1.4531521, %v2471_v54  ;;  %11256 = vst [vmem:[#allocation27_spill] sm:$0xff] %v8624_v26  ;;  %v8635_v34 = vpop.f32.mrb[54].mxu0 }
 0x304   : > { %v2476_v61 = vmul.f32 1.0614054, %v8611_v35  ;;  %v8622_v5 = vadd.f32 %v8174_v33, %v11255_v0  ;;  %v6284_v36 = vpop.eup %6283  ;;  %v3620_v18 = vadd.f32 1.0, %v3556_v22  ;;  %v3554_v46 = vsel %vm3426_vm12, %v3362_v59, %v3490_v11  ;;  %11257 = vst [vmem:[#allocation47_spill] sm:$0xff] %v8635_v34 }
 0x305   : > { %v2981_v43 = vmul.f32 %v8446_v25, %v2917_v10  ;;  %v2285_v60 = vmul.f32 0.3275911, %v8609_v62  ;;  %v2979_v57 = vmul.f32 %v8455_v53, %v2915_v17  ;;  %v2792_v4 = vadd.f32 -0.28449672, %v2728_v39 }
 0x306   : > { %v2726_v54 = vmul.f32 %v8533_v28, %v2662_v19  ;;  %v4318_v0 = vsel %vm3774_vm13, %v8285_v24, 0.0  ;;  %v3206_v37 = vmul.f32 1.442695, %v3112_v27  ;;  %v2665_v3 = vadd.f32 1.4214138, %v2601_v40 }
 0x307   : > { %v3113_v26 = vmul.f32 %v3049_v20, %v8478_v45  ;;  %v2349_v22 = vadd.f32 1.0, %v2285_v60  ;;  %4319 = vadd.xlane.f32.xlu0 %v4318_v0  ;;  %v3202_v59 = vmul.f32 1.442695, %v3110_v32  ;;  %v2599_v25 = vmul.f32 %v8586_v9, %v2535_v48 }
 0x308   : > { %v2540_v11 = vadd.f32 -1.4531521, %v2476_v61  ;;  %v8639_v53 = vmul.f32 0.70710677, %v8622_v5  ;;  %v6286_v10 = vpop.eup %6285  ;;  %v3618_v17 = vadd.f32 1.0, %v3554_v46  ;;  %v3301_v39 = vmul.f32 %v6284_v36, %v2981_v43 }
 0x309   : > { %v8642_v19 = vmul.f32 0.5, %v8435_v49  ;;  %6289 = vrcp.f32 %v2349_v22  ;;  %v3299_v27 = vmul.f32 %v6286_v10, %v2979_v57  ;;  %v2856_v45 = vmul.f32 %v8509_v30, %v2792_v4  ;;  %v8669_v22 = vpop.f32.mrb[55].mxu0 }
 0x30a   : > { %v2790_v40 = vadd.f32 -0.28449672, %v2726_v54  ;;  %v8646_v20 = vand.u32 2147483647, %v8639_v53  ;;  %v8649_v32 = vmul.f32 %v3620_v18, %v8398_v50  ;;  %6291 = vpow2.f32 %v3206_v37  ;;  %11260 = vst [vmem:[#allocation50_spill] sm:$0xff] %v8669_v22 }
 0x30b   : > { %v2729_v48 = vmul.f32 %v8555_v15, %v2665_v3  ;;  %v3208_v61 = vmul.f32 1.442695, %v3113_v26  ;;  %vm3429_vm14 = vcmp.ge.f32.partialorder %v8338_v2, 0.0  ;;  %6293 = vpow2.f32 %v3202_v59 }
 0x30c   : > { %11258 = vst [vmem:[#allocation48_spill] sm:$0xff] %v8649_v32  ;;  %v8654_v49 = vmul.f32 0.5, %v8486_v21  ;;  %v2663_v36 = vadd.f32 1.4214138, %v2599_v25  ;;  %v2604_v46 = vmul.f32 %v8611_v35, %v2540_v11  ;;  %v3365_v60 = vsub.f32 1.0, %v3301_v39 }
 0x30d   : > { %v8657_v43 = vpop.eup %6287  ;;  %vm3427_vm15 = vcmp.ge.f32.partialorder %v8351_v41, 0.0  ;;  %v3047_v50 = vsub.f32 0.0, %v8503_v8  ;;  %v3052_v37 = vsub.f32 0.0, %v8538_v44  ;;  %v2283_v3 = vmul.f32 0.3275911, %v8646_v20 }
 0x30e   : > { %v8664_v26 = vmul.f32 %v3618_v17, %v8469_v63  ;;  %v3363_v18 = vsub.f32 1.0, %v3299_v27  ;;  %v2920_v21 = vadd.f32 0.2548296, %v2856_v45  ;;  %v2854_v57 = vmul.f32 %v8533_v28, %v2790_v40  ;;  %v11261_v40 = vld [vmem:[#allocation12_spill] sm:$0xff] }
 0x30f   : > { %v2793_v4 = vadd.f32 -0.28449672, %v2729_v48  ;;  %6295 = vpow2.f32 %v3208_v61  ;;  %v2347_v54 = vadd.f32 1.0, %v2283_v3  ;;  %v4321_v0 = vsel %vm3774_vm13, %v8297_v47, 0.0  ;;  %v11262_v61 = vld [vmem:[#allocation32_spill] sm:$0xff]  ;;  %v8723_v47 = vpop.f32.mrb[56].mxu0 }
 0x310   : > { %11259 = vst [vmem:[#allocation49_spill] sm:$0xff] %v8664_v26  ;;  %v2727_v59 = vmul.f32 %v8586_v9, %v2663_v36  ;;  %v2668_v25 = vadd.f32 1.4214138, %v2604_v46  ;;  %v2474_v11 = vmul.f32 1.0614054, %v8657_v43  ;;  %4322 = vadd.xlane.f32.xlu1 %v4321_v0  ;;  %v4312_v63 = vsel %vm3774_vm13, %v8294_v23, 0.0 }
 0x311   : > { %v3493_v10 = vsub.f32 0.0, %v3365_v60  ;;  %v3111_v17 = vmul.f32 %v3047_v50, %v8503_v8  ;;  %v3116_v39 = vmul.f32 %v3052_v37, %v8538_v44  ;;  %6297 = vrcp.f32 %v2347_v54  ;;  %4313 = vadd.xlane.f32.xlu0 %v4312_v63  ;;  %11263 = vst [vmem:[#allocation12_spill] sm:$0xff] %v8723_v47 }
 0x312   : > { %v3491_v27 = vsub.f32 0.0, %v3363_v18  ;;  %v2918_v45 = vadd.f32 0.2548296, %v2854_v57  ;;  %v8679_v48 = vadd.f32 %v8174_v33, %v11261_v40  ;;  %v8683_v36 = vadd.f32 %v8174_v33, %v11262_v61 }
 0x313   : > { %v8685_v46 = vpop.eup %6289  ;;  %v2984_v3 = vmul.f32 %v8509_v30, %v2920_v21  ;;  %v2857_v8 = vmul.f32 %v8555_v15, %v2793_v4  ;;  %v8690_v44 = vmul.f32 0.5, %v8507_v51  ;;  %v4315_v50 = vsel %vm3774_vm13, %v8327_v56, 0.0 }
 0x314   : > { %v2791_v37 = vadd.f32 -0.28449672, %v2727_v59  ;;  %v2732_v57 = vmul.f32 %v8611_v35, %v2668_v25  ;;  %v2538_v54 = vadd.f32 -1.4531521, %v2474_v11  ;;  %v2477_v0 = vmul.f32 1.0614054, %v8685_v46  ;;  %4316 = vadd.xlane.f32.xlu1 %v4315_v50  ;;  %v6292_v33 = vpop.eup %6291 }
 0x315   : > { %v3557_v63 = vsel %vm3429_vm14, %v3365_v60, %v3493_v10  ;;  %v3204_v30 = vmul.f32 1.442695, %v3111_v17  ;;  %v8699_v21 = vmul.f32 0.70710677, %v8679_v48  ;;  %v8702_v51 = vmul.f32 0.70710677, %v8683_v36  ;;  %v6294_v4 = vpop.eup %6293 }
 0x316   : > { %v3555_v59 = vsel %vm3427_vm15, %v3363_v18, %v3491_v27  ;;  %v2982_v25 = vmul.f32 %v8533_v28, %v2918_v45  ;;  %v3214_v11 = vmul.f32 1.442695, %v3116_v39  ;;  %v3050_v40 = vsub.f32 0.0, %v8572_v42 }
 0x317   : > { %v8708_v61 = vmul.f32 %v6292_v33, %v2984_v3  ;;  %v2921_v2 = vadd.f32 0.2548296, %v2857_v8  ;;  %v8711_v60 = vand.u32 2147483647, %v8699_v21  ;;  %v8714_v10 = vand.u32 2147483647, %v8702_v51 }
 0x318   : > { %v2855_v17 = vmul.f32 %v8586_v9, %v2791_v37  ;;  %v2796_v50 = vadd.f32 -0.28449672, %v2732_v57  ;;  %v2602_v41 = vmul.f32 %v8657_v43, %v2538_v54  ;;  %v2541_v18 = vadd.f32 -1.4531521, %v2477_v0 }
 0x319   : > { %v6296_v27 = vpop.eup %6295  ;;  %v3621_v28 = vadd.f32 1.0, %v3557_v63  ;;  %6299 = vpow2.f32 %v3204_v30  ;;  %v2288_v39 = vmul.f32 0.3275911, %v8711_v60  ;;  %v2286_v45 = vmul.f32 0.3275911, %v8714_v10  ;;  %v8730_v30 = vpop.f32.mrb[57].mxu0 }
 0x31a   : > { %v3619_v3 = vadd.f32 1.0, %v3555_v59  ;;  %v8720_v8 = vmul.f32 %v6294_v4, %v2982_v25  ;;  %6301 = vpow2.f32 %v3214_v11  ;;  %v3114_v33 = vmul.f32 %v3050_v40, %v8572_v42  ;;  %11264 = vst [vmem:[#allocation32_spill] sm:$0xff] %v8730_v30 }
 0x31b   : > { %v8725_v37 = vpop.eup %6297  ;;  %v3368_v57 = vsub.f32 1.0, %v8708_v61  ;;  %vm3432_vm1 = vcmp.ge.f32.partialorder %v8418_v55, 0.0  ;;  %v2985_v54 = vmul.f32 %v8555_v15, %v2921_v2  ;;  %v2352_v0 = vadd.f32 1.0, %v2288_v39  ;;  %v8744_v15 = vld [vmem:[%s10871_s7] ss:$0 sm:$0xff]  ;;  %v11266_v61 = vld [vmem:[#allocation13_spill] sm:$0xff] }
 0x31c   : > { %v2350_v63 = vadd.f32 1.0, %v2286_v45  ;;  %v2919_v59 = vadd.f32 0.2548296, %v2855_v17  ;;  %v2860_v4 = vmul.f32 %v8611_v35, %v2796_v50  ;;  %v2666_v25 = vadd.f32 1.4214138, %v2602_v41 }
 0x31d   : > { %v2605_v42 = vmul.f32 %v8685_v46, %v2541_v18  ;;  %v8735_v11 = vmul.f32 %v3621_v28, %v8516_v14  ;;  %vm3430_vm2 = vcmp.ge.f32.partialorder %v8431_v58, 0.0  ;;  %v8739_v40 = vmul.f32 0.5, %v8542_v16  ;;  %v6033_v14 = vld [vmem:[%s10873_s9] sm:$0xff]  }
 0x31e   : > { %6303 = vrcp.f32 %v2352_v0  ;;  %v8748_v2 = vadd.f32 %v8744_v15, %v11266_v61  ;;  %v3366_v17 = vsub.f32 1.0, %v8720_v8  ;;  %v8755_v50 = vmul.f32 0.5, %v8582_v31  ;;  %5916 = vmatprep.subr.bf16.mxu1 %v6033_v14  ;;  %v11268_v8 = vld [vmem:[#allocation36_spill] sm:$0xff] }
 0x31f   : > { %11265 = vst [vmem:[#allocation51_spill] sm:$0xff] %v8735_v11  ;;  %v2475_v16 = vmul.f32 1.0614054, %v8725_v37  ;;  %6305 = vrcp.f32 %v2350_v63  ;;  %v8759_v41 = vmul.f32 %v3619_v3, %v8564_v6  ;;  %v3496_v18 = vsub.f32 0.0, %v3368_v57  ;;  %5917 = vmatpush3.bf16.msra.mxu1 %v6033_v14  ;;  %v11269_v6 = vld [vmem:[#allocation4_spill] sm:$0xff] }
 0x320   : > { %v3305_v28 = vmul.f32 %v6296_v27, %v2985_v54  ;;  %v3210_v39 = vmul.f32 1.442695, %v3114_v33  ;;  %v2983_v45 = vmul.f32 %v8586_v9, %v2919_v59  ;;  %v2924_v0 = vadd.f32 0.2548296, %v2860_v4  ;;  %v11270_v9 = vld [vmem:[#allocation35_spill] sm:$0xff] }
 0x321   : > { %11267 = vst [vmem:[#allocation13_spill] sm:$0xff] %v8759_v41  ;;  %v2730_v61 = vmul.f32 %v8657_v43, %v2666_v25  ;;  %v2669_v24 = vadd.f32 1.4214138, %v2605_v42  ;;  %v8764_v31 = vmul.f32 0.70710677, %v8748_v2  ;;  %v8768_v63 = vadd.f32 %v8744_v15, %v11268_v8 }
 0x322   : > { %v4330_v3 = vsel %vm3774_vm13, %v11269_v6, 0.0  ;;  %v4333_v27 = vsel %vm3774_vm13, %v8489_v12, 0.0  ;;  %v3494_v33 = vsub.f32 0.0, %v3366_v17  ;;  %vm3433_vm3 = vcmp.ge.f32.partialorder %v11270_v9, 0.0 }
 0x323   : > { %v3053_v54 = vsub.f32 0.0, %v8609_v62  ;;  %v8777_v59 = vmul.f32 0.5, %v8622_v5  ;;  %v2539_v4 = vadd.f32 -1.4531521, %v2475_v16  ;;  %4331 = vadd.xlane.f32.xlu0 %v4330_v3  ;;  %4334 = vadd.xlane.f32.xlu1 %v4333_v27  ;;  %v6300_v25 = vpop.eup %6299  ;;  %v3369_v42 = vsub.f32 1.0, %v3305_v28 }
 0x324   : > { %6307 = vpow2.f32 %v3210_v39  ;;  %v8780_v14 = vand.u32 2147483647, %v8764_v31  ;;  %v8783_v8 = vmul.f32 0.70710677, %v8768_v63  ;;  %v6302_v12 = vpop.eup %6301  ;;  %v3560_v6 = vsel %vm3432_vm1, %v3368_v57, %v3496_v18  ;;  %v11271_v39 = vld [vmem:[#allocation17_spill] sm:$0xff]  ;;  %v8800_v18 = vpop.f32.mrb[58].mxu0 }
 0x325   : > { %v3303_v56 = vmul.f32 %v6300_v25, %v2983_v45  ;;  %v2988_v5 = vmul.f32 %v8611_v35, %v2924_v0  ;;  %v2794_v23 = vadd.f32 -0.28449672, %v2730_v61  ;;  %v2733_v16 = vmul.f32 %v8685_v46, %v2669_v24  ;;  %11272 = vst [vmem:[#allocation36_spill] sm:$0xff] %v8800_v18  ;;  %v11273_v0 = vld [vmem:[#allocation14_spill] sm:$0xff] }
 0x326   : > { %v2289_v3 = vmul.f32 0.3275911, %v8780_v14  ;;  %v8791_v28 = vand.u32 2147483647, %v8783_v8  ;;  %v4324_v27 = vsel %vm3774_vm13, %v11271_v39, 0.0  ;;  %v3558_v30 = vsel %vm3430_vm2, %v3366_v17, %v3494_v33  ;;  %v11274_v39 = vld [vmem:[#allocation15_spill] sm:$0xff] }
 0x327   : > { %v3117_v55 = vmul.f32 %v3053_v54, %v8609_v62  ;;  %v2603_v57 = vmul.f32 %v8725_v37, %v2539_v4  ;;  %v3051_v35 = vsub.f32 0.0, %v8646_v20  ;;  %4325 = vadd.xlane.f32.xlu0 %v4324_v27  ;;  %v3497_v45 = vsub.f32 0.0, %v3369_v42  ;;  %v8810_v62 = vpop.f32.mrb[59].mxu0 }
 0x328   : > { %v8802_v24 = vpop.eup %6303  ;;  %vm3431_vm4 = vcmp.ge.f32.partialorder %v11273_v0, 0.0  ;;  %v2353_v61 = vadd.f32 1.0, %v2289_v3  ;;  %v2287_v25 = vmul.f32 0.3275911, %v8791_v28  ;;  %v8808_v58 = vadd.f32 %v8744_v15, %v11274_v39  ;;  %11275 = vst [vmem:[#allocation35_spill] sm:$0xff] %v8810_v62 }
 0x329   : > { %v8812_v17 = vpop.eup %6305  ;;  %v3624_v33 = vadd.f32 1.0, %v3560_v6  ;;  %v3367_v54 = vsub.f32 1.0, %v3303_v56  ;;  %v3308_v4 = vmul.f32 %v6302_v12, %v2988_v5  ;;  %v2480_v27 = vmul.f32 1.0614054, %v8802_v24 }
 0x32a   : > { %v2858_v18 = vmul.f32 %v8657_v43, %v2794_v23  ;;  %v2797_v47 = vadd.f32 -0.28449672, %v2733_v16  ;;  %6309 = vrcp.f32 %v2353_v61  ;;  %v2351_v3 = vadd.f32 1.0, %v2287_v25  ;;  %v11276_v23 = vld [vmem:[#allocation23_spill] sm:$0xff]  ;;  %v11277_v16 = vld [vmem:[#allocation37_spill] sm:$0xff] }
 0x32b   : > { %v3622_v22 = vadd.f32 1.0, %v3558_v30  ;;  %v3216_v34 = vmul.f32 1.442695, %v3117_v55  ;;  %v2667_v41 = vadd.f32 1.4214138, %v2603_v57  ;;  %v3115_v39 = vmul.f32 %v3051_v35, %v8646_v20  ;;  %v6034_v35 = vld [vmem:[%s10873_s9 + $0x8] sm:$0xff]  }
 0x32c   : > { %v3561_v62 = vsel %vm3433_vm3, %v3369_v42, %v3497_v45  ;;  %v2544_v26 = vadd.f32 -1.4531521, %v2480_v27  ;;  %v2478_v6 = vmul.f32 1.0614054, %v8812_v17  ;;  %v8821_v56 = vmul.f32 0.70710677, %v8808_v58  ;;  %5918 = vmatprep.subr.bf16.mxu1 %v6034_v35 }
 0x32d   : > { %v3495_v12 = vsub.f32 0.0, %v3367_v54  ;;  %v3372_v5 = vsub.f32 1.0, %v3308_v4  ;;  %vm3436_vm5 = vcmp.ge.f32.partialorder %v11276_v23, 0.0  ;;  %6311 = vrcp.f32 %v2351_v3  ;;  %5919 = vmatpush3.bf16.msra.mxu1 %v6034_v35 }
 0x32e   : > { %v8826_v30 = vadd.f32 %v8744_v15, %v11277_v16  ;;  %v6308_v55 = vpop.eup %6307  ;;  %v8829_v20 = vmul.f32 %v3624_v33, %v8590_v38  ;;  %v2922_v9 = vadd.f32 0.2548296, %v2858_v18  ;;  %v2861_v42 = vmul.f32 %v8685_v46, %v2797_v47 }
 0x32f   : > { %v8833_v57 = vand.u32 2147483647, %v8821_v56  ;;  %v8839_v45 = vmul.f32 %v3622_v22, %v8595_v29  ;;  %v3625_v61 = vadd.f32 1.0, %v3561_v62  ;;  %6313 = vpow2.f32 %v3216_v34  ;;  %v11280_v62 = vld [vmem:[#allocation8_spill] sm:$0xff] }
 0x330   : > { %11278 = vst [vmem:[#allocation14_spill] sm:$0xff] %v8829_v20  ;;  %v2731_v25 = vmul.f32 %v8725_v37, %v2667_v41  ;;  %v3212_v4 = vmul.f32 1.442695, %v3115_v39  ;;  %v2608_v38 = vmul.f32 %v8802_v24, %v2544_v26  ;;  %v2542_v18 = vadd.f32 -1.4531521, %v2478_v6 }
 0x331   : > { %11279 = vst [vmem:[#allocation15_spill] sm:$0xff] %v8839_v45  ;;  %v2292_v47 = vmul.f32 0.3275911, %v8833_v57  ;;  %v3559_v33 = vsel %vm3431_vm4, %v3367_v54, %v3495_v12  ;;  %v3500_v27 = vsub.f32 0.0, %v3372_v5  ;;  %v3056_v3 = vsub.f32 0.0, %v8711_v60  ;;  %v11281_v54 = vld [vmem:[#allocation10_spill] sm:$0xff] }
 0x332   : > { %v8848_v29 = vmul.f32 0.70710677, %v8826_v30  ;;  %v2986_v34 = vmul.f32 %v8657_v43, %v2922_v9  ;;  %v2925_v22 = vadd.f32 0.2548296, %v2861_v42  ;;  %v4327_v26 = vsel %vm3774_vm13, %v11280_v62, 0.0 }
 0x333   : > { %v2356_v41 = vadd.f32 1.0, %v2292_v47  ;;  %v2795_v39 = vadd.f32 -0.28449672, %v2731_v25  ;;  %v3054_v6 = vsub.f32 0.0, %v8714_v10  ;;  %4328 = vadd.xlane.f32.xlu1 %v4327_v26  ;;  %v8859_v12 = vadd.f32 %v8744_v15, %v11281_v54 }
 0x334   : > { %v8855_v0 = vand.u32 2147483647, %v8848_v29  ;;  %v8861_v16 = vpop.eup %6309  ;;  %v8864_v43 = vmul.f32 %v3625_v61, %v8642_v19  ;;  %v2672_v9 = vadd.f32 1.4214138, %v2608_v38  ;;  %v2606_v42 = vmul.f32 %v8812_v17, %v2542_v18 }
 0x335   : > { %6315 = vrcp.f32 %v2356_v41  ;;  %v3623_v35 = vadd.f32 1.0, %v3559_v33  ;;  %v3120_v25 = vmul.f32 %v3056_v3, %v8711_v60  ;;  %v2481_v47 = vmul.f32 1.0614054, %v8861_v16 }
 0x336   : > { %11282 = vst [vmem:[#allocation23_spill] sm:$0xff] %v8864_v43  ;;  %6317 = vpow2.f32 %v3212_v4  ;;  %v3564_v26 = vsel %vm3436_vm5, %v3372_v5, %v3500_v27  ;;  %v8871_v54 = vmul.f32 %v6308_v55, %v2986_v34  ;;  %v2989_v62 = vmul.f32 %v8685_v46, %v2925_v22 }
 0x337   : > { %v2290_v19 = vmul.f32 0.3275911, %v8855_v0  ;;  %v8875_v61 = vpop.eup %6311  ;;  %v2859_v38 = vmul.f32 %v8725_v37, %v2795_v39  ;;  %v3118_v18 = vmul.f32 %v3054_v6, %v8714_v10  ;;  %v2545_v4 = vadd.f32 -1.4531521, %v2481_v47 }
 0x338   : > { %v8880_v60 = vmul.f32 0.70710677, %v8859_v12  ;;  %v2736_v33 = vmul.f32 %v8802_v24, %v2672_v9  ;;  %v2670_v23 = vadd.f32 1.4214138, %v2606_v42  ;;  %v2479_v5 = vmul.f32 1.0614054, %v8875_v61 }
 0x339   : > { %v2354_v55 = vadd.f32 1.0, %v2290_v19  ;;  %v6314_v27 = vpop.eup %6313  ;;  %v3628_v46 = vadd.f32 1.0, %v3564_v26  ;;  %v3222_v3 = vmul.f32 1.442695, %v3120_v25  ;;  %v2609_v34 = vmul.f32 %v8861_v16, %v2545_v4 }
 0x33a   : > { %v8886_v22 = vand.u32 2147483647, %v8880_v60  ;;  %v3370_v10 = vsub.f32 1.0, %v8871_v54  ;;  %v3309_v41 = vmul.f32 %v6314_v27, %v2989_v62  ;;  %v2543_v39 = vadd.f32 -1.4531521, %v2479_v5  ;;  %v11283_v54 = vld [vmem:[#allocation24_spill] sm:$0xff] }
 0x33b   : > { %6319 = vrcp.f32 %v2354_v55  ;;  %vm3434_vm6 = vcmp.ge.f32.partialorder %v8553_v52, 0.0  ;;  %v2923_v6 = vadd.f32 0.2548296, %v2859_v38  ;;  %v8891_v9 = vmul.f32 0.5, %v8679_v48 }
 0x33c   : > { %v3057_v42 = vsub.f32 0.0, %v8780_v14  ;;  %v2293_v25 = vmul.f32 0.3275911, %v8886_v22  ;;  %v2800_v47 = vadd.f32 -0.28449672, %v2736_v33  ;;  %v8896_v26 = vmul.f32 0.5, %v8683_v36 }
 0x33d   : > { %v2734_v19 = vmul.f32 %v8812_v17, %v2670_v23  ;;  %v8901_v62 = vadd.f32 %v8744_v15, %v11283_v54  ;;  %v8904_v4 = vmul.f32 %v3623_v35, %v8654_v49  ;;  %vm3437_vm7 = vcmp.ge.f32.partialorder %v8600_v1, 0.0 }
 0x33e   : > { %v3218_v48 = vmul.f32 1.442695, %v3118_v18  ;;  %v2673_v38 = vadd.f32 1.4214138, %v2609_v34  ;;  %v2607_v5 = vmul.f32 %v8875_v61, %v2543_v39  ;;  %v8911_v36 = vmul.f32 %v3628_v46, %v8690_v44 }
 0x33f   : > { %11284 = vst [vmem:[#allocation37_spill] sm:$0xff] %v8904_v4  ;;  %v8908_v55 = vpop.eup %6315  ;;  %v3498_v33 = vsub.f32 0.0, %v3370_v10  ;;  %v3373_v23 = vsub.f32 1.0, %v3309_v41  ;;  %6321 = vpow2.f32 %v3222_v3  ;;  %v2987_v54 = vmul.f32 %v8725_v37, %v2923_v6 }
 0x340   : > { %11285 = vst [vmem:[#allocation10_spill] sm:$0xff] %v8911_v36  ;;  %v6318_v27 = vpop.eup %6317  ;;  %v3121_v49 = vmul.f32 %v3057_v42, %v8780_v14  ;;  %v2484_v35 = vmul.f32 1.0614054, %v8908_v55  ;;  %v2357_v4 = vadd.f32 1.0, %v2293_v25  ;;  %v2864_v18 = vmul.f32 %v8802_v24, %v2800_v47 }
 0x341   : > { %v2798_v34 = vadd.f32 -0.28449672, %v2734_v19  ;;  %v3055_v39 = vsub.f32 0.0, %v8791_v28  ;;  %v8919_v45 = vmul.f32 0.70710677, %v8901_v62  ;;  %v2737_v44 = vmul.f32 %v8861_v16, %v2673_v38 }
 0x342   : > { %v2671_v46 = vadd.f32 1.4214138, %v2607_v5  ;;  %v2548_v3 = vadd.f32 -1.4531521, %v2484_v35  ;;  %v4342_v37 = vsel %vm3774_vm13, %v8558_v13, 0.0  ;;  %v3501_v41 = vsub.f32 0.0, %v3373_v23 }
 0x343   : > { %6323 = vpow2.f32 %v3218_v48  ;;  %v8925_v14 = vmul.f32 0.5, %v8748_v2  ;;  %v8928_v6 = vmul.f32 0.5, %v8768_v63  ;;  %4343 = vadd.xlane.f32.xlu0 %v4342_v37  ;;  %v3307_v42 = vmul.f32 %v6318_v27, %v2987_v54 }
 0x344   : > { %v2612_v25 = vmul.f32 %v8908_v55, %v2548_v3  ;;  %6325 = vrcp.f32 %v2357_v4  ;;  %v8932_v47 = vand.u32 2147483647, %v8919_v45  ;;  %v3562_v38 = vsel %vm3434_vm6, %v3370_v10, %v3498_v33  ;;  %v11286_v33 = vld [vmem:[#allocation21_spill] sm:$0xff] }
 0x345   : > { %v8934_v19 = vpop.eup %6319  ;;  %v2928_v48 = vadd.f32 0.2548296, %v2864_v18  ;;  %v2862_v2 = vmul.f32 %v8812_v17, %v2798_v34  ;;  %v4345_v63 = vsel %vm3774_vm13, %v8575_v7, 0.0  ;;  %v2801_v5 = vadd.f32 -0.28449672, %v2737_v44 }
 0x346   : > { %v3224_v35 = vmul.f32 1.442695, %v3121_v49  ;;  %v2735_v27 = vmul.f32 %v8875_v61, %v2671_v46  ;;  %v3119_v4 = vmul.f32 %v3055_v39, %v8791_v28  ;;  %4346 = vadd.xlane.f32.xlu1 %v4345_v63  ;;  %v3565_v54 = vsel %vm3437_vm7, %v3373_v23, %v3501_v41  ;;  %v11287_v46 = vld [vmem:[#allocation43_spill] sm:$0xff] }
 0x347   : > { %vm3435_vm8 = vcmp.ge.f32.partialorder %v8639_v53, 0.0  ;;  %v3060_v52 = vsub.f32 0.0, %v8833_v57  ;;  %v2291_v10 = vmul.f32 0.3275911, %v8932_v47  ;;  %v4336_v18 = vsel %vm3774_vm13, %v11286_v33, 0.0  ;;  %v11298_v33 = vld [vmem:[#allocation6_spill] sm:$0xff] }
 0x348   : > { %v3371_v34 = vsub.f32 1.0, %v3307_v42  ;;  %v2676_v44 = vadd.f32 1.4214138, %v2612_v25  ;;  %v2482_v49 = vmul.f32 1.0614054, %v8934_v19  ;;  %4337 = vadd.xlane.f32.xlu0 %v4336_v18  ;;  %v8953_v28 = vadd.f32 %v8744_v15, %v11287_v46 }
 0x349   : > { %v6322_v1 = vpop.eup %6321  ;;  %v3626_v23 = vadd.f32 1.0, %v3562_v38  ;;  %v2992_v39 = vmul.f32 %v8802_v24, %v2928_v48  ;;  %v2926_v3 = vadd.f32 0.2548296, %v2862_v2  ;;  %v2355_v37 = vadd.f32 1.0, %v2291_v10 }
 0x34a   : > { %v2865_v41 = vmul.f32 %v8861_v16, %v2801_v5  ;;  %6327 = vpow2.f32 %v3224_v35  ;;  %v2799_v63 = vadd.f32 -0.28449672, %v2735_v27  ;;  %v8958_v42 = vmul.f32 0.5, %v8808_v58  ;;  %v11289_v35 = vld [vmem:[#allocation3_spill] sm:$0xff] }
 0x34b   : > { %v3629_v25 = vadd.f32 1.0, %v3565_v54  ;;  %v3220_v7 = vmul.f32 1.442695, %v3119_v4  ;;  %v3124_v18 = vmul.f32 %v3060_v52, %v8833_v57  ;;  %6329 = vrcp.f32 %v2355_v37 }
 0x34c   : > { %v3499_v46 = vsub.f32 0.0, %v3371_v34  ;;  %v2740_v13 = vmul.f32 %v8908_v55, %v2676_v44  ;;  %v2546_v38 = vadd.f32 -1.4531521, %v2482_v49  ;;  %v8963_v24 = vmul.f32 0.70710677, %v8953_v28 }
 0x34d   : > { %v6324_v48 = vpop.eup %6323  ;;  %v8966_v2 = vmul.f32 %v3626_v23, %v8739_v40  ;;  %v3312_v5 = vmul.f32 %v6322_v1, %v2992_v39  ;;  %v2990_v58 = vmul.f32 %v8812_v17, %v2926_v3  ;;  %v8971_v27 = vadd.f32 %v8744_v15, %v11289_v35 }
 0x34e   : > { %v8973_v57 = vpop.eup %6325  ;;  %v2929_v4 = vadd.f32 0.2548296, %v2865_v41  ;;  %v2863_v54 = vmul.f32 %v8875_v61, %v2799_v63  ;;  %v8977_v52 = vmul.f32 0.5, %v8826_v30  ;;  %v8980_v10 = vand.u32 2147483647, %v8963_v24 }
 0x34f   : > { %11288 = vst [vmem:[#allocation24_spill] sm:$0xff] %v8966_v2  ;;  %v8983_v40 = vmul.f32 %v3629_v25, %v8755_v50  ;;  %6331 = vpow2.f32 %v3220_v7  ;;  %v3230_v17 = vmul.f32 1.442695, %v3124_v18  ;;  %v3058_v44 = vsub.f32 0.0, %v8855_v0 }
 0x350   : > { %v3563_v49 = vsel %vm3435_vm8, %v3371_v34, %v3499_v46  ;;  %vm3440_vm9 = vcmp.ge.f32.partialorder %v8699_v21, 0.0  ;;  %v2804_v1 = vadd.f32 -0.28449672, %v2740_v13  ;;  %v2610_v23 = vmul.f32 %v8934_v19, %v2546_v38 }
 0x351   : > { %11290 = vst [vmem:[#allocation43_spill] sm:$0xff] %v8983_v40  ;;  %v2296_v30 = vmul.f32 0.3275911, %v8980_v10  ;;  %v3376_v39 = vsub.f32 1.0, %v3312_v5  ;;  %v3310_v3 = vmul.f32 %v6324_v48, %v2990_v58  ;;  %v2485_v37 = vmul.f32 1.0614054, %v8973_v57 }
 0x352   : > { %v8993_v50 = vmul.f32 0.70710677, %v8971_v27  ;;  %v2993_v7 = vmul.f32 %v8861_v16, %v2929_v4  ;;  %v2927_v41 = vadd.f32 0.2548296, %v2863_v54  ;;  %v8997_v53 = vmul.f32 0.5, %v8859_v12 }
 0x353   : > { %v2360_v34 = vadd.f32 1.0, %v2296_v30  ;;  %6333 = vpow2.f32 %v3230_v17  ;;  %v3122_v13 = vmul.f32 %v3058_v44, %v8855_v0  ;;  %v3061_v63 = vsub.f32 0.0, %v8886_v22  ;;  %v11291_v17 = vld [vmem:[#allocation33_spill] sm:$0xff]  ;;  %v11292_v30 = vld [vmem:[#allocation22_spill] sm:$0xff] }
 0x354   : > { %v9002_v25 = vand.u32 2147483647, %v8993_v50  ;;  %v6328_v18 = vpop.eup %6327  ;;  %v3627_v46 = vadd.f32 1.0, %v3563_v49  ;;  %vm3438_vm10 = vcmp.ge.f32.partialorder %v8702_v51, 0.0  ;;  %v2868_v38 = vmul.f32 %v8908_v55, %v2804_v1 }
 0x355   : > { %v2674_v16 = vadd.f32 1.4214138, %v2610_v23  ;;  %6335 = vrcp.f32 %v2360_v34  ;;  %v9006_v48 = vpop.eup %6329  ;;  %v3504_v12 = vsub.f32 0.0, %v3376_v39  ;;  %v3374_v5 = vsub.f32 1.0, %v3310_v3 }
 0x356   : > { %v2549_v58 = vadd.f32 -1.4531521, %v2485_v37  ;;  %v2294_v0 = vmul.f32 0.3275911, %v9002_v25  ;;  %v3313_v35 = vmul.f32 %v6328_v18, %v2993_v7  ;;  %v2991_v4 = vmul.f32 %v8875_v61, %v2927_v41 }
 0x357   : > { %v2483_v54 = vmul.f32 1.0614054, %v9006_v48  ;;  %v9013_v44 = vadd.f32 %v8744_v15, %v11291_v17  ;;  %v3226_v49 = vmul.f32 1.442695, %v3122_v13  ;;  %v3125_v1 = vmul.f32 %v3061_v63, %v8886_v22 }
 0x358   : > { %v2358_v23 = vadd.f32 1.0, %v2294_v0  ;;  %v4339_v34 = vsel %vm3774_vm13, %v11292_v30, 0.0  ;;  %v9019_v3 = vmul.f32 %v3627_v46, %v8777_v59  ;;  %v2932_v37 = vadd.f32 0.2548296, %v2868_v38  ;;  %v11294_v0 = vld [vmem:[#allocation45_spill] sm:$0xff] }
 0x359   : > { %v2738_v7 = vmul.f32 %v8934_v19, %v2674_v16  ;;  %v2547_v61 = vadd.f32 -1.4531521, %v2483_v54  ;;  %4340 = vadd.xlane.f32.xlu1 %v4339_v34  ;;  %v6332_v41 = vpop.eup %6331  ;;  %v3568_v18 = vsel %vm3440_vm9, %v3376_v39, %v3504_v12  ;;  %v3502_v17 = vsub.f32 0.0, %v3374_v5 }
 0x35a   : > { %11293 = vst [vmem:[#allocation3_spill] sm:$0xff] %v9019_v3  ;;  %vm3441_vm11 = vcmp.ge.f32.partialorder %v8764_v31, 0.0  ;;  %v2613_v22 = vmul.f32 %v8973_v57, %v2549_v58  ;;  %6337 = vrcp.f32 %v2358_v23  ;;  %v3377_v13 = vsub.f32 1.0, %v3313_v35 }
 0x35b   : > { %v3311_v63 = vmul.f32 %v6332_v41, %v2991_v4  ;;  %v3059_v59 = vsub.f32 0.0, %v8932_v47  ;;  %v9028_v46 = vmul.f32 0.70710677, %v9013_v44  ;;  %6339 = vpow2.f32 %v3226_v49 }
 0x35c   : > { %v3232_v38 = vmul.f32 1.442695, %v3125_v1  ;;  %v2611_v16 = vmul.f32 %v9006_v48, %v2547_v61  ;;  %v9033_v21 = vadd.f32 %v8744_v15, %v11294_v0  ;;  %v2996_v39 = vmul.f32 %v8908_v55, %v2932_v37 }
 0x35d   : > { %v2802_v12 = vadd.f32 -0.28449672, %v2738_v7  ;;  %v9037_v58 = vmul.f32 0.5, %v8901_v62  ;;  %v9040_v35 = vand.u32 2147483647, %v9028_v46  ;;  %v6334_v4 = vpop.eup %6333  ;;  %v3632_v54 = vadd.f32 1.0, %v3568_v18 }
 0x35e   : > { %v3566_v49 = vsel %vm3438_vm10, %v3374_v5, %v3502_v17  ;;  %v2677_v1 = vadd.f32 1.4214138, %v2613_v22  ;;  %v9045_v23 = vmul.f32 0.70710677, %v9033_v21  ;;  %v3505_v61 = vsub.f32 0.0, %v3377_v13 }
 0x35f   : > { %v9047_v34 = vpop.eup %6335  ;;  %v3375_v55 = vsub.f32 1.0, %v3311_v63  ;;  %vm3439_vm12 = vcmp.ge.f32.partialorder %v8783_v8, 0.0  ;;  %v3123_v62 = vmul.f32 %v3059_v59, %v8932_v47  ;;  %v2297_v37 = vmul.f32 0.3275911, %v9040_v35  ;;  %v11295_v47 = vld [vmem:[#allocation5_spill] sm:$0xff] }
 0x360   : > { %6341 = vpow2.f32 %v3232_v38  ;;  %v2675_v7 = vadd.f32 1.4214138, %v2611_v16  ;;  %v2488_v41 = vmul.f32 1.0614054, %v9047_v34  ;;  %v9054_v51 = vand.u32 2147483647, %v9045_v23 }
 0x361   : > { %v3630_v5 = vadd.f32 1.0, %v3566_v49  ;;  %v3316_v18 = vmul.f32 %v6334_v4, %v2996_v39  ;;  %v2866_v17 = vmul.f32 %v8934_v19, %v2802_v12  ;;  %v2361_v22 = vadd.f32 1.0, %v2297_v37 }
 0x362   : > { %v2741_v63 = vmul.f32 %v8973_v57, %v2677_v1  ;;  %v2552_v0 = vadd.f32 -1.4531521, %v2488_v41  ;;  %v2295_v30 = vmul.f32 0.3275911, %v9054_v51  ;;  %v9061_v59 = vadd.f32 %v8744_v15, %v11295_v47 }
 0x363   : > { %v9064_v38 = vmul.f32 %v3632_v54, %v8891_v9  ;;  %v3569_v16 = vsel %vm3441_vm11, %v3377_v13, %v3505_v61  ;;  %v3228_v49 = vmul.f32 1.442695, %v3123_v62  ;;  %6343 = vrcp.f32 %v2361_v22 }
 0x364   : > { %v9068_v39 = vpop.eup %6337  ;;  %v3503_v12 = vsub.f32 0.0, %v3375_v55  ;;  %vm3444_vm14 = vcmp.ge.f32.partialorder %v8821_v56, 0.0  ;;  %v2739_v4 = vmul.f32 %v9006_v48, %v2675_v7  ;;  %v3064_v1 = vsub.f32 0.0, %v8980_v10 }
 0x365   : > { %11296 = vst [vmem:[#allocation33_spill] sm:$0xff] %v9064_v38  ;;  %v2359_v37 = vadd.f32 1.0, %v2295_v30  ;;  %v9074_v41 = vmul.f32 %v3630_v5, %v8896_v26  ;;  %v3380_v9 = vsub.f32 1.0, %v3316_v18  ;;  %v2930_v54 = vadd.f32 0.2548296, %v2866_v17  ;;  %v6340_v13 = vpop.eup %6339 }
 0x366   : > { %v2486_v31 = vmul.f32 1.0614054, %v9068_v39  ;;  %v2805_v61 = vadd.f32 -0.28449672, %v2741_v63  ;;  %v2616_v62 = vmul.f32 %v9047_v34, %v2552_v0  ;;  %v9079_v22 = vmul.f32 0.70710677, %v9061_v59 }
 0x367   : > { %11297 = vst [vmem:[#allocation45_spill] sm:$0xff] %v9074_v41  ;;  %6345 = vrcp.f32 %v2359_v37  ;;  %v3633_v47 = vadd.f32 1.0, %v3569_v16  ;;  %v9082_v7 = vmul.f32 0.5, %v8953_v28  ;;  %v9086_v26 = vadd.f32 %v8744_v15, %v11298_v33 }
 0x368   : > { %v2550_v30 = vadd.f32 -1.4531521, %v2486_v31  ;;  %v3567_v5 = vsel %vm3439_vm12, %v3375_v55, %v3503_v12  ;;  %v2803_v18 = vadd.f32 -0.28449672, %v2739_v4  ;;  %v3128_v17 = vmul.f32 %v3064_v1, %v8980_v10 }
 0x369   : > { %v9092_v63 = vand.u32 2147483647, %v9079_v22  ;;  %v3508_v0 = vsub.f32 0.0, %v3380_v9  ;;  %v2994_v16 = vmul.f32 %v8934_v19, %v2930_v54  ;;  %v3062_v28 = vsub.f32 0.0, %v9002_v25 }
 0x36a   : > { %v9097_v37 = vmul.f32 0.70710677, %v9086_v26  ;;  %v6342_v31 = vpop.eup %6341  ;;  %v2869_v33 = vmul.f32 %v8973_v57, %v2805_v61  ;;  %6347 = vpow2.f32 %v3228_v49  ;;  %v2680_v8 = vadd.f32 1.4214138, %v2616_v62 }
 0x36b   : > { %v2300_v55 = vmul.f32 0.3275911, %v9092_v63  ;;  %v3631_v12 = vadd.f32 1.0, %v3567_v5  ;;  %v9102_v10 = vmul.f32 0.5, %v8971_v27  ;;  %v2614_v4 = vmul.f32 %v9068_v39, %v2550_v30 }
 0x36c   : > { %v9106_v19 = vand.u32 2147483647, %v9097_v37  ;;  %v9109_v1 = vmul.f32 %v3633_v47, %v8925_v14  ;;  %v2867_v54 = vmul.f32 %v9006_v48, %v2803_v18  ;;  %v3238_v38 = vmul.f32 1.442695, %v3128_v17 }
 0x36d   : > { %v2364_v61 = vadd.f32 1.0, %v2300_v55  ;;  %v9112_v49 = vpop.eup %6343  ;;  %v3572_v62 = vsel %vm3444_vm14, %v3380_v9, %v3508_v0  ;;  %v3314_v5 = vmul.f32 %v6340_v13, %v2994_v16  ;;  %v3126_v27 = vmul.f32 %v3062_v28, %v9002_v25  ;;  %v11301_v55 = vld [vmem:[#allocation7_spill] sm:$0xff]  ;;  %v9127_v9 = vpop.f32.mrb[60].mxu0 }
 0x36e   : > { %11299 = vst [vmem:[#allocation5_spill] sm:$0xff] %v9109_v1  ;;  %v2298_v30 = vmul.f32 0.3275911, %v9106_v19  ;;  %v2933_v41 = vadd.f32 0.2548296, %v2869_v33  ;;  %v2744_v40 = vmul.f32 %v9047_v34, %v2680_v8  ;;  %v9121_v47 = vmul.f32 %v3631_v12, %v8928_v6  ;;  %11302 = vst [vmem:[#allocation7_spill] sm:$0xff] %v9127_v9 }
 0x36f   : > { %v2489_v14 = vmul.f32 1.0614054, %v9112_v49  ;;  %6349 = vrcp.f32 %v2364_v61  ;;  %v2678_v18 = vadd.f32 1.4214138, %v2614_v4  ;;  %v9125_v56 = vadd.f32 %v8744_v15, %v11301_v55  ;;  %v9132_v28 = vpop.f32.mrb[61].mxu0 }
 0x370   : > { %11300 = vst [vmem:[#allocation6_spill] sm:$0xff] %v9121_v47  ;;  %v2362_v17 = vadd.f32 1.0, %v2298_v30  ;;  %v3636_v13 = vadd.f32 1.0, %v3572_v62  ;;  %vm3442_vm15 = vcmp.ge.f32.partialorder %v8848_v29, 0.0  ;;  %v2931_v0 = vadd.f32 0.2548296, %v2867_v54 }
 0x371   : > { %v9129_v25 = vpop.eup %6345  ;;  %6351 = vpow2.f32 %v3238_v38  ;;  %v2553_v16 = vadd.f32 -1.4531521, %v2489_v14  ;;  %11303 = vst [vmem:[#allocation52_spill] sm:$0xff] %v9132_v28  ;;  %v3378_v6 = vsub.f32 1.0, %v3314_v5  ;;  %v9135_v33 = vmul.f32 0.5, %v9013_v44  ;;  %v11304_v28 = vld [vmem:[#allocation16_spill] sm:$0xff] }
 0x372   : > { %v2487_v8 = vmul.f32 1.0614054, %v9129_v25  ;;  %6353 = vrcp.f32 %v2362_v17  ;;  %v2997_v12 = vmul.f32 %v8973_v57, %v2933_v41  ;;  %v2808_v4 = vadd.f32 -0.28449672, %v2744_v40  ;;  %v9194_v1 = vpop.f32.mrb[62].mxu0 }
 0x373   : > { %v3234_v61 = vmul.f32 1.442695, %v3126_v27  ;;  %v2617_v62 = vmul.f32 %v9112_v49, %v2553_v16  ;;  %v2742_v30 = vmul.f32 %v9068_v39, %v2678_v18  ;;  %v3065_v38 = vsub.f32 0.0, %v9040_v35 }
 0x374   : > { %v2551_v54 = vadd.f32 -1.4531521, %v2487_v8  ;;  %v9143_v14 = vmul.f32 0.70710677, %v9125_v56  ;;  %v6348_v5 = vpop.eup %6347  ;;  %v2995_v44 = vmul.f32 %v9006_v48, %v2931_v0  ;;  %v9148_v17 = vadd.f32 %v8744_v15, %v11304_v28 }
 0x375   : > { %v2681_v55 = vadd.f32 1.4214138, %v2617_v62  ;;  %v4354_v57 = vsel %vm3774_vm13, %v8649_v32, 0.0  ;;  %v9153_v40 = vmul.f32 %v3636_v13, %v8958_v42  ;;  %v3506_v41 = vsub.f32 0.0, %v3378_v6 }
 0x376   : > { %v2615_v27 = vmul.f32 %v9129_v25, %v2551_v54  ;;  %v9157_v18 = vand.u32 2147483647, %v9143_v14  ;;  %4355 = vadd.xlane.f32.xlu0 %v4354_v57  ;;  %v9159_v16 = vmul.f32 %v6342_v31, %v2997_v12  ;;  %v2872_v48 = vmul.f32 %v9047_v34, %v2808_v4 }
 0x377   : > { %11305 = vst [vmem:[#allocation16_spill] sm:$0xff] %v9153_v40  ;;  %v3063_v0 = vsub.f32 0.0, %v9054_v51  ;;  %v9164_v28 = vmul.f32 0.70710677, %v9148_v17  ;;  %v2806_v8 = vadd.f32 -0.28449672, %v2742_v30  ;;  %v3129_v42 = vmul.f32 %v3065_v38, %v9040_v35 }
 0x378   : > { %v2679_v13 = vadd.f32 1.4214138, %v2615_v27  ;;  %v2301_v62 = vmul.f32 0.3275911, %v9157_v18  ;;  %v9170_v32 = vmul.f32 %v6348_v5, %v2995_v44  ;;  %6355 = vpow2.f32 %v3234_v61 }
 0x379   : > { %v9168_v54 = vpop.eup %6349  ;;  %v2745_v31 = vmul.f32 %v9112_v49, %v2681_v55  ;;  %v9174_v12 = vand.u32 2147483647, %v9164_v28  ;;  %v3570_v4 = vsel %vm3442_vm15, %v3378_v6, %v3506_v41  ;;  %v9179_v30 = vmul.f32 0.5, %v9033_v21 }
 0x37a   : > { %v2743_v35 = vmul.f32 %v9129_v25, %v2679_v13  ;;  %v2492_v38 = vmul.f32 1.0614054, %v9168_v54  ;;  %vm3445_vm1 = vcmp.ge.f32.partialorder %v8880_v60, 0.0  ;;  %v2936_v5 = vadd.f32 0.2548296, %v2872_v48 }
 0x37b   : > { %v6352_v57 = vpop.eup %6351  ;;  %v3127_v61 = vmul.f32 %v3063_v0, %v9054_v51  ;;  %v2365_v44 = vadd.f32 1.0, %v2301_v62  ;;  %v2299_v55 = vmul.f32 0.3275911, %v9174_v12  ;;  %v3381_v29 = vsub.f32 1.0, %v9159_v16 }
 0x37c   : > { %v9186_v27 = vpop.eup %6353  ;;  %v2870_v21 = vmul.f32 %v9068_v39, %v2806_v8  ;;  %v3240_v6 = vmul.f32 1.442695, %v3129_v42  ;;  %v2556_v41 = vadd.f32 -1.4531521, %v2492_v38  ;;  %v3379_v13 = vsub.f32 1.0, %v9170_v32  ;;  %v9198_v32 = vpop.f32.mrb[63].mxu0 }
 0x37d   : > { %vm3443_vm2 = vcmp.ge.f32.partialorder %v8919_v45, 0.0  ;;  %v2809_v40 = vadd.f32 -0.28449672, %v2745_v31  ;;  %v2490_v48 = vmul.f32 1.0614054, %v9186_v27  ;;  %6357 = vrcp.f32 %v2365_v44 }
 0x37e   : > { %v3634_v51 = vadd.f32 1.0, %v3570_v4  ;;  %v2807_v0 = vadd.f32 -0.28449672, %v2743_v35  ;;  %v2620_v62 = vmul.f32 %v9168_v54, %v2556_v41  ;;  %v2363_v9 = vadd.f32 1.0, %v2299_v55 }
 0x37f   : > { %v3000_v16 = vmul.f32 %v9047_v34, %v2936_v5  ;;  %v3236_v8 = vmul.f32 1.442695, %v3127_v61  ;;  %v3068_v42 = vsub.f32 0.0, %v9092_v63  ;;  %v2554_v38 = vadd.f32 -1.4531521, %v2490_v48  ;;  %v11306_v61 = vld [vmem:[#allocation49_spill] sm:$0xff] }
 0x380   : > { %v3509_v47 = vsub.f32 0.0, %v3381_v29  ;;  %v2934_v31 = vadd.f32 0.2548296, %v2870_v21  ;;  %v2684_v3 = vadd.f32 1.4214138, %v2620_v62  ;;  %6359 = vrcp.f32 %v2363_v9 }
 0x381   : > { %v3507_v44 = vsub.f32 0.0, %v3379_v13  ;;  %v2873_v4 = vmul.f32 %v9112_v49, %v2809_v40  ;;  %6361 = vpow2.f32 %v3240_v6  ;;  %v4357_v35 = vsel %vm3774_vm13, %v8735_v11, 0.0  ;;  %v11307_v40 = vld [vmem:[#allocation26_spill] sm:$0xff] }
 0x382   : > { %v2871_v55 = vmul.f32 %v9129_v25, %v2807_v0  ;;  %v2748_v34 = vmul.f32 %v9168_v54, %v2684_v3  ;;  %v2618_v5 = vmul.f32 %v9186_v27, %v2554_v38  ;;  %4358 = vadd.xlane.f32.xlu1 %v4357_v35  ;;  %v4348_v41 = vsel %vm3774_vm13, %v11306_v61, 0.0  ;;  %v6356_v21 = vpop.eup %6355 }
 0x383   : > { %v3320_v48 = vmul.f32 %v6352_v57, %v3000_v16  ;;  %6363 = vpow2.f32 %v3236_v8  ;;  %v3132_v9 = vmul.f32 %v3068_v42, %v9092_v63  ;;  %4349 = vadd.xlane.f32.xlu0 %v4348_v41  ;;  %v9211_v6 = vadd.f32 %v8744_v15, %v11307_v40  ;;  %v11308_v63 = vld [vmem:[#allocation27_spill] sm:$0xff]  ;;  %v11309_v8 = vld [vmem:[#allocation13_spill] sm:$0xff] }
 0x384   : > { %v9214_v0 = vmul.f32 %v3634_v51, %v8977_v52  ;;  %v3573_v3 = vsel %vm3445_vm1, %v3381_v29, %v3509_v47  ;;  %v2998_v62 = vmul.f32 %v9068_v39, %v2934_v31  ;;  %v3066_v38 = vsub.f32 0.0, %v9106_v19 }
 0x385   : > { %v2937_v35 = vadd.f32 0.2548296, %v2873_v4  ;;  %v9221_v57 = vmul.f32 0.70710677, %v9211_v6  ;;  %v9225_v16 = vadd.f32 %v8744_v15, %v11308_v63  ;;  %v4351_v42 = vsel %vm3774_vm13, %v11309_v8, 0.0 }
 0x386   : > { %v3571_v52 = vsel %vm3443_vm2, %v3379_v13, %v3507_v44  ;;  %v2935_v60 = vadd.f32 0.2548296, %v2871_v55  ;;  %v2812_v47 = vadd.f32 -0.28449672, %v2748_v34  ;;  %v2682_v29 = vadd.f32 1.4214138, %v2618_v5  ;;  %4352 = vadd.xlane.f32.xlu1 %v4351_v42 }
 0x387   : > { %v9231_v39 = vpop.eup %6357  ;;  %v3384_v51 = vsub.f32 1.0, %v3320_v48  ;;  %vm3448_vm3 = vcmp.ge.f32.partialorder %v8963_v24, 0.0  ;;  %v9235_v31 = vmul.f32 0.5, %v9061_v59  ;;  %v3246_v15 = vmul.f32 1.442695, %v3132_v9 }
 0x388   : > { %v9238_v4 = vand.u32 2147483647, %v9221_v57  ;;  %v3637_v41 = vadd.f32 1.0, %v3573_v3  ;;  %v3318_v40 = vmul.f32 %v6356_v21, %v2998_v62  ;;  %v3130_v45 = vmul.f32 %v3066_v38, %v9106_v19 }
 0x389   : > { %v2493_v13 = vmul.f32 1.0614054, %v9231_v39  ;;  %v3635_v44 = vadd.f32 1.0, %v3571_v52  ;;  %v3001_v55 = vmul.f32 %v9112_v49, %v2937_v35  ;;  %v9245_v5 = vmul.f32 0.70710677, %v9225_v16 }
 0x38a   : > { %v2304_v34 = vmul.f32 0.3275911, %v9238_v4  ;;  %v9247_v59 = vpop.eup %6359  ;;  %v2999_v48 = vmul.f32 %v9129_v25, %v2935_v60  ;;  %v2876_v9 = vmul.f32 %v9168_v54, %v2812_v47  ;;  %v2746_v21 = vmul.f32 %v9186_v27, %v2682_v29 }
 0x38b   : > { %v2557_v3 = vadd.f32 -1.4531521, %v2493_v13  ;;  %v6362_v19 = vpop.eup %6361  ;;  %v3512_v62 = vsub.f32 0.0, %v3384_v51  ;;  %6365 = vpow2.f32 %v3246_v15  ;;  %v2491_v38 = vmul.f32 1.0614054, %v9247_v59 }
 0x38c   : > { %v2368_v49 = vadd.f32 1.0, %v2304_v34  ;;  %v3382_v35 = vsub.f32 1.0, %v3318_v40  ;;  %vm3446_vm4 = vcmp.ge.f32.partialorder %v8993_v50, 0.0  ;;  %v3069_v42 = vsub.f32 0.0, %v9157_v18 }
 0x38d   : > { %v2621_v63 = vmul.f32 %v9231_v39, %v2557_v3  ;;  %v9257_v25 = vand.u32 2147483647, %v9245_v5  ;;  %v6364_v52 = vpop.eup %6363  ;;  %v9260_v60 = vmul.f32 %v3637_v41, %v8997_v53  ;;  %v3321_v47 = vmul.f32 %v6362_v19, %v3001_v55 }
 0x38e   : > { %v9263_v29 = vmul.f32 0.5, %v9086_v26  ;;  %v2555_v15 = vadd.f32 -1.4531521, %v2491_v38  ;;  %v3319_v13 = vmul.f32 %v6364_v52, %v2999_v48  ;;  %v2940_v40 = vadd.f32 0.2548296, %v2876_v9  ;;  %v11312_v9 = vld [vmem:[#allocation47_spill] sm:$0xff] }
 0x38f   : > { %11310 = vst [vmem:[#allocation26_spill] sm:$0xff] %v9260_v60  ;;  %v2810_v34 = vadd.f32 -0.28449672, %v2746_v21  ;;  %v3242_v11 = vmul.f32 1.442695, %v3130_v45  ;;  %v9266_v3 = vmul.f32 %v3635_v44, %v9037_v58  ;;  %6367 = vrcp.f32 %v2368_v49 }
 0x390   : > { %v2619_v8 = vmul.f32 %v9247_v59, %v2555_v15  ;;  %v2302_v61 = vmul.f32 0.3275911, %v9257_v25  ;;  %v3576_v53 = vsel %vm3448_vm3, %v3384_v51, %v3512_v62  ;;  %v3510_v41 = vsub.f32 0.0, %v3382_v35  ;;  %v9279_v44 = vld [vmem:[%s10871_s7] ss:$0 sm:$0xff] }
 0x391   : > { %11311 = vst [vmem:[#allocation27_spill] sm:$0xff] %v9266_v3  ;;  %vm3449_vm5 = vcmp.ge.f32.partialorder %v9028_v46, 0.0  ;;  %v2685_v26 = vadd.f32 1.4214138, %v2621_v63  ;;  %v3133_v55 = vmul.f32 %v3069_v42, %v9157_v18  ;;  %v3385_v48 = vsub.f32 1.0, %v3321_v47 }
 0x392   : > { %vm3447_vm6 = vcmp.ge.f32.partialorder %v9045_v23, 0.0  ;;  %v3067_v58 = vsub.f32 0.0, %v9174_v12  ;;  %v2366_v45 = vadd.f32 1.0, %v2302_v61  ;;  %v9283_v24 = vadd.f32 %v9279_v44, %v11312_v9  ;;  %v11313_v61 = vld [vmem:[#allocation50_spill] sm:$0xff] }
 0x393   : > { %v3383_v51 = vsub.f32 1.0, %v3319_v13  ;;  %v3004_v21 = vmul.f32 %v9168_v54, %v2940_v40  ;;  %v2874_v18 = vmul.f32 %v9186_v27, %v2810_v34  ;;  %6369 = vpow2.f32 %v3242_v11 }
 0x394   : > { %v9288_v19 = vmul.f32 0.5, %v9125_v56  ;;  %v2683_v62 = vadd.f32 1.4214138, %v2619_v8  ;;  %6371 = vrcp.f32 %v2366_v45  ;;  %v9292_v38 = vadd.f32 %v9279_v44, %v11313_v61 }
 0x395   : > { %v3640_v49 = vadd.f32 1.0, %v3576_v53  ;;  %v2749_v63 = vmul.f32 %v9231_v39, %v2685_v26  ;;  %v9296_v42 = vmul.f32 0.5, %v9148_v17  ;;  %v9299_v54 = vmul.f32 0.70710677, %v9283_v24  ;;  %v6366_v52 = vpop.eup %6365 }
 0x396   : > { %v3574_v11 = vsel %vm3446_vm4, %v3382_v35, %v3510_v41  ;;  %v3513_v56 = vsub.f32 0.0, %v3385_v48  ;;  %v3248_v8 = vmul.f32 1.442695, %v3133_v55  ;;  %v3131_v47 = vmul.f32 %v3067_v58, %v9174_v12 }
 0x397   : > { %v3511_v15 = vsub.f32 0.0, %v3383_v51  ;;  %v9304_v13 = vmul.f32 %v6366_v52, %v3004_v21  ;;  %v2938_v40 = vadd.f32 0.2548296, %v2874_v18  ;;  %v9307_v34 = vand.u32 2147483647, %v9299_v54 }
 0x398   : > { %v2747_v17 = vmul.f32 %v9247_v59, %v2683_v62  ;;  %v9311_v53 = vmul.f32 0.70710677, %v9292_v38  ;;  %v4366_v50 = vsel %vm3774_vm13, %v8829_v20, 0.0  ;;  %v4369_v35 = vsel %vm3774_vm13, %v8864_v43, 0.0 }
 0x399   : > { %v9318_v12 = vmul.f32 %v3640_v49, %v9082_v7  ;;  %v3638_v41 = vadd.f32 1.0, %v3574_v11  ;;  %v2813_v26 = vadd.f32 -0.28449672, %v2749_v63  ;;  %v2305_v55 = vmul.f32 0.3275911, %v9307_v34  ;;  %4367 = vadd.xlane.f32.xlu0 %v4366_v50  ;;  %4370 = vadd.xlane.f32.xlu1 %v4369_v35  ;;  %v9321_v58 = vpop.eup %6367 }
 0x39a   : > { %v3577_v45 = vsel %vm3449_vm5, %v3385_v48, %v3513_v56  ;;  %6373 = vpow2.f32 %v3248_v8  ;;  %v3244_v9 = vmul.f32 1.442695, %v3131_v47  ;;  %v9326_v21 = vand.u32 2147483647, %v9311_v53  ;;  %v11314_v48 = vld [vmem:[#allocation15_spill] sm:$0xff] }
 0x39b   : > { %v3575_v7 = vsel %vm3447_vm6, %v3383_v51, %v3511_v15  ;;  %v3002_v18 = vmul.f32 %v9186_v27, %v2938_v40  ;;  %v3072_v62 = vsub.f32 0.0, %v9238_v4  ;;  %v2369_v61 = vadd.f32 1.0, %v2305_v55  ;;  %v11315_v27 = vld [vmem:[#allocation12_spill] sm:$0xff] }
 0x39c   : > { %v3388_v49 = vsub.f32 1.0, %v9304_v13  ;;  %vm3452_vm7 = vcmp.ge.f32.partialorder %v9079_v22, 0.0  ;;  %v2811_v63 = vadd.f32 -0.28449672, %v2747_v17  ;;  %v2303_v46 = vmul.f32 0.3275911, %v9326_v21 }
 0x39d   : > { %v4360_v52 = vsel %vm3774_vm13, %v11314_v48, 0.0  ;;  %v6370_v11 = vpop.eup %6369  ;;  %v2877_v56 = vmul.f32 %v9231_v39, %v2813_v26  ;;  %v2496_v23 = vmul.f32 1.0614054, %v9321_v58  ;;  %6375 = vrcp.f32 %v2369_v61 }
 0x39e   : > { %4361 = vadd.xlane.f32.xlu0 %v4360_v52  ;;  %v9341_v51 = vadd.f32 %v9279_v44, %v11315_v27  ;;  %v9343_v8 = vpop.eup %6371  ;;  %v9346_v47 = vmul.f32 %v3638_v41, %v9102_v10  ;;  %v3641_v15 = vadd.f32 1.0, %v3577_v45  ;;  %6377 = vpow2.f32 %v3244_v9 }
 0x39f   : > { %v2367_v13 = vadd.f32 1.0, %v2303_v46  ;;  %v3639_v40 = vadd.f32 1.0, %v3575_v7  ;;  %v3136_v17 = vmul.f32 %v3072_v62, %v9238_v4  ;;  %v2494_v50 = vmul.f32 1.0614054, %v9343_v8  ;;  %v11318_v46 = vld [vmem:[#allocation32_spill] sm:$0xff] }
 0x3a0   : > { %v3070_v35 = vsub.f32 0.0, %v9257_v25  ;;  %v3516_v26 = vsub.f32 0.0, %v3388_v49  ;;  %v3322_v55 = vmul.f32 %v6370_v11, %v3002_v18  ;;  %v2875_v61 = vmul.f32 %v9247_v59, %v2811_v63 }
 0x3a1   : > { %v9353_v52 = vmul.f32 0.70710677, %v9341_v51  ;;  %v2941_v27 = vadd.f32 0.2548296, %v2877_v56  ;;  %v2560_v10 = vadd.f32 -1.4531521, %v2496_v23  ;;  %6379 = vrcp.f32 %v2367_v13 }
 0x3a2   : > { %v2558_v41 = vadd.f32 -1.4531521, %v2494_v50  ;;  %v9356_v45 = vmul.f32 %v3641_v15, %v9135_v33  ;;  %v9359_v4 = vmul.f32 0.5, %v9211_v6  ;;  %v9362_v9 = vmul.f32 0.5, %v9225_v16 }
 0x3a3   : > { %v9365_v7 = vand.u32 2147483647, %v9353_v52  ;;  %v3254_v18 = vmul.f32 1.442695, %v3136_v17  ;;  %v3134_v63 = vmul.f32 %v3070_v35, %v9257_v25  ;;  %v9371_v11 = vadd.f32 %v9279_v44, %v11318_v46 }
 0x3a4   : > { %11316 = vst [vmem:[#allocation47_spill] sm:$0xff] %v9356_v45  ;;  %11317 = vst [vmem:[#allocation50_spill] sm:$0xff] %v9359_v4  ;;  %v2622_v62 = vmul.f32 %v9343_v8, %v2558_v41  ;;  %v6374_v33 = vpop.eup %6373  ;;  %v9374_v56 = vmul.f32 %v3639_v40, %v9179_v30  ;;  %v3386_v6 = vsub.f32 1.0, %v3322_v55  ;;  %vm3450_vm8 = vcmp.ge.f32.partialorder %v9097_v37, 0.0  ;;  %v11322_v40 = vld [vmem:[#allocation37_spill] sm:$0xff] }
 0x3a5   : > { %11319 = vst [vmem:[#allocation12_spill] sm:$0xff] %v9371_v11  ;;  %v2939_v16 = vadd.f32 0.2548296, %v2875_v61  ;;  %v2308_v23 = vmul.f32 0.3275911, %v9365_v7  ;;  %v3580_v15 = vsel %vm3452_vm7, %v3388_v49, %v3516_v26  ;;  %v3005_v13 = vmul.f32 %v9231_v39, %v2941_v27  ;;  %v11323_v39 = vld [vmem:[#allocation36_spill] sm:$0xff] }
 0x3a6   : > { %11320 = vst [vmem:[#allocation32_spill] sm:$0xff] %v9374_v56  ;;  %v2624_v25 = vmul.f32 %v9321_v58, %v2560_v10  ;;  %v2686_v17 = vadd.f32 1.4214138, %v2622_v62  ;;  %v3071_v50 = vsub.f32 0.0, %v9326_v21  ;;  %v9384_v30 = vmul.f32 0.70710677, %v9371_v11 }
 0x3a7   : > { %v2372_v35 = vadd.f32 1.0, %v2308_v23  ;;  %v4363_v55 = vsel %vm3774_vm13, %v11322_v40, 0.0  ;;  %v9388_v61 = vpop.eup %6375  ;;  %v3250_v22 = vmul.f32 1.442695, %v3134_v63  ;;  %v3073_v49 = vsub.f32 0.0, %v9307_v34 }
 0x3a8   : > { %11321 = vst [vmem:[#allocation53_spill] sm:$0xff] %v9384_v30  ;;  %v2750_v41 = vmul.f32 %v9343_v8, %v2686_v17  ;;  %4364 = vadd.xlane.f32.xlu1 %v4363_v55  ;;  %v9394_v26 = vadd.f32 %v9279_v44, %v11323_v39  ;;  %v6378_v27 = vpop.eup %6377  ;;  %v3003_v10 = vmul.f32 %v9247_v59, %v2939_v16  ;;  %v2497_v62 = vmul.f32 1.0614054, %v9388_v61 }
 0x3a9   : > { %6381 = vrcp.f32 %v2372_v35  ;;  %v9399_v46 = vand.u32 2147483647, %v9384_v30  ;;  %v3644_v23 = vadd.f32 1.0, %v3580_v15  ;;  %v3514_v43 = vsub.f32 0.0, %v3386_v6 }
 0x3aa   : > { %11324 = vst [vmem:[#allocation36_spill] sm:$0xff] %v9394_v26  ;;  %v2688_v17 = vadd.f32 1.4214138, %v2624_v25  ;;  %6383 = vpow2.f32 %v3254_v18  ;;  %v9401_v63 = vmul.f32 %v6374_v33, %v3005_v13  ;;  %v2561_v55 = vadd.f32 -1.4531521, %v2497_v62 }
 0x3ab   : > { %v3135_v20 = vmul.f32 %v3071_v50, %v9326_v21  ;;  %v2306_v39 = vmul.f32 0.3275911, %v9399_v46  ;;  %v9405_v40 = vpop.eup %6379  ;;  %v2814_v59 = vadd.f32 -0.28449672, %v2750_v41  ;;  %6385 = vpow2.f32 %v3250_v22 }
 0x3ac   : > { %v3137_v16 = vmul.f32 %v3073_v49, %v9307_v34  ;;  %v9409_v35 = vmul.f32 0.70710677, %v9394_v26  ;;  %v3323_v15 = vmul.f32 %v6378_v27, %v3003_v10  ;;  %v2625_v25 = vmul.f32 %v9388_v61, %v2561_v55 }
 0x3ad   : > { %v2495_v18 = vmul.f32 1.0614054, %v9405_v40  ;;  %v2370_v33 = vadd.f32 1.0, %v2306_v39  ;;  %v3578_v21 = vsel %vm3450_vm8, %v3386_v6, %v3514_v43  ;;  %v2752_v13 = vmul.f32 %v9321_v58, %v2688_v17  ;;  %v11328_v17 = vld [vmem:[#allocation35_spill] sm:$0xff] }
 0x3ae   : > { %11325 = vst [vmem:[#allocation54_spill] sm:$0xff] %v9409_v35  ;;  %v9417_v50 = vmul.f32 0.5, %v9283_v24  ;;  %v9420_v41 = vand.u32 2147483647, %v9409_v35  ;;  %v11000_v34 = vsub.f32 1.0, %v9401_v63  ;;  %v9424_v27 = vmul.f32 %v3644_v23, %v9235_v31 }
 0x3af   : > { %v2559_v22 = vadd.f32 -1.4531521, %v2495_v18  ;;  %v3252_v49 = vmul.f32 1.442695, %v3135_v20  ;;  %6387 = vrcp.f32 %v2370_v33  ;;  %vm3451_vm9 = vcmp.ge.f32.partialorder %v9164_v28, 0.0 }
 0x3b0   : > { %11326 = vst [vmem:[#allocation55_spill] sm:$0xff] %v9417_v50  ;;  %11327 = vst [vmem:[#allocation56_spill] sm:$0xff] %v9424_v27  ;;  %v2878_v43 = vmul.f32 %v9343_v8, %v2814_v59  ;;  %v2689_v37 = vadd.f32 1.4214138, %v2625_v25  ;;  %v2309_v6 = vmul.f32 0.3275911, %v9420_v41  ;;  %v9432_v55 = vadd.f32 %v9279_v44, %v11328_v17 }
 0x3b1   : > { %v3387_v24 = vsub.f32 1.0, %v3323_v15  ;;  %v3256_v10 = vmul.f32 1.442695, %v3137_v16  ;;  %v2623_v62 = vmul.f32 %v9405_v40, %v2559_v22  ;;  %v9434_v20 = vadd.f32 1.0, %v3578_v21 }
 0x3b2   : > { %11329 = vst [vmem:[#allocation35_spill] sm:$0xff] %v9432_v55  ;;  %vm3453_vm10 = vcmp.ge.f32.partialorder %v9143_v14, 0.0  ;;  %v2816_v31 = vadd.f32 -0.28449672, %v2752_v13  ;;  %v9438_v23 = vmul.f32 0.5, %v9292_v38  ;;  %v2373_v39 = vadd.f32 1.0, %v2309_v6 }
 0x3b3   : > { %v9440_v59 = vpop.eup %6381  ;;  %v3517_v16 = vsub.f32 0.0, %v11000_v34  ;;  %v2687_v15 = vadd.f32 1.4214138, %v2623_v62  ;;  %6389 = vpow2.f32 %v3252_v49  ;;  %v4378_v25 = vsel %vm3774_vm13, %v8911_v36, 0.0  ;;  %v6035_v38 = vld [vmem:[%s10872_s8] sm:$0xff]  }
 0x3b4   : > { %v9446_v18 = vpop.eup %6383  ;;  %v2942_v33 = vadd.f32 0.2548296, %v2878_v43  ;;  %v2753_v21 = vmul.f32 %v9388_v61, %v2689_v37  ;;  %v2500_v13 = vmul.f32 1.0614054, %v9440_v59  ;;  %6391 = vrcp.f32 %v2373_v39  ;;  %4379 = vadd.xlane.f32.xlu0 %v4378_v25  ;;  %v11331_v39 = vld [vmem:[#allocation3_spill] sm:$0xff]  ;;  %5952 = vmatprep.subr.bf16.mxu1 %v6035_v38 }
 0x3b5   : > { %v3515_v22 = vsub.f32 0.0, %v3387_v24  ;;  %6393 = vpow2.f32 %v3256_v10  ;;  %v2751_v49 = vmul.f32 %v9405_v40, %v2687_v15  ;;  %v9455_v6 = vmul.f32 0.70710677, %v9432_v55  ;;  %v6386_v62 = vpop.eup %6385  ;;  %v11332_v15 = vld [vmem:[#allocation43_spill] sm:$0xff] }
 0x3b6   : > { %v2880_v43 = vmul.f32 %v9321_v58, %v2816_v31  ;;  %v2564_v17 = vadd.f32 -1.4531521, %v2500_v13  ;;  %v3076_v37 = vsub.f32 0.0, %v9365_v7  ;;  %v3742_v25 = vpack.c.bf16 %v11331_v39, %v8966_v2  ;;  %v6036_v31 = vld [vmem:[%s10872_s8 + $0x8] sm:$0xff]   ;;  %v11334_v39 = vld [vmem:[#allocation6_spill] sm:$0xff] }
 0x3b7   : > { %11330 = vst [vmem:[#allocation57_spill] sm:$0xff] %v9455_v6  ;;  %v2815_v34 = vadd.f32 -0.28449672, %v2751_v49  ;;  %v3074_v48 = vsub.f32 0.0, %v9399_v46  ;;  %v9463_v10 = vand.u32 2147483647, %v9455_v6  ;;  %v3743_v55 = vpack.c.bf16 %v11332_v15, %v8911_v36 }
 0x3b8   : > { %v3006_v13 = vmul.f32 %v9343_v8, %v2942_v33  ;;  %v2817_v50 = vadd.f32 -0.28449672, %v2753_v21  ;;  %v2628_v4 = vmul.f32 %v9440_v59, %v2564_v17  ;;  %5920 = vmatprep.mubr.msk.bf16.mxu1 %vm3774_vm13, %v3742_v25  ;;  %v11333_v49 = vld [vmem:[#allocation45_spill] sm:$0xff]  ;;  %v3579_v6 = vsel %vm3451_vm9, %v3387_v24, %v3515_v22 }
 0x3b9   : > { %v3744_v35 = vpack.c.bf16 %v11334_v39, %v11333_v49  ;;  %v9475_v26 = vpop.eup %6387  ;;  %v2879_v27 = vmul.f32 %v9405_v40, %v2815_v34  ;;  %v3077_v30 = vsub.f32 0.0, %v9420_v41  ;;  %v2307_v11 = vmul.f32 0.3275911, %v9463_v10  ;;  %5921 = vmatmul.mubr.msk.bf16.vlgmr.msra.gmra.mrb[0].mxu1 %vm3774_vm13, %v3743_v55  ;;  %5018 = vrot.lane.b32.xlu1 %v8911_v36, %s6496_s24 }
 0x3ba   : > { %v2944_v8 = vadd.f32 0.2548296, %v2880_v43  ;;  %v2692_v33 = vadd.f32 1.4214138, %v2628_v4  ;;  %v3140_v21 = vmul.f32 %v3076_v37, %v9365_v7  ;;  %v2498_v17 = vmul.f32 1.0614054, %v9475_v26  ;;  %5953 = vmatpush3.bf16.msra.mxu1 %v6035_v38 }
 0x3bb   : > { %5924 = vmatprep.mubr.msk.bf16.mxu1 %vm3774_vm13, %v3744_v35  ;;  %v11335_v28 = vsub.f32 1.0, %v9401_v63  ;;  %v2943_v24 = vadd.f32 0.2548296, %v2879_v27  ;;  %v3138_v55 = vmul.f32 %v3074_v48, %v9399_v46  ;;  %v2371_v22 = vadd.f32 1.0, %v2307_v11  ;;  %5954 = vmatprep.subr.bf16.mxu1 %v6036_v31 }
 0x3bc   : > { %v3643_v25 = vadd.f32 1.0, %v3579_v6  ;;  %v9493_v43 = vmul.f32 %v6386_v62, %v3006_v13  ;;  %v2881_v4 = vmul.f32 %v9388_v61, %v2817_v50  ;;  %v2562_v7 = vadd.f32 -1.4531521, %v2498_v17  ;;  %v11337_v6 = vld [vmem:[#allocation5_spill] sm:$0xff] }
 0x3bd   : > { %v3581_v34 = vsel %vm3453_vm10, %v11335_v28, %v3517_v16  ;;  %v6390_v37 = vpop.eup %6389  ;;  %v3007_v35 = vmul.f32 %v9405_v40, %v2943_v24  ;;  %v2756_v38 = vmul.f32 %v9440_v59, %v2692_v33  ;;  %v3141_v63 = vmul.f32 %v3077_v30, %v9420_v41  ;;  %5020 = vrot.lane.b32.xlu1 %v11332_v15, %s6496_s24  ;;  %v11336_v41 = vld [vmem:[#allocation33_spill] sm:$0xff] }
 0x3be   : > { %6395 = vrcp.f32 %v2371_v22  ;;  %v9501_v14 = vpop.eup %6391  ;;  %v3008_v48 = vmul.f32 %v9321_v58, %v2944_v8  ;;  %v3262_v11 = vmul.f32 1.442695, %v3140_v21  ;;  %v2626_v46 = vmul.f32 %v9475_v26, %v2562_v7  ;;  %5955 = vmatpush3.bf16.msra.mxu1 %v6036_v31  ;;  %v11353_v36 = vld [vmem:[#allocation57_spill] sm:$0xff] }
 0x3bf   : > { %v3746_v50 = vpack.c.bf16 %v9266_v3, %v9214_v0  ;;  %v6394_v40 = vpop.eup %6393  ;;  %v3327_v27 = vmul.f32 %v6390_v37, %v3007_v35  ;;  %v3258_v16 = vmul.f32 1.442695, %v3138_v55  ;;  %v2501_v30 = vmul.f32 1.0614054, %v9501_v14 }
 0x3c0   : > { %v3745_v62 = vpack.c.bf16 %v11337_v6, %v11336_v41  ;;  %v9510_v13 = vadd.f32 1.0, %v3581_v34  ;;  %v3390_v33 = vsub.f32 1.0, %v9493_v43  ;;  %vm3454_vm11 = vcmp.ge.f32.partialorder %v9245_v5, 0.0  ;;  %v11339_v43 = vld [vmem:[#allocation7_spill] sm:$0xff] }
 0x3c1   : > { %v2945_v58 = vadd.f32 0.2548296, %v2881_v4  ;;  %v2690_v8 = vadd.f32 1.4214138, %v2626_v46  ;;  %v9516_v21 = vmul.f32 %v9434_v20, %v9263_v29  ;;  %vm3455_vm12 = vcmp.ge.f32.partialorder %v9311_v53, 0.0 }
 0x3c2   : > { %v2820_v31 = vadd.f32 -0.28449672, %v2756_v38  ;;  %v2565_v17 = vadd.f32 -1.4531521, %v2501_v30  ;;  %v3264_v28 = vmul.f32 1.442695, %v3141_v63  ;;  %5925 = vmatmul.mubr.msk.bf16.gmra.mrb[4].mxu1 %vm3774_vm13, %v3745_v62  ;;  %v9521_v34 = vmul.f32 %v3643_v25, %v9296_v42 }
 0x3c3   : > { %v3391_v24 = vsub.f32 1.0, %v3327_v27  ;;  %v2754_v55 = vmul.f32 %v9475_v26, %v2690_v8  ;;  %v3075_v22 = vsub.f32 0.0, %v9463_v10  ;;  %5928 = vmatprep.mubr.msk.bf16.mxu1 %vm3774_vm13, %v3746_v50  ;;  %v9527_v29 = vmul.f32 %v9446_v18, %v3008_v48  ;;  %v11340_v50 = vld [vmem:[#allocation16_spill] sm:$0xff] }
 0x3c4   : > { %11338 = vst [vmem:[#allocation45_spill] sm:$0xff] %v9521_v34  ;;  %6397 = vpow2.f32 %v3262_v11  ;;  %v2629_v20 = vmul.f32 %v9501_v14, %v2565_v17  ;;  %v9532_v4 = vadd.f32 %v9279_v44, %v11339_v43  ;;  %v3518_v7 = vsub.f32 0.0, %v3390_v33  ;;  %v11341_v30 = vld [vmem:[#allocation52_spill] sm:$0xff] }
 0x3c5   : > { %v3009_v42 = vmul.f32 %v9388_v61, %v2945_v58  ;;  %v2818_v25 = vadd.f32 -0.28449672, %v2754_v55  ;;  %6399 = vpow2.f32 %v3258_v16  ;;  %v2884_v37 = vmul.f32 %v9440_v59, %v2820_v31 }
 0x3c6   : > { %v2693_v35 = vadd.f32 1.4214138, %v2629_v20  ;;  %6401 = vpow2.f32 %v3264_v28  ;;  %v9537_v38 = vmul.f32 0.70710677, %v9532_v4  ;;  %v3519_v18 = vsub.f32 0.0, %v3391_v24 }
 0x3c7   : > { %v2882_v63 = vmul.f32 %v9475_v26, %v2818_v25  ;;  %v3139_v48 = vmul.f32 %v3075_v22, %v9463_v10  ;;  %v3748_v11 = vpack.c.bf16 %v9374_v56, %v9346_v47  ;;  %v3747_v27 = vpack.c.bf16 %v9260_v60, %v11340_v50 }
 0x3c8   : > { %v9543_v46 = vpop.eup %6395  ;;  %v2757_v61 = vmul.f32 %v9501_v14, %v2693_v35  ;;  %v9549_v16 = vand.u32 2147483647, %v9537_v38  ;;  %v9553_v62 = vadd.f32 %v9279_v44, %v11341_v30  ;;  %v3392_v58 = vsub.f32 1.0, %v9527_v29 }
 0x3c9   : > { %v3329_v10 = vmul.f32 %v6394_v40, %v3009_v42  ;;  %v2946_v8 = vadd.f32 0.2548296, %v2882_v63  ;;  %v2499_v31 = vmul.f32 1.0614054, %v9543_v46  ;;  %v3582_v17 = vsel %vm3454_vm11, %v3390_v33, %v3518_v7 }
 0x3ca   : > { %v2948_v28 = vadd.f32 0.2548296, %v2884_v37  ;;  %v2821_v55 = vadd.f32 -0.28449672, %v2757_v61  ;;  %5929 = vmatmul.mubr.msk.bf16.gmra.mrb[8].mxu1 %vm3774_vm13, %v3747_v27  ;;  %v2312_v22 = vmul.f32 0.3275911, %v9549_v16  ;;  %v3583_v20 = vsel %vm3455_vm12, %v3391_v24, %v3519_v18  ;;  %5014 = vrot.lane.b32.xlu0 %v8966_v2, %s6496_s24 }
 0x3cb   : > { %vm3456_vm14 = vcmp.ge.f32.partialorder %v9221_v57, 0.0  ;;  %v2563_v43 = vadd.f32 -1.4531521, %v2499_v31  ;;  %v3260_v29 = vmul.f32 1.442695, %v3139_v48  ;;  %5932 = vmatprep.mubr.msk.bf16.mxu1 %vm3774_vm13, %v3748_v11  ;;  %v9569_v5 = vadd.f32 %v9279_v44, %v9194_v1  ;;  %v11345_v57 = vld [vmem:[#allocation53_spill] sm:$0xff] }
 0x3cc   : > { %vm3457_vm15 = vcmp.ge.f32.partialorder %v9299_v54, 0.0  ;;  %v3010_v40 = vmul.f32 %v9475_v26, %v2946_v8  ;;  %v2885_v33 = vmul.f32 %v9501_v14, %v2821_v55  ;;  %v2376_v7 = vadd.f32 1.0, %v2312_v22 }
 0x3cd   : > { %v9575_v53 = vmul.f32 0.70710677, %v9553_v62  ;;  %v3520_v24 = vsub.f32 0.0, %v3392_v58  ;;  %v3646_v42 = vadd.f32 1.0, %v3582_v17  ;;  %v3393_v25 = vsub.f32 1.0, %v3329_v10 }
 0x3ce   : > { %v2627_v37 = vmul.f32 %v9543_v46, %v2563_v43  ;;  %v6398_v35 = vpop.eup %6397  ;;  %v3012_v18 = vmul.f32 %v9440_v59, %v2948_v28  ;;  %v2949_v1 = vadd.f32 0.2548296, %v2885_v33  ;;  %v3749_v63 = vpack.c.bf16 %v9356_v45, %v9318_v12 }
 0x3cf   : > { %6403 = vrcp.f32 %v2376_v7  ;;  %v6400_v26 = vpop.eup %6399  ;;  %v3647_v48 = vadd.f32 1.0, %v3583_v20  ;;  %v3750_v61 = vpack.c.bf16 %v9521_v34, %v9516_v21  ;;  %v9584_v27 = vand.u32 2147483647, %v9575_v53 }
 0x3d0   : > { %v2691_v11 = vadd.f32 1.4214138, %v2627_v37  ;;  %v6402_v30 = vpop.eup %6401  ;;  %v3330_v10 = vmul.f32 %v6400_v26, %v3010_v40  ;;  %v3013_v8 = vmul.f32 %v9501_v14, %v2949_v1  ;;  %6405 = vpow2.f32 %v3260_v29 }
 0x3d1   : > { %v9588_v59 = vmul.f32 0.70710677, %v9569_v5  ;;  %v3521_v31 = vsub.f32 0.0, %v3393_v25  ;;  %v9591_v17 = vmul.f32 0.5, %v9341_v51  ;;  %v2310_v55 = vmul.f32 0.3275911, %v9584_v27 }
 0x3d2   : > { %v2755_v28 = vmul.f32 %v9543_v46, %v2691_v11  ;;  %v9597_v22 = vmul.f32 %v9510_v13, %v9288_v19  ;;  %v3332_v20 = vmul.f32 %v6398_v35, %v3012_v18  ;;  %v3333_v43 = vmul.f32 %v6402_v30, %v3013_v8  ;;  %5933 = vmatmul.mubr.msk.bf16.gmra.mrb[12].mxu1 %vm3774_vm13, %v3749_v63 }
 0x3d3   : > { %v9601_v14 = vand.u32 2147483647, %v9588_v59  ;;  %v9604_v29 = vmul.f32 %v3647_v48, %v9438_v23  ;;  %5936 = vmatprep.mubr.msk.bf16.mxu1 %vm3774_vm13, %v3750_v61  ;;  %v2374_v40 = vadd.f32 1.0, %v2310_v55  ;;  %v9609_v33 = vadd.f32 %v9279_v44, %v9198_v32  ;;  %v11344_v44 = vld [vmem:[#allocation12_spill] sm:$0xff] }
 0x3d4   : > { %11342 = vst [vmem:[#allocation6_spill] sm:$0xff] %v9597_v22  ;;  %v2819_v51 = vadd.f32 -0.28449672, %v2755_v28  ;;  %v3584_v19 = vsel %vm3456_vm14, %v3392_v58, %v3520_v24  ;;  %v9614_v13 = vmul.f32 %v3646_v42, %v9362_v9  ;;  %v3394_v7 = vsub.f32 1.0, %v3330_v10  ;;  %v11346_v48 = vld [vmem:[#allocation56_spill] sm:$0xff] }
 0x3d5   : > { %11343 = vst [vmem:[#allocation5_spill] sm:$0xff] %v9604_v29  ;;  %v2313_v37 = vmul.f32 0.3275911, %v9601_v14  ;;  %v3585_v23 = vsel %vm3457_vm15, %v3393_v25, %v3521_v31  ;;  %vm3460_vm1 = vcmp.ge.f32.partialorder %v9353_v52, 0.0  ;;  %v3397_v35 = vsub.f32 1.0, %v3333_v43  ;;  %v11347_v55 = vld [vmem:[#allocation36_spill] sm:$0xff] }
 0x3d6   : > { %v2883_v18 = vmul.f32 %v9543_v46, %v2819_v51  ;;  %6407 = vrcp.f32 %v2374_v40  ;;  %v3396_v32 = vsub.f32 1.0, %v3332_v20  ;;  %v9622_v1 = vmul.f32 0.5, %v11344_v44  ;;  %v11348_v43 = vld [vmem:[#allocation54_spill] sm:$0xff]  ;;  %v11350_v44 = vld [vmem:[#allocation55_spill] sm:$0xff] }
 0x3d7   : > { %vm3458_vm2 = vcmp.ge.f32.partialorder %v11345_v57, 0.0  ;;  %v2377_v9 = vadd.f32 1.0, %v2313_v37  ;;  %v3648_v58 = vadd.f32 1.0, %v3584_v19  ;;  %v3752_v42 = vpack.c.bf16 %v9604_v29, %v9614_v13  ;;  %v11397_v29 = vld [vmem:[#allocation22_spill] sm:$0xff] }
 0x3d8   : > { %v2947_v24 = vadd.f32 0.2548296, %v2883_v18  ;;  %v9628_v54 = vmul.f32 0.70710677, %v9609_v33  ;;  %v3649_v63 = vadd.f32 1.0, %v3585_v23  ;;  %v3522_v26 = vsub.f32 0.0, %v3394_v7 }
 0x3d9   : > { %v9630_v25 = vpop.eup %6403  ;;  %v3751_v11 = vpack.c.bf16 %v9597_v22, %v11346_v48  ;;  %6409 = vrcp.f32 %v2377_v9  ;;  %v3525_v61 = vsub.f32 0.0, %v3397_v35  ;;  %v3524_v28 = vsub.f32 0.0, %v3396_v32  ;;  %v11349_v23 = vld [vmem:[#allocation50_spill] sm:$0xff] }
 0x3da   : > { %v3011_v30 = vmul.f32 %v9543_v46, %v2947_v24  ;;  %v2504_v10 = vmul.f32 1.0614054, %v9630_v25  ;;  %v9637_v8 = vand.u32 2147483647, %v9628_v54  ;;  %v6406_v31 = vpop.eup %6405  ;;  %v2117_v20 = vmul.f32 0.5, %v11347_v55 }
 0x3db   : > { %vm3461_vm3 = vcmp.ge.f32.partialorder %v11348_v43, 0.0  ;;  %5937 = vmatmul.mubr.msk.bf16.gmra.mrb[16].mxu1 %vm3774_vm13, %v3751_v11  ;;  %v3080_v51 = vsub.f32 0.0, %v9549_v16  ;;  %v3078_v46 = vsub.f32 0.0, %v9584_v27  ;;  %v9647_v18 = vmul.f32 %v3648_v58, %v11349_v23  ;;  %v11352_v11 = vld [vmem:[#allocation35_spill] sm:$0xff]  ;;  %v9659_v58 = vpop.xlane.xlu1 %4286 }
 0x3dc   : > { %v3331_v40 = vmul.f32 %v6406_v31, %v3011_v30  ;;  %5940 = vmatprep.mubr.msk.bf16.mxu1 %vm3774_vm13, %v3752_v42  ;;  %v2568_v19 = vadd.f32 -1.4531521, %v2504_v10  ;;  %v2311_v37 = vmul.f32 0.3275911, %v9637_v8  ;;  %v9650_v9 = vmul.f32 %v3649_v63, %v11350_v44 }
 0x3dd   : > { %v3586_v24 = vsel %vm3458_vm2, %v3394_v7, %v3522_v26  ;;  %v2115_v55 = vmul.f32 0.5, %v11352_v11  ;;  %v3589_v43 = vsel %vm3461_vm3, %v3397_v35, %v3525_v61  ;;  %v3588_v31 = vsel %vm3460_vm1, %v3396_v32, %v3524_v28 }
 0x3de   : > { %11351 = vst [vmem:[#allocation7_spill] sm:$0xff] %v9650_v9  ;;  %v3395_v30 = vsub.f32 1.0, %v3331_v40  ;;  %v2632_v42 = vmul.f32 %v9630_v25, %v2568_v19  ;;  %v2375_v10 = vadd.f32 1.0, %v2311_v37  ;;  %vm3459_vm4 = vcmp.ge.f32.partialorder %v11353_v36, 0.0 }
 0x3df   : > { %v3144_v63 = vmul.f32 %v3080_v51, %v9549_v16  ;;  %v3081_v23 = vsub.f32 0.0, %v9601_v14  ;;  %v3142_v35 = vmul.f32 %v3078_v46, %v9584_v27  ;;  %v3650_v61 = vadd.f32 1.0, %v3586_v24 }
 0x3e0   : > { %v9663_v57 = vpop.eup %6407  ;;  %v3523_v7 = vsub.f32 0.0, %v3395_v30  ;;  %v2696_v26 = vadd.f32 1.4214138, %v2632_v42  ;;  %6411 = vrcp.f32 %v2375_v10  ;;  %v3653_v40 = vadd.f32 1.0, %v3589_v43 }
 0x3e1   : > { %v3753_v52 = vpack.c.bf16 %v9650_v9, %v9647_v18  ;;  %v2502_v36 = vmul.f32 1.0614054, %v9663_v57  ;;  %v3652_v32 = vadd.f32 1.0, %v3588_v31  ;;  %v4381_v16 = vsel %vm3774_vm13, %v11332_v15, 0.0  ;;  %v9681_v31 = vpop.xlane.xlu0 %4283 }
 0x3e2   : > { %v3587_v28 = vsel %vm3459_vm4, %v3395_v30, %v3523_v7  ;;  %v2760_v51 = vmul.f32 %v9630_v25, %v2696_v26  ;;  %4382 = vadd.xlane.f32.xlu1 %v4381_v16  ;;  %v3270_v27 = vmul.f32 1.442695, %v3144_v63  ;;  %v3145_v44 = vmul.f32 %v3081_v23, %v9601_v14  ;;  %v9684_v26 = vpop.xlane.xlu1 %4280 }
 0x3e3   : > { %v6410_v19 = vpop.eup %6409  ;;  %v3651_v37 = vadd.f32 1.0, %v3587_v28  ;;  %5941 = vmatmul.mubr.msk.bf16.gmra.mrb[20].mxu1 %vm3774_vm13, %v3753_v52  ;;  %v2566_v46 = vadd.f32 -1.4531521, %v2502_v36  ;;  %v3266_v11 = vmul.f32 1.442695, %v3142_v35  ;;  %v9675_v42 = vmul.f32 %v3650_v61, %v9622_v1 }
 0x3e4   : > { %v2824_v24 = vadd.f32 -0.28449672, %v2760_v51  ;;  %v2505_v43 = vmul.f32 1.0614054, %v6410_v19  ;;  %v9677_v30 = vmul.f32 %v3653_v40, %v2117_v20  ;;  %v3079_v52 = vsub.f32 0.0, %v9637_v8 }
 0x3e5   : > { %11354 = vst [vmem:[#allocation16_spill] sm:$0xff] %v9675_v42  ;;  %v9679_v10 = vmul.f32 %v3651_v37, %v2115_v55  ;;  %v2630_v7 = vmul.f32 %v9663_v57, %v2566_v46  ;;  %v9688_v14 = vmul.f32 %v3652_v32, %v9591_v17  ;;  %v3272_v20 = vmul.f32 1.442695, %v3145_v44  ;;  %v9701_v16 = vpop.xlane.xlu0 %4277 }
 0x3e6   : > { %11355 = vst [vmem:[#allocation52_spill] sm:$0xff] %v9677_v30  ;;  %v2569_v63 = vadd.f32 -1.4531521, %v2505_v43  ;;  %v2888_v55 = vmul.f32 %v9630_v25, %v2824_v24  ;;  %6413 = vpow2.f32 %v3266_v11  ;;  %v4372_v17 = vsel %vm3774_vm13, %v8966_v2, 0.0  ;;  %v9703_v46 = vpop.xlane.xlu1 %4298 }
 0x3e7   : > { %11356 = vst [vmem:[#allocation12_spill] sm:$0xff] %v9679_v10  ;;  %11357 = vst [vmem:[#allocation53_spill] sm:$0xff] %v9688_v14  ;;  %v3754_v1 = vpack.c.bf16 %v9679_v10, %v9675_v42  ;;  %v2694_v23 = vadd.f32 1.4214138, %v2630_v7  ;;  %v3755_v61 = vpack.c.bf16 %v9677_v30, %v9688_v14  ;;  %6415 = vpow2.f32 %v3270_v27  ;;  %v11382_v10 = vld [vmem:[#allocation41_spill] sm:$0xff] }
 0x3e8   : > { %v2633_v35 = vmul.f32 %v6410_v19, %v2569_v63  ;;  %v3143_v28 = vmul.f32 %v3079_v52, %v9637_v8  ;;  %6417 = vpow2.f32 %v3272_v20  ;;  %v2952_v27 = vadd.f32 0.2548296, %v2888_v55  ;;  %v11396_v14 = vld [vmem:[#allocation21_spill] sm:$0xff] }
 0x3e9   : > { %5944 = vmatprep.mubr.msk.bf16.mxu1 %vm3774_vm13, %v3754_v1  ;;  %v2758_v40 = vmul.f32 %v9663_v57, %v2694_v23  ;;  %4373 = vadd.xlane.f32.xlu0 %v4372_v17  ;;  %vm3465_vm5 = vcmp.ge.f32.partialorder %v9588_v59, 0.0  ;;  %vm3462_vm6 = vcmp.ge.f32.partialorder %v9575_v53, 0.0  ;;  %vm3464_vm7 = vcmp.ge.f32.partialorder %v9537_v38, 0.0 }
 0x3ea   : > { %v6412_v36 = vpop.eup %6411  ;;  %v2697_v32 = vadd.f32 1.4214138, %v2633_v35  ;;  %v3268_v7 = vmul.f32 1.442695, %v3143_v28  ;;  %v3016_v8 = vmul.f32 %v9630_v25, %v2952_v27  ;;  %v9710_v20 = vpop.xlane.xlu1 %4292  ;;  %v11358_v28 = vld [vmem:[#allocation3_spill] sm:$0xff]  ;;  %vm3463_vm8 = vcmp.ge.f32.partialorder %v9628_v54, 0.0 }
 0x3eb   : > { %5945 = vmatmul.mubr.msk.bf16.gmra.mrb[24].mxu1 %vm3774_vm13, %v3755_v61  ;;  %v2822_v51 = vadd.f32 -0.28449672, %v2758_v40  ;;  %v2503_v37 = vmul.f32 1.0614054, %v6412_v36  ;;  %v9708_v61 = vpop.xlane.xlu0 %4295  ;;  %v2118_v38 = vmul.f32 0.5, %v9553_v62  ;;  %vm5270_vm9 = vcmask 519168  }
 0x3ec   : > { %v2761_v44 = vmul.f32 %v6410_v19, %v2697_v32  ;;  %6419 = vpow2.f32 %v3268_v7 }
 0x3ed   : > { %v2886_v24 = vmul.f32 %v9663_v57, %v2822_v51  ;;  %v2567_v11 = vadd.f32 -1.4531521, %v2503_v37 }
 0x3ee   : > { %v2825_v43 = vadd.f32 -0.28449672, %v2761_v44 }
 0x3ef   : > { %v2950_v63 = vadd.f32 0.2548296, %v2886_v24  ;;  %v2631_v1 = vmul.f32 %v6412_v36, %v2567_v11 }
 0x3f0   : > { %v2889_v52 = vmul.f32 %v6410_v19, %v2825_v43  ;;  %v6414_v40 = vpop.eup %6413  ;;  %v9714_v43 = vpop.xlane.xlu0 %4289 }
 0x3f1   : > { %v3014_v23 = vmul.f32 %v9663_v57, %v2950_v63  ;;  %v2695_v35 = vadd.f32 1.4214138, %v2631_v1  ;;  %v6416_v17 = vpop.eup %6415  ;;  %v9716_v63 = vpop.xlane.xlu1 %4310 }
 0x3f2   : > { %v2953_v55 = vadd.f32 0.2548296, %v2889_v52  ;;  %v3336_v37 = vmul.f32 %v6416_v17, %v3016_v8  ;;  %v6418_v25 = vpop.eup %6417 }
 0x3f3   : > { %v3334_v32 = vmul.f32 %v6414_v40, %v3014_v23  ;;  %v2759_v51 = vmul.f32 %v6412_v36, %v2695_v35  ;;  %5016 = vrot.lane.b32.xlu1 %v11358_v28, %s6496_s24 }
 0x3f4   : > { %v3017_v44 = vmul.f32 %v6410_v19, %v2953_v55  ;;  %v3400_v1 = vsub.f32 1.0, %v3336_v37  ;;  %v9719_v8 = vpop.xlane.xlu0 %4307 }
 0x3f5   : > { %v2823_v27 = vadd.f32 -0.28449672, %v2759_v51  ;;  %v3398_v57 = vsub.f32 1.0, %v3334_v32  ;;  %v9721_v55 = vpop.xlane.xlu1 %4304 }
 0x3f6   : > { %v3337_v24 = vmul.f32 %v6418_v25, %v3017_v44  ;;  %v6420_v40 = vpop.eup %6419  ;;  %v3528_v2 = vsub.f32 0.0, %v3400_v1 }
 0x3f7   : > { %v2887_v11 = vmul.f32 %v6412_v36, %v2823_v27  ;;  %v3526_v23 = vsub.f32 0.0, %v3398_v57  ;;  %v2121_v27 = vmul.f32 0.5, %v9569_v5 }
 0x3f8   : > { %v3401_v52 = vsub.f32 1.0, %v3337_v24  ;;  %v3592_v37 = vsel %vm3464_vm7, %v3400_v1, %v3528_v2  ;;  %v2119_v2 = vmul.f32 0.5, %v9609_v33  ;;  %v11364_v33 = vld [vmem:[#allocation31_spill] sm:$0xff] }
 0x3f9   : > { %v2951_v7 = vadd.f32 0.2548296, %v2887_v11  ;;  %v3590_v32 = vsel %vm3462_vm6, %v3398_v57, %v3526_v23  ;;  %v3656_v59 = vadd.f32 1.0, %v3592_v37  ;;  %v9729_v11 = vpop.xlane.xlu0 %4301  ;;  %v2120_v57 = vmul.f32 0.5, %v9532_v4  ;;  %v11363_v4 = vld [vmem:[#allocation29_spill] sm:$0xff] }
 0x3fa   : > { %v3529_v15 = vsub.f32 0.0, %v3401_v52  ;;  %v3654_v25 = vadd.f32 1.0, %v3590_v32  ;;  %v11366_v32 = vld [vmem:[#allocation28_spill] sm:$0xff] }
 0x3fb   : > { %v3015_v35 = vmul.f32 %v6412_v36, %v2951_v7  ;;  %v9742_v7 = vmul.f32 %v3656_v59, %v2120_v57  ;;  %v11374_v57 = vld [vmem:[#allocation9_spill] sm:$0xff] }
 0x3fc   : > { %v3593_v17 = vsel %vm3465_vm5, %v3401_v52, %v3529_v15  ;;  %v9731_v15 = vpop.xlane.xlu1 %4322  ;;  %v9738_v52 = vmul.f32 %v3654_v25, %v2118_v38  ;;  %v11372_v38 = vld [vmem:[#allocation18_spill] sm:$0xff] }
 0x3fd   : > { %v3335_v19 = vmul.f32 %v6420_v40, %v3015_v35  ;;  %v3657_v36 = vadd.f32 1.0, %v3593_v17  ;;  %11362 = vst [vmem:[#allocation50_spill] sm:$0xff] %v9742_v7  ;;  %v9746_v23 = vpop.xlane.xlu0 %4319  ;;  %v3722_v40 = vpack.c.bf16 %v11364_v33, %v11363_v4 }
 0x3fe   : > { %11360 = vst [vmem:[#allocation36_spill] sm:$0xff] %v9738_v52 }
 0x3ff   : > { %v3399_v51 = vsub.f32 1.0, %v3335_v19  ;;  %5026 = vrot.lane.b32.xlu0 %v11336_v41, %s6496_s24  ;;  %v9736_v1 = vmul.f32 %v3657_v36, %v2121_v27  ;;  %v11368_v36 = vld [vmem:[#allocation11_spill] sm:$0xff] }
 0x400   : > { %v9748_v35 = vpop.xlane.xlu1 %4316 }
 0x401   : > { %v3527_v44 = vsub.f32 0.0, %v3399_v51  ;;  %11359 = vst [vmem:[#allocation56_spill] sm:$0xff] %v9736_v1  ;;  %v3757_v62 = vpack.c.bf16 %v9736_v1, %v9742_v7  ;;  %v9757_v19 = vpop.xlane.xlu0 %4313  ;;  %v11381_v1 = vld [vmem:[#allocation38_spill] sm:$0xff]  ;;  %v11383_v7 = vld [vmem:[#allocation44_spill] sm:$0xff] }
 0x403   : > { %v3591_v24 = vsel %vm3463_vm8, %v3399_v51, %v3527_v44  ;;  %v11367_v51 = vld [vmem:[#allocation30_spill] sm:$0xff] }
 0x404   : > { %v3655_v53 = vadd.f32 1.0, %v3591_v24  ;;  %v9759_v17 = vpop.xlane.xlu1 %4334  ;;  %v3723_v37 = vpack.c.bf16 %v11367_v51, %v11366_v32  ;;  %v11369_v44 = vld [vmem:[#allocation2_spill] sm:$0xff]  ;;  %v4375_v24 = vsel %vm3774_vm13, %v11358_v28, 0.0 }
 0x405   : > { %11365 = vst [vmem:[#allocation55_spill] sm:$0xff] %v9759_v17  ;;  %v3724_v25 = vpack.c.bf16 %v11369_v44, %v11368_v36  ;;  %v9767_v59 = vpop.xlane.xlu0 %4331  ;;  %v11380_v28 = vld [vmem:[#allocation34_spill] sm:$0xff] }
 0x406   : > { %v9740_v54 = vmul.f32 %v3655_v53, %v2119_v2  ;;  %11370 = vst [vmem:[#allocation35_spill] sm:$0xff] %v9767_v59  ;;  %v11373_v2 = vld [vmem:[#allocation19_spill] sm:$0xff]  ;;  %v3732_v59 = vpack.c.bf16 %v11397_v29, %v11396_v14  ;;  %v11410_v29 = vld [vmem:[#allocation37_spill] sm:$0xff] }
 0x407   : > { %v3725_v53 = vpack.c.bf16 %v11373_v2, %v11372_v38 }
 0x408   : > { %11361 = vst [vmem:[#allocation54_spill] sm:$0xff] %v9740_v54  ;;  %v3756_v5 = vpack.c.bf16 %v9740_v54, %v9738_v52  ;;  %v9769_v27 = vpop.xlane.xlu1 %4328  ;;  %v3727_v52 = vpack.c.bf16 %v11381_v1, %v11380_v28 }
 0x409   : > { %11371 = vst [vmem:[#allocation57_spill] sm:$0xff] %v9769_v27  ;;  %v3728_v27 = vpack.c.bf16 %v11383_v7, %v11382_v10 }
 0x40a   : > { %5948 = vmatprep.mubr.msk.bf16.mxu1 %vm3774_vm13, %v3756_v5  ;;  %v11375_v5 = vld [vmem:[#allocation39_spill] sm:$0xff] }
 0x40b   : > { %5949 = vmatmul.mubr.msk.bf16.gmra.mrb[28].mxu1 %vm3774_vm13, %v3757_v62  ;;  %v3726_v62 = vpack.c.bf16 %v11375_v5, %v11374_v57 }
 0x40c   : > { %5956 = vmatprep.mubr.msk.bf16.mxu1 %vm3774_vm13, %v3722_v40  ;;  %v9777_v40 = vpop.xlane.xlu0 %4325  ;;  %v9779_v54 = vpop.xlane.xlu1 %4346 }
 0x40d   : > { %11376 = vst [vmem:[#allocation29_spill] sm:$0xff] %v9777_v40  ;;  %11377 = vst [vmem:[#allocation31_spill] sm:$0xff] %v9779_v54  ;;  %v11388_v54 = vld [vmem:[#allocation17_spill] sm:$0xff] }
 0x413   : > { %5957 = vmatmul.mubr.msk.bf16.vlgmr.msra.gmra.mrb[0].mxu1 %vm3774_vm13, %v3723_v37  ;;  %v4390_v37 = vsel %vm3774_vm13, %v11336_v41, 0.0  ;;  %v11387_v41 = vld [vmem:[#allocation42_spill] sm:$0xff] }
 0x414   : > { %5960 = vmatprep.mubr.msk.bf16.mxu1 %vm3774_vm13, %v3724_v25  ;;  %v9785_v25 = vpop.xlane.xlu0 %4343 }
 0x415   : > { %11378 = vst [vmem:[#allocation11_spill] sm:$0xff] %v9785_v25  ;;  %v11389_v25 = vld [vmem:[#allocation8_spill] sm:$0xff] }
 0x416   : > { %v3730_v42 = vpack.c.bf16 %v11389_v25, %v11388_v54  ;;  %v11403_v25 = vld [vmem:[#allocation13_spill] sm:$0xff] }
 0x417   : > { %4376 = vadd.xlane.f32.xlu1 %v4375_v24  ;;  %v9787_v24 = vpop.xlane.xlu1 %4340 }
 0x418   : > { %11379 = vst [vmem:[#allocation2_spill] sm:$0xff] %v9787_v24 }
 0x41b   : > { %5961 = vmatmul.mubr.msk.bf16.gmra.mrb[4].mxu1 %vm3774_vm13, %v3725_v53  ;;  %v9795_v53 = vpop.xlane.xlu1 %4358 }
 0x41c   : > { %5964 = vmatprep.mubr.msk.bf16.mxu1 %vm3774_vm13, %v3726_v62  ;;  %11384 = vst [vmem:[#allocation18_spill] sm:$0xff] %v9795_v53  ;;  %v9797_v62 = vpop.xlane.xlu0 %4337  ;;  %v11394_v53 = vld [vmem:[#allocation4_spill] sm:$0xff] }
 0x41d   : > { %11385 = vst [vmem:[#allocation19_spill] sm:$0xff] %v9797_v62  ;;  %v11395_v62 = vld [vmem:[#allocation20_spill] sm:$0xff] }
 0x41e   : > { %4391 = vadd.xlane.f32.xlu0 %v4390_v37  ;;  %v11386_v37 = vld [vmem:[#allocation40_spill] sm:$0xff]  ;;  %v3731_v17 = vpack.c.bf16 %v11395_v62, %v11394_v53 }
 0x41f   : > { %v3729_v24 = vpack.c.bf16 %v11387_v41, %v11386_v37  ;;  %v9807_v40 = vpop.xlane.xlu1 %4352 }
 0x420   : > { %v9805_v30 = vpop.xlane.xlu0 %4355  ;;  %11391 = vst [vmem:[#allocation39_spill] sm:$0xff] %v9807_v40  ;;  %v11400_v40 = vld [vmem:[#allocation25_spill] sm:$0xff] }
 0x421   : > { %11390 = vst [vmem:[#allocation9_spill] sm:$0xff] %v9805_v30  ;;  %v11402_v30 = vld [vmem:[#allocation49_spill] sm:$0xff] }
 0x422   : > { %v3734_v54 = vpack.c.bf16 %v11403_v25, %v11402_v30  ;;  %v11408_v30 = vld [vmem:[#allocation51_spill] sm:$0xff] }
 0x423   : > { %5965 = vmatmul.mubr.msk.bf16.gmra.mrb[8].mxu1 %vm3774_vm13, %v3727_v52 }
 0x424   : > { %5968 = vmatprep.mubr.msk.bf16.mxu1 %vm3774_vm13, %v3728_v27  ;;  %v9811_v52 = vpop.xlane.xlu0 %4349 }
 0x425   : > { %11392 = vst [vmem:[#allocation34_spill] sm:$0xff] %v9811_v52 }
 0x426   : > { %v9813_v27 = vpop.xlane.xlu1 %4370 }
 0x427   : > { %11393 = vst [vmem:[#allocation38_spill] sm:$0xff] %v9813_v27  ;;  %v11401_v27 = vld [vmem:[#allocation46_spill] sm:$0xff] }
 0x428   : > { %5028 = vrot.lane.b32.xlu1 %v11337_v6, %s6496_s24  ;;  %v3733_v52 = vpack.c.bf16 %v11401_v27, %v11400_v40 }
 0x42b   : > { %5969 = vmatmul.mubr.msk.bf16.gmra.mrb[12].mxu1 %vm3774_vm13, %v3729_v24  ;;  %v9823_v24 = vpop.xlane.xlu0 %4367 }
 0x42c   : > { %5972 = vmatprep.mubr.msk.bf16.mxu1 %vm3774_vm13, %v3730_v42  ;;  %11398 = vst [vmem:[#allocation41_spill] sm:$0xff] %v9823_v24 }
 0x433   : > { %5973 = vmatmul.mubr.msk.bf16.gmra.mrb[16].mxu1 %vm3774_vm13, %v3731_v17 }
 0x434   : > { %5976 = vmatprep.mubr.msk.bf16.mxu1 %vm3774_vm13, %v3732_v59  ;;  %5022 = vrot.lane.b32.xlu0 %v11333_v49, %s6496_s24  ;;  %v9843_v59 = vpop.xlane.xlu0 %4361 }
 0x435   : > { %v9825_v42 = vpop.xlane.xlu1 %4364  ;;  %11405 = vst [vmem:[#allocation4_spill] sm:$0xff] %v9843_v59 }
 0x436   : > { %11399 = vst [vmem:[#allocation40_spill] sm:$0xff] %v9825_v42 }
 0x439   : > { %v5019_v62 = vpop.permute.xlu1 %5018 }
 0x43a   : > { %v9840_v17 = vsel %vm3774_vm13, %v11366_v32, %v5019_v62  ;;  %v11407_v62 = vld [vmem:[#allocation48_spill] sm:$0xff] }
 0x43b   : > { %5977 = vmatmul.mubr.msk.bf16.gmra.mrb[20].mxu1 %vm3774_vm13, %v3733_v52  ;;  %11404 = vst [vmem:[#allocation42_spill] sm:$0xff] %v9840_v17  ;;  %v5742_v42 = vpack.c.bf16 %v9840_v17, %v9840_v17  ;;  %v3735_v32 = vpack.c.bf16 %v11408_v30, %v11407_v62 }
 0x43c   : > { %5980 = vmatprep.mubr.msk.bf16.mxu1 %vm3774_vm13, %v3734_v54  ;;  %v11409_v54 = vld [vmem:[#allocation15_spill] sm:$0xff] }
 0x43d   : > { %5273 = vst.msk [vmem:[%s9836_s28 + $0x8] sm:$0xf] %vm5270_vm9, %v5742_v42  ;;  %v5021_v52 = vpop.permute.xlu1 %5020  ;;  %v3736_v59 = vpack.c.bf16 %v11410_v29, %v11409_v54  ;;  %v11413_v54 = vld [vmem:[#allocation23_spill] sm:$0xff] }
 0x43e   : > { %v9851_v24 = vsel %vm3774_vm13, %v11367_v51, %v5021_v52 }
 0x43f   : > { %11406 = vst [vmem:[#allocation25_spill] sm:$0xff] %v9851_v24  ;;  %v5743_v25 = vpack.c.bf16 %v9851_v24, %v9851_v24 }
 0x441   : > { %v4380_v14 = vpop.xlane.xlu0 %4379  ;;  %5274 = vst.msk [vmem:[%s9836_s28 + $0xc] sm:$0xf] %vm5270_vm9, %v5743_v25  ;;  %v11412_v25 = vld [vmem:[#allocation14_spill] sm:$0xff] }
 0x442   : > { %v4470_v42 = vadd.f32 %v4380_v14, %v9681_v31  ;;  %v4393_v31 = vsel %vm3774_vm13, %v11337_v6, 0.0  ;;  %v4384_v14 = vsel %vm3774_vm13, %v11333_v49, 0.0 }
 0x443   : > { %5981 = vmatmul.mubr.msk.bf16.gmra.mrb[24].mxu1 %vm3774_vm13, %v3735_v32  ;;  %v3737_v32 = vpack.c.bf16 %v11413_v54, %v11412_v25 }
 0x444   : > { %5984 = vmatprep.mubr.msk.bf16.mxu1 %vm3774_vm13, %v3736_v59  ;;  %v9864_v52 = vmul.f32 0.015625, %v4470_v42 }
 0x445   : > { %v5015_v51 = vpop.permute.xlu0 %5014 }
 0x446   : > { %v9870_v30 = vsel %vm3774_vm13, %v11363_v4, %v5015_v51 }
 0x447   : > { %11411 = vst [vmem:[#allocation48_spill] sm:$0xff] %v9870_v30  ;;  %v5740_v29 = vpack.c.bf16 %v9870_v30, %v9870_v30 }
 0x449   : > { %5271 = vst.msk [vmem:[%s9836_s28] sm:$0xf] %vm5270_vm9, %v5740_v29 }
 0x44b   : > { %5985 = vmatmul.mubr.msk.bf16.gmra.mrb[28].mxu1 %vm3774_vm13, %v3737_v32 }
 0x44c   : > { %4394 = vadd.xlane.f32.xlu1 %v4393_v31 }
 0x453   : > { %4385 = vadd.xlane.f32.xlu0 %v4384_v14 }
 0x45d   : > { %5024 = vrot.lane.b32.xlu1 %v11334_v39, %s6496_s24 }
 0x469   : > { %5034 = vrot.lane.b32.xlu0 %v11340_v50, %s6496_s24 }
 0x46f   : > { %v4383_v51 = vpop.xlane.xlu1 %4382 }
 0x470   : > { %v4471_v29 = vadd.f32 %v4383_v51, %v9659_v58 }
 0x472   : > { %v9888_v59 = vmul.f32 0.015625, %v4471_v29 }
 0x473   : > { %v5017_v42 = vpop.permute.xlu1 %5016 }
 0x474   : > { %v9894_v31 = vsel %vm3774_vm13, %v11364_v33, %v5017_v42 }
 0x475   : > { %11414 = vst [vmem:[#allocation58_spill] sm:$0xff] %v9894_v31  ;;  %v5741_v14 = vpack.c.bf16 %v9894_v31, %v9894_v31 }
 0x476   : > { %v4374_v27 = vpop.xlane.xlu0 %4373 }
 0x477   : > { %5272 = vst.msk [vmem:[%s9836_s28 + $0x4] sm:$0xf] %vm5270_vm9, %v5741_v14  ;;  %v4468_v17 = vadd.f32 %v4374_v27, %v9701_v16  ;;  %v4387_v14 = vsel %vm3774_vm13, %v11334_v39, 0.0  ;;  %v4402_v16 = vsel %vm3774_vm13, %v11340_v50, 0.0 }
 0x479   : > { %v9901_v54 = vmul.f32 0.015625, %v4468_v17 }
 0x47a   : > { %v5027_v58 = vpop.permute.xlu0 %5026 }
 0x47b   : > { %v9907_v29 = vsel %vm3774_vm13, %v11372_v38, %v5027_v58 }
 0x47c   : > { %11415 = vst [vmem:[#allocation59_spill] sm:$0xff] %v9907_v29  ;;  %v5746_v42 = vpack.c.bf16 %v9907_v29, %v9907_v29 }
 0x47e   : > { %5277 = vst.msk [vmem:[%s9836_s28 + $0x18] sm:$0xf] %vm5270_vm9, %v5746_v42 }
 0x481   : > { %4388 = vadd.xlane.f32.xlu1 %v4387_v14 }
 0x488   : > { %4403 = vadd.xlane.f32.xlu0 %v4402_v16 }
 0x492   : > { %5036 = vrot.lane.b32.xlu1 %v9260_v60, %s6496_s24 }
 0x49e   : > { %5030 = vrot.lane.b32.xlu0 %v9214_v0, %s6496_s24 }
 0x4a4   : > { %v4377_v27 = vpop.xlane.xlu1 %4376 }
 0x4a5   : > { %v4469_v17 = vadd.f32 %v4377_v27, %v9684_v26 }
 0x4a7   : > { %v9922_v58 = vmul.f32 0.015625, %v4469_v17 }
 0x4a8   : > { %v5029_v42 = vpop.permute.xlu1 %5028 }
 0x4a9   : > { %v9928_v32 = vsel %vm3774_vm13, %v11373_v2, %v5029_v42 }
 0x4aa   : > { %11416 = vst [vmem:[#allocation60_spill] sm:$0xff] %v9928_v32  ;;  %v5747_v16 = vpack.c.bf16 %v9928_v32, %v9928_v32 }
 0x4ab   : > { %v4392_v51 = vpop.xlane.xlu0 %4391 }
 0x4ac   : > { %5278 = vst.msk [vmem:[%s9836_s28 + $0x1c] sm:$0xf] %vm5270_vm9, %v5747_v16  ;;  %v4474_v24 = vadd.f32 %v4392_v51, %v9708_v61  ;;  %v4405_v16 = vsel %vm3774_vm13, %v9260_v60, 0.0  ;;  %v4396_v61 = vsel %vm3774_vm13, %v9214_v0, 0.0 }
 0x4ae   : > { %v9935_v30 = vmul.f32 0.015625, %v4474_v24 }
 0x4af   : > { %v5023_v26 = vpop.permute.xlu0 %5022 }
 0x4b0   : > { %v9941_v17 = vsel %vm3774_vm13, %v11368_v36, %v5023_v26 }
 0x4b1   : > { %11417 = vst [vmem:[#allocation61_spill] sm:$0xff] %v9941_v17  ;;  %v5744_v42 = vpack.c.bf16 %v9941_v17, %v9941_v17 }
 0x4b3   : > { %5275 = vst.msk [vmem:[%s9836_s28 + $0x10] sm:$0xf] %vm5270_vm9, %v5744_v42 }
 0x4b6   : > { %4406 = vadd.xlane.f32.xlu1 %v4405_v16 }
 0x4bd   : > { %4397 = vadd.xlane.f32.xlu0 %v4396_v61 }
 0x4c7   : > { %5032 = vrot.lane.b32.xlu1 %v9266_v3, %s6496_s24 }
 0x4d3   : > { %5042 = vrot.lane.b32.xlu0 %v9318_v12, %s6496_s24 }
 0x4d9   : > { %v4395_v24 = vpop.xlane.xlu1 %4394 }
 0x4da   : > { %v4475_v51 = vadd.f32 %v4395_v24, %v9703_v46  ;;  %v9972_v46 = vld [vmem:[%s10874_s10] ss:$0 sm:$0xff] }
 0x4dc   : > { %v9956_v26 = vmul.f32 0.015625, %v4475_v51 }
 0x4dd   : > { %v5025_v42 = vpop.permute.xlu1 %5024 }
 0x4de   : > { %v9962_v14 = vsel %vm3774_vm13, %v11369_v44, %v5025_v42 }
 0x4df   : > { %11418 = vst [vmem:[#allocation62_spill] sm:$0xff] %v9962_v14  ;;  %v5745_v61 = vpack.c.bf16 %v9962_v14, %v9962_v14 }
 0x4e0   : > { %v4386_v27 = vpop.xlane.xlu0 %4385 }
 0x4e1   : > { %5276 = vst.msk [vmem:[%s9836_s28 + $0x14] sm:$0xf] %vm5270_vm9, %v5745_v61  ;;  %v4472_v31 = vadd.f32 %v4386_v27, %v9714_v43 }
 0x4e3   : > { %v9974_v24 = vmul.f32 0.015625, %v4472_v31 }
 0x4e4   : > { %v5035_v51 = vpop.permute.xlu0 %5034 }
 0x4e5   : > { %v9986_v27 = vsel %vm3774_vm13, %v11380_v28, %v5035_v51 }
 0x4e6   : > { %v5958_v42 = vpop.f32.mrb[0].mxu1  ;;  %11419 = vst [vmem:[#allocation63_spill] sm:$0xff] %v9986_v27  ;;  %v5750_v16 = vpack.c.bf16 %v9986_v27, %v9986_v27  ;;  %v11438_v27 = vld [vmem:[#allocation8_spill] sm:$0xff] }
 0x4e7   : > { %v4214_v31 = vadd.f32 %v5958_v42, %v9972_v46  ;;  %v4078_v61 = vpop.f32.mrb[1].mxu1  ;;  %v4399_v42 = vsel %vm3774_vm13, %v9266_v3, 0.0 }
 0x4e8   : > { %v4212_v32 = vadd.f32 %v9972_v46, %v4078_v61  ;;  %v5959_v29 = vpop.f32.mrb[2].mxu1  ;;  %5281 = vst.msk [vmem:[%s9836_s28 + $0x28] sm:$0xf] %vm5270_vm9, %v5750_v16  ;;  %v4414_v16 = vsel %vm3774_vm13, %v9318_v12, 0.0 }
 0x4e9   : > { %4246 = vst [vmem:[%s9980_s17 + $0x10] sm:$0xff] %v4214_v31  ;;  %v4215_v25 = vadd.f32 %v5959_v29, %v9972_v46  ;;  %v4081_v60 = vpop.f32.mrb[3].mxu1 }
 0x4ea   : > { %4244 = vst [vmem:[%s9980_s17] sm:$0xff] %v4212_v32  ;;  %v4213_v51 = vadd.f32 %v9972_v46, %v4081_v60 }
 0x4eb   : > { %4247 = vst [vmem:[%s9980_s17 + $0x18] sm:$0xff] %v4215_v25  ;;  %4400 = vadd.xlane.f32.xlu1 %v4399_v42 }
 0x4ec   : > { %4245 = vst [vmem:[%s9980_s17 + $0x8] sm:$0xff] %v4213_v51 }
 0x4ee   : > { %v5962_v61 = vpop.f32.mrb[4].mxu1 }
 0x4ef   : > { %v4218_v31 = vadd.f32 %v5962_v61, %v9972_v46  ;;  %v4094_v43 = vpop.f32.mrb[5].mxu1 }
 0x4f0   : > { %v4216_v29 = vadd.f32 %v9972_v46, %v4094_v43  ;;  %v5963_v17 = vpop.f32.mrb[6].mxu1 }
 0x4f1   : > { %4250 = vst [vmem:[%s9980_s17 + $0x30] sm:$0xff] %v4218_v31  ;;  %v4219_v32 = vadd.f32 %v5963_v17, %v9972_v46  ;;  %v4097_v60 = vpop.f32.mrb[7].mxu1 }
 0x4f2   : > { %4248 = vst [vmem:[%s9980_s17 + $0x20] sm:$0xff] %v4216_v29  ;;  %v4217_v25 = vadd.f32 %v9972_v46, %v4097_v60  ;;  %4415 = vadd.xlane.f32.xlu0 %v4414_v16 }
 0x4f3   : > { %4251 = vst [vmem:[%s9980_s17 + $0x38] sm:$0xff] %v4219_v32 }
 0x4f4   : > { %4249 = vst [vmem:[%s9980_s17 + $0x28] sm:$0xff] %v4217_v25 }
 0x4f6   : > { %v5966_v51 = vpop.f32.mrb[8].mxu1 }
 0x4f7   : > { %v4222_v43 = vadd.f32 %v5966_v51, %v9972_v46  ;;  %v4110_v42 = vpop.f32.mrb[9].mxu1 }
 0x4f8   : > { %v4220_v17 = vadd.f32 %v9972_v46, %v4110_v42  ;;  %v5967_v61 = vpop.f32.mrb[10].mxu1 }
 0x4f9   : > { %4254 = vst [vmem:[%s9980_s17 + $0x50] sm:$0xff] %v4222_v43  ;;  %v4223_v31 = vadd.f32 %v5967_v61, %v9972_v46  ;;  %v4113_v29 = vpop.f32.mrb[11].mxu1 }
 0x4fa   : > { %4252 = vst [vmem:[%s9980_s17 + $0x40] sm:$0xff] %v4220_v17  ;;  %v4221_v32 = vadd.f32 %v9972_v46, %v4113_v29 }
 0x4fb   : > { %4255 = vst [vmem:[%s9980_s17 + $0x58] sm:$0xff] %v4223_v31 }
 0x4fc   : > { %4253 = vst [vmem:[%s9980_s17 + $0x48] sm:$0xff] %v4221_v32  ;;  %5044 = vrot.lane.b32.xlu1 %v9356_v45, %s6496_s24 }
 0x4fe   : > { %v5970_v60 = vpop.f32.mrb[12].mxu1 }
 0x4ff   : > { %v4226_v25 = vadd.f32 %v5970_v60, %v9972_v46  ;;  %v4126_v16 = vpop.f32.mrb[13].mxu1 }
 0x500   : > { %v4224_v51 = vadd.f32 %v9972_v46, %v4126_v16  ;;  %v5971_v43 = vpop.f32.mrb[14].mxu1 }
 0x501   : > { %4258 = vst [vmem:[%s9980_s17 + $0x70] sm:$0xff] %v4226_v25  ;;  %v4227_v42 = vadd.f32 %v5971_v43, %v9972_v46  ;;  %v4129_v17 = vpop.f32.mrb[15].mxu1 }
 0x502   : > { %4256 = vst [vmem:[%s9980_s17 + $0x60] sm:$0xff] %v4224_v51  ;;  %v4225_v61 = vadd.f32 %v9972_v46, %v4129_v17 }
 0x503   : > { %4259 = vst [vmem:[%s9980_s17 + $0x78] sm:$0xff] %v4227_v42 }
 0x504   : > { %4257 = vst [vmem:[%s9980_s17 + $0x68] sm:$0xff] %v4225_v61 }
 0x506   : > { %v5974_v31 = vpop.f32.mrb[16].mxu1 }
 0x507   : > { %v4230_v29 = vadd.f32 %v5974_v31, %v9972_v46  ;;  %v4142_v32 = vpop.f32.mrb[17].mxu1 }
 0x508   : > { %v4228_v60 = vadd.f32 %v9972_v46, %v4142_v32  ;;  %v5975_v16 = vpop.f32.mrb[18].mxu1  ;;  %5038 = vrot.lane.b32.xlu0 %v9346_v47, %s6496_s24 }
 0x509   : > { %4262 = vst [vmem:[%s9980_s17 + $0x90] sm:$0xff] %v4230_v29  ;;  %v4231_v25 = vadd.f32 %v5975_v16, %v9972_v46  ;;  %v4145_v43 = vpop.f32.mrb[19].mxu1 }
 0x50a   : > { %4260 = vst [vmem:[%s9980_s17 + $0x80] sm:$0xff] %v4228_v60  ;;  %v4229_v51 = vadd.f32 %v9972_v46, %v4145_v43 }
 0x50b   : > { %4263 = vst [vmem:[%s9980_s17 + $0x98] sm:$0xff] %v4231_v25 }
 0x50c   : > { %4261 = vst [vmem:[%s9980_s17 + $0x88] sm:$0xff] %v4229_v51 }
 0x50e   : > { %v5978_v42 = vpop.f32.mrb[20].mxu1  ;;  %v4389_v17 = vpop.xlane.xlu1 %4388 }
 0x50f   : > { %v4234_v61 = vadd.f32 %v5978_v42, %v9972_v46  ;;  %v4158_v31 = vpop.f32.mrb[21].mxu1  ;;  %v4473_v29 = vadd.f32 %v4389_v17, %v9710_v20 }
 0x510   : > { %v4232_v32 = vadd.f32 %v9972_v46, %v4158_v31  ;;  %v5979_v16 = vpop.f32.mrb[22].mxu1 }
 0x511   : > { %4266 = vst [vmem:[%s9980_s17 + $0xb0] sm:$0xff] %v4234_v61  ;;  %v4235_v60 = vadd.f32 %v5979_v16, %v9972_v46  ;;  %v4161_v3 = vpop.f32.mrb[23].mxu1  ;;  %v10045_v43 = vmul.f32 0.015625, %v4473_v29 }
 0x512   : > { %4264 = vst [vmem:[%s9980_s17 + $0xa0] sm:$0xff] %v4232_v32  ;;  %v4233_v25 = vadd.f32 %v9972_v46, %v4161_v3  ;;  %v5037_v51 = vpop.permute.xlu1 %5036 }
 0x513   : > { %4267 = vst [vmem:[%s9980_s17 + $0xb8] sm:$0xff] %v4235_v60  ;;  %v10054_v20 = vsel %vm3774_vm13, %v11381_v1, %v5037_v51 }
 0x514   : > { %11420 = vst [vmem:[#allocation64_spill] sm:$0xff] %v10054_v20  ;;  %4265 = vst [vmem:[%s9980_s17 + $0xa8] sm:$0xff] %v4233_v25  ;;  %v5751_v17 = vpack.c.bf16 %v10054_v20, %v10054_v20 }
 0x515   : > { %v4404_v31 = vpop.xlane.xlu0 %4403 }
 0x516   : > { %v5982_v61 = vpop.f32.mrb[24].mxu1  ;;  %5282 = vst.msk [vmem:[%s9836_s28 + $0x2c] sm:$0xf] %vm5270_vm9, %v5751_v17  ;;  %v4478_v32 = vadd.f32 %v4404_v31, %v9719_v8 }
 0x517   : > { %v4238_v3 = vadd.f32 %v5982_v61, %v9972_v46  ;;  %v4174_v29 = vpop.f32.mrb[25].mxu1 }
 0x518   : > { %v4236_v16 = vadd.f32 %v9972_v46, %v4174_v29  ;;  %v5983_v60 = vpop.f32.mrb[26].mxu1  ;;  %v10066_v42 = vmul.f32 0.015625, %v4478_v32 }
 0x519   : > { %4270 = vst [vmem:[%s9980_s17 + $0xd0] sm:$0xff] %v4238_v3  ;;  %v4239_v25 = vadd.f32 %v5983_v60, %v9972_v46  ;;  %v4177_v51 = vpop.f32.mrb[27].mxu1  ;;  %v5031_v14 = vpop.permute.xlu0 %5030 }
 0x51a   : > { %4268 = vst [vmem:[%s9980_s17 + $0xc0] sm:$0xff] %v4236_v16  ;;  %v4237_v17 = vadd.f32 %v9972_v46, %v4177_v51  ;;  %v10075_v61 = vsel %vm3774_vm13, %v11374_v57, %v5031_v14  ;;  %v4417_v16 = vsel %vm3774_vm13, %v9356_v45, 0.0 }
 0x51b   : > { %4271 = vst [vmem:[%s9980_s17 + $0xd8] sm:$0xff] %v4239_v25  ;;  %11421 = vst [vmem:[#allocation65_spill] sm:$0xff] %v10075_v61  ;;  %v5748_v31 = vpack.c.bf16 %v10075_v61, %v10075_v61 }
 0x51c   : > { %4269 = vst [vmem:[%s9980_s17 + $0xc8] sm:$0xff] %v4237_v17 }
 0x51d   : > { %5279 = vst.msk [vmem:[%s9836_s28 + $0x20] sm:$0xf] %vm5270_vm9, %v5748_v31  ;;  %v4408_v31 = vsel %vm3774_vm13, %v9346_v47, 0.0 }
 0x51e   : > { %v5986_v3 = vpop.f32.mrb[28].mxu1 }
 0x51f   : > { %v4242_v29 = vadd.f32 %v5986_v3, %v9972_v46  ;;  %v4190_v32 = vpop.f32.mrb[29].mxu1 }
 0x520   : > { %v4240_v60 = vadd.f32 %v9972_v46, %v4190_v32  ;;  %v5987_v25 = vpop.f32.mrb[30].mxu1  ;;  %4418 = vadd.xlane.f32.xlu1 %v4417_v16 }
 0x521   : > { %4274 = vst [vmem:[%s9980_s17 + $0xf0] sm:$0xff] %v4242_v29  ;;  %v4243_v14 = vadd.f32 %v5987_v25, %v9972_v46  ;;  %v4193_v51 = vpop.f32.mrb[31].mxu1 }
 0x522   : > { %4272 = vst [vmem:[%s9980_s17 + $0xe0] sm:$0xff] %v4240_v60  ;;  %v4241_v17 = vadd.f32 %v9972_v46, %v4193_v51 }
 0x523   : > { %4275 = vst [vmem:[%s9980_s17 + $0xf8] sm:$0xff] %v4243_v14 }
 0x524   : > { %4273 = vst [vmem:[%s9980_s17 + $0xe8] sm:$0xff] %v4241_v17 }
 0x527   : > { %4409 = vadd.xlane.f32.xlu0 %v4408_v31 }
 0x531   : > { %5040 = vrot.lane.b32.xlu1 %v9374_v56, %s6496_s24 }
 0x53d   : > { %5050 = vrot.lane.b32.xlu0 %v11346_v48, %s6496_s24 }
 0x543   : > { %v4407_v3 = vpop.xlane.xlu1 %4406 }
 0x544   : > { %v4479_v29 = vadd.f32 %v4407_v3, %v9716_v63 }
 0x546   : > { %v10099_v32 = vmul.f32 0.015625, %v4479_v29 }
 0x547   : > { %v5033_v16 = vpop.permute.xlu1 %5032 }
 0x548   : > { %v10105_v60 = vsel %vm3774_vm13, %v11375_v5, %v5033_v16  ;;  %v4411_v16 = vsel %vm3774_vm13, %v9374_v56, 0.0 }
 0x549   : > { %11422 = vst [vmem:[#allocation66_spill] sm:$0xff] %v10105_v60  ;;  %v5749_v25 = vpack.c.bf16 %v10105_v60, %v10105_v60 }
 0x54a   : > { %v4398_v14 = vpop.xlane.xlu0 %4397 }
 0x54b   : > { %5280 = vst.msk [vmem:[%s9836_s28 + $0x24] sm:$0xf] %vm5270_vm9, %v5749_v25  ;;  %v4476_v51 = vadd.f32 %v4398_v14, %v9729_v11  ;;  %v4426_v11 = vsel %vm3774_vm13, %v11346_v48, 0.0 }
 0x54d   : > { %v10112_v17 = vmul.f32 0.015625, %v4476_v51 }
 0x54e   : > { %v5043_v63 = vpop.permute.xlu0 %5042 }
 0x54f   : > { %v10118_v3 = vsel %vm3774_vm13, %v11386_v37, %v5043_v63 }
 0x550   : > { %11423 = vst [vmem:[#allocation67_spill] sm:$0xff] %v10118_v3  ;;  %v5754_v29 = vpack.c.bf16 %v10118_v3, %v10118_v3 }
 0x552   : > { %5285 = vst.msk [vmem:[%s9836_s28 + $0x38] sm:$0xf] %vm5270_vm9, %v5754_v29 }
 0x555   : > { %4412 = vadd.xlane.f32.xlu1 %v4411_v16 }
 0x55c   : > { %4427 = vadd.xlane.f32.xlu0 %v4426_v11 }
 0x566   : > { %5052 = vrot.lane.b32.xlu1 %v9597_v22, %s6496_s24 }
 0x572   : > { %5046 = vrot.lane.b32.xlu0 %v9516_v21, %s6496_s24 }
 0x578   : > { %v4401_v25 = vpop.xlane.xlu1 %4400 }
 0x579   : > { %v4477_v14 = vadd.f32 %v4401_v25, %v9721_v55 }
 0x57b   : > { %v10133_v51 = vmul.f32 0.015625, %v4477_v14 }
 0x57c   : > { %v5045_v63 = vpop.permute.xlu1 %5044 }
 0x57d   : > { %v10139_v16 = vsel %vm3774_vm13, %v11387_v41, %v5045_v63 }
 0x57e   : > { %11424 = vst [vmem:[#allocation68_spill] sm:$0xff] %v10139_v16  ;;  %v5755_v11 = vpack.c.bf16 %v10139_v16, %v10139_v16 }
 0x57f   : > { %v4416_v46 = vpop.xlane.xlu0 %4415 }
 0x580   : > { %5286 = vst.msk [vmem:[%s9836_s28 + $0x3c] sm:$0xf] %vm5270_vm9, %v5755_v11  ;;  %v4482_v31 = vadd.f32 %v4416_v46, %v9746_v23  ;;  %v4429_v11 = vsel %vm3774_vm13, %v9597_v22, 0.0  ;;  %v4420_v23 = vsel %vm3774_vm13, %v9516_v21, 0.0  ;;  %v11440_v22 = vld [vmem:[#allocation29_spill] sm:$0xff] }
 0x582   : > { %v10146_v8 = vmul.f32 0.015625, %v4482_v31 }
 0x583   : > { %v5039_v55 = vpop.permute.xlu0 %5038 }
 0x584   : > { %v10152_v14 = vsel %vm3774_vm13, %v11382_v10, %v5039_v55 }
 0x585   : > { %11425 = vst [vmem:[#allocation69_spill] sm:$0xff] %v10152_v14  ;;  %v5752_v63 = vpack.c.bf16 %v10152_v14, %v10152_v14  ;;  %v11431_v14 = vld [vmem:[#allocation35_spill] sm:$0xff] }
 0x587   : > { %5283 = vst.msk [vmem:[%s9836_s28 + $0x30] sm:$0xf] %vm5270_vm9, %v5752_v63 }
 0x58a   : > { %4430 = vadd.xlane.f32.xlu1 %v4429_v11  ;;  %v11429_v11 = vld [vmem:[#allocation20_spill] sm:$0xff] }
 0x591   : > { %4421 = vadd.xlane.f32.xlu0 %v4420_v23 }
 0x59b   : > { %5048 = vrot.lane.b32.xlu1 %v9521_v34, %s6496_s24 }
 0x5a7   : > { %5058 = vrot.lane.b32.xlu0 %v9647_v18, %s6496_s24 }
 0x5ad   : > { %v4419_v46 = vpop.xlane.xlu1 %4418 }
 0x5ae   : > { %v4483_v31 = vadd.f32 %v4419_v46, %v9731_v15 }
 0x5b0   : > { %v10167_v55 = vmul.f32 0.015625, %v4483_v31 }
 0x5b1   : > { %v5041_v63 = vpop.permute.xlu1 %5040 }
 0x5b2   : > { %v10173_v29 = vsel %vm3774_vm13, %v11383_v7, %v5041_v63 }
 0x5b3   : > { %11426 = vst [vmem:[#allocation70_spill] sm:$0xff] %v10173_v29  ;;  %v5753_v23 = vpack.c.bf16 %v10173_v29, %v10173_v29 }
 0x5b4   : > { %v4410_v25 = vpop.xlane.xlu0 %4409 }
 0x5b5   : > { %5284 = vst.msk [vmem:[%s9836_s28 + $0x34] sm:$0xf] %vm5270_vm9, %v5753_v23  ;;  %v4480_v60 = vadd.f32 %v4410_v25, %v9757_v19  ;;  %v4423_v23 = vsel %vm3774_vm13, %v9521_v34, 0.0  ;;  %v4438_v19 = vsel %vm3774_vm13, %v9647_v18, 0.0 }
 0x5b7   : > { %v10180_v20 = vmul.f32 0.015625, %v4480_v60 }
 0x5b8   : > { %v5051_v15 = vpop.permute.xlu0 %5050 }
 0x5b9   : > { %v10186_v31 = vsel %vm3774_vm13, %v11394_v53, %v5051_v15 }
 0x5ba   : > { %11427 = vst [vmem:[#allocation71_spill] sm:$0xff] %v10186_v31  ;;  %v5758_v63 = vpack.c.bf16 %v10186_v31, %v10186_v31 }
 0x5bc   : > { %5289 = vst.msk [vmem:[%s9836_s28 + $0x48] sm:$0xf] %vm5270_vm9, %v5758_v63 }
 0x5bf   : > { %4424 = vadd.xlane.f32.xlu1 %v4423_v23 }
 0x5c6   : > { %4439 = vadd.xlane.f32.xlu0 %v4438_v19 }
 0x5d0   : > { %5060 = vrot.lane.b32.xlu1 %v9650_v9, %s6496_s24 }
 0x5dc   : > { %5054 = vrot.lane.b32.xlu0 %v9614_v13, %s6496_s24 }
 0x5e2   : > { %v4413_v60 = vpop.xlane.xlu1 %4412 }
 0x5e3   : > { %v4481_v25 = vadd.f32 %v4413_v60, %v9748_v35  ;;  %v11436_v60 = vld [vmem:[#allocation55_spill] sm:$0xff] }
 0x5e5   : > { %v10201_v15 = vmul.f32 0.015625, %v4481_v25  ;;  %v11432_v25 = vld [vmem:[#allocation17_spill] sm:$0xff] }
 0x5e6   : > { %v5053_v63 = vpop.permute.xlu1 %5052 }
 0x5e7   : > { %11428 = vst [vmem:[#allocation72_spill] sm:$0xff] %v10201_v15  ;;  %v10207_v46 = vsel %vm3774_vm13, %v11429_v11, %v5053_v63 }
 0x5e8   : > { %11430 = vst [vmem:[#allocation73_spill] sm:$0xff] %v10207_v46  ;;  %v5759_v19 = vpack.c.bf16 %v10207_v46, %v10207_v46 }
 0x5e9   : > { %v4428_v16 = vpop.xlane.xlu0 %4427 }
 0x5ea   : > { %5290 = vst.msk [vmem:[%s9836_s28 + $0x4c] sm:$0xf] %vm5270_vm9, %v5759_v19  ;;  %v4486_v3 = vadd.f32 %v4428_v16, %v11431_v14  ;;  %v4441_v19 = vsel %vm3774_vm13, %v9650_v9, 0.0  ;;  %v11434_v16 = vld [vmem:[#allocation5_spill] sm:$0xff] }
 0x5eb   : > { %v11435_v14 = vld [vmem:[#allocation53_spill] sm:$0xff] }
 0x5ec   : > { %v10214_v61 = vmul.f32 0.015625, %v4486_v3  ;;  %v4432_v3 = vsel %vm3774_vm13, %v9614_v13, 0.0 }
 0x5ed   : > { %v5047_v35 = vpop.permute.xlu0 %5046 }
 0x5ee   : > { %v10220_v23 = vsel %vm3774_vm13, %v11432_v25, %v5047_v35 }
 0x5ef   : > { %11433 = vst [vmem:[#allocation35_spill] sm:$0xff] %v10220_v23  ;;  %v5756_v63 = vpack.c.bf16 %v10220_v23, %v10220_v23  ;;  %v11446_v23 = vld [vmem:[#allocation46_spill] sm:$0xff] }
 0x5f1   : > { %5287 = vst.msk [vmem:[%s9836_s28 + $0x40] sm:$0xf] %vm5270_vm9, %v5756_v63 }
 0x5f4   : > { %4442 = vadd.xlane.f32.xlu1 %v4441_v19  ;;  %v11444_v19 = vld [vmem:[#allocation57_spill] sm:$0xff] }
 0x5fb   : > { %4433 = vadd.xlane.f32.xlu0 %v4432_v3 }
 0x605   : > { %5056 = vrot.lane.b32.xlu1 %v11434_v16, %s6496_s24 }
 0x611   : > { %5066 = vrot.lane.b32.xlu0 %v11435_v14, %s6496_s24 }
 0x617   : > { %v4431_v35 = vpop.xlane.xlu1 %4430 }
 0x618   : > { %v4487_v29 = vadd.f32 %v4431_v35, %v11436_v60 }
 0x61a   : > { %v10235_v31 = vmul.f32 0.015625, %v4487_v29 }
 0x61b   : > { %v5049_v63 = vpop.permute.xlu1 %5048 }
 0x61c   : > { %11437 = vst [vmem:[#allocation17_spill] sm:$0xff] %v10235_v31  ;;  %v10241_v9 = vsel %vm3774_vm13, %v11438_v27, %v5049_v63  ;;  %v11448_v31 = vld [vmem:[#allocation11_spill] sm:$0xff] }
 0x61d   : > { %11439 = vst [vmem:[#allocation55_spill] sm:$0xff] %v10241_v9  ;;  %v5757_v3 = vpack.c.bf16 %v10241_v9, %v10241_v9  ;;  %v11454_v9 = vld [vmem:[#allocation31_spill] sm:$0xff] }
 0x61e   : > { %v4422_v34 = vpop.xlane.xlu0 %4421 }
 0x61f   : > { %5288 = vst.msk [vmem:[%s9836_s28 + $0x44] sm:$0xf] %vm5270_vm9, %v5757_v3  ;;  %v4484_v11 = vadd.f32 %v4422_v34, %v11440_v22  ;;  %v4435_v3 = vsel %vm3774_vm13, %v11434_v16, 0.0  ;;  %v4450_v34 = vsel %vm3774_vm13, %v11435_v14, 0.0  ;;  %v11442_v22 = vld [vmem:[#allocation52_spill] sm:$0xff] }
 0x621   : > { %v10248_v56 = vmul.f32 0.015625, %v4484_v11  ;;  %v11443_v11 = vld [vmem:[#allocation16_spill] sm:$0xff] }
 0x622   : > { %v5059_v29 = vpop.permute.xlu0 %5058 }
 0x623   : > { %v10254_v35 = vsel %vm3774_vm13, %v11400_v40, %v5059_v29 }
 0x624   : > { %11441 = vst [vmem:[#allocation29_spill] sm:$0xff] %v10254_v35  ;;  %v5762_v63 = vpack.c.bf16 %v10254_v35, %v10254_v35 }
 0x626   : > { %5293 = vst.msk [vmem:[%s9836_s28 + $0x58] sm:$0xf] %vm5270_vm9, %v5762_v63 }
 0x629   : > { %4436 = vadd.xlane.f32.xlu1 %v4435_v3 }
 0x630   : > { %4451 = vadd.xlane.f32.xlu0 %v4450_v34 }
 0x63a   : > { %5068 = vrot.lane.b32.xlu1 %v11442_v22, %s6496_s24 }
 0x646   : > { %5062 = vrot.lane.b32.xlu0 %v11443_v11, %s6496_s24 }
 0x64c   : > { %v4425_v29 = vpop.xlane.xlu1 %4424 }
 0x64d   : > { %v4485_v60 = vadd.f32 %v4425_v29, %v11444_v19  ;;  %v11449_v29 = vld [vmem:[#allocation21_spill] sm:$0xff] }
 0x64f   : > { %v10269_v46 = vmul.f32 0.015625, %v4485_v60  ;;  %v11453_v60 = vld [vmem:[#allocation36_spill] sm:$0xff] }
 0x650   : > { %v5061_v63 = vpop.permute.xlu1 %5060 }
 0x651   : > { %11445 = vst [vmem:[#allocation57_spill] sm:$0xff] %v10269_v46  ;;  %v10275_v16 = vsel %vm3774_vm13, %v11446_v23, %v5061_v63  ;;  %v11455_v23 = vld [vmem:[#allocation22_spill] sm:$0xff] }
 0x652   : > { %11447 = vst [vmem:[#allocation74_spill] sm:$0xff] %v10275_v16  ;;  %v5763_v34 = vpack.c.bf16 %v10275_v16, %v10275_v16  ;;  %v11460_v16 = vld [vmem:[#allocation10_spill] sm:$0xff] }
 0x653   : > { %v4440_v27 = vpop.xlane.xlu0 %4439 }
 0x654   : > { %5294 = vst.msk [vmem:[%s9836_s28 + $0x5c] sm:$0xf] %vm5270_vm9, %v5763_v34  ;;  %v4490_v7 = vadd.f32 %v4440_v27, %v11448_v31  ;;  %v4453_v34 = vsel %vm3774_vm13, %v11442_v22, 0.0  ;;  %v11451_v27 = vld [vmem:[#allocation50_spill] sm:$0xff] }
 0x655   : > { %v4462_v31 = vsel %vm3774_vm13, %v11451_v27, 0.0 }
 0x656   : > { %v10282_v15 = vmul.f32 0.015625, %v4490_v7  ;;  %v4444_v7 = vsel %vm3774_vm13, %v11443_v11, 0.0  ;;  %v11457_v11 = vld [vmem:[#allocation19_spill] sm:$0xff] }
 0x657   : > { %v5055_v19 = vpop.permute.xlu0 %5054 }
 0x658   : > { %v10288_v3 = vsel %vm3774_vm13, %v11449_v29, %v5055_v19  ;;  %v11452_v19 = vld [vmem:[#allocation12_spill] sm:$0xff] }
 0x659   : > { %11450 = vst [vmem:[#allocation11_spill] sm:$0xff] %v10288_v3  ;;  %v5760_v63 = vpack.c.bf16 %v10288_v3, %v10288_v3  ;;  %v4566_v3 = vsub.f32 %v11460_v16, %v9864_v52 }
 0x65b   : > { %5291 = vst.msk [vmem:[%s9836_s28 + $0x50] sm:$0xf] %vm5270_vm9, %v5760_v63 }
 0x65e   : > { %4454 = vadd.xlane.f32.xlu1 %v4453_v34 }
 0x665   : > { %4445 = vadd.xlane.f32.xlu0 %v4444_v7 }
 0x669   : > { %4463 = vadd.xlane.f32.xlu0 %v4462_v31 }
 0x66f   : > { %5064 = vrot.lane.b32.xlu1 %v11452_v19, %s6496_s24 }
 0x67f   : > { %5070 = vrot.lane.b32.xlu0 %v11453_v60, %s6496_s24 }
 0x681   : > { %v4443_v63 = vpop.xlane.xlu1 %4442 }
 0x682   : > { %v4491_v35 = vadd.f32 %v4443_v63, %v11454_v9 }
 0x684   : > { %v10305_v22 = vmul.f32 0.015625, %v4491_v35 }
 0x685   : > { %v5057_v34 = vpop.permute.xlu1 %5056 }
 0x686   : > { %v10311_v46 = vsel %vm3774_vm13, %v11455_v23, %v5057_v34  ;;  %v4726_v23 = vmul.f32 %v4566_v3, %v4566_v3  ;;  %v4538_v3 = vsub.f32 %v11372_v38, %v9935_v30  ;;  %v4568_v38 = vsub.f32 %v11333_v49, %v9974_v24 }
 0x687   : > { %11456 = vst [vmem:[#allocation21_spill] sm:$0xff] %v10311_v46  ;;  %v5761_v31 = vpack.c.bf16 %v10311_v46, %v10311_v46  ;;  %v4540_v46 = vsub.f32 %v11374_v57, %v10112_v17  ;;  %v11468_v57 = vld [vmem:[#allocation30_spill] sm:$0xff] }
 0x688   : > { %v4434_v27 = vpop.xlane.xlu0 %4433 }
 0x689   : > { %5292 = vst.msk [vmem:[%s9836_s28 + $0x54] sm:$0xf] %vm5270_vm9, %v5761_v31  ;;  %v4488_v14 = vadd.f32 %v4434_v27, %v11457_v11  ;;  %v4447_v31 = vsel %vm3774_vm13, %v11452_v19, 0.0  ;;  %v11458_v11 = vld [vmem:[#allocation56_spill] sm:$0xff] }
 0x68a   : > { %v11459_v27 = vld [vmem:[#allocation28_spill] sm:$0xff] }
 0x68b   : > { %v10318_v45 = vmul.f32 0.015625, %v4488_v14  ;;  %v4465_v14 = vsel %vm3774_vm13, %v11458_v11, 0.0  ;;  %v4534_v7 = vsub.f32 %v11459_v27, %v9864_v52  ;;  %v11461_v27 = vld [vmem:[#allocation24_spill] sm:$0xff] }
 0x68c   : > { %v5067_v9 = vpop.permute.xlu0 %5066  ;;  %v4564_v19 = vsub.f32 %v11461_v27, %v9901_v54  ;;  %v4536_v27 = vsub.f32 %v11368_v36, %v9974_v24  ;;  %v4542_v36 = vsub.f32 %v11380_v28, %v10066_v42  ;;  %v4574_v28 = vsub.f32 %v11340_v50, %v10066_v42 }
 0x68d   : > { %v10324_v63 = vsel %vm3774_vm13, %v11407_v62, %v5067_v9  ;;  %v4456_v9 = vsel %vm3774_vm13, %v11453_v60, 0.0  ;;  %v4598_v35 = vmul.f32 %v4534_v7, %v4534_v7  ;;  %v11462_v7 = vld [vmem:[#allocation54_spill] sm:$0xff] }
 0x68e   : > { %v5766_v34 = vpack.c.bf16 %v10324_v63, %v10324_v63 }
 0x690   : > { %5297 = vst.msk [vmem:[%s9836_s28 + $0x68] sm:$0xf] %vm5270_vm9, %v5766_v34  ;;  %v4634_v34 = vsel %vm3774_vm13, %v4598_v35, 0.0  ;;  %v4602_v35 = vmul.f32 %v4538_v3, %v4538_v3 }
 0x693   : > { %4448 = vadd.xlane.f32.xlu1 %v4447_v31  ;;  %v4532_v31 = vsub.f32 %v11363_v4, %v9901_v54 }
 0x695   : > { %v4596_v11 = vmul.f32 %v4532_v31, %v4532_v31  ;;  %v4646_v31 = vsel %vm3774_vm13, %v4602_v35, 0.0  ;;  %v4728_v35 = vmul.f32 %v4568_v38, %v4568_v38  ;;  %v4606_v38 = vmul.f32 %v4542_v36, %v4542_v36  ;;  %v11467_v36 = vld [vmem:[#allocation49_spill] sm:$0xff] }
 0x697   : > { %4466 = vadd.xlane.f32.xlu1 %v4465_v14  ;;  %v4762_v14 = vsel %vm3774_vm13, %v4726_v23, 0.0  ;;  %v4628_v16 = vsel %vm3774_vm13, %v4596_v11, 0.0  ;;  %v11463_v23 = vld [vmem:[#allocation33_spill] sm:$0xff]  ;;  %v4600_v11 = vmul.f32 %v4536_v27, %v4536_v27 }
 0x69e   : > { %4457 = vadd.xlane.f32.xlu0 %v4456_v9  ;;  %v4724_v9 = vmul.f32 %v4564_v19, %v4564_v19 }
 0x6a0   : > { %v4756_v4 = vsel %vm3774_vm13, %v4724_v9, 0.0  ;;  %v11464_v9 = vld [vmem:[#allocation2_spill] sm:$0xff] }
 0x6a2   : > { %4635 = vadd.xlane.f32.xlu0 %v4634_v34  ;;  %v4570_v34 = vsub.f32 %v11463_v23, %v9935_v30 }
 0x6a6   : > { %4763 = vadd.xlane.f32.xlu0 %v4762_v14  ;;  %v4730_v14 = vmul.f32 %v4570_v34, %v4570_v34 }
 0x6a8   : > { %5072 = vrot.lane.b32.xlu1 %v11462_v7, %s6496_s24  ;;  %v4774_v19 = vsel %vm3774_vm13, %v4730_v14, 0.0  ;;  %v11465_v14 = vld [vmem:[#allocation51_spill] sm:$0xff] }
 0x6aa   : > { %4629 = vadd.xlane.f32.xlu0 %v4628_v16 }
 0x6ae   : > { %4757 = vadd.xlane.f32.xlu0 %v4756_v4  ;;  %v4640_v4 = vsel %vm3774_vm13, %v4600_v11, 0.0  ;;  %v4768_v11 = vsel %vm3774_vm13, %v4728_v35, 0.0 }
 0x6b2   : > { %4647 = vadd.xlane.f32.xlu0 %v4646_v31  ;;  %v4734_v31 = vmul.f32 %v4574_v28, %v4574_v28  ;;  %v4535_v28 = vsub.f32 %v11468_v57, %v9888_v59  ;;  %v4578_v57 = vsub.f32 %v9318_v12, %v10146_v8  ;;  %v11470_v12 = vld [vmem:[#allocation3_spill] sm:$0xff] }
 0x6b6   : > { %v4437_v16 = vpop.xlane.xlu1 %4436  ;;  %4775 = vadd.xlane.f32.xlu0 %v4774_v19 }
 0x6b7   : > { %v4489_v3 = vadd.f32 %v4437_v16, %v11464_v9  ;;  %v11466_v16 = vld [vmem:[#allocation9_spill] sm:$0xff] }
 0x6b9   : > { %v10361_v23 = vmul.f32 0.015625, %v4489_v3 }
 0x6ba   : > { %v5069_v34 = vpop.permute.xlu1 %5068  ;;  %4641 = vadd.xlane.f32.xlu0 %v4640_v4 }
 0x6bb   : > { %v10370_v49 = vsel %vm3774_vm13, %v11465_v14, %v5069_v34  ;;  %v4658_v34 = vsel %vm3774_vm13, %v4606_v38, 0.0  ;;  %v4572_v38 = vsub.f32 %v9214_v0, %v10112_v17 }
 0x6bc   : > { %v5767_v27 = vpack.c.bf16 %v10370_v49, %v10370_v49 }
 0x6bd   : > { %v4452_v19 = vpop.xlane.xlu0 %4451 }
 0x6be   : > { %5298 = vst.msk [vmem:[%s9836_s28 + $0x6c] sm:$0xf] %vm5270_vm9, %v5767_v27  ;;  %v4494_v9 = vadd.f32 %v4452_v19, %v11466_v16  ;;  %4769 = vadd.xlane.f32.xlu0 %v4768_v11  ;;  %v4786_v19 = vsel %vm3774_vm13, %v4734_v31, 0.0  ;;  %v4604_v11 = vmul.f32 %v4540_v46, %v4540_v46  ;;  %v11469_v46 = vld [vmem:[#allocation43_spill] sm:$0xff] }
 0x6bf   : > { %v4567_v31 = vsub.f32 %v11469_v46, %v9888_v59  ;;  %v4565_v46 = vsub.f32 %v11470_v12, %v9922_v58 }
 0x6c0   : > { %v10380_v3 = vmul.f32 0.015625, %v4494_v9  ;;  %v4652_v16 = vsel %vm3774_vm13, %v4604_v11, 0.0  ;;  %v4732_v9 = vmul.f32 %v4572_v38, %v4572_v38 }
 0x6c1   : > { %v5063_v4 = vpop.permute.xlu0 %5062  ;;  %v4727_v38 = vmul.f32 %v4567_v31, %v4567_v31 }
 0x6c2   : > { %v5329_v35 = vsub.f32 %v10324_v63, %v10380_v3  ;;  %v10389_v27 = vsel %vm3774_vm13, %v11467_v36, %v5063_v4  ;;  %4659 = vadd.xlane.f32.xlu0 %v4658_v34  ;;  %v4546_v4 = vsub.f32 %v11386_v37, %v10146_v8  ;;  %v4459_v34 = vsel %vm3774_vm13, %v11462_v7, 0.0 }
 0x6c3   : > { %v5764_v50 = vpack.c.bf16 %v10389_v27, %v10389_v27  ;;  %v4780_v0 = vsel %vm3774_vm13, %v4732_v9, 0.0  ;;  %v4533_v37 = vsub.f32 %v11364_v33, %v9922_v58  ;;  %v4765_v9 = vsel %vm3774_vm13, %v4727_v38, 0.0 }
 0x6c4   : > { %v4576_v33 = vsub.f32 %v9346_v47, %v10180_v20  ;;  %v4550_v38 = vsub.f32 %v11394_v53, %v10214_v61  ;;  %v4571_v47 = vsub.f32 %v11337_v6, %v9956_v26  ;;  %v4537_v53 = vsub.f32 %v11369_v44, %v10045_v43 }
 0x6c5   : > { %5295 = vst.msk [vmem:[%s9836_s28 + $0x60] sm:$0xf] %vm5270_vm9, %v5764_v50  ;;  %v4599_v50 = vmul.f32 %v4535_v28, %v4535_v28  ;;  %v4548_v6 = vsub.f32 %v11432_v25, %v10248_v56  ;;  %v4580_v44 = vsub.f32 %v9516_v21, %v10248_v56  ;;  %v4543_v25 = vsub.f32 %v11381_v1, %v10099_v32  ;;  %v11471_v21 = vld [vmem:[#allocation26_spill] sm:$0xff] }
 0x6c6   : > { %4787 = vadd.xlane.f32.xlu0 %v4786_v19  ;;  %v4610_v19 = vmul.f32 %v4546_v4, %v4546_v4  ;;  %v4597_v4 = vmul.f32 %v4533_v37, %v4533_v37 }
 0x6c7   : > { %v4637_v11 = vsel %vm3774_vm13, %v4599_v50, 0.0 }
 0x6c8   : > { %v4670_v28 = vsel %vm3774_vm13, %v4610_v19, 0.0  ;;  %v4725_v19 = vmul.f32 %v4565_v46, %v4565_v46 }
 0x6ca   : > { %4653 = vadd.xlane.f32.xlu0 %v4652_v16  ;;  %v4738_v16 = vmul.f32 %v4578_v57, %v4578_v57  ;;  %v4759_v37 = vsel %vm3774_vm13, %v4725_v19, 0.0 }
 0x6cc   : > { %4460 = vadd.xlane.f32.xlu1 %v4459_v34  ;;  %v4544_v34 = vsub.f32 %v11382_v10, %v10180_v20  ;;  %v4798_v50 = vsel %vm3774_vm13, %v4738_v16, 0.0  ;;  %v4539_v10 = vsub.f32 %v11373_v2, %v9956_v26  ;;  %v4582_v2 = vsub.f32 %v11346_v48, %v10214_v61 }
 0x6cd   : > { %v4569_v48 = vsub.f32 %v11334_v39, %v10045_v43  ;;  %v4554_v39 = vsub.f32 %v11400_v40, %v10282_v15  ;;  %v4586_v40 = vsub.f32 %v9647_v18, %v10282_v15 }
 0x6ce   : > { %4781 = vadd.xlane.f32.xlu0 %v4780_v0  ;;  %v4608_v31 = vmul.f32 %v4544_v34, %v4544_v34  ;;  %v4631_v0 = vsel %vm3774_vm13, %v4597_v4, 0.0  ;;  %v4614_v34 = vmul.f32 %v4550_v38, %v4550_v38  ;;  %v4731_v4 = vmul.f32 %v4571_v47, %v4571_v47 }
 0x6cf   : > { %v4742_v46 = vmul.f32 %v4582_v2, %v4582_v2  ;;  %v4575_v47 = vsub.f32 %v11471_v21, %v10099_v32  ;;  %v4618_v2 = vmul.f32 %v4554_v39, %v4554_v39 }
 0x6d0   : > { %4638 = vadd.xlane.f32.xlu1 %v4637_v11  ;;  %v4664_v57 = vsel %vm3774_vm13, %v4608_v31, 0.0  ;;  %v4736_v11 = vmul.f32 %v4576_v33, %v4576_v33  ;;  %v4682_v12 = vsel %vm3774_vm13, %v4614_v34, 0.0  ;;  %v4601_v31 = vmul.f32 %v4537_v53, %v4537_v53 }
 0x6d1   : > { %v4810_v33 = vsel %vm3774_vm13, %v4742_v46, 0.0  ;;  %v4541_v46 = vsub.f32 %v11375_v5, %v10133_v51  ;;  %v4694_v18 = vsel %vm3774_vm13, %v4618_v2, 0.0 }
 0x6d2   : > { %4671 = vadd.xlane.f32.xlu0 %v4670_v28  ;;  %v4603_v28 = vmul.f32 %v4539_v10, %v4539_v10  ;;  %v4792_v16 = vsel %vm3774_vm13, %v4736_v11, 0.0  ;;  %v4643_v19 = vsel %vm3774_vm13, %v4601_v31, 0.0  ;;  %v4729_v10 = vmul.f32 %v4569_v48, %v4569_v48 }
 0x6d3   : > { %v4740_v11 = vmul.f32 %v4580_v44, %v4580_v44 }
 0x6d4   : > { %4766 = vadd.xlane.f32.xlu1 %v4765_v9  ;;  %v4649_v9 = vsel %vm3774_vm13, %v4603_v28, 0.0  ;;  %v4607_v28 = vmul.f32 %v4543_v25, %v4543_v25 }
 0x6d5   : > { %v4804_v1 = vsel %vm3774_vm13, %v4740_v11, 0.0 }
 0x6d6   : > { %4799 = vadd.xlane.f32.xlu0 %v4798_v50  ;;  %v4777_v50 = vsel %vm3774_vm13, %v4731_v4, 0.0  ;;  %v4661_v53 = vsel %vm3774_vm13, %v4607_v28, 0.0 }
 0x6d8   : > { %4632 = vadd.xlane.f32.xlu1 %v4631_v0  ;;  %v4612_v0 = vmul.f32 %v4548_v6, %v4548_v6 }
 0x6da   : > { %4665 = vadd.xlane.f32.xlu0 %v4664_v57  ;;  %v4676_v57 = vsel %vm3774_vm13, %v4612_v0, 0.0  ;;  %v4552_v0 = vsub.f32 %v11449_v29, %v10318_v45  ;;  %v4584_v29 = vsub.f32 %v9614_v13, %v10318_v45 }
 0x6dc   : > { %4760 = vadd.xlane.f32.xlu1 %v4759_v37  ;;  %v4771_v37 = vsel %vm3774_vm13, %v4729_v10, 0.0  ;;  %v11474_v10 = vld [vmem:[#allocation27_spill] sm:$0xff]  ;;  %v4744_v2 = vmul.f32 %v4584_v29, %v4584_v29 }
 0x6dd   : > { %v4573_v25 = vsub.f32 %v11474_v10, %v10133_v51  ;;  %v11479_v10 = vld [vmem:[#allocation72_spill] sm:$0xff] }
 0x6de   : > { %4793 = vadd.xlane.f32.xlu0 %v4792_v16  ;;  %v11472_v16 = vld [vmem:[#allocation18_spill] sm:$0xff] }
 0x6e0   : > { %4650 = vadd.xlane.f32.xlu1 %v4649_v9 }
 0x6e2   : > { %4683 = vadd.xlane.f32.xlu0 %v4682_v12  ;;  %v4735_v12 = vmul.f32 %v4575_v47, %v4575_v47  ;;  %v4733_v47 = vmul.f32 %v4573_v25, %v4573_v25  ;;  %v11480_v25 = vld [vmem:[#allocation44_spill] sm:$0xff] }
 0x6e4   : > { %4778 = vadd.xlane.f32.xlu1 %v4777_v50  ;;  %v11473_v50 = vld [vmem:[#allocation13_spill] sm:$0xff]  ;;  %v4789_v5 = vsel %vm3774_vm13, %v4735_v12, 0.0  ;;  %v11476_v12 = vld [vmem:[#allocation47_spill] sm:$0xff] }
 0x6e6   : > { %4811 = vadd.xlane.f32.xlu0 %v4810_v33  ;;  %v4746_v33 = vmul.f32 %v4586_v40, %v4586_v40  ;;  %v4558_v40 = vsub.f32 %v11407_v62, %v10380_v3  ;;  %v11478_v62 = vld [vmem:[#allocation53_spill] sm:$0xff] }
 0x6e8   : > { %4644 = vadd.xlane.f32.xlu1 %v4643_v19  ;;  %v4605_v19 = vmul.f32 %v4541_v46, %v4541_v46  ;;  %v4579_v46 = vsub.f32 %v11476_v12, %v10167_v55 }
 0x6ea   : > { %4677 = vadd.xlane.f32.xlu0 %v4676_v57  ;;  %v11475_v57 = vld [vmem:[#allocation34_spill] sm:$0xff]  ;;  %v4655_v21 = vsel %vm3774_vm13, %v4605_v19, 0.0  ;;  %v4739_v19 = vmul.f32 %v4579_v46, %v4579_v46  ;;  %v11484_v46 = vld [vmem:[#allocation17_spill] sm:$0xff] }
 0x6eb   : > { %v4455_v38 = vpop.xlane.xlu1 %4454 }
 0x6ec   : > { %v4495_v34 = vadd.f32 %v4455_v38, %v11472_v16  ;;  %4772 = vadd.xlane.f32.xlu1 %v4771_v37  ;;  %v4822_v38 = vsel %vm3774_vm13, %v4746_v33, 0.0  ;;  %v4616_v37 = vmul.f32 %v4552_v0, %v4552_v0  ;;  %v4547_v16 = vsub.f32 %v11387_v41, %v10167_v55  ;;  %v11477_v41 = vld [vmem:[#allocation15_spill] sm:$0xff] }
 0x6ed   : > { %v4816_v33 = vsel %vm3774_vm13, %v4744_v2, 0.0  ;;  %v4622_v0 = vmul.f32 %v4558_v40, %v4558_v40 }
 0x6ee   : > { %v10457_v9 = vmul.f32 0.015625, %v4495_v34  ;;  %4805 = vadd.xlane.f32.xlu0 %v4804_v1  ;;  %v4688_v1 = vsel %vm3774_vm13, %v4616_v37, 0.0 }
 0x6ef   : > { %v5065_v4 = vpop.permute.xlu1 %5064  ;;  %v4706_v37 = vsel %vm3774_vm13, %v4622_v0, 0.0 }
 0x6f0   : > { %v5330_v6 = vsub.f32 %v10370_v49, %v10457_v9  ;;  %v10468_v31 = vsel %vm3774_vm13, %v11473_v50, %v5065_v4  ;;  %4662 = vadd.xlane.f32.xlu1 %v4661_v53  ;;  %v4783_v4 = vsel %vm3774_vm13, %v4733_v47, 0.0  ;;  %v4611_v53 = vmul.f32 %v4547_v16, %v4547_v16 }
 0x6f1   : > { %v5765_v48 = vpack.c.bf16 %v10468_v31, %v10468_v31  ;;  %v4801_v47 = vsel %vm3774_vm13, %v4739_v19, 0.0 }
 0x6f2   : > { %4695 = vadd.xlane.f32.xlu0 %v4694_v18  ;;  %v4446_v44 = vpop.xlane.xlu0 %4445 }
 0x6f3   : > { %5296 = vst.msk [vmem:[%s9836_s28 + $0x64] sm:$0xf] %vm5270_vm9, %v5765_v48  ;;  %v4492_v11 = vadd.f32 %v4446_v44, %v11475_v57  ;;  %v4590_v44 = vsub.f32 %v11478_v62, %v10380_v3  ;;  %v4545_v57 = vsub.f32 %v11480_v25, %v11479_v10 }
 0x6f4   : > { %4790 = vadd.xlane.f32.xlu1 %v4789_v5  ;;  %v4673_v5 = vsel %vm3774_vm13, %v4611_v53, 0.0 }
 0x6f5   : > { %v10481_v39 = vmul.f32 0.015625, %v4492_v11  ;;  %v11481_v11 = vld [vmem:[#allocation41_spill] sm:$0xff]  ;;  %v4750_v29 = vmul.f32 %v4590_v44, %v4590_v44  ;;  %v4609_v16 = vmul.f32 %v4545_v57, %v4545_v57  ;;  %v11486_v44 = vld [vmem:[#allocation14_spill] sm:$0xff] }
 0x6f6   : > { %4823 = vadd.xlane.f32.xlu0 %v4822_v38  ;;  %v4464_v28 = vpop.xlane.xlu0 %4463  ;;  %v11487_v57 = vld [vmem:[#allocation6_spill] sm:$0xff] }
 0x6f7   : > { %v5327_v34 = vsub.f32 %v10389_v27, %v10481_v39  ;;  %v4498_v38 = vadd.f32 %v4464_v28, %v11481_v11  ;;  %v11483_v28 = vld [vmem:[#allocation16_spill] sm:$0xff]  ;;  %v4667_v12 = vsel %vm3774_vm13, %v4609_v16, 0.0  ;;  %v4583_v11 = vsub.f32 %v11487_v57, %v11484_v46 }
 0x6f8   : > { %4656 = vadd.xlane.f32.xlu1 %v4655_v21  ;;  %v4556_v21 = vsub.f32 %v11467_v36, %v10481_v39  ;;  %v4588_v53 = vsub.f32 %v11483_v28, %v10481_v39 }
 0x6f9   : > { %v10518_v40 = vmul.f32 0.015625, %v4498_v38  ;;  %v4743_v16 = vmul.f32 %v4583_v11, %v4583_v11  ;;  %v11493_v11 = vld [vmem:[#allocation7_spill] sm:$0xff] }
 0x6fa   : > { %4689 = vadd.xlane.f32.xlu0 %v4688_v1  ;;  %v5071_v13 = vpop.permute.xlu0 %5070  ;;  %v11482_v1 = vld [vmem:[#allocation32_spill] sm:$0xff]  ;;  %v4748_v62 = vmul.f32 %v4588_v53, %v4588_v53 }
 0x6fb   : > { %v10499_v48 = vsel %vm3774_vm13, %v11477_v41, %v5071_v13  ;;  %v4577_v2 = vsub.f32 %v11482_v1, %v11479_v10  ;;  %v4834_v13 = vsel %vm3774_vm13, %v4750_v29, 0.0  ;;  %v11488_v29 = vld [vmem:[#allocation50_spill] sm:$0xff]  ;;  %v11489_v1 = vld [vmem:[#allocation57_spill] sm:$0xff]  ;;  %v4813_v53 = vsel %vm3774_vm13, %v4743_v16, 0.0 }
 0x6fc   : > { %4784 = vadd.xlane.f32.xlu1 %v4783_v4  ;;  %v5768_v18 = vpack.c.bf16 %v10499_v48, %v10499_v48  ;;  %v4620_v4 = vmul.f32 %v4556_v21, %v4556_v21  ;;  %v4828_v38 = vsel %vm3774_vm13, %v4748_v62, 0.0  ;;  %v4594_v21 = vsub.f32 %v11488_v29, %v10518_v40 }
 0x6fd   : > { %v4737_v36 = vmul.f32 %v4577_v2, %v4577_v2  ;;  %v11490_v2 = vld [vmem:[#allocation8_spill] sm:$0xff] }
 0x6fe   : > { %5299 = vst.msk [vmem:[%s9836_s28 + $0x70] sm:$0xf] %vm5270_vm9, %v5768_v18  ;;  %4817 = vadd.xlane.f32.xlu0 %v4816_v33  ;;  %v11485_v18 = vld [vmem:[#allocation20_spill] sm:$0xff]  ;;  %v4700_v0 = vsel %vm3774_vm13, %v4620_v4, 0.0  ;;  %v4754_v28 = vmul.f32 %v4594_v21, %v4594_v21 }
 0x6ff   : > { %v4551_v33 = vsub.f32 %v11485_v18, %v11484_v46  ;;  %v4795_v19 = vsel %vm3774_vm13, %v4737_v36, 0.0  ;;  %v11491_v36 = vld [vmem:[#allocation45_spill] sm:$0xff] }
 0x700   : > { %4674 = vadd.xlane.f32.xlu1 %v4673_v5  ;;  %v4562_v5 = vsub.f32 %v11486_v44, %v10518_v40  ;;  %v4581_v18 = vsub.f32 %v11491_v36, %v11489_v1  ;;  %v11496_v36 = vld [vmem:[#allocation5_spill] sm:$0xff] }
 0x701   : > { %v4615_v25 = vmul.f32 %v4551_v33, %v4551_v33  ;;  %v4846_v33 = vsel %vm3774_vm13, %v4754_v28, 0.0 }
 0x702   : > { %4707 = vadd.xlane.f32.xlu0 %v4706_v37  ;;  %v4626_v37 = vmul.f32 %v4562_v5, %v4562_v5  ;;  %v4741_v62 = vmul.f32 %v4581_v18, %v4581_v18  ;;  %v11492_v5 = vld [vmem:[#allocation46_spill] sm:$0xff]  ;;  %v4585_v18 = vsub.f32 %v11496_v36, %v10361_v23 }
 0x704   : > { %4802 = vadd.xlane.f32.xlu1 %v4801_v47  ;;  %v4685_v47 = vsel %vm3774_vm13, %v4615_v25, 0.0  ;;  %v4718_v4 = vsel %vm3774_vm13, %v4626_v37, 0.0  ;;  %v4807_v25 = vsel %vm3774_vm13, %v4741_v62, 0.0 }
 0x706   : > { %4835 = vadd.xlane.f32.xlu0 %v4834_v13  ;;  %v4549_v13 = vsub.f32 %v11490_v2, %v11489_v1 }
 0x708   : > { %4668 = vadd.xlane.f32.xlu1 %v4667_v12  ;;  %v4613_v12 = vmul.f32 %v4549_v13, %v4549_v13  ;;  %v11495_v13 = vld [vmem:[#allocation39_spill] sm:$0xff] }
 0x70a   : > { %4701 = vadd.xlane.f32.xlu0 %v4700_v0  ;;  %v4679_v0 = vsel %vm3774_vm13, %v4613_v12, 0.0 }
 0x70c   : > { %4796 = vadd.xlane.f32.xlu1 %v4795_v19  ;;  %v4555_v19 = vsub.f32 %v11492_v5, %v10305_v22  ;;  %v4745_v5 = vmul.f32 %v4585_v18, %v4585_v18 }
 0x70e   : > { %4829 = vadd.xlane.f32.xlu0 %v4828_v38  ;;  %v4619_v57 = vmul.f32 %v4555_v19, %v4555_v19  ;;  %v4587_v38 = vsub.f32 %v11493_v11, %v10305_v22  ;;  %v4559_v19 = vsub.f32 %v11465_v14, %v10457_v9  ;;  %v11499_v14 = vld [vmem:[#allocation4_spill] sm:$0xff] }
 0x710   : > { %4686 = vadd.xlane.f32.xlu1 %v4685_v47  ;;  %v4697_v37 = vsel %vm3774_vm13, %v4619_v57, 0.0  ;;  %v4747_v21 = vmul.f32 %v4587_v38, %v4587_v38  ;;  %v11494_v47 = vld [vmem:[#allocation22_spill] sm:$0xff]  ;;  %v11497_v57 = vld [vmem:[#allocation37_spill] sm:$0xff] }
 0x711   : > { %v4553_v16 = vsub.f32 %v11494_v47, %v10361_v23  ;;  %v4819_v47 = vsel %vm3774_vm13, %v4745_v5, 0.0 }
 0x712   : > { %4719 = vadd.xlane.f32.xlu0 %v4718_v4 }
 0x713   : > { %v4617_v12 = vmul.f32 %v4553_v16, %v4553_v16  ;;  %v4623_v16 = vmul.f32 %v4559_v19, %v4559_v19 }
 0x714   : > { %4814 = vadd.xlane.f32.xlu1 %v4813_v53  ;;  %v4825_v53 = vsel %vm3774_vm13, %v4747_v21, 0.0 }
 0x715   : > { %v4691_v62 = vsel %vm3774_vm13, %v4617_v12, 0.0  ;;  %v11500_v12 = vld [vmem:[#allocation38_spill] sm:$0xff]  ;;  %v4709_v18 = vsel %vm3774_vm13, %v4623_v16, 0.0  ;;  %v11501_v16 = vld [vmem:[#allocation12_spill] sm:$0xff] }
 0x716   : > { %4847 = vadd.xlane.f32.xlu0 %v4846_v33 }
 0x718   : > { %4680 = vadd.xlane.f32.xlu1 %v4679_v0 }
 0x71c   : > { %4808 = vadd.xlane.f32.xlu1 %v4807_v25 }
 0x720   : > { %v4449_v2 = vpop.xlane.xlu1 %4448  ;;  %4698 = vadd.xlane.f32.xlu1 %v4697_v37  ;;  %v11498_v37 = vld [vmem:[#allocation52_spill] sm:$0xff] }
 0x721   : > { %v4493_v4 = vadd.f32 %v4449_v2, %v11495_v13  ;;  %v4591_v21 = vsub.f32 %v11498_v37, %v10457_v9 }
 0x723   : > { %v10553_v28 = vmul.f32 0.015625, %v4493_v4  ;;  %v4751_v4 = vmul.f32 %v4591_v21, %v4591_v21 }
 0x724   : > { %v4467_v33 = vpop.xlane.xlu1 %4466  ;;  %4826 = vadd.xlane.f32.xlu1 %v4825_v53 }
 0x725   : > { %v4499_v36 = vadd.f32 %v4467_v33, %v11500_v12  ;;  %v4837_v37 = vsel %vm3774_vm13, %v4751_v4, 0.0  ;;  %v11502_v4 = vld [vmem:[#allocation23_spill] sm:$0xff]  ;;  %v11553_v9 = vsub.f32 %v10468_v31, %v10553_v28 }
 0x727   : > { %v10588_v21 = vmul.f32 0.015625, %v4499_v36 }
 0x728   : > { %v5073_v25 = vpop.permute.xlu1 %5072  ;;  %4692 = vadd.xlane.f32.xlu1 %v4691_v62  ;;  %v4557_v62 = vsub.f32 %v11473_v50, %v10553_v28  ;;  %v4589_v50 = vsub.f32 %v11501_v16, %v10553_v28 }
 0x729   : > { %v10565_v11 = vsel %vm3774_vm13, %v11497_v57, %v5073_v25  ;;  %v4563_v36 = vsub.f32 %v11502_v4, %v10588_v21 }
 0x72a   : > { %v5769_v38 = vpack.c.bf16 %v10565_v11, %v10565_v11 }
 0x72b   : > { %v4458_v2 = vpop.xlane.xlu0 %4457 }
 0x72c   : > { %5300 = vst.msk [vmem:[%s9836_s28 + $0x74] sm:$0xf] %vm5270_vm9, %v5769_v38  ;;  %4820 = vadd.xlane.f32.xlu1 %v4819_v47  ;;  %v4496_v13 = vadd.f32 %v4458_v2, %v11499_v14  ;;  %v4621_v47 = vmul.f32 %v4557_v62, %v4557_v62 }
 0x72e   : > { %v10575_v53 = vmul.f32 0.015625, %v4496_v13 }
 0x72f   : > { %v4636_v25 = vpop.xlane.xlu0 %4635 }
 0x730   : > { %4710 = vadd.xlane.f32.xlu1 %v4709_v18  ;;  %v5331_v5 = vsub.f32 %v10499_v48, %v10575_v53  ;;  %v4560_v19 = vsub.f32 %v11477_v41, %v10575_v53  ;;  %v4592_v38 = vsub.f32 %v11453_v60, %v10575_v53  ;;  %v4703_v18 = vsel %vm3774_vm13, %v4621_v47, 0.0 }
 0x731   : > { %v4749_v60 = vmul.f32 %v4589_v50, %v4589_v50 }
 0x732   : > { %v4624_v33 = vmul.f32 %v4560_v19, %v4560_v19  ;;  %v4752_v12 = vmul.f32 %v4592_v38, %v4592_v38  ;;  %v11503_v38 = vld [vmem:[#allocation56_spill] sm:$0xff] }
 0x733   : > { %v4764_v2 = vpop.xlane.xlu0 %4763 }
 0x734   : > { %4838 = vadd.xlane.f32.xlu1 %v4837_v37  ;;  %v4854_v14 = vadd.f32 %v4764_v2, %v4636_v25  ;;  %v4712_v13 = vsel %vm3774_vm13, %v4624_v33, 0.0  ;;  %v4840_v19 = vsel %vm3774_vm13, %v4752_v12, 0.0  ;;  %v4831_v25 = vsel %vm3774_vm13, %v4749_v60, 0.0 }
 0x735   : > { %4713 = vadd.xlane.f32.xlu0 %v4712_v13  ;;  %v4627_v37 = vmul.f32 %v4563_v36, %v4563_v36  ;;  %v4595_v33 = vsub.f32 %v11503_v38, %v10588_v21  ;;  %v10605_v36 = vld [vmem:[%s10875_s11] ss:$0 sm:$0xff] }
 0x736   : > { %v4886_v41 = vmul.f32 0.015625, %v4854_v14 }
 0x737   : > { %v4630_v0 = vpop.xlane.xlu0 %4629  ;;  %v4721_v2 = vsel %vm3774_vm13, %v4627_v37, 0.0  ;;  %v4755_v14 = vmul.f32 %v4595_v33, %v4595_v33  ;;  %v10613_v37 = vld [vmem:[%s10876_s12] ss:$0 sm:$0xff] }
 0x738   : > { %4704 = vadd.xlane.f32.xlu1 %v4703_v18  ;;  %v4918_v62 = vadd.f32 1e-05, %v4886_v41 }
 0x739   : > { %4841 = vadd.xlane.f32.xlu0 %v4840_v19  ;;  %v4849_v12 = vsel %vm3774_vm13, %v4755_v14, 0.0 }
 0x73a   : > { %6421 = vrsqrt.f32 %v4918_v62  ;;  %v11504_v62 = vld [vmem:[#allocation42_spill] sm:$0xff] }
 0x73b   : > { %v4758_v16 = vpop.xlane.xlu0 %4757  ;;  %v11505_v19 = vsub.f32 %v11504_v62, %v9864_v52 }
 0x73c   : > { %4832 = vadd.xlane.f32.xlu1 %v4831_v25  ;;  %v4852_v47 = vadd.f32 %v4758_v16, %v4630_v0 }
 0x73e   : > { %v4884_v50 = vmul.f32 0.015625, %v4852_v47 }
 0x73f   : > { %v4648_v13 = vpop.xlane.xlu0 %4647 }
 0x740   : > { %4722 = vadd.xlane.f32.xlu1 %v4721_v2  ;;  %v4916_v41 = vadd.f32 1e-05, %v4884_v50 }
 0x742   : > { %6423 = vrsqrt.f32 %v4916_v41  ;;  %v11506_v41 = vld [vmem:[#allocation48_spill] sm:$0xff] }
 0x743   : > { %v4776_v18 = vpop.xlane.xlu0 %4775 }
 0x744   : > { %4850 = vadd.xlane.f32.xlu1 %v4849_v12  ;;  %v6422_v60 = vpop.eup %6421  ;;  %v4858_v0 = vadd.f32 %v4776_v18, %v4648_v13  ;;  %v11507_v12 = vsub.f32 %v11506_v41, %v9901_v54 }
 0x745   : > { %v5337_v25 = vmul.f32 %v6422_v60, %v11505_v19 }
 0x746   : > { %v4890_v33 = vmul.f32 0.015625, %v4858_v0 }
 0x747   : > { %v5375_v16 = vmul.f32 %v10605_v36, %v5337_v25  ;;  %v4642_v47 = vpop.xlane.xlu0 %4641 }
 0x748   : > { %v4922_v50 = vadd.f32 1e-05, %v4890_v33 }
 0x749   : > { %v5413_v52 = vadd.f32 %v10613_v37, %v5375_v16 }
 0x74a   : > { %6425 = vrsqrt.f32 %v4922_v50  ;;  %v11508_v50 = vld [vmem:[#allocation59_spill] sm:$0xff] }
 0x74b   : > { %5445 = vst.msk [vmem:[%s10620_s20 + $0x10] sm:$0xff] %vm582_vm0, %v5413_v52  ;;  %v4770_v2 = vpop.xlane.xlu0 %4769  ;;  %v11509_v54 = vsub.f32 %v11508_v50, %v9935_v30 }
 0x74c   : > { %v6424_v14 = vpop.eup %6423  ;;  %v4856_v13 = vadd.f32 %v4770_v2, %v4642_v47 }
 0x74d   : > { %v5335_v18 = vmul.f32 %v6424_v14, %v11507_v12 }
 0x74e   : > { %v4888_v60 = vmul.f32 0.015625, %v4856_v13 }
 0x74f   : > { %v5373_v0 = vmul.f32 %v10605_v36, %v5335_v18  ;;  %5074 = vrot.lane.b32.xlu0 %v11488_v29, %s6496_s24  ;;  %v4660_v62 = vpop.xlane.xlu0 %4659  ;;  %v11510_v18 = vld [vmem:[#allocation40_spill] sm:$0xff] }
 0x750   : > { %v4920_v19 = vadd.f32 1e-05, %v4888_v60 }
 0x751   : > { %v5411_v25 = vadd.f32 %v10613_v37, %v5373_v0 }
 0x752   : > { %6427 = vrsqrt.f32 %v4920_v19 }
 0x753   : > { %5443 = vst.msk [vmem:[%s10620_s20] sm:$0xff] %vm582_vm0, %v5411_v25  ;;  %v4788_v33 = vpop.xlane.xlu0 %4787 }
 0x754   : > { %v6426_v16 = vpop.eup %6425  ;;  %v4862_v47 = vadd.f32 %v4788_v33, %v4660_v62  ;;  %v11511_v33 = vld [vmem:[#allocation61_spill] sm:$0xff] }
 0x755   : > { %v5341_v52 = vmul.f32 %v6426_v16, %v11509_v54  ;;  %v11512_v16 = vsub.f32 %v11511_v33, %v9974_v24 }
 0x756   : > { %v4894_v2 = vmul.f32 0.015625, %v4862_v47 }
 0x757   : > { %v5379_v14 = vmul.f32 %v10605_v36, %v5341_v52  ;;  %v4654_v13 = vpop.xlane.xlu0 %4653 }
 0x758   : > { %v4926_v29 = vadd.f32 1e-05, %v4894_v2 }
 0x759   : > { %v4461_v41 = vpop.xlane.xlu1 %4460  ;;  %v5417_v12 = vadd.f32 %v10613_v37, %v5379_v14 }
 0x75a   : > { %v4497_v60 = vadd.f32 %v4461_v41, %v11510_v18  ;;  %6429 = vrsqrt.f32 %v4926_v29 }
 0x75b   : > { %5449 = vst.msk [vmem:[%s10620_s20 + $0x30] sm:$0xff] %vm582_vm0, %v5417_v12  ;;  %v4782_v0 = vpop.xlane.xlu0 %4781 }
 0x75c   : > { %v10642_v19 = vmul.f32 0.015625, %v4497_v60  ;;  %v6428_v62 = vpop.eup %6427  ;;  %v4860_v25 = vadd.f32 %v4782_v0, %v4654_v13 }
 0x75d   : > { %v4639_v30 = vpop.xlane.xlu1 %4638  ;;  %v5339_v47 = vmul.f32 %v6428_v62, %v11512_v16  ;;  %v11513_v16 = vld [vmem:[#allocation63_spill] sm:$0xff] }
 0x75e   : > { %v5332_v50 = vsub.f32 %v10565_v11, %v10642_v19  ;;  %v4561_v54 = vsub.f32 %v11497_v57, %v10642_v19  ;;  %v4593_v52 = vsub.f32 %v11462_v7, %v10642_v19  ;;  %v4892_v2 = vmul.f32 0.015625, %v4860_v25 }
 0x75f   : > { %v5377_v14 = vmul.f32 %v10605_v36, %v5339_v47  ;;  %v4672_v29 = vpop.xlane.xlu0 %4671  ;;  %v11514_v47 = vsub.f32 %v11513_v16, %v10066_v42 }
 0x760   : > { %v4625_v13 = vmul.f32 %v4561_v54, %v4561_v54  ;;  %v4924_v41 = vadd.f32 1e-05, %v4892_v2  ;;  %v4753_v0 = vmul.f32 %v4593_v52, %v4593_v52 }
 0x761   : > { %v4767_v12 = vpop.xlane.xlu1 %4766  ;;  %v5415_v24 = vadd.f32 %v10613_v37, %v5377_v14 }
 0x762   : > { %v4855_v18 = vadd.f32 %v4767_v12, %v4639_v30  ;;  %v4715_v60 = vsel %vm3774_vm13, %v4625_v13, 0.0  ;;  %6431 = vrsqrt.f32 %v4924_v41  ;;  %v4843_v30 = vsel %vm3774_vm13, %v4753_v0, 0.0 }
 0x763   : > { %4716 = vadd.xlane.f32.xlu1 %v4715_v60  ;;  %5447 = vst.msk [vmem:[%s10620_s20 + $0x20] sm:$0xff] %vm582_vm0, %v5415_v24  ;;  %v4800_v57 = vpop.xlane.xlu0 %4799 }
 0x764   : > { %v4887_v62 = vmul.f32 0.015625, %v4855_v18  ;;  %v6430_v7 = vpop.eup %6429  ;;  %v4866_v25 = vadd.f32 %v4800_v57, %v4672_v29 }
 0x765   : > { %v4633_v33 = vpop.xlane.xlu1 %4632  ;;  %v5345_v54 = vmul.f32 %v6430_v7, %v11514_v47 }
 0x766   : > { %v4919_v2 = vadd.f32 1e-05, %v4887_v62  ;;  %v4898_v14 = vmul.f32 0.015625, %v4866_v25  ;;  %v11515_v62 = vld [vmem:[#allocation65_spill] sm:$0xff] }
 0x767   : > { %4844 = vadd.xlane.f32.xlu1 %v4843_v30  ;;  %v5383_v52 = vmul.f32 %v10605_v36, %v5345_v54  ;;  %v4666_v13 = vpop.xlane.xlu0 %4665  ;;  %v11516_v7 = vsub.f32 %v11515_v62, %v10112_v17  ;;  %v11519_v62 = vld [vmem:[#allocation67_spill] sm:$0xff] }
 0x768   : > { %6433 = vrsqrt.f32 %v4919_v2  ;;  %v4930_v41 = vadd.f32 1e-05, %v4898_v14 }
 0x769   : > { %v4761_v12 = vpop.xlane.xlu1 %4760  ;;  %v5421_v24 = vadd.f32 %v10613_v37, %v5383_v52 }
 0x76a   : > { %v4853_v18 = vadd.f32 %v4761_v12, %v4633_v33  ;;  %6435 = vrsqrt.f32 %v4930_v41  ;;  %v11517_v12 = vld [vmem:[#allocation25_spill] sm:$0xff] }
 0x76b   : > { %5453 = vst.msk [vmem:[%s10620_s20 + $0x50] sm:$0xff] %vm582_vm0, %v5421_v24  ;;  %v4794_v29 = vpop.xlane.xlu0 %4793 }
 0x76c   : > { %v4885_v42 = vmul.f32 0.015625, %v4853_v18  ;;  %v6432_v60 = vpop.eup %6431  ;;  %v4864_v57 = vadd.f32 %v4794_v29, %v4666_v13  ;;  %v11518_v13 = vsub.f32 %v11517_v12, %v9888_v59 }
 0x76d   : > { %v4651_v0 = vpop.xlane.xlu1 %4650  ;;  %v5343_v25 = vmul.f32 %v6432_v60, %v11516_v7  ;;  %v11520_v7 = vsub.f32 %v11519_v62, %v10146_v8 }
 0x76e   : > { %v4917_v16 = vadd.f32 1e-05, %v4885_v42  ;;  %v4896_v47 = vmul.f32 0.015625, %v4864_v57 }
 0x76f   : > { %v5381_v54 = vmul.f32 %v10605_v36, %v5343_v25  ;;  %v4684_v2 = vpop.xlane.xlu0 %4683 }
 0x770   : > { %6437 = vrsqrt.f32 %v4917_v16  ;;  %v4928_v33 = vadd.f32 1e-05, %v4896_v47 }
 0x771   : > { %v4779_v30 = vpop.xlane.xlu1 %4778  ;;  %v5419_v52 = vadd.f32 %v10613_v37, %v5381_v54 }
 0x772   : > { %v6434_v14 = vpop.eup %6433  ;;  %v4859_v41 = vadd.f32 %v4779_v30, %v4651_v0  ;;  %6439 = vrsqrt.f32 %v4928_v33 }
 0x773   : > { %v5338_v24 = vmul.f32 %v6434_v14, %v11518_v13  ;;  %5451 = vst.msk [vmem:[%s10620_s20 + $0x40] sm:$0xff] %vm582_vm0, %v5419_v52  ;;  %v4812_v17 = vpop.xlane.xlu0 %4811  ;;  %v11521_v52 = vld [vmem:[#allocation58_spill] sm:$0xff] }
 0x774   : > { %v4891_v18 = vmul.f32 0.015625, %v4859_v41  ;;  %v6436_v29 = vpop.eup %6435  ;;  %v4870_v60 = vadd.f32 %v4812_v17, %v4684_v2  ;;  %v11522_v41 = vsub.f32 %v11521_v52, %v9922_v58 }
 0x775   : > { %v5376_v42 = vmul.f32 %v10605_v36, %v5338_v24  ;;  %v4645_v57 = vpop.xlane.xlu1 %4644  ;;  %v5349_v25 = vmul.f32 %v6436_v29, %v11520_v7 }
 0x776   : > { %v4923_v0 = vadd.f32 1e-05, %v4891_v18  ;;  %v4902_v16 = vmul.f32 0.015625, %v4870_v60 }
 0x777   : > { %v5414_v59 = vadd.f32 %v10613_v37, %v5376_v42  ;;  %v5387_v47 = vmul.f32 %v10605_v36, %v5349_v25  ;;  %v4678_v54 = vpop.xlane.xlu0 %4677  ;;  %v11523_v42 = vld [vmem:[#allocation69_spill] sm:$0xff] }
 0x778   : > { %6441 = vrsqrt.f32 %v4923_v0  ;;  %5076 = vrot.lane.b32.xlu1 %v11503_v38, %s6496_s24  ;;  %v4934_v2 = vadd.f32 1e-05, %v4902_v16  ;;  %v11524_v60 = vsub.f32 %v11523_v42, %v10180_v20 }
 0x779   : > { %5446 = vst.msk [vmem:[%s10620_s20 + $0x18] sm:$0xff] %vm582_vm0, %v5414_v59  ;;  %v4773_v33 = vpop.xlane.xlu1 %4772  ;;  %v5425_v8 = vadd.f32 %v10613_v37, %v5387_v47 }
 0x77a   : > { %v6438_v30 = vpop.eup %6437  ;;  %v4857_v14 = vadd.f32 %v4773_v33, %v4645_v57  ;;  %6443 = vrsqrt.f32 %v4934_v2  ;;  %v11525_v33 = vld [vmem:[#allocation60_spill] sm:$0xff] }
 0x77b   : > { %v5336_v12 = vmul.f32 %v6438_v30, %v11522_v41  ;;  %5457 = vst.msk [vmem:[%s10620_s20 + $0x70] sm:$0xff] %vm582_vm0, %v5425_v8  ;;  %v4806_v13 = vpop.xlane.xlu0 %4805  ;;  %v11526_v20 = vsub.f32 %v11525_v33, %v9956_v26 }
 0x77c   : > { %v4889_v24 = vmul.f32 0.015625, %v4857_v14  ;;  %v6440_v17 = vpop.eup %6439  ;;  %v4868_v18 = vadd.f32 %v4806_v13, %v4678_v54 }
 0x77d   : > { %v5374_v38 = vmul.f32 %v10605_v36, %v5336_v12  ;;  %v4663_v29 = vpop.xlane.xlu1 %4662  ;;  %v5347_v57 = vmul.f32 %v6440_v17, %v11524_v60 }
 0x77e   : > { %v4921_v62 = vadd.f32 1e-05, %v4889_v24  ;;  %v4900_v7 = vmul.f32 0.015625, %v4868_v18  ;;  %v11527_v24 = vld [vmem:[#allocation71_spill] sm:$0xff] }
 0x77f   : > { %v5412_v58 = vadd.f32 %v10613_v37, %v5374_v38  ;;  %v5385_v25 = vmul.f32 %v10605_v36, %v5347_v57  ;;  %v4696_v0 = vpop.xlane.xlu0 %4695  ;;  %v11528_v17 = vsub.f32 %v11527_v24, %v10214_v61 }
 0x780   : > { %6445 = vrsqrt.f32 %v4921_v62  ;;  %v4932_v59 = vadd.f32 1e-05, %v4900_v7 }
 0x781   : > { %5444 = vst.msk [vmem:[%s10620_s20 + $0x8] sm:$0xff] %vm582_vm0, %v5412_v58  ;;  %v4791_v16 = vpop.xlane.xlu1 %4790  ;;  %v5423_v54 = vadd.f32 %v10613_v37, %v5385_v25 }
 0x782   : > { %v6442_v47 = vpop.eup %6441  ;;  %v4863_v2 = vadd.f32 %v4791_v16, %v4663_v29  ;;  %6447 = vrsqrt.f32 %v4932_v59 }
 0x783   : > { %v5342_v30 = vmul.f32 %v6442_v47, %v11526_v20  ;;  %5455 = vst.msk [vmem:[%s10620_s20 + $0x60] sm:$0xff] %vm582_vm0, %v5423_v54  ;;  %v4824_v8 = vpop.xlane.xlu0 %4823 }
 0x784   : > { %v4895_v14 = vmul.f32 0.015625, %v4863_v2  ;;  %v6444_v52 = vpop.eup %6443  ;;  %v4874_v12 = vadd.f32 %v4824_v8, %v4696_v0  ;;  %v11529_v0 = vld [vmem:[#allocation62_spill] sm:$0xff] }
 0x785   : > { %v5380_v41 = vmul.f32 %v10605_v36, %v5342_v30  ;;  %v4657_v13 = vpop.xlane.xlu1 %4656  ;;  %v5353_v38 = vmul.f32 %v6444_v52, %v11528_v17  ;;  %v11530_v61 = vsub.f32 %v11529_v0, %v10045_v43  ;;  %v11531_v30 = vld [vmem:[#allocation35_spill] sm:$0xff]  ;;  %v11535_v0 = vld [vmem:[#allocation29_spill] sm:$0xff] }
 0x786   : > { %v4927_v18 = vadd.f32 1e-05, %v4895_v14  ;;  %v4906_v29 = vmul.f32 0.015625, %v4874_v12  ;;  %v11532_v8 = vsub.f32 %v11531_v30, %v10248_v56 }
 0x787   : > { %v5418_v26 = vadd.f32 %v10613_v37, %v5380_v41  ;;  %v5391_v42 = vmul.f32 %v10605_v36, %v5353_v38  ;;  %v4690_v60 = vpop.xlane.xlu0 %4689 }
 0x788   : > { %6449 = vrsqrt.f32 %v4927_v18  ;;  %v4938_v57 = vadd.f32 1e-05, %v4906_v29  ;;  %v11533_v29 = vld [vmem:[#allocation64_spill] sm:$0xff] }
 0x789   : > { %5450 = vst.msk [vmem:[%s10620_s20 + $0x38] sm:$0xff] %vm582_vm0, %v5418_v26  ;;  %v4785_v62 = vpop.xlane.xlu1 %4784  ;;  %v5429_v7 = vadd.f32 %v10613_v37, %v5391_v42  ;;  %v11534_v56 = vsub.f32 %v11533_v29, %v10099_v32 }
 0x78a   : > { %v6446_v58 = vpop.eup %6445  ;;  %v4861_v25 = vadd.f32 %v4785_v62, %v4657_v13  ;;  %6451 = vrsqrt.f32 %v4938_v57 }
 0x78b   : > { %v5340_v59 = vmul.f32 %v6446_v58, %v11530_v61  ;;  %5461 = vst.msk [vmem:[%s10620_s20 + $0x90] sm:$0xff] %vm582_vm0, %v5429_v7  ;;  %v4818_v16 = vpop.xlane.xlu0 %4817  ;;  %v11536_v61 = vsub.f32 %v11535_v0, %v10282_v15  ;;  %v11541_v0 = vld [vmem:[#allocation68_spill] sm:$0xff] }
 0x78c   : > { %v4893_v47 = vmul.f32 0.015625, %v4861_v25  ;;  %v6448_v54 = vpop.eup %6447  ;;  %v4872_v33 = vadd.f32 %v4818_v16, %v4690_v60 }
 0x78d   : > { %v5378_v2 = vmul.f32 %v10605_v36, %v5340_v59  ;;  %v4675_v20 = vpop.xlane.xlu1 %4674  ;;  %v5351_v14 = vmul.f32 %v6448_v54, %v11532_v8 }
 0x78e   : > { %v4925_v52 = vadd.f32 1e-05, %v4893_v47  ;;  %v4904_v41 = vmul.f32 0.015625, %v4872_v33 }
 0x78f   : > { %v5416_v43 = vadd.f32 %v10613_v37, %v5378_v2  ;;  %v5389_v12 = vmul.f32 %v10605_v36, %v5351_v14  ;;  %v4708_v13 = vpop.xlane.xlu0 %4707 }
 0x790   : > { %6453 = vrsqrt.f32 %v4925_v52  ;;  %v4936_v24 = vadd.f32 1e-05, %v4904_v41  ;;  %v11537_v52 = vld [vmem:[#allocation66_spill] sm:$0xff] }
 0x791   : > { %5448 = vst.msk [vmem:[%s10620_s20 + $0x28] sm:$0xff] %vm582_vm0, %v5416_v43  ;;  %v4803_v17 = vpop.xlane.xlu1 %4802  ;;  %v5427_v18 = vadd.f32 %v10613_v37, %v5389_v12  ;;  %v11538_v15 = vsub.f32 %v11537_v52, %v10133_v51  ;;  %v11543_v52 = vld [vmem:[#allocation70_spill] sm:$0xff] }
 0x792   : > { %v6450_v38 = vpop.eup %6449  ;;  %v4867_v26 = vadd.f32 %v4803_v17, %v4675_v20  ;;  %6455 = vrsqrt.f32 %v4936_v24 }
 0x793   : > { %v5346_v42 = vmul.f32 %v6450_v38, %v11534_v56  ;;  %5459 = vst.msk [vmem:[%s10620_s20 + $0x80] sm:$0xff] %vm582_vm0, %v5427_v18  ;;  %v4836_v60 = vpop.xlane.xlu0 %4835  ;;  %v11539_v18 = vld [vmem:[#allocation11_spill] sm:$0xff] }
 0x794   : > { %v4899_v57 = vmul.f32 0.015625, %v4867_v26  ;;  %v6452_v62 = vpop.eup %6451  ;;  %v4878_v7 = vadd.f32 %v4836_v60, %v4708_v13  ;;  %v11540_v26 = vsub.f32 %v11539_v18, %v10318_v45  ;;  %v11542_v45 = vsub.f32 %v11541_v0, %v10167_v55 }
 0x795   : > { %v5384_v58 = vmul.f32 %v10605_v36, %v5346_v42  ;;  %v4669_v25 = vpop.xlane.xlu1 %4668  ;;  %v5357_v59 = vmul.f32 %v6452_v62, %v11536_v61 }
 0x796   : > { %v4931_v16 = vadd.f32 1e-05, %v4899_v57  ;;  %v4910_v47 = vmul.f32 0.015625, %v4878_v7 }
 0x797   : > { %v5422_v32 = vadd.f32 %v10613_v37, %v5384_v58  ;;  %v5395_v54 = vmul.f32 %v10605_v36, %v5357_v59  ;;  %v4702_v2 = vpop.xlane.xlu0 %4701 }
 0x798   : > { %6457 = vrsqrt.f32 %v4931_v16  ;;  %v4942_v33 = vadd.f32 1e-05, %v4910_v47 }
 0x799   : > { %5454 = vst.msk [vmem:[%s10620_s20 + $0x58] sm:$0xff] %vm582_vm0, %v5422_v32  ;;  %v4797_v20 = vpop.xlane.xlu1 %4796  ;;  %v5433_v8 = vadd.f32 %v10613_v37, %v5395_v54 }
 0x79a   : > { %v6454_v30 = vpop.eup %6453  ;;  %v4865_v14 = vadd.f32 %v4797_v20, %v4669_v25  ;;  %6459 = vrsqrt.f32 %v4942_v33 }
 0x79b   : > { %v5344_v43 = vmul.f32 %v6454_v30, %v11538_v15  ;;  %5465 = vst.msk [vmem:[%s10620_s20 + $0xb0] sm:$0xff] %vm582_vm0, %v5433_v8  ;;  %v4830_v41 = vpop.xlane.xlu0 %4829  ;;  %v11544_v15 = vsub.f32 %v11543_v52, %v11479_v10 }
 0x79c   : > { %v4897_v12 = vmul.f32 0.015625, %v4865_v14  ;;  %v6456_v13 = vpop.eup %6455  ;;  %v4876_v17 = vadd.f32 %v4830_v41, %v4702_v2 }
 0x79d   : > { %v5382_v24 = vmul.f32 %v10605_v36, %v5344_v43  ;;  %v4687_v38 = vpop.xlane.xlu1 %4686  ;;  %v5355_v29 = vmul.f32 %v6456_v13, %v11540_v26 }
 0x79e   : > { %v4929_v56 = vadd.f32 1e-05, %v4897_v12  ;;  %v4908_v42 = vmul.f32 0.015625, %v4876_v17 }
 0x79f   : > { %v5420_v51 = vadd.f32 %v10613_v37, %v5382_v24  ;;  %v5393_v60 = vmul.f32 %v10605_v36, %v5355_v29  ;;  %v4720_v24 = vpop.xlane.xlu0 %4719 }
 0x7a0   : > { %6461 = vrsqrt.f32 %v4929_v56  ;;  %v4940_v57 = vadd.f32 1e-05, %v4908_v42  ;;  %v11545_v56 = vld [vmem:[#allocation73_spill] sm:$0xff] }
 0x7a1   : > { %5452 = vst.msk [vmem:[%s10620_s20 + $0x48] sm:$0xff] %vm582_vm0, %v5420_v51  ;;  %v4815_v62 = vpop.xlane.xlu1 %4814  ;;  %v5431_v7 = vadd.f32 %v10613_v37, %v5393_v60  ;;  %v11546_v51 = vsub.f32 %v11545_v56, %v11484_v46  ;;  %v11547_v46 = vld [vmem:[#allocation55_spill] sm:$0xff] }
 0x7a2   : > { %v6458_v58 = vpop.eup %6457  ;;  %v4871_v25 = vadd.f32 %v4815_v62, %v4687_v38  ;;  %6463 = vrsqrt.f32 %v4940_v57 }
 0x7a3   : > { %v5350_v61 = vmul.f32 %v6458_v58, %v11542_v45  ;;  %5463 = vst.msk [vmem:[%s10620_s20 + $0xa0] sm:$0xff] %vm582_vm0, %v5431_v7  ;;  %v11548_v45 = vsub.f32 %v11547_v46, %v11489_v1 }
 0x7a4   : > { %v4903_v59 = vmul.f32 0.015625, %v4871_v25  ;;  %v6460_v16 = vpop.eup %6459 }
 0x7a5   : > { %v5388_v32 = vmul.f32 %v10605_v36, %v5350_v61  ;;  %v4681_v47 = vpop.xlane.xlu1 %4680  ;;  %v5361_v54 = vmul.f32 %v6460_v16, %v5329_v35 }
 0x7a6   : > { %v4935_v2 = vadd.f32 1e-05, %v4903_v59 }
 0x7a7   : > { %v5426_v33 = vadd.f32 %v10613_v37, %v5388_v32  ;;  %v5399_v20 = vmul.f32 %v10605_v36, %v5361_v54 }
 0x7a8   : > { %6465 = vrsqrt.f32 %v4935_v2 }
 0x7a9   : > { %5458 = vst.msk [vmem:[%s10620_s20 + $0x78] sm:$0xff] %vm582_vm0, %v5426_v33  ;;  %v4809_v55 = vpop.xlane.xlu1 %4808  ;;  %v5437_v8 = vadd.f32 %v10613_v37, %v5399_v20 }
 0x7aa   : > { %v6462_v30 = vpop.eup %6461  ;;  %v4869_v14 = vadd.f32 %v4809_v55, %v4681_v47 }
 0x7ab   : > { %v5348_v43 = vmul.f32 %v6462_v30, %v11544_v15  ;;  %5469 = vst.msk [vmem:[%s10620_s20 + $0xd0] sm:$0xff] %vm582_vm0, %v5437_v8  ;;  %v11549_v8 = vld [vmem:[#allocation74_spill] sm:$0xff] }
 0x7ac   : > { %v4901_v63 = vmul.f32 0.015625, %v4869_v14  ;;  %v6464_v3 = vpop.eup %6463  ;;  %v11550_v1 = vsub.f32 %v11549_v8, %v10305_v22 }
 0x7ad   : > { %v5386_v35 = vmul.f32 %v10605_v36, %v5348_v43  ;;  %v4699_v41 = vpop.xlane.xlu1 %4698  ;;  %v5359_v12 = vmul.f32 %v6464_v3, %v5327_v34  ;;  %v4848_v34 = vpop.xlane.xlu0 %4847 }
 0x7ae   : > { %v4933_v13 = vadd.f32 1e-05, %v4901_v63  ;;  %v4882_v58 = vadd.f32 %v4848_v34, %v4720_v24 }
 0x7af   : > { %v5424_v17 = vadd.f32 %v10613_v37, %v5386_v35  ;;  %v5397_v38 = vmul.f32 %v10605_v36, %v5359_v12 }
 0x7b0   : > { %6467 = vrsqrt.f32 %v4933_v13  ;;  %v4914_v59 = vmul.f32 0.015625, %v4882_v58 }
 0x7b1   : > { %5456 = vst.msk [vmem:[%s10620_s20 + $0x68] sm:$0xff] %vm582_vm0, %v5424_v17  ;;  %v4827_v10 = vpop.xlane.xlu1 %4826  ;;  %v5435_v26 = vadd.f32 %v10613_v37, %v5397_v38  ;;  %v11551_v38 = vld [vmem:[#allocation21_spill] sm:$0xff] }
 0x7b2   : > { %v6466_v18 = vpop.eup %6465  ;;  %v4875_v29 = vadd.f32 %v4827_v10, %v4699_v41  ;;  %v4946_v33 = vadd.f32 1e-05, %v4914_v59  ;;  %v11552_v10 = vsub.f32 %v11551_v38, %v10361_v23 }
 0x7b3   : > { %v5354_v27 = vmul.f32 %v6466_v18, %v11546_v51  ;;  %5467 = vst.msk [vmem:[%s10620_s20 + $0xc0] sm:$0xff] %vm582_vm0, %v5435_v26 }
 0x7b4   : > { %v4907_v39 = vmul.f32 0.015625, %v4875_v29 }
 0x7b5   : > { %v5392_v42 = vmul.f32 %v10605_v36, %v5354_v27  ;;  %v4693_v60 = vpop.xlane.xlu1 %4692 }
 0x7b6   : > { %v4939_v57 = vadd.f32 1e-05, %v4907_v39 }
 0x7b7   : > { %v5430_v62 = vadd.f32 %v10613_v37, %v5392_v42 }
 0x7b8   : > { %6469 = vrsqrt.f32 %v4939_v57 }
 0x7b9   : > { %5462 = vst.msk [vmem:[%s10620_s20 + $0x98] sm:$0xff] %vm582_vm0, %v5430_v62  ;;  %v4821_v7 = vpop.xlane.xlu1 %4820 }
 0x7ba   : > { %v6468_v25 = vpop.eup %6467  ;;  %v4873_v0 = vadd.f32 %v4821_v7, %v4693_v60 }
 0x7bb   : > { %v5352_v61 = vmul.f32 %v6468_v25, %v11548_v45 }
 0x7bc   : > { %v4905_v16 = vmul.f32 0.015625, %v4873_v0 }
 0x7bd   : > { %v5390_v32 = vmul.f32 %v10605_v36, %v5352_v61  ;;  %v4711_v47 = vpop.xlane.xlu1 %4710 }
 0x7be   : > { %v4937_v54 = vadd.f32 1e-05, %v4905_v16 }
 0x7bf   : > { %v5428_v2 = vadd.f32 %v10613_v37, %v5390_v32 }
 0x7c0   : > { %6471 = vrsqrt.f32 %v4937_v54 }
 0x7c1   : > { %5460 = vst.msk [vmem:[%s10620_s20 + $0x88] sm:$0xff] %vm582_vm0, %v5428_v2  ;;  %v4839_v20 = vpop.xlane.xlu1 %4838  ;;  %6473 = vrsqrt.f32 %v4946_v33 }
 0x7c2   : > { %v6470_v55 = vpop.eup %6469  ;;  %v4879_v30 = vadd.f32 %v4839_v20, %v4711_v47  ;;  %v4714_v52 = vpop.xlane.xlu0 %4713 }
 0x7c3   : > { %v5358_v14 = vmul.f32 %v6470_v55, %v11550_v1 }
 0x7c4   : > { %v4911_v15 = vmul.f32 0.015625, %v4879_v30 }
 0x7c5   : > { %v5396_v43 = vmul.f32 %v10605_v36, %v5358_v14  ;;  %v4705_v63 = vpop.xlane.xlu1 %4704 }
 0x7c6   : > { %v4943_v3 = vadd.f32 1e-05, %v4911_v15  ;;  %v4842_v41 = vpop.xlane.xlu0 %4841 }
 0x7c7   : > { %v5434_v35 = vadd.f32 %v10613_v37, %v5396_v43  ;;  %v4880_v12 = vadd.f32 %v4842_v41, %v4714_v52 }
 0x7c8   : > { %6475 = vrsqrt.f32 %v4943_v3 }
 0x7c9   : > { %5466 = vst.msk [vmem:[%s10620_s20 + $0xb8] sm:$0xff] %vm582_vm0, %v5434_v35  ;;  %v4833_v13 = vpop.xlane.xlu1 %4832  ;;  %v4912_v17 = vmul.f32 0.015625, %v4880_v12 }
 0x7ca   : > { %v6472_v24 = vpop.eup %6471  ;;  %v4877_v22 = vadd.f32 %v4833_v13, %v4705_v63  ;;  %v5075_v26 = vpop.permute.xlu0 %5074 }
 0x7cb   : > { %v5356_v18 = vmul.f32 %v6472_v24, %v11552_v10  ;;  %v4944_v29 = vadd.f32 1e-05, %v4912_v17  ;;  %v5140_v56 = vsel %vm3774_vm13, %v11486_v44, %v5075_v26  ;;  %v6474_v42 = vpop.eup %6473 }
 0x7cc   : > { %v4909_v51 = vmul.f32 0.015625, %v4877_v22  ;;  %v5770_v39 = vpack.c.bf16 %v5140_v56, %v5140_v56  ;;  %v5333_v34 = vsub.f32 %v5140_v56, %v10518_v40 }
 0x7cd   : > { %v5394_v27 = vmul.f32 %v10605_v36, %v5356_v18  ;;  %6477 = vrsqrt.f32 %v4944_v29  ;;  %v4723_v61 = vpop.xlane.xlu1 %4722 }
 0x7ce   : > { %v4941_v60 = vadd.f32 1e-05, %v4909_v51  ;;  %5301 = vst.msk [vmem:[%s9836_s28 + $0x78] sm:$0xf] %vm5270_vm9, %v5770_v39  ;;  %v5365_v57 = vmul.f32 %v6474_v42, %v5333_v34 }
 0x7cf   : > { %v5432_v23 = vadd.f32 %v10613_v37, %v5394_v27 }
 0x7d0   : > { %6479 = vrsqrt.f32 %v4941_v60  ;;  %v5403_v44 = vmul.f32 %v10605_v36, %v5365_v57 }
 0x7d1   : > { %5464 = vst.msk [vmem:[%s10620_s20 + $0xa8] sm:$0xff] %vm582_vm0, %v5432_v23  ;;  %v4851_v48 = vpop.xlane.xlu1 %4850 }
 0x7d2   : > { %v6476_v62 = vpop.eup %6475  ;;  %v5441_v58 = vadd.f32 %v10613_v37, %v5403_v44  ;;  %v4883_v53 = vadd.f32 %v4851_v48, %v4723_v61 }
 0x7d3   : > { %v5362_v40 = vmul.f32 %v6476_v62, %v5330_v6 }
 0x7d4   : > { %5473 = vst.msk [vmem:[%s10620_s20 + $0xf0] sm:$0xff] %vm582_vm0, %v5441_v58 }
 0x7d5   : > { %v5400_v7 = vmul.f32 %v10605_v36, %v5362_v40 }
 0x7d7   : > { %v5438_v25 = vadd.f32 %v10613_v37, %v5400_v7  ;;  %v6478_v0 = vpop.eup %6477 }
 0x7d8   : > { %v5363_v46 = vmul.f32 %v6478_v0, %v5331_v5  ;;  %v4915_v5 = vmul.f32 0.015625, %v4883_v53 }
 0x7d9   : > { %5470 = vst.msk [vmem:[%s10620_s20 + $0xd8] sm:$0xff] %vm582_vm0, %v5438_v25 }
 0x7da   : > { %v6480_v45 = vpop.eup %6479  ;;  %v5401_v49 = vmul.f32 %v10605_v36, %v5363_v46  ;;  %v4947_v47 = vadd.f32 1e-05, %v4915_v5 }
 0x7db   : > { %v5360_v6 = vmul.f32 %v6480_v45, %v11553_v9 }
 0x7dc   : > { %v5439_v59 = vadd.f32 %v10613_v37, %v5401_v49  ;;  %6481 = vrsqrt.f32 %v4947_v47 }
 0x7dd   : > { %v5398_v16 = vmul.f32 %v10605_v36, %v5360_v6 }
 0x7de   : > { %5471 = vst.msk [vmem:[%s10620_s20 + $0xe0] sm:$0xff] %vm582_vm0, %v5439_v59 }
 0x7df   : > { %v5436_v32 = vadd.f32 %v10613_v37, %v5398_v16 }
 0x7e1   : > { %5468 = vst.msk [vmem:[%s10620_s20 + $0xc8] sm:$0xff] %vm582_vm0, %v5436_v32 }
 0x7e6   : > { %v6482_v1 = vpop.eup %6481 }
 0x7f0   : > { %v4717_v54 = vpop.xlane.xlu1 %4716 }
 0x7f4   : > { %v4845_v31 = vpop.xlane.xlu1 %4844 }
 0x7f5   : > { %v4881_v28 = vadd.f32 %v4845_v31, %v4717_v54 }
 0x7f7   : > { %v4913_v2 = vmul.f32 0.015625, %v4881_v28 }
 0x7f8   : > { %v5077_v33 = vpop.permute.xlu1 %5076 }
 0x7f9   : > { %v4945_v20 = vadd.f32 1e-05, %v4913_v2  ;;  %v5141_v55 = vsel %vm3774_vm13, %v11502_v4, %v5077_v33 }
 0x7fa   : > { %v5771_v30 = vpack.c.bf16 %v5141_v55, %v5141_v55  ;;  %v5334_v8 = vsub.f32 %v5141_v55, %v10588_v21 }
 0x7fb   : > { %6483 = vrsqrt.f32 %v4945_v20 }
 0x7fc   : > { %5302 = vst.msk [vmem:[%s9836_s28 + $0x7c] sm:$0xf] %vm5270_vm9, %v5771_v30  ;;  %v5366_v14 = vmul.f32 %v6482_v1, %v5334_v8 }
 0x7fe   : > { %v5404_v52 = vmul.f32 %v10605_v36, %v5366_v14 }
 0x800   : > { %v5442_v15 = vadd.f32 %v10613_v37, %v5404_v52 }
 0x802   : > { %5474 = vst.msk [vmem:[%s10620_s20 + $0xf8] sm:$0xff] %vm582_vm0, %v5442_v15 }
 0x805   : > { %v6484_v43 = vpop.eup %6483 }
 0x806   : > { %v5364_v63 = vmul.f32 %v6484_v43, %v5332_v50 }
 0x808   : > { %v5402_v4 = vmul.f32 %v10605_v36, %v5364_v63 }
 0x80a   : > { %v5440_v21 = vadd.f32 %v10613_v37, %v5402_v4 }
 0x80c   : > { %5472 = vst.msk [vmem:[%s10620_s20 + $0xe8] sm:$0xff] %vm582_vm0, %v5440_v21 }
 0x80d PF: > { %s26_s18 = sadd.s32 1, %s6494_s18  }
 0x80e   : > { %p23_p4 = scmp.ge.s32.totalorder %s26_s18, 4  }
 0x810   :  { %25 = sbr.rel (!%p23_p4) target bundleno = 1 (0x1), region = 129 }

</bundles_post_ra>
